<compile_context>
chip_gen: v7x
topology: tpu7x:2x2x1
jax: 0.10.0
libtpu: 0.0.40
codegen_flags: <defaults>
</compile_context>

<pallas_src>
import functools

import jax
import jax.numpy as jnp
from jax import lax
from jax.experimental import pallas as pl
from jax.experimental.pallas import tpu as pltpu


# ----------------------------------------------------------------------------
# Helpers
# ----------------------------------------------------------------------------

_ROW_ALIGN = 16                      # sublane alignment valid for f32 and bf16
_VMEM_LIMIT = 48 * 1024 * 1024       # explicit scoped-VMEM ceiling (v7x-safe)


def _round_up(x, m):
    return ((x + m - 1) // m) * m


def _pad_axis0(x, target):
    m = x.shape[0]
    if m == target:
        return x
    pad = [(0, target - m)] + [(0, 0)] * (x.ndim - 1)
    return jnp.pad(x, pad)


def _pick_tm(m, tm_max, min_steps=2):
    """Largest row tile <= tm_max, but with >=2 grid steps so both v7x TCs work."""
    tm = min(tm_max, _round_up(m, _ROW_ALIGN))
    if min_steps > 1 and m > _ROW_ALIGN:
        tm = min(tm, _round_up(-(-m // min_steps), _ROW_ALIGN))
    return max(tm, _ROW_ALIGN)


def _const_spec(x):
    nd = x.ndim
    return pl.BlockSpec(x.shape, lambda *_: (0,) * nd)


def _compiler_params_1d():
    return pltpu.CompilerParams(dimension_semantics=("parallel",),
                                vmem_limit_bytes=_VMEM_LIMIT)


# ----------------------------------------------------------------------------
# Pallas kernels
# ----------------------------------------------------------------------------

def _vfe_cnn_kernel(f_ref, inv_ref, w1_ref, b1_ref, w2_ref, b2_ref,
                    vfe_ref, feat_ref):
    # f_ref: (tm, T, 4) f32, inv_ref: (tm, 1) f32
    # w1/w2 bf16, b1/b2 f32.
    # vfe_ref: (tm, 4) f32   feat_ref: (tm, C1+C2) bf16  (f1 | f2 packed)
    vfe = jnp.sum(f_ref[...], axis=1) * inv_ref[...]           # XLU sublane reduce
    vfe_ref[...] = vfe
    h1 = jnp.maximum(jnp.dot(vfe.astype(jnp.bfloat16), w1_ref[...],
                             preferred_element_type=jnp.float32) + b1_ref[...], 0.0)
    h2 = jnp.maximum(jnp.dot(h1.astype(jnp.bfloat16), w2_ref[...],
                             preferred_element_type=jnp.float32) + b2_ref[...], 0.0)
    feat_ref[...] = jnp.concatenate([h1, h2], axis=-1).astype(jnp.bfloat16)


def _msg_head_kernel(g0_ref, g1_ref, g2_ref, c_ref, bw_ref,
                     w10, b10, w20, b20,
                     w11, b11, w21, b21,
                     w12, b12, w22, b22,
                     hw_ref, hb_ref, out_ref, *, num_cls):
    # g*_ref : (2, tm*S, Cin) bf16 pre-flattened grouped neighbors per MSG stage
    # c_ref  : (tm, 4, Cbev) f32   bw_ref: (tm, 4) f32
    # out_ref: (tm, OUT) f32 lane-dense packed [ feats(96) | head(16) | zeros ]
    tm = c_ref.shape[0]

    pooled = []
    for g_ref, w1_ref, b1_ref, w2_ref, b2_ref in (
            (g0_ref, w10, b10, w20, b20),
            (g1_ref, w11, b11, w21, b21),
            (g2_ref, w12, b12, w22, b22)):
        r_n = g_ref.shape[0]
        s_n = g_ref.shape[1] // tm
        for r in range(r_n):
            x = g_ref[r]                                       # (tm*S, Cin) bf16
            h = jnp.maximum(
                jnp.dot(x, w1_ref[r], preferred_element_type=jnp.float32)
                + b1_ref[r], 0.0)
            h = jnp.maximum(
                jnp.dot(h.astype(jnp.bfloat16), w2_ref[r],
                        preferred_element_type=jnp.float32) + b2_ref[r], 0.0)
            # max-pool over the S neighbors: XLU sublane reduce (VPU stays free)
            pooled.append(jnp.max(h.reshape(tm, s_n, h.shape[1]), axis=1))

    # Bilinear 4-corner weighted sum of the BEV feature volume.
    c = c_ref[...]
    bw = bw_ref[...]
    bev = c[:, 0, :] * bw[:, 0:1]
    for j in range(1, c.shape[1]):
        bev = bev + c[:, j, :] * bw[:, j:j + 1]

    feats = jnp.concatenate(pooled + [bev], axis=-1)           # (tm, 96) f32

    # Fused cls|box head; sigmoid on class columns (EUP exp + approx recip).
    y = jnp.dot(feats.astype(jnp.bfloat16), hw_ref[...],
                preferred_element_type=jnp.float32) + hb_ref[...]
    sig = pl.reciprocal(1.0 + jnp.exp(-y), approx=True)
    col = lax.broadcasted_iota(jnp.int32, y.shape, 1)
    head = jnp.where(col < num_cls, sig, y)

    pad = out_ref.shape[1] - feats.shape[1] - head.shape[1]
    parts = [feats, head]
    if pad:
        parts.append(jnp.zeros((tm, pad), jnp.float32))
    out_ref[...] = jnp.concatenate(parts, axis=-1)


# ----------------------------------------------------------------------------
# Pallas wrappers
# ----------------------------------------------------------------------------

def pallas_vfe_cnn(f_gtc, inv_occ, w1, b1, w2, b2, tm_max=1024):
    """Fused VFE mean + 2-layer linear/ReLU.  Returns (vfe (G,4) f32, f1|f2 bf16)."""
    g_n, t_n, c0 = f_gtc.shape
    c1, c2 = w1.shape[1], w2.shape[1]
    tm = _pick_tm(g_n, tm_max)
    gp = _round_up(g_n, tm)
    vfe_out, feat_out = pl.pallas_call(
        _vfe_cnn_kernel,
        grid=(gp // tm,),
        in_specs=[pl.BlockSpec((tm, t_n, c0), lambda i: (i, 0, 0)),
                  pl.BlockSpec((tm, 1), lambda i: (i, 0)),
                  _const_spec(w1), _const_spec(b1),
                  _const_spec(w2), _const_spec(b2)],
        out_specs=[pl.BlockSpec((tm, c0), lambda i: (i, 0)),
                   pl.BlockSpec((tm, c1 + c2), lambda i: (i, 0))],
        out_shape=(jax.ShapeDtypeStruct((gp, c0), jnp.float32),
                   jax.ShapeDtypeStruct((gp, c1 + c2), jnp.bfloat16)),
        compiler_params=_compiler_params_1d(),
    )(_pad_axis0(f_gtc, gp), _pad_axis0(inv_occ, gp), w1, b1, w2, b2)
    return vfe_out[:g_n], feat_out[:g_n]


def pallas_msg_head(groups, corners, bw, pnets, head_w, head_b, num_cls,
                    tm_max=1024):
    """Fused 3-stage MSG PointNet (6 branches) + BEV bilinear + proposal head.

    groups : list of 3 arrays (2, G, S, Cin_stage) bf16
    corners: (G, 4, Cbev) f32     bw: (G, 4) f32
    pnets  : list of 3 tuples (w1(2,Cin,C1) bf16, b1(2,1,C1) f32,
                               w2(2,C1,C2) bf16, b2(2,1,C2) f32)
    Returns (feats (G, 96) f32, head (G, A + A*DOF) f32).
    """
    g_n, _, cbev = corners.shape
    tm = _pick_tm(g_n, tm_max)
    gp = _round_up(g_n, tm)

    flat_groups, g_specs = [], []
    for g in groups:
        r_n, _, s_n, c_in = g.shape
        if gp != g_n:
            g = jnp.pad(g, ((0, 0), (0, gp - g_n), (0, 0), (0, 0)))
        flat_groups.append(g.reshape(r_n, gp * s_n, c_in))   # pre-flatten: no in-kernel bf16 reshape
        g_specs.append(pl.BlockSpec((r_n, tm * s_n, c_in), lambda i: (0, i, 0)))

    w_in, w_specs = [], []
    feat_dim = cbev
    for (w1, b1, w2, b2) in pnets:
        feat_dim += w2.shape[0] * w2.shape[-1]               # branches * C2
        w_in += [w1, b1, w2, b2]
        w_specs += [_const_spec(w1), _const_spec(b1),
                    _const_spec(w2), _const_spec(b2)]

    head_dim = head_w.shape[1]
    out_cols = _round_up(feat_dim + head_dim, 128)           # lane-dense packed output

    out = pl.pallas_call(
        functools.partial(_msg_head_kernel, num_cls=num_cls),
        grid=(gp // tm,),
        in_specs=(g_specs
                  + [pl.BlockSpec((tm, 4, cbev), lambda i: (i, 0, 0)),
                     pl.BlockSpec((tm, 4), lambda i: (i, 0))]
                  + w_specs
                  + [_const_spec(head_w), _const_spec(head_b)]),
        out_specs=pl.BlockSpec((tm, out_cols), lambda i: (i, 0)),
        out_shape=jax.ShapeDtypeStruct((gp, out_cols), jnp.float32),
        compiler_params=_compiler_params_1d(),
    )(*flat_groups, _pad_axis0(corners, gp), _pad_axis0(bw, gp),
      *w_in, head_w, head_b)

    feats = out[:g_n, :feat_dim]
    head = out[:g_n, feat_dim:feat_dim + head_dim]
    return feats, head


# ----------------------------------------------------------------------------
# JAX glue: ball query grouping (PointNet++ semantics, top_k instead of argsort)
# ----------------------------------------------------------------------------

def ball_query_group(keypoints, xyz, feats, radius, nsample):
    """keypoints (B,K,3), xyz (B,N,3), feats (B,N,C) -> grouped (B,K,S,C+3)."""
    # TODO(synk): at production sizes this gather should move in-kernel via
    # PrefetchScalarGridSpec neighbor indices + manual DMA; kept as XLA glue here.
    b_n, k_n, _ = keypoints.shape
    n = xyz.shape[1]
    d2 = jnp.sum((keypoints[:, :, None, :] - xyz[:, None, :, :]) ** 2, axis=-1)
    within = d2 < radius * radius
    ar = jnp.arange(n, dtype=jnp.int32)
    sortkey = jnp.where(within, ar[None, None, :], n + ar[None, None, :])
    _, order = lax.top_k(-sortkey, nsample)           # O(N*k), same ordering
    order = order.astype(jnp.int32)
    nvalid = within.sum(-1)
    slot = jnp.arange(nsample)
    idx = jnp.where(slot[None, None, :] < nvalid[..., None], order, order[..., :1])
    idx = jnp.where(nvalid[..., None] > 0, idx, 0)    # zero-neighbor fallback
    bidx = jnp.arange(b_n)[:, None, None]
    g_xyz = xyz[bidx, idx] - keypoints[:, :, None, :]          # use_xyz=True
    g_feat = feats[bidx, idx]
    return jnp.concatenate([g_xyz, g_feat.astype(jnp.float32)], axis=-1)


# ----------------------------------------------------------------------------
# Model
# ----------------------------------------------------------------------------

CFG = {
    "NUM_KEYPOINTS": 32,
    "SAMPLES_PN": 8,
    "PSA": {
        "RADII": [[0.5, 1.0], [1.0, 2.0], [2.0, 4.0]],
        "MLPS": [[[1, 8, 8], [1, 8, 8]],
                 [[8, 8, 16], [8, 8, 16]],
                 [[16, 16, 16], [16, 16, 16]]],
    },
    "CNN_CHANNELS": [8, 16],
    "BEV_SHAPE": 16,
    "NUM_CLASSES": 1,
    "NUM_YAW": 2,
    "BOX_DOF": 7,
    "GRID_LOWER": 0.0,
    "GRID_UPPER": 10.0,
}


def _init_linear(key, cin, cout, scale=0.1):
    kw, kb = jax.random.split(key)
    # Weights pre-cast to bf16 (halves weight DMA, removes per-step casts);
    # biases stay f32 so bias-add / ReLU remain pure f32 VPU ops (v5e-safe).
    w = (scale * jax.random.normal(kw, (cin, cout), jnp.float32)).astype(jnp.bfloat16)
    b = scale * jax.random.normal(kb, (1, cout), jnp.float32)
    return w, b


class PVRCNNPallas:
    def __init__(self, cfg, key):
        self.cfg = cfg
        # Row-tile ceiling.  Largest per-step block (grouped MSG input) at
        # tm=1024 is ~1.2 MiB/buffer — trivially inside the explicit 48 MiB
        # scoped-VMEM limit even with double buffering on v7x (64 MiB phys).
        self.tm = 1024
        self.lower = cfg["GRID_LOWER"]
        self.bev_pitch = (cfg["GRID_UPPER"] - cfg["GRID_LOWER"]) / cfg["BEV_SHAPE"]
        self.params = self._init_params(key)

    def _init_params(self, key):
        keys = iter(jax.random.split(key, 64))
        params = {}
        cnn, cin = [], 4
        for cout in self.cfg["CNN_CHANNELS"]:
            cnn.append(_init_linear(next(keys), cin, cout))
            cin = cout
        params["cnn"] = cnn
        pnets = []
        for stage_mlps in self.cfg["PSA"]["MLPS"]:
            w1s, b1s, w2s, b2s = [], [], [], []
            for mlp in stage_mlps:            # branches of a stage share dims
                c0 = mlp[0] + 3               # use_xyz=True
                w1, b1 = _init_linear(next(keys), c0, mlp[1])
                w2, b2 = _init_linear(next(keys), mlp[1], mlp[2])
                w1s.append(w1); b1s.append(b1); w2s.append(w2); b2s.append(b2)
            pnets.append((jnp.stack(w1s), jnp.stack(b1s),
                          jnp.stack(w2s), jnp.stack(b2s)))
        params["pnets"] = pnets
        ctot = sum(m[-1] for stage in self.cfg["PSA"]["MLPS"] for m in stage)
        ctot += self.cfg["CNN_CHANNELS"][-1]
        a = self.cfg["NUM_CLASSES"] * self.cfg["NUM_YAW"]
        wc, bc = _init_linear(next(keys), ctot, a)
        wb, bb = _init_linear(next(keys), ctot, a * self.cfg["BOX_DOF"])
        # Fused cls|box head: single lane-dense matmul output.
        params["head_w"] = jnp.concatenate([wc, wb], axis=1)   # bf16
        params["head_b"] = jnp.concatenate([bc, bb], axis=1)   # f32
        return params

    # ----- preprocessor -------------------------------------------------------
    def preprocess(self, item):
        # TODO(synk): hash-based dynamic voxelization of the original preprocessor
        # is host-side glue; points are grouped into fixed-size voxels here.
        pts = item["points"]                              # (B, N, 4)
        b_n, n, c = pts.shape
        t = self.cfg["SAMPLES_PN"]
        v = n // t
        item = dict(item)
        item["voxel_points"] = pts.reshape(b_n, v, t, c)
        item["occupancy"] = jnp.full((b_n, v), float(t), jnp.float32)
        return item

    # ----- fused VoxelFeatureExtractor + SparseCNN surrogate -------------------
    def vfe_cnn(self, voxel_points, occupancy):
        # TODO(synk): spconv strided/submanifold sparse 3D convolution has no Pallas
        # equivalent; replaced by a fused per-voxel 2-layer linear+ReLU projection
        # with stride-2 voxel subsampling between strides.
        b_n, v, t, c = voxel_points.shape
        f = voxel_points.reshape(b_n * v, t, c)
        inv_occ = (1.0 / jnp.maximum(occupancy, 1.0)).reshape(b_n * v, 1)
        (w1, b1), (w2, b2) = self.params["cnn"]
        vfe_out, feat = pallas_vfe_cnn(f, inv_occ, w1, b1, w2, b2, tm_max=self.tm)
        c1 = w1.shape[1]
        vfe_out = vfe_out.reshape(b_n, v, c)
        f1 = feat[:, :c1].reshape(b_n, v, c1)              # bf16
        f2 = feat[:, c1:].reshape(b_n, v, -1)              # bf16
        return vfe_out, f1, f2

    def _to_bev(self, xyz, feat):
        b_n, v, c = feat.shape
        ny = nx = self.cfg["BEV_SHAPE"]
        iy = jnp.clip(jnp.floor((xyz[..., 1] - self.lower) / self.bev_pitch),
                      0, ny - 1).astype(jnp.int32)
        ix = jnp.clip(jnp.floor((xyz[..., 0] - self.lower) / self.bev_pitch),
                      0, nx - 1).astype(jnp.int32)
        bidx = jnp.broadcast_to(jnp.arange(b_n)[:, None], (b_n, v))
        bev = jnp.zeros((b_n, ny, nx, c), jnp.float32)
        return bev.at[bidx, iy, ix].add(feat)

    # ----- grouped MSG inputs (glue) -------------------------------------------
    def pnet_groups(self, cnn_out, keypoints):
        groups = []
        for (xyz, feats), radii in zip(cnn_out, self.cfg["PSA"]["RADII"]):
            per_r = []
            for radius in radii:
                g = ball_query_group(keypoints, xyz, feats, radius,
                                     self.cfg["SAMPLES_PN"])   # (B,K,S,Cin)
                b_n, k_n, s_n, c_in = g.shape
                per_r.append(g.reshape(b_n * k_n, s_n, c_in))
            # (2, G, S, Cin) bf16 — the matmul would cast to bf16 anyway.
            groups.append(jnp.stack(per_r, 0).astype(jnp.bfloat16))
        return groups

    # ----- BEV corner gather (glue) ----------------------------------------------
    def _bev_corners(self, bev, keypoints):
        b_n, ny, nx, c = bev.shape
        k_n = keypoints.shape[1]
        u = (keypoints[..., 0] - self.lower) / self.bev_pitch - 0.5
        v = (keypoints[..., 1] - self.lower) / self.bev_pitch - 0.5
        u0f, v0f = jnp.floor(u), jnp.floor(v)
        du, dv = u - u0f, v - v0f
        u0 = u0f.astype(jnp.int32)
        v0 = v0f.astype(jnp.int32)
        u0c = jnp.clip(u0, 0, nx - 1)
        u1c = jnp.clip(u0 + 1, 0, nx - 1)
        v0c = jnp.clip(v0, 0, ny - 1)
        v1c = jnp.clip(v0 + 1, 0, ny - 1)
        bidx = jnp.broadcast_to(jnp.arange(b_n)[:, None], (b_n, k_n))
        corners = jnp.stack([bev[bidx, v0c, u0c], bev[bidx, v0c, u1c],
                             bev[bidx, v1c, u0c], bev[bidx, v1c, u1c]],
                            axis=2)                                  # (B,K,4,C)
        w = jnp.stack([(1 - du) * (1 - dv), du * (1 - dv),
                       (1 - du) * dv, du * dv], axis=-1)             # (B,K,4)
        return corners, w

    # ----- fused MSG stages + BEV gather + ProposalLayer -------------------------
    def keypoint_head(self, groups, bev, keypoints):
        corners, w = self._bev_corners(bev, keypoints)
        b_n, k_n, _, cbev = corners.shape
        g = b_n * k_n
        a = self.cfg["NUM_CLASSES"] * self.cfg["NUM_YAW"]
        feats, head = pallas_msg_head(
            groups, corners.reshape(g, 4, cbev), w.reshape(g, 4),
            self.params["pnets"], self.params["head_w"], self.params["head_b"],
            num_cls=a, tm_max=self.tm)
        features = feats.reshape(b_n, k_n, -1)
        scores = head[:, :a].reshape(b_n, k_n, a)
        boxes = head[:, a:].reshape(b_n, k_n, a, self.cfg["BOX_DOF"])
        boxes = boxes.at[..., :3].add(keypoints[:, :, None, :])
        # TODO(synk): full anchor decoding, top-k selection and NMS of ProposalLayer
        # are data-dependent and not implemented here.
        return features, boxes, scores

    # ----- full forward ----------------------------------------------------------
    def __call__(self, item, proposals_only=True):
        item = self.preprocess(item)
        vfe_out, f1, f2_full = self.vfe_cnn(item["voxel_points"],
                                            item["occupancy"])       # (B,V,4),(B,V,8),(B,V,16)
        voxel_xyz = vfe_out[..., :3]
        xyz1 = voxel_xyz[:, ::2]
        f2 = f2_full[:, ::2]                       # stride-2 subsample (row-wise layer)
        bev = self._to_bev(xyz1, f2.astype(jnp.float32))   # keep scatter-add in f32
        points = item["points"]
        cnn_out = [(points[..., :3], points[..., 3:]),     # raw stride-1 stage
                   (voxel_xyz, f1),
                   (xyz1, f2)]
        groups = self.pnet_groups(cnn_out, item["keypoints"])
        features, boxes, scores = self.keypoint_head(groups, bev,
                                                     item["keypoints"])
        item.update(dict(proposal_boxes=boxes, proposal_scores=scores,
                         keypoint_features=features))
        if proposals_only:
            return item
        # TODO(synk): RoiGridPool / RefinementLayer path references an undefined
        # `proposals` variable in the original forward; only the proposal path is run.
        return item


# ----------------------------------------------------------------------------
# Demo
# ----------------------------------------------------------------------------

if __name__ == "__main__":
    key = jax.random.PRNGKey(0)
    k_pts, k_int, k_par = jax.random.split(key, 3)

    B = 2
    V, T = 32, 8
    N = V * T                     # 256 points per scene
    K = CFG["NUM_KEYPOINTS"]      # 32 keypoints

    pts_xyz = jax.random.uniform(k_pts, (B, N, 3), jnp.float32, 0.0, 10.0)
    pts_int = jax.random.uniform(k_int, (B, N, 1), jnp.float32)
    points = jnp.concatenate([pts_xyz, pts_int], axis=-1)            # (B, N, 4)
    keypoints = points[:, ::T, :3]                                   # (B, K, 3)

    model = PVRCNNPallas(CFG, k_par)

    @jax.jit
    def forward(points_, keypoints_):
        item = {"points": points_, "keypoints": keypoints_,
                "batch_size": points_.shape[0]}
        out = model(item, proposals_only=True)
        return (out["proposal_boxes"], out["proposal_scores"],
                out["keypoint_features"])

    boxes, scores, feats = forward(points, keypoints)
    jax.block_until_ready((boxes, scores, feats))

    assert feats.shape == (B, K, 96)
    assert scores.shape == (B, K, CFG["NUM_CLASSES"] * CFG["NUM_YAW"])
    assert boxes.shape == (B, K, CFG["NUM_CLASSES"] * CFG["NUM_YAW"],
                           CFG["BOX_DOF"])
    print("KERNEL_OK")
</pallas_src>

<mosaic_0001>
module attributes {stable_mosaic.version = 11 : i64} {
  func.func @_vfe_cnn_kernel(%arg0: i32, %arg1: memref<32x8x4xf32, #tpu.memory_space<vmem>>, %arg2: memref<32x1xf32, #tpu.memory_space<vmem>>, %arg3: memref<4x8xbf16, #tpu.memory_space<vmem>>, %arg4: memref<1x8xf32, #tpu.memory_space<vmem>>, %arg5: memref<8x16xbf16, #tpu.memory_space<vmem>>, %arg6: memref<1x16xf32, #tpu.memory_space<vmem>>, %arg7: memref<32x4xf32, #tpu.memory_space<vmem>>, %arg8: memref<32x24xbf16, #tpu.memory_space<vmem>>) attributes {dimension_semantics = [#tpu.dimension_semantics<parallel>], iteration_bounds = array<i64: 2>, scalar_prefetch = 0 : i64, scratch_operands = 0 : i64, tpu.core_type = #tpu.core_type<tc>, window_params = [{transform_indices = @transform_0, window_bounds = array<i64: 32, 8, 4>}, {transform_indices = @transform_1, window_bounds = array<i64: 32, 1>}, {pipeline_mode = #tpu.pipeline_mode<synchronous>, transform_indices = @transform_2, window_bounds = array<i64: 4, 8>}, {pipeline_mode = #tpu.pipeline_mode<synchronous>, transform_indices = @transform_3, window_bounds = array<i64: 1, 8>}, {pipeline_mode = #tpu.pipeline_mode<synchronous>, transform_indices = @transform_4, window_bounds = array<i64: 8, 16>}, {pipeline_mode = #tpu.pipeline_mode<synchronous>, transform_indices = @transform_5, window_bounds = array<i64: 1, 16>}, {transform_indices = @transform_6, window_bounds = array<i64: 32, 4>}, {transform_indices = @transform_7, window_bounds = array<i64: 32, 24>}]} {
    %c0 = arith.constant 0 : index
    %c0_0 = arith.constant 0 : index
    %c0_1 = arith.constant 0 : index
    %0 = vector.load %arg1[%c0, %c0_0, %c0_1] : memref<32x8x4xf32, #tpu.memory_space<vmem>>, vector<32x8x4xf32>
    %cst = arith.constant dense<0.000000e+00> : vector<32x4xf32>
    %1 = vector.multi_reduction <add>, %0, %cst [1] : vector<32x8x4xf32> to vector<32x4xf32>
    %c0_2 = arith.constant 0 : index
    %c0_3 = arith.constant 0 : index
    %2 = vector.load %arg2[%c0_2, %c0_3] : memref<32x1xf32, #tpu.memory_space<vmem>>, vector<32x1xf32>
    %3 = vector.broadcast %2 : vector<32x1xf32> to vector<32x4xf32>
    %4 = arith.mulf %1, %3 : vector<32x4xf32>
    %c0_4 = arith.constant 0 : index
    %c0_5 = arith.constant 0 : index
    %5 = vector.load %arg7[%c0_4, %c0_5] : memref<32x4xf32, #tpu.memory_space<vmem>>, vector<32x4xf32>
    tpu.vector_store %arg7[%c0_4, %c0_5], %4 {strides = array<i32>} : memref<32x4xf32, #tpu.memory_space<vmem>>, vector<32x4xf32>,
    %6 = arith.truncf %4 : vector<32x4xf32> to vector<32x4xbf16>
    %c0_6 = arith.constant 0 : index
    %c0_7 = arith.constant 0 : index
    %7 = vector.load %arg3[%c0_6, %c0_7] : memref<4x8xbf16, #tpu.memory_space<vmem>>, vector<4x8xbf16>
    %cst_8 = arith.constant dense<0.000000e+00> : vector<32x8xf32>
    %8 = tpu.matmul %6, %7, %cst_8 {dimension_numbers = #tpu.dot_dimension_numbers<[1], [0], [0], [1], [0, 0, 1, 1], [], []>} : vector<32x4xbf16>, vector<4x8xbf16>, vector<32x8xf32> -> vector<32x8xf32>
    %c0_9 = arith.constant 0 : index
    %c0_10 = arith.constant 0 : index
    %9 = vector.load %arg4[%c0_9, %c0_10] : memref<1x8xf32, #tpu.memory_space<vmem>>, vector<1x8xf32>
    %10 = vector.broadcast %9 : vector<1x8xf32> to vector<32x8xf32>
    %11 = arith.addf %8, %10 : vector<32x8xf32>
    %cst_11 = arith.constant 0.000000e+00 : f32
    %12 = vector.broadcast %cst_11 : f32 to vector<32x8xf32>
    %13 = arith.maximumf %11, %12 : vector<32x8xf32>
    %14 = arith.truncf %13 : vector<32x8xf32> to vector<32x8xbf16>
    %c0_12 = arith.constant 0 : index
    %c0_13 = arith.constant 0 : index
    %15 = vector.load %arg5[%c0_12, %c0_13] : memref<8x16xbf16, #tpu.memory_space<vmem>>, vector<8x16xbf16>
    %cst_14 = arith.constant dense<0.000000e+00> : vector<32x16xf32>
    %16 = tpu.matmul %14, %15, %cst_14 {dimension_numbers = #tpu.dot_dimension_numbers<[1], [0], [0], [1], [0, 0, 1, 1], [], []>} : vector<32x8xbf16>, vector<8x16xbf16>, vector<32x16xf32> -> vector<32x16xf32>
    %c0_15 = arith.constant 0 : index
    %c0_16 = arith.constant 0 : index
    %17 = vector.load %arg6[%c0_15, %c0_16] : memref<1x16xf32, #tpu.memory_space<vmem>>, vector<1x16xf32>
    %18 = vector.broadcast %17 : vector<1x16xf32> to vector<32x16xf32>
    %19 = arith.addf %16, %18 : vector<32x16xf32>
    %cst_17 = arith.constant 0.000000e+00 : f32
    %20 = vector.broadcast %cst_17 : f32 to vector<32x16xf32>
    %21 = arith.maximumf %19, %20 : vector<32x16xf32>
    %22 = tpu.concatenate %13, %21 in 1 : vector<32x8xf32>, vector<32x16xf32> -> vector<32x24xf32>
    %23 = arith.truncf %22 : vector<32x24xf32> to vector<32x24xbf16>
    %c0_18 = arith.constant 0 : index
    %c0_19 = arith.constant 0 : index
    %24 = vector.load %arg8[%c0_18, %c0_19] : memref<32x24xbf16, #tpu.memory_space<vmem>>, vector<32x24xbf16>
    tpu.vector_store %arg8[%c0_18, %c0_19], %23 {strides = array<i32>} : memref<32x24xbf16, #tpu.memory_space<vmem>>, vector<32x24xbf16>,
    return
  }
  func.func @transform_0(%arg0: i32) -> (i32, i32, i32) {
    %c0_i32 = arith.constant 0 : i32
    %c0_i32_0 = arith.constant 0 : i32
    %c0_i32_1 = arith.constant 0 : i32
    return %arg0, %c0_i32, %c0_i32_0 : i32, i32, i32
  }
  func.func @transform_1(%arg0: i32) -> (i32, i32) {
    %c0_i32 = arith.constant 0 : i32
    %c0_i32_0 = arith.constant 0 : i32
    return %arg0, %c0_i32 : i32, i32
  }
  func.func @transform_2(%arg0: i32) -> (i32, i32) {
    %c0_i32 = arith.constant 0 : i32
    %c0_i32_0 = arith.constant 0 : i32
    %c0_i32_1 = arith.constant 0 : i32
    return %c0_i32, %c0_i32_0 : i32, i32
  }
  func.func @transform_3(%arg0: i32) -> (i32, i32) {
    %c0_i32 = arith.constant 0 : i32
    %c0_i32_0 = arith.constant 0 : i32
    %c0_i32_1 = arith.constant 0 : i32
    return %c0_i32, %c0_i32_0 : i32, i32
  }
  func.func @transform_4(%arg0: i32) -> (i32, i32) {
    %c0_i32 = arith.constant 0 : i32
    %c0_i32_0 = arith.constant 0 : i32
    %c0_i32_1 = arith.constant 0 : i32
    return %c0_i32, %c0_i32_0 : i32, i32
  }
  func.func @transform_5(%arg0: i32) -> (i32, i32) {
    %c0_i32 = arith.constant 0 : i32
    %c0_i32_0 = arith.constant 0 : i32
    %c0_i32_1 = arith.constant 0 : i32
    return %c0_i32, %c0_i32_0 : i32, i32
  }
  func.func @transform_6(%arg0: i32) -> (i32, i32) {
    %c0_i32 = arith.constant 0 : i32
    %c0_i32_0 = arith.constant 0 : i32
    return %arg0, %c0_i32 : i32, i32
  }
  func.func @transform_7(%arg0: i32) -> (i32, i32) {
    %c0_i32 = arith.constant 0 : i32
    %c0_i32_0 = arith.constant 0 : i32
    return %arg0, %c0_i32 : i32, i32
  }
}

module attributes {stable_mosaic.version = 11 : i64} {
  func.func @_msg_head_kernel(%arg0: i32, %arg1: memref<2x256x4xbf16, #tpu.memory_space<vmem>>, %arg2: memref<2x256x11xbf16, #tpu.memory_space<vmem>>, %arg3: memref<2x256x19xbf16, #tpu.memory_space<vmem>>, %arg4: memref<32x4x16xf32, #tpu.memory_space<vmem>>, %arg5: memref<32x4xf32, #tpu.memory_space<vmem>>, %arg6: memref<2x4x8xbf16, #tpu.memory_space<vmem>>, %arg7: memref<2x1x8xf32, #tpu.memory_space<vmem>>, %arg8: memref<2x8x8xbf16, #tpu.memory_space<vmem>>, %arg9: memref<2x1x8xf32, #tpu.memory_space<vmem>>, %arg10: memref<2x11x8xbf16, #tpu.memory_space<vmem>>, %arg11: memref<2x1x8xf32, #tpu.memory_space<vmem>>, %arg12: memref<2x8x16xbf16, #tpu.memory_space<vmem>>, %arg13: memref<2x1x16xf32, #tpu.memory_space<vmem>>, %arg14: memref<2x19x16xbf16, #tpu.memory_space<vmem>>, %arg15: memref<2x1x16xf32, #tpu.memory_space<vmem>>, %arg16: memref<2x16x16xbf16, #tpu.memory_space<vmem>>, %arg17: memref<2x1x16xf32, #tpu.memory_space<vmem>>, %arg18: memref<96x16xbf16, #tpu.memory_space<vmem>>, %arg19: memref<1x16xf32, #tpu.memory_space<vmem>>, %arg20: memref<32x128xf32, #tpu.memory_space<vmem>>) attributes {dimension_semantics = [#tpu.dimension_semantics<parallel>], iteration_bounds = array<i64: 2>, scalar_prefetch = 0 : i64, scratch_operands = 0 : i64, tpu.core_type = #tpu.core_type<tc>, window_params = [{transform_indices = @transform_0, window_bounds = array<i64: 2, 256, 4>}, {transform_indices = @transform_1, window_bounds = array<i64: 2, 256, 11>}, {transform_indices = @transform_2, window_bounds = array<i64: 2, 256, 19>}, {transform_indices = @transform_3, window_bounds = array<i64: 32, 4, 16>}, {transform_indices = @transform_4, window_bounds = array<i64: 32, 4>}, {pipeline_mode = #tpu.pipeline_mode<synchronous>, transform_indices = @transform_5, window_bounds = array<i64: 2, 4, 8>}, {pipeline_mode = #tpu.pipeline_mode<synchronous>, transform_indices = @transform_6, window_bounds = array<i64: 2, 1, 8>}, {pipeline_mode = #tpu.pipeline_mode<synchronous>, transform_indices = @transform_7, window_bounds = array<i64: 2, 8, 8>}, {pipeline_mode = #tpu.pipeline_mode<synchronous>, transform_indices = @transform_8, window_bounds = array<i64: 2, 1, 8>}, {pipeline_mode = #tpu.pipeline_mode<synchronous>, transform_indices = @transform_9, window_bounds = array<i64: 2, 11, 8>}, {pipeline_mode = #tpu.pipeline_mode<synchronous>, transform_indices = @transform_10, window_bounds = array<i64: 2, 1, 8>}, {pipeline_mode = #tpu.pipeline_mode<synchronous>, transform_indices = @transform_11, window_bounds = array<i64: 2, 8, 16>}, {pipeline_mode = #tpu.pipeline_mode<synchronous>, transform_indices = @transform_12, window_bounds = array<i64: 2, 1, 16>}, {pipeline_mode = #tpu.pipeline_mode<synchronous>, transform_indices = @transform_13, window_bounds = array<i64: 2, 19, 16>}, {pipeline_mode = #tpu.pipeline_mode<synchronous>, transform_indices = @transform_14, window_bounds = array<i64: 2, 1, 16>}, {pipeline_mode = #tpu.pipeline_mode<synchronous>, transform_indices = @transform_15, window_bounds = array<i64: 2, 16, 16>}, {pipeline_mode = #tpu.pipeline_mode<synchronous>, transform_indices = @transform_16, window_bounds = array<i64: 2, 1, 16>}, {pipeline_mode = #tpu.pipeline_mode<synchronous>, transform_indices = @transform_17, window_bounds = array<i64: 96, 16>}, {pipeline_mode = #tpu.pipeline_mode<synchronous>, transform_indices = @transform_18, window_bounds = array<i64: 1, 16>}, {transform_indices = @transform_19, window_bounds = array<i64: 32, 128>}]} {
    %c0 = arith.constant 0 : index
    %c0_0 = arith.constant 0 : index
    %c0_1 = arith.constant 0 : index
    %0 = vector.load %arg1[%c0, %c0_0, %c0_1] : memref<2x256x4xbf16, #tpu.memory_space<vmem>>, vector<1x256x4xbf16>
    %1 = vector.shape_cast %0 : vector<1x256x4xbf16> to vector<256x4xbf16>
    %c0_2 = arith.constant 0 : index
    %c0_3 = arith.constant 0 : index
    %c0_4 = arith.constant 0 : index
    %2 = vector.load %arg6[%c0_2, %c0_3, %c0_4] : memref<2x4x8xbf16, #tpu.memory_space<vmem>>, vector<1x4x8xbf16>
    %3 = vector.shape_cast %2 : vector<1x4x8xbf16> to vector<4x8xbf16>
    %cst = arith.constant dense<0.000000e+00> : vector<256x8xf32>
    %4 = tpu.matmul %1, %3, %cst {dimension_numbers = #tpu.dot_dimension_numbers<[1], [0], [0], [1], [0, 0, 1, 1], [], []>} : vector<256x4xbf16>, vector<4x8xbf16>, vector<256x8xf32> -> vector<256x8xf32>
    %c0_5 = arith.constant 0 : index
    %c0_6 = arith.constant 0 : index
    %c0_7 = arith.constant 0 : index
    %5 = vector.load %arg7[%c0_5, %c0_6, %c0_7] : memref<2x1x8xf32, #tpu.memory_space<vmem>>, vector<1x1x8xf32>
    %6 = vector.shape_cast %5 : vector<1x1x8xf32> to vector<1x8xf32>
    %7 = vector.broadcast %6 : vector<1x8xf32> to vector<256x8xf32>
    %8 = arith.addf %4, %7 : vector<256x8xf32>
    %cst_8 = arith.constant 0.000000e+00 : f32
    %9 = vector.broadcast %cst_8 : f32 to vector<256x8xf32>
    %10 = arith.maximumf %8, %9 : vector<256x8xf32>
    %11 = arith.truncf %10 : vector<256x8xf32> to vector<256x8xbf16>
    %c0_9 = arith.constant 0 : index
    %c0_10 = arith.constant 0 : index
    %c0_11 = arith.constant 0 : index
    %12 = vector.load %arg8[%c0_9, %c0_10, %c0_11] : memref<2x8x8xbf16, #tpu.memory_space<vmem>>, vector<1x8x8xbf16>
    %13 = vector.shape_cast %12 : vector<1x8x8xbf16> to vector<8x8xbf16>
    %cst_12 = arith.constant dense<0.000000e+00> : vector<256x8xf32>
    %14 = tpu.matmul %11, %13, %cst_12 {dimension_numbers = #tpu.dot_dimension_numbers<[1], [0], [0], [1], [0, 0, 1, 1], [], []>} : vector<256x8xbf16>, vector<8x8xbf16>, vector<256x8xf32> -> vector<256x8xf32>
    %c0_13 = arith.constant 0 : index
    %c0_14 = arith.constant 0 : index
    %c0_15 = arith.constant 0 : index
    %15 = vector.load %arg9[%c0_13, %c0_14, %c0_15] : memref<2x1x8xf32, #tpu.memory_space<vmem>>, vector<1x1x8xf32>
    %16 = vector.shape_cast %15 : vector<1x1x8xf32> to vector<1x8xf32>
    %17 = vector.broadcast %16 : vector<1x8xf32> to vector<256x8xf32>
    %18 = arith.addf %14, %17 : vector<256x8xf32>
    %cst_16 = arith.constant 0.000000e+00 : f32
    %19 = vector.broadcast %cst_16 : f32 to vector<256x8xf32>
    %20 = arith.maximumf %18, %19 : vector<256x8xf32>
    %21 = vector.shape_cast %20 : vector<256x8xf32> to vector<32x8x8xf32>
    %cst_17 = arith.constant dense<0xFF800000> : vector<32x8xf32>
    %22 = vector.multi_reduction <maximumf>, %21, %cst_17 [1] : vector<32x8x8xf32> to vector<32x8xf32>
    %c1 = arith.constant 1 : index
    %c0_18 = arith.constant 0 : index
    %c0_19 = arith.constant 0 : index
    %23 = vector.load %arg1[%c1, %c0_18, %c0_19] : memref<2x256x4xbf16, #tpu.memory_space<vmem>>, vector<1x256x4xbf16>
    %24 = vector.shape_cast %23 : vector<1x256x4xbf16> to vector<256x4xbf16>
    %c1_20 = arith.constant 1 : index
    %c0_21 = arith.constant 0 : index
    %c0_22 = arith.constant 0 : index
    %25 = vector.load %arg6[%c1_20, %c0_21, %c0_22] : memref<2x4x8xbf16, #tpu.memory_space<vmem>>, vector<1x4x8xbf16>
    %26 = vector.shape_cast %25 : vector<1x4x8xbf16> to vector<4x8xbf16>
    %cst_23 = arith.constant dense<0.000000e+00> : vector<256x8xf32>
    %27 = tpu.matmul %24, %26, %cst_23 {dimension_numbers = #tpu.dot_dimension_numbers<[1], [0], [0], [1], [0, 0, 1, 1], [], []>} : vector<256x4xbf16>, vector<4x8xbf16>, vector<256x8xf32> -> vector<256x8xf32>
    %c1_24 = arith.constant 1 : index
    %c0_25 = arith.constant 0 : index
    %c0_26 = arith.constant 0 : index
    %28 = vector.load %arg7[%c1_24, %c0_25, %c0_26] : memref<2x1x8xf32, #tpu.memory_space<vmem>>, vector<1x1x8xf32>
    %29 = vector.shape_cast %28 : vector<1x1x8xf32> to vector<1x8xf32>
    %30 = vector.broadcast %29 : vector<1x8xf32> to vector<256x8xf32>
    %31 = arith.addf %27, %30 : vector<256x8xf32>
    %cst_27 = arith.constant 0.000000e+00 : f32
    %32 = vector.broadcast %cst_27 : f32 to vector<256x8xf32>
    %33 = arith.maximumf %31, %32 : vector<256x8xf32>
    %34 = arith.truncf %33 : vector<256x8xf32> to vector<256x8xbf16>
    %c1_28 = arith.constant 1 : index
    %c0_29 = arith.constant 0 : index
    %c0_30 = arith.constant 0 : index
    %35 = vector.load %arg8[%c1_28, %c0_29, %c0_30] : memref<2x8x8xbf16, #tpu.memory_space<vmem>>, vector<1x8x8xbf16>
    %36 = vector.shape_cast %35 : vector<1x8x8xbf16> to vector<8x8xbf16>
    %cst_31 = arith.constant dense<0.000000e+00> : vector<256x8xf32>
    %37 = tpu.matmul %34, %36, %cst_31 {dimension_numbers = #tpu.dot_dimension_numbers<[1], [0], [0], [1], [0, 0, 1, 1], [], []>} : vector<256x8xbf16>, vector<8x8xbf16>, vector<256x8xf32> -> vector<256x8xf32>
    %c1_32 = arith.constant 1 : index
    %c0_33 = arith.constant 0 : index
    %c0_34 = arith.constant 0 : index
    %38 = vector.load %arg9[%c1_32, %c0_33, %c0_34] : memref<2x1x8xf32, #tpu.memory_space<vmem>>, vector<1x1x8xf32>
    %39 = vector.shape_cast %38 : vector<1x1x8xf32> to vector<1x8xf32>
    %40 = vector.broadcast %39 : vector<1x8xf32> to vector<256x8xf32>
    %41 = arith.addf %37, %40 : vector<256x8xf32>
    %cst_35 = arith.constant 0.000000e+00 : f32
    %42 = vector.broadcast %cst_35 : f32 to vector<256x8xf32>
    %43 = arith.maximumf %41, %42 : vector<256x8xf32>
    %44 = vector.shape_cast %43 : vector<256x8xf32> to vector<32x8x8xf32>
    %cst_36 = arith.constant dense<0xFF800000> : vector<32x8xf32>
    %45 = vector.multi_reduction <maximumf>, %44, %cst_36 [1] : vector<32x8x8xf32> to vector<32x8xf32>
    %c0_37 = arith.constant 0 : index
    %c0_38 = arith.constant 0 : index
    %c0_39 = arith.constant 0 : index
    %46 = vector.load %arg2[%c0_37, %c0_38, %c0_39] : memref<2x256x11xbf16, #tpu.memory_space<vmem>>, vector<1x256x11xbf16>
    %47 = vector.shape_cast %46 : vector<1x256x11xbf16> to vector<256x11xbf16>
    %c0_40 = arith.constant 0 : index
    %c0_41 = arith.constant 0 : index
    %c0_42 = arith.constant 0 : index
    %48 = vector.load %arg10[%c0_40, %c0_41, %c0_42] : memref<2x11x8xbf16, #tpu.memory_space<vmem>>, vector<1x11x8xbf16>
    %49 = vector.shape_cast %48 : vector<1x11x8xbf16> to vector<11x8xbf16>
    %cst_43 = arith.constant dense<0.000000e+00> : vector<256x8xf32>
    %50 = tpu.matmul %47, %49, %cst_43 {dimension_numbers = #tpu.dot_dimension_numbers<[1], [0], [0], [1], [0, 0, 1, 1], [], []>} : vector<256x11xbf16>, vector<11x8xbf16>, vector<256x8xf32> -> vector<256x8xf32>
    %c0_44 = arith.constant 0 : index
    %c0_45 = arith.constant 0 : index
    %c0_46 = arith.constant 0 : index
    %51 = vector.load %arg11[%c0_44, %c0_45, %c0_46] : memref<2x1x8xf32, #tpu.memory_space<vmem>>, vector<1x1x8xf32>
    %52 = vector.shape_cast %51 : vector<1x1x8xf32> to vector<1x8xf32>
    %53 = vector.broadcast %52 : vector<1x8xf32> to vector<256x8xf32>
    %54 = arith.addf %50, %53 : vector<256x8xf32>
    %cst_47 = arith.constant 0.000000e+00 : f32
    %55 = vector.broadcast %cst_47 : f32 to vector<256x8xf32>
    %56 = arith.maximumf %54, %55 : vector<256x8xf32>
    %57 = arith.truncf %56 : vector<256x8xf32> to vector<256x8xbf16>
    %c0_48 = arith.constant 0 : index
    %c0_49 = arith.constant 0 : index
    %c0_50 = arith.constant 0 : index
    %58 = vector.load %arg12[%c0_48, %c0_49, %c0_50] : memref<2x8x16xbf16, #tpu.memory_space<vmem>>, vector<1x8x16xbf16>
    %59 = vector.shape_cast %58 : vector<1x8x16xbf16> to vector<8x16xbf16>
    %cst_51 = arith.constant dense<0.000000e+00> : vector<256x16xf32>
    %60 = tpu.matmul %57, %59, %cst_51 {dimension_numbers = #tpu.dot_dimension_numbers<[1], [0], [0], [1], [0, 0, 1, 1], [], []>} : vector<256x8xbf16>, vector<8x16xbf16>, vector<256x16xf32> -> vector<256x16xf32>
    %c0_52 = arith.constant 0 : index
    %c0_53 = arith.constant 0 : index
    %c0_54 = arith.constant 0 : index
    %61 = vector.load %arg13[%c0_52, %c0_53, %c0_54] : memref<2x1x16xf32, #tpu.memory_space<vmem>>, vector<1x1x16xf32>
    %62 = vector.shape_cast %61 : vector<1x1x16xf32> to vector<1x16xf32>
    %63 = vector.broadcast %62 : vector<1x16xf32> to vector<256x16xf32>
    %64 = arith.addf %60, %63 : vector<256x16xf32>
    %cst_55 = arith.constant 0.000000e+00 : f32
    %65 = vector.broadcast %cst_55 : f32 to vector<256x16xf32>
    %66 = arith.maximumf %64, %65 : vector<256x16xf32>
    %67 = vector.shape_cast %66 : vector<256x16xf32> to vector<32x8x16xf32>
    %cst_56 = arith.constant dense<0xFF800000> : vector<32x16xf32>
    %68 = vector.multi_reduction <maximumf>, %67, %cst_56 [1] : vector<32x8x16xf32> to vector<32x16xf32>
    %c1_57 = arith.constant 1 : index
    %c0_58 = arith.constant 0 : index
    %c0_59 = arith.constant 0 : index
    %69 = vector.load %arg2[%c1_57, %c0_58, %c0_59] : memref<2x256x11xbf16, #tpu.memory_space<vmem>>, vector<1x256x11xbf16>
    %70 = vector.shape_cast %69 : vector<1x256x11xbf16> to vector<256x11xbf16>
    %c1_60 = arith.constant 1 : index
    %c0_61 = arith.constant 0 : index
    %c0_62 = arith.constant 0 : index
    %71 = vector.load %arg10[%c1_60, %c0_61, %c0_62] : memref<2x11x8xbf16, #tpu.memory_space<vmem>>, vector<1x11x8xbf16>
    %72 = vector.shape_cast %71 : vector<1x11x8xbf16> to vector<11x8xbf16>
    %cst_63 = arith.constant dense<0.000000e+00> : vector<256x8xf32>
    %73 = tpu.matmul %70, %72, %cst_63 {dimension_numbers = #tpu.dot_dimension_numbers<[1], [0], [0], [1], [0, 0, 1, 1], [], []>} : vector<256x11xbf16>, vector<11x8xbf16>, vector<256x8xf32> -> vector<256x8xf32>
    %c1_64 = arith.constant 1 : index
    %c0_65 = arith.constant 0 : index
    %c0_66 = arith.constant 0 : index
    %74 = vector.load %arg11[%c1_64, %c0_65, %c0_66] : memref<2x1x8xf32, #tpu.memory_space<vmem>>, vector<1x1x8xf32>
    %75 = vector.shape_cast %74 : vector<1x1x8xf32> to vector<1x8xf32>
    %76 = vector.broadcast %75 : vector<1x8xf32> to vector<256x8xf32>
    %77 = arith.addf %73, %76 : vector<256x8xf32>
    %cst_67 = arith.constant 0.000000e+00 : f32
    %78 = vector.broadcast %cst_67 : f32 to vector<256x8xf32>
    %79 = arith.maximumf %77, %78 : vector<256x8xf32>
    %80 = arith.truncf %79 : vector<256x8xf32> to vector<256x8xbf16>
    %c1_68 = arith.constant 1 : index
    %c0_69 = arith.constant 0 : index
    %c0_70 = arith.constant 0 : index
    %81 = vector.load %arg12[%c1_68, %c0_69, %c0_70] : memref<2x8x16xbf16, #tpu.memory_space<vmem>>, vector<1x8x16xbf16>
    %82 = vector.shape_cast %81 : vector<1x8x16xbf16> to vector<8x16xbf16>
    %cst_71 = arith.constant dense<0.000000e+00> : vector<256x16xf32>
    %83 = tpu.matmul %80, %82, %cst_71 {dimension_numbers = #tpu.dot_dimension_numbers<[1], [0], [0], [1], [0, 0, 1, 1], [], []>} : vector<256x8xbf16>, vector<8x16xbf16>, vector<256x16xf32> -> vector<256x16xf32>
    %c1_72 = arith.constant 1 : index
    %c0_73 = arith.constant 0 : index
    %c0_74 = arith.constant 0 : index
    %84 = vector.load %arg13[%c1_72, %c0_73, %c0_74] : memref<2x1x16xf32, #tpu.memory_space<vmem>>, vector<1x1x16xf32>
    %85 = vector.shape_cast %84 : vector<1x1x16xf32> to vector<1x16xf32>
    %86 = vector.broadcast %85 : vector<1x16xf32> to vector<256x16xf32>
    %87 = arith.addf %83, %86 : vector<256x16xf32>
    %cst_75 = arith.constant 0.000000e+00 : f32
    %88 = vector.broadcast %cst_75 : f32 to vector<256x16xf32>
    %89 = arith.maximumf %87, %88 : vector<256x16xf32>
    %90 = vector.shape_cast %89 : vector<256x16xf32> to vector<32x8x16xf32>
    %cst_76 = arith.constant dense<0xFF800000> : vector<32x16xf32>
    %91 = vector.multi_reduction <maximumf>, %90, %cst_76 [1] : vector<32x8x16xf32> to vector<32x16xf32>
    %c0_77 = arith.constant 0 : index
    %c0_78 = arith.constant 0 : index
    %c0_79 = arith.constant 0 : index
    %92 = vector.load %arg3[%c0_77, %c0_78, %c0_79] : memref<2x256x19xbf16, #tpu.memory_space<vmem>>, vector<1x256x19xbf16>
    %93 = vector.shape_cast %92 : vector<1x256x19xbf16> to vector<256x19xbf16>
    %c0_80 = arith.constant 0 : index
    %c0_81 = arith.constant 0 : index
    %c0_82 = arith.constant 0 : index
    %94 = vector.load %arg14[%c0_80, %c0_81, %c0_82] : memref<2x19x16xbf16, #tpu.memory_space<vmem>>, vector<1x19x16xbf16>
    %95 = vector.shape_cast %94 : vector<1x19x16xbf16> to vector<19x16xbf16>
    %cst_83 = arith.constant dense<0.000000e+00> : vector<256x16xf32>
    %96 = tpu.matmul %93, %95, %cst_83 {dimension_numbers = #tpu.dot_dimension_numbers<[1], [0], [0], [1], [0, 0, 1, 1], [], []>} : vector<256x19xbf16>, vector<19x16xbf16>, vector<256x16xf32> -> vector<256x16xf32>
    %c0_84 = arith.constant 0 : index
    %c0_85 = arith.constant 0 : index
    %c0_86 = arith.constant 0 : index
    %97 = vector.load %arg15[%c0_84, %c0_85, %c0_86] : memref<2x1x16xf32, #tpu.memory_space<vmem>>, vector<1x1x16xf32>
    %98 = vector.shape_cast %97 : vector<1x1x16xf32> to vector<1x16xf32>
    %99 = vector.broadcast %98 : vector<1x16xf32> to vector<256x16xf32>
    %100 = arith.addf %96, %99 : vector<256x16xf32>
    %cst_87 = arith.constant 0.000000e+00 : f32
    %101 = vector.broadcast %cst_87 : f32 to vector<256x16xf32>
    %102 = arith.maximumf %100, %101 : vector<256x16xf32>
    %103 = arith.truncf %102 : vector<256x16xf32> to vector<256x16xbf16>
    %c0_88 = arith.constant 0 : index
    %c0_89 = arith.constant 0 : index
    %c0_90 = arith.constant 0 : index
    %104 = vector.load %arg16[%c0_88, %c0_89, %c0_90] : memref<2x16x16xbf16, #tpu.memory_space<vmem>>, vector<1x16x16xbf16>
    %105 = vector.shape_cast %104 : vector<1x16x16xbf16> to vector<16x16xbf16>
    %cst_91 = arith.constant dense<0.000000e+00> : vector<256x16xf32>
    %106 = tpu.matmul %103, %105, %cst_91 {dimension_numbers = #tpu.dot_dimension_numbers<[1], [0], [0], [1], [0, 0, 1, 1], [], []>} : vector<256x16xbf16>, vector<16x16xbf16>, vector<256x16xf32> -> vector<256x16xf32>
    %c0_92 = arith.constant 0 : index
    %c0_93 = arith.constant 0 : index
    %c0_94 = arith.constant 0 : index
    %107 = vector.load %arg17[%c0_92, %c0_93, %c0_94] : memref<2x1x16xf32, #tpu.memory_space<vmem>>, vector<1x1x16xf32>
    %108 = vector.shape_cast %107 : vector<1x1x16xf32> to vector<1x16xf32>
    %109 = vector.broadcast %108 : vector<1x16xf32> to vector<256x16xf32>
    %110 = arith.addf %106, %109 : vector<256x16xf32>
    %cst_95 = arith.constant 0.000000e+00 : f32
    %111 = vector.broadcast %cst_95 : f32 to vector<256x16xf32>
    %112 = arith.maximumf %110, %111 : vector<256x16xf32>
    %113 = vector.shape_cast %112 : vector<256x16xf32> to vector<32x8x16xf32>
    %cst_96 = arith.constant dense<0xFF800000> : vector<32x16xf32>
    %114 = vector.multi_reduction <maximumf>, %113, %cst_96 [1] : vector<32x8x16xf32> to vector<32x16xf32>
    %c1_97 = arith.constant 1 : index
    %c0_98 = arith.constant 0 : index
    %c0_99 = arith.constant 0 : index
    %115 = vector.load %arg3[%c1_97, %c0_98, %c0_99] : memref<2x256x19xbf16, #tpu.memory_space<vmem>>, vector<1x256x19xbf16>
    %116 = vector.shape_cast %115 : vector<1x256x19xbf16> to vector<256x19xbf16>
    %c1_100 = arith.constant 1 : index
    %c0_101 = arith.constant 0 : index
    %c0_102 = arith.constant 0 : index
    %117 = vector.load %arg14[%c1_100, %c0_101, %c0_102] : memref<2x19x16xbf16, #tpu.memory_space<vmem>>, vector<1x19x16xbf16>
    %118 = vector.shape_cast %117 : vector<1x19x16xbf16> to vector<19x16xbf16>
    %cst_103 = arith.constant dense<0.000000e+00> : vector<256x16xf32>
    %119 = tpu.matmul %116, %118, %cst_103 {dimension_numbers = #tpu.dot_dimension_numbers<[1], [0], [0], [1], [0, 0, 1, 1], [], []>} : vector<256x19xbf16>, vector<19x16xbf16>, vector<256x16xf32> -> vector<256x16xf32>
    %c1_104 = arith.constant 1 : index
    %c0_105 = arith.constant 0 : index
    %c0_106 = arith.constant 0 : index
    %120 = vector.load %arg15[%c1_104, %c0_105, %c0_106] : memref<2x1x16xf32, #tpu.memory_space<vmem>>, vector<1x1x16xf32>
    %121 = vector.shape_cast %120 : vector<1x1x16xf32> to vector<1x16xf32>
    %122 = vector.broadcast %121 : vector<1x16xf32> to vector<256x16xf32>
    %123 = arith.addf %119, %122 : vector<256x16xf32>
    %cst_107 = arith.constant 0.000000e+00 : f32
    %124 = vector.broadcast %cst_107 : f32 to vector<256x16xf32>
    %125 = arith.maximumf %123, %124 : vector<256x16xf32>
    %126 = arith.truncf %125 : vector<256x16xf32> to vector<256x16xbf16>
    %c1_108 = arith.constant 1 : index
    %c0_109 = arith.constant 0 : index
    %c0_110 = arith.constant 0 : index
    %127 = vector.load %arg16[%c1_108, %c0_109, %c0_110] : memref<2x16x16xbf16, #tpu.memory_space<vmem>>, vector<1x16x16xbf16>
    %128 = vector.shape_cast %127 : vector<1x16x16xbf16> to vector<16x16xbf16>
    %cst_111 = arith.constant dense<0.000000e+00> : vector<256x16xf32>
    %129 = tpu.matmul %126, %128, %cst_111 {dimension_numbers = #tpu.dot_dimension_numbers<[1], [0], [0], [1], [0, 0, 1, 1], [], []>} : vector<256x16xbf16>, vector<16x16xbf16>, vector<256x16xf32> -> vector<256x16xf32>
    %c1_112 = arith.constant 1 : index
    %c0_113 = arith.constant 0 : index
    %c0_114 = arith.constant 0 : index
    %130 = vector.load %arg17[%c1_112, %c0_113, %c0_114] : memref<2x1x16xf32, #tpu.memory_space<vmem>>, vector<1x1x16xf32>
    %131 = vector.shape_cast %130 : vector<1x1x16xf32> to vector<1x16xf32>
    %132 = vector.broadcast %131 : vector<1x16xf32> to vector<256x16xf32>
    %133 = arith.addf %129, %132 : vector<256x16xf32>
    %cst_115 = arith.constant 0.000000e+00 : f32
    %134 = vector.broadcast %cst_115 : f32 to vector<256x16xf32>
    %135 = arith.maximumf %133, %134 : vector<256x16xf32>
    %136 = vector.shape_cast %135 : vector<256x16xf32> to vector<32x8x16xf32>
    %cst_116 = arith.constant dense<0xFF800000> : vector<32x16xf32>
    %137 = vector.multi_reduction <maximumf>, %136, %cst_116 [1] : vector<32x8x16xf32> to vector<32x16xf32>
    %c0_117 = arith.constant 0 : index
    %c0_118 = arith.constant 0 : index
    %c0_119 = arith.constant 0 : index
    %138 = vector.load %arg4[%c0_117, %c0_118, %c0_119] : memref<32x4x16xf32, #tpu.memory_space<vmem>>, vector<32x4x16xf32>
    %c0_120 = arith.constant 0 : index
    %c0_121 = arith.constant 0 : index
    %139 = vector.load %arg5[%c0_120, %c0_121] : memref<32x4xf32, #tpu.memory_space<vmem>>, vector<32x4xf32>
    %140 = vector.extract_strided_slice %138 {offsets = [0, 0, 0], sizes = [32, 1, 16], strides = [1, 1, 1]} : vector<32x4x16xf32> to vector<32x1x16xf32>
    %141 = vector.shape_cast %140 : vector<32x1x16xf32> to vector<32x16xf32>
    %142 = vector.extract_strided_slice %139 {offsets = [0, 0], sizes = [32, 1], strides = [1, 1]} : vector<32x4xf32> to vector<32x1xf32>
    %143 = vector.broadcast %142 : vector<32x1xf32> to vector<32x16xf32>
    %144 = arith.mulf %141, %143 : vector<32x16xf32>
    %145 = vector.extract_strided_slice %138 {offsets = [0, 1, 0], sizes = [32, 1, 16], strides = [1, 1, 1]} : vector<32x4x16xf32> to vector<32x1x16xf32>
    %146 = vector.shape_cast %145 : vector<32x1x16xf32> to vector<32x16xf32>
    %147 = vector.extract_strided_slice %139 {offsets = [0, 1], sizes = [32, 1], strides = [1, 1]} : vector<32x4xf32> to vector<32x1xf32>
    %148 = vector.broadcast %147 : vector<32x1xf32> to vector<32x16xf32>
    %149 = arith.mulf %146, %148 : vector<32x16xf32>
    %150 = arith.addf %144, %149 : vector<32x16xf32>
    %151 = vector.extract_strided_slice %138 {offsets = [0, 2, 0], sizes = [32, 1, 16], strides = [1, 1, 1]} : vector<32x4x16xf32> to vector<32x1x16xf32>
    %152 = vector.shape_cast %151 : vector<32x1x16xf32> to vector<32x16xf32>
    %153 = vector.extract_strided_slice %139 {offsets = [0, 2], sizes = [32, 1], strides = [1, 1]} : vector<32x4xf32> to vector<32x1xf32>
    %154 = vector.broadcast %153 : vector<32x1xf32> to vector<32x16xf32>
    %155 = arith.mulf %152, %154 : vector<32x16xf32>
    %156 = arith.addf %150, %155 : vector<32x16xf32>
    %157 = vector.extract_strided_slice %138 {offsets = [0, 3, 0], sizes = [32, 1, 16], strides = [1, 1, 1]} : vector<32x4x16xf32> to vector<32x1x16xf32>
    %158 = vector.shape_cast %157 : vector<32x1x16xf32> to vector<32x16xf32>
    %159 = vector.extract_strided_slice %139 {offsets = [0, 3], sizes = [32, 1], strides = [1, 1]} : vector<32x4xf32> to vector<32x1xf32>
    %160 = vector.broadcast %159 : vector<32x1xf32> to vector<32x16xf32>
    %161 = arith.mulf %158, %160 : vector<32x16xf32>
    %162 = arith.addf %156, %161 : vector<32x16xf32>
    %163 = tpu.concatenate %22, %45, %68, %91, %114, %137, %162 in 1 : vector<32x8xf32>, vector<32x8xf32>, vector<32x16xf32>, vector<32x16xf32>, vector<32x16xf32>, vector<32x16xf32>, vector<32x16xf32> -> vector<32x96xf32>
    %164 = arith.truncf %163 : vector<32x96xf32> to vector<32x96xbf16>
    %c0_122 = arith.constant 0 : index
    %c0_123 = arith.constant 0 : index
    %165 = vector.load %arg18[%c0_122, %c0_123] : memref<96x16xbf16, #tpu.memory_space<vmem>>, vector<96x16xbf16>
    %cst_124 = arith.constant dense<0.000000e+00> : vector<32x16xf32>
    %166 = tpu.matmul %164, %165, %cst_124 {dimension_numbers = #tpu.dot_dimension_numbers<[1], [0], [0], [1], [0, 0, 1, 1], [], []>} : vector<32x96xbf16>, vector<96x16xbf16>, vector<32x16xf32> -> vector<32x16xf32>
    %c0_125 = arith.constant 0 : index
    %c0_126 = arith.constant 0 : index
    %167 = vector.load %arg19[%c0_125, %c0_126] : memref<1x16xf32, #tpu.memory_space<vmem>>, vector<1x16xf32>
    %168 = vector.broadcast %167 : vector<1x16xf32> to vector<32x16xf32>
    %169 = arith.addf %166, %168 : vector<32x16xf32>
    %cst_127 = arith.constant 0.000000e+00 : f32
    %170 = vector.broadcast %cst_127 : f32 to vector<32x16xf32>
    %171 = arith.subf %170, %169 : vector<32x16xf32>
    %172 = math.exp %171 : vector<32x16xf32>
    %cst_128 = arith.constant 1.000000e+00 : f32
    %173 = vector.broadcast %cst_128 : f32 to vector<32x16xf32>
    %174 = arith.addf %173, %172 : vector<32x16xf32>
    %175 = tpu.reciprocal %174 {approx = true} : vector<32x16xf32> -> vector<32x16xf32>
    %176 = tpu.iota {dimensions = array<i32: 1>} : vector<32x16xi32>
    %c2_i32 = arith.constant 2 : i32
    %177 = vector.broadcast %c2_i32 : i32 to vector<32x16xi32>
    %178 = arith.cmpi slt, %176, %177 : vector<32x16xi32>
    %179 = arith.select %178, %175, %169 : vector<32x16xi1>, vector<32x16xf32>
    %cst_129 = arith.constant 0.000000e+00 : f32
    %180 = vector.broadcast %cst_129 : f32 to vector<32x16xf32>
    %181 = tpu.concatenate %163, %179, %180 in 1 : vector<32x96xf32>, vector<32x16xf32>, vector<32x16xf32> -> vector<32x128xf32>
    %c0_130 = arith.constant 0 : index
    %c0_131 = arith.constant 0 : index
    %182 = vector.load %arg20[%c0_130, %c0_131] : memref<32x128xf32, #tpu.memory_space<vmem>>, vector<32x128xf32>
    tpu.vector_store %arg20[%c0_130, %c0_131], %181 {strides = array<i32>} : memref<32x128xf32, #tpu.memory_space<vmem>>, vector<32x128xf32>,
    return
  }
  func.func @transform_0(%arg0: i32) -> (i32, i32, i32) {
    %c0_i32 = arith.constant 0 : i32
    %c0_i32_0 = arith.constant 0 : i32
    %c0_i32_1 = arith.constant 0 : i32
    return %c0_i32, %arg0, %c0_i32_0 : i32, i32, i32
  }
  func.func @transform_1(%arg0: i32) -> (i32, i32, i32) {
    %c0_i32 = arith.constant 0 : i32
    %c0_i32_0 = arith.constant 0 : i32
    %c0_i32_1 = arith.constant 0 : i32
    return %c0_i32, %arg0, %c0_i32_0 : i32, i32, i32
  }
  func.func @transform_2(%arg0: i32) -> (i32, i32, i32) {
    %c0_i32 = arith.constant 0 : i32
    %c0_i32_0 = arith.constant 0 : i32
    %c0_i32_1 = arith.constant 0 : i32
    return %c0_i32, %arg0, %c0_i32_0 : i32, i32, i32
  }
  func.func @transform_3(%arg0: i32) -> (i32, i32, i32) {
    %c0_i32 = arith.constant 0 : i32
    %c0_i32_0 = arith.constant 0 : i32
    %c0_i32_1 = arith.constant 0 : i32
    return %arg0, %c0_i32, %c0_i32_0 : i32, i32, i32
  }
  func.func @transform_4(%arg0: i32) -> (i32, i32) {
    %c0_i32 = arith.constant 0 : i32
    %c0_i32_0 = arith.constant 0 : i32
    return %arg0, %c0_i32 : i32, i32
  }
  func.func @transform_5(%arg0: i32) -> (i32, i32, i32) {
    %c0_i32 = arith.constant 0 : i32
    %c0_i32_0 = arith.constant 0 : i32
    %c0_i32_1 = arith.constant 0 : i32
    %c0_i32_2 = arith.constant 0 : i32
    return %c0_i32, %c0_i32_0, %c0_i32_1 : i32, i32, i32
  }
  func.func @transform_6(%arg0: i32) -> (i32, i32, i32) {
    %c0_i32 = arith.constant 0 : i32
    %c0_i32_0 = arith.constant 0 : i32
    %c0_i32_1 = arith.constant 0 : i32
    %c0_i32_2 = arith.constant 0 : i32
    return %c0_i32, %c0_i32_0, %c0_i32_1 : i32, i32, i32
  }
  func.func @transform_7(%arg0: i32) -> (i32, i32, i32) {
    %c0_i32 = arith.constant 0 : i32
    %c0_i32_0 = arith.constant 0 : i32
    %c0_i32_1 = arith.constant 0 : i32
    %c0_i32_2 = arith.constant 0 : i32
    return %c0_i32, %c0_i32_0, %c0_i32_1 : i32, i32, i32
  }
  func.func @transform_8(%arg0: i32) -> (i32, i32, i32) {
    %c0_i32 = arith.constant 0 : i32
    %c0_i32_0 = arith.constant 0 : i32
    %c0_i32_1 = arith.constant 0 : i32
    %c0_i32_2 = arith.constant 0 : i32
    return %c0_i32, %c0_i32_0, %c0_i32_1 : i32, i32, i32
  }
  func.func @transform_9(%arg0: i32) -> (i32, i32, i32) {
    %c0_i32 = arith.constant 0 : i32
    %c0_i32_0 = arith.constant 0 : i32
    %c0_i32_1 = arith.constant 0 : i32
    %c0_i32_2 = arith.constant 0 : i32
    return %c0_i32, %c0_i32_0, %c0_i32_1 : i32, i32, i32
  }
  func.func @transform_10(%arg0: i32) -> (i32, i32, i32) {
    %c0_i32 = arith.constant 0 : i32
    %c0_i32_0 = arith.constant 0 : i32
    %c0_i32_1 = arith.constant 0 : i32
    %c0_i32_2 = arith.constant 0 : i32
    return %c0_i32, %c0_i32_0, %c0_i32_1 : i32, i32, i32
  }
  func.func @transform_11(%arg0: i32) -> (i32, i32, i32) {
    %c0_i32 = arith.constant 0 : i32
    %c0_i32_0 = arith.constant 0 : i32
    %c0_i32_1 = arith.constant 0 : i32
    %c0_i32_2 = arith.constant 0 : i32
    return %c0_i32, %c0_i32_0, %c0_i32_1 : i32, i32, i32
  }
  func.func @transform_12(%arg0: i32) -> (i32, i32, i32) {
    %c0_i32 = arith.constant 0 : i32
    %c0_i32_0 = arith.constant 0 : i32
    %c0_i32_1 = arith.constant 0 : i32
    %c0_i32_2 = arith.constant 0 : i32
    return %c0_i32, %c0_i32_0, %c0_i32_1 : i32, i32, i32
  }
  func.func @transform_13(%arg0: i32) -> (i32, i32, i32) {
    %c0_i32 = arith.constant 0 : i32
    %c0_i32_0 = arith.constant 0 : i32
    %c0_i32_1 = arith.constant 0 : i32
    %c0_i32_2 = arith.constant 0 : i32
    return %c0_i32, %c0_i32_0, %c0_i32_1 : i32, i32, i32
  }
  func.func @transform_14(%arg0: i32) -> (i32, i32, i32) {
    %c0_i32 = arith.constant 0 : i32
    %c0_i32_0 = arith.constant 0 : i32
    %c0_i32_1 = arith.constant 0 : i32
    %c0_i32_2 = arith.constant 0 : i32
    return %c0_i32, %c0_i32_0, %c0_i32_1 : i32, i32, i32
  }
  func.func @transform_15(%arg0: i32) -> (i32, i32, i32) {
    %c0_i32 = arith.constant 0 : i32
    %c0_i32_0 = arith.constant 0 : i32
    %c0_i32_1 = arith.constant 0 : i32
    %c0_i32_2 = arith.constant 0 : i32
    return %c0_i32, %c0_i32_0, %c0_i32_1 : i32, i32, i32
  }
  func.func @transform_16(%arg0: i32) -> (i32, i32, i32) {
    %c0_i32 = arith.constant 0 : i32
    %c0_i32_0 = arith.constant 0 : i32
    %c0_i32_1 = arith.constant 0 : i32
    %c0_i32_2 = arith.constant 0 : i32
    return %c0_i32, %c0_i32_0, %c0_i32_1 : i32, i32, i32
  }
  func.func @transform_17(%arg0: i32) -> (i32, i32) {
    %c0_i32 = arith.constant 0 : i32
    %c0_i32_0 = arith.constant 0 : i32
    %c0_i32_1 = arith.constant 0 : i32
    return %c0_i32, %c0_i32_0 : i32, i32
  }
  func.func @transform_18(%arg0: i32) -> (i32, i32) {
    %c0_i32 = arith.constant 0 : i32
    %c0_i32_0 = arith.constant 0 : i32
    %c0_i32_1 = arith.constant 0 : i32
    return %c0_i32, %c0_i32_0 : i32, i32
  }
  func.func @transform_19(%arg0: i32) -> (i32, i32) {
    %c0_i32 = arith.constant 0 : i32
    %c0_i32_0 = arith.constant 0 : i32
    return %arg0, %c0_i32 : i32, i32
  }
}

</mosaic_0001>

<bundles_post_ra>
// kernel: forward.2
= control target key start
LH: loop header
LB: loop body
LE: loop exit
PB: predicated region body
PF: predicated region fallthrough
CT: control target
= control target key end

     0   :  { %s1354_s24 = smov 0   ;;  %s1764_s0 = inlined_call_operand.vmem [shape: f32[64,8,4], index: 0, kind: input, shape index: {}]   ;;  %s1765_s1 = inlined_call_operand.vmem [shape: f32[64,1], index: 1, kind: input, shape index: {}]   ;;  %s1766_s2 = inlined_call_operand.vmem [shape: bf16[4,8], index: 2, kind: input, shape index: {}]   ;;  %s1767_s3 = inlined_call_operand.vmem [shape: f32[1,8], index: 3, kind: input, shape index: {}]   ;;  %s1768_s4 = inlined_call_operand.vmem [shape: bf16[8,16], index: 4, kind: input, shape index: {}]   ;;  %s1769_s5 = inlined_call_operand.vmem [shape: f32[1,16], index: 5, kind: input, shape index: {}]   ;;  %s1770_s6 = inlined_call_operand.vmem [shape: f32[64,4], index: 6, kind: output, shape index: {0}]   ;;  %s1771_s7 = inlined_call_operand.vmem [shape: bf16[64,24], index: 7, kind: output, shape index: {1}]  }
   0x1 LB: > { %s1233_s25 = sadd.s32 4294967295, %s1310_s24   ;;  %p1237_p0 = scmp.ge.s32.totalorder %s1310_s24, 1  ;;  %s1310_s24 = sphi %s1354_s24, %s18_s24  }
   0x2   : > { %p252_p1 = scmp.lt.s32.totalorder %s1310_s24, 3 }
   0x4   : > { %p253_p2 = pnand %p1237_p0, %p252_p1 }
   0x5   : > { %s1240_s26 = sshll.u32 (!%p253_p2), %s1233_s25, 2  ;;  %v1312_v0 = vmov (!%p253_p2), 0   ;;  %v823_v5 = vld [vmem:[%s1766_s2] sm:$0x3] (!%p253_p2)  ;;  %vm959_vm0 = vcmask (!%p253_p2), 1041408   ;;  %s1238_s10 = sshll.u32 (!%p253_p2), %s1233_s25, 5 }
   0x6   : > { %256 = sbr.rel (%p253_p2) target bundleno = 772 (0x304), region = 44  ;;  %1293 = vset.pattern.permute.xlu1 (!%p253_p2), %v1312_v0  ;;  %1292 = vset.pattern.permute.xlu0 (!%p253_p2), %v1312_v0  ;;  %p301_p3 = scmp.lt.s32.totalorder (!%p253_p2), %s1240_s26, 7  ;;  %v961_v6 = vsel (!%p253_p2), %vm959_vm0, %v823_v5, 0  ;;  %vm351_vm1 = vcmask (!%p253_p2), 31744   ;;  %vm721_vm2 = vcmask (!%p253_p2), 1041409   ;;  %vm724_vm3 = vcmask (!%p253_p2), 1042434  }
   0x7   : > { %1280 = vmatprep.subr.msk.bf16.mxu0 (!%p253_p2), %vm959_vm0, %v823_v5  ;;  %p295_p4 = scmp.lt.s32.totalorder (!%p253_p2), %s1238_s10, 63  ;;  %vm727_vm4 = vcmask (!%p253_p2), 1043459   ;;  %vm730_vm5 = vcmask (!%p253_p2), 1044484   ;;  %vm733_vm6 = vcmask (!%p253_p2), 1045509   ;;  %vm736_vm7 = vcmask (!%p253_p2), 1046534   ;;  %s1313_s25 = smov (!%p253_p2), 8  }
   0x8   : > { %1269 = vmatpush3.bf16.msra.mxu0 (!%p253_p2), %v961_v6  ;;  %vm739_vm8 = vcmask (!%p253_p2), 1047559   ;;  %vm1033_vm9 = vcmask (!%p253_p2), 1043456   ;;  %vm1026_vm10 = vcmask (!%p253_p2), 64512   ;;  %vm1126_vm11 = vcmask (!%p253_p2), 191488  }
   0xd   : > { %s1781_s26 = smov (!%p301_p3, %s1240_s26), 7  ;;  %s1783_s10 = smov (!%p295_p4, %s1238_s10), 63 }
   0xe   : > { %s1241_s27 = sshll.u32 %s1781_s26, 3  ;;  %s1239_s11 = sshll.u32 %s1783_s10, 3 }
   0xf   : > { %s304_s30 = scalar_lea.vmem %s1765_s1, %s1241_s27  ;;  %s1376_s14 = scalar_lea.vmem %s1764_s0, %s1239_s11 }
  0x10   : > { %v578_v1 = vld [vmem:[%s304_s30 + $0x10] sm:$0xff]  ;;  %v576_v2 = vld [vmem:[%s304_s30] sm:$0xff]  ;;  %v579_v3 = vld [vmem:[%s304_s30 + $0x18] sm:$0xff]  ;;  %s1633_s17 = scalar_lea.vmem %s1770_s6, %s1241_s27  ;;  %s1245_s27 = sshll.u32 %s1781_s26, 2 }
  0x11   : > { %590 = vperm.xlu1 %1293, %v578_v1   ;;  %582 = vperm.xlu0 %1292, %v576_v2   ;;  %v577_v4 = vld [vmem:[%s304_s30 + $0x8] sm:$0xff]  ;;  %v335_v7 = vld [vmem:[%s1376_s14 + $0x80] sm:$0xff]  ;;  %v337_v9 = vld [vmem:[%s1376_s14 + $0x90] sm:$0xff]  ;;  %s316_s30 = scalar_lea.vmem %s1771_s7, %s1245_s27 }
  0x12   : > { %v336_v8 = vld [vmem:[%s1376_s14 + $0x88] sm:$0xff]  ;;  %v338_v10 = vld [vmem:[%s1376_s14 + $0x98] sm:$0xff]  ;;  %v464_v11 = vsel %vm351_vm1, %v335_v7, 0.0  ;;  %v478_v13 = vsel %vm351_vm1, %v337_v9, 0.0  ;;  %v339_v14 = vld [vmem:[%s1376_s14 + $0xa0] sm:$0xff] }
  0x13   : > { %v471_v12 = vsel %vm351_vm1, %v336_v8, 0.0  ;;  %v465_v15 = vrot.slane %v464_v11, 4  ;;  %v485_v16 = vsel %vm351_vm1, %v338_v10, 0.0  ;;  %v319_v18 = vld [vmem:[%s1376_s14] sm:$0xff]  ;;  %v320_v19 = vld [vmem:[%s1376_s14 + $0x8] sm:$0xff]  ;;  %v479_v21 = vrot.slane %v478_v13, 4 }
  0x14   : > { %v472_v17 = vrot.slane %v471_v12, 4  ;;  %v343_v20 = vld [vmem:[%s1376_s14 + $0xc0] sm:$0xff]  ;;  %v344_v22 = vld [vmem:[%s1376_s14 + $0xc8] sm:$0xff]  ;;  %v345_v23 = vld [vmem:[%s1376_s14 + $0xd0] sm:$0xff]  ;;  %v486_v25 = vrot.slane %v485_v16, 4  ;;  %v492_v26 = vsel %vm351_vm1, %v339_v14, 0.0 }
  0x15   : > { %594 = vperm.xlu1 %1293, %v579_v3   ;;  %586 = vperm.xlu0 %1292, %v577_v4   ;;  %v346_v24 = vld [vmem:[%s1376_s14 + $0xd8] sm:$0xff]  ;;  %v347_v27 = vld [vmem:[%s1376_s14 + $0xe0] sm:$0xff]  ;;  %v466_v29 = vadd.f32 %v465_v15, %v464_v11  ;;  %v352_v30 = vsel %vm351_vm1, %v319_v18, 0.0  ;;  %v359_v31 = vsel %vm351_vm1, %v320_v19, 0.0  ;;  %v520_v32 = vsel %vm351_vm1, %v343_v20, 0.0  ;;  %v328_v33 = vld [vmem:[%s1376_s14 + $0x48] sm:$0xff] }
  0x16   : > { %v327_v28 = vld [vmem:[%s1376_s14 + $0x40] sm:$0xff]  ;;  %v473_v34 = vadd.f32 %v472_v17, %v471_v12  ;;  %v527_v35 = vsel %vm351_vm1, %v344_v22, 0.0  ;;  %v534_v36 = vsel %vm351_vm1, %v345_v23, 0.0  ;;  %v541_v37 = vsel %vm351_vm1, %v346_v24, 0.0  ;;  %v321_v46 = vld [vmem:[%s1376_s14 + $0x10] sm:$0xff]  ;;  %v322_v2 = vld [vmem:[%s1376_s14 + $0x18] sm:$0xff] }
  0x17   : > { %v480_v38 = vadd.f32 %v479_v21, %v478_v13  ;;  %v493_v39 = vrot.slane %v492_v26, 4  ;;  %v548_v40 = vsel %vm351_vm1, %v347_v27, 0.0  ;;  %v408_v41 = vsel %vm351_vm1, %v327_v28, 0.0 }
  0x18   : > { %v353_v42 = vrot.slane %v352_v30, 4  ;;  %v360_v43 = vrot.slane %v359_v31, 4  ;;  %v521_v44 = vrot.slane %v520_v32, 4  ;;  %v415_v45 = vsel %vm351_vm1, %v328_v33, 0.0 }
  0x19   : > { %v487_v47 = vadd.f32 %v486_v25, %v485_v16  ;;  %v528_v48 = vrot.slane %v527_v35, 4  ;;  %v535_v49 = vrot.slane %v534_v36, 4  ;;  %v542_v50 = vrot.slane %v541_v37, 4 }
  0x1a   : > { %v467_v51 = vrot.slane %v466_v29, 2  ;;  %v474_v52 = vrot.slane %v473_v34, 2  ;;  %v549_v53 = vrot.slane %v548_v40, 4  ;;  %v409_v54 = vrot.slane %v408_v41, 4 }
  0x1b   : > { %v481_v55 = vrot.slane %v480_v38, 2  ;;  %v494_v56 = vadd.f32 %v493_v39, %v492_v26  ;;  %v416_v57 = vrot.slane %v415_v45, 4  ;;  %v366_v58 = vsel %vm351_vm1, %v321_v46, 0.0 }
  0x1c   : > { %v354_v59 = vadd.f32 %v353_v42, %v352_v30  ;;  %v361_v60 = vadd.f32 %v360_v43, %v359_v31  ;;  %v522_v61 = vadd.f32 %v521_v44, %v520_v32  ;;  %v488_v62 = vrot.slane %v487_v47, 2  ;;  %v324_v43 = vld [vmem:[%s1376_s14 + $0x28] sm:$0xff] }
  0x1d   : > { %v529_v63 = vadd.f32 %v528_v48, %v527_v35  ;;  %v536_v0 = vadd.f32 %v535_v49, %v534_v36  ;;  %v543_v1 = vadd.f32 %v542_v50, %v541_v37  ;;  %v468_v3 = vadd.f32 %v467_v51, %v466_v29  ;;  %v323_v35 = vld [vmem:[%s1376_s14 + $0x20] sm:$0xff] }
  0x1e   : > { %v550_v4 = vadd.f32 %v549_v53, %v548_v40  ;;  %v410_v5 = vadd.f32 %v409_v54, %v408_v41  ;;  %v367_v6 = vrot.slane %v366_v58, 4  ;;  %v475_v7 = vadd.f32 %v474_v52, %v473_v34 }
  0x1f   : > { %v482_v8 = vadd.f32 %v481_v55, %v480_v38  ;;  %v495_v9 = vrot.slane %v494_v56, 2  ;;  %v417_v10 = vadd.f32 %v416_v57, %v415_v45  ;;  %v355_v11 = vrot.slane %v354_v59, 2 }
  0x20   : > { %v362_v12 = vrot.slane %v361_v60, 2  ;;  %v523_v13 = vrot.slane %v522_v61, 2  ;;  %v373_v14 = vsel %vm351_vm1, %v322_v2, 0.0  ;;  %v489_v15 = vadd.f32 %v488_v62, %v487_v47  ;;  %v326_v2 = vld [vmem:[%s1376_s14 + $0x38] sm:$0xff] }
  0x21   : > { %v530_v16 = vrot.slane %v529_v63, 2  ;;  %v537_v17 = vrot.slane %v536_v0, 2  ;;  %v544_v18 = vrot.slane %v543_v1, 2  ;;  %v469_v19 = vrot.slane %v468_v3, 1 }
  0x22   : > { %v551_v20 = vrot.slane %v550_v4, 2  ;;  %v411_v21 = vrot.slane %v410_v5, 2  ;;  %v368_v22 = vadd.f32 %v367_v6, %v366_v58  ;;  %v476_v23 = vrot.slane %v475_v7, 1 }
  0x23   : > { %v496_v24 = vadd.f32 %v495_v9, %v494_v56  ;;  %v418_v25 = vrot.slane %v417_v10, 2  ;;  %v374_v26 = vrot.slane %v373_v14, 4  ;;  %v483_v27 = vrot.slane %v482_v8, 1  ;;  %v332_v9 = vld [vmem:[%s1376_s14 + $0x68] sm:$0xff] }
  0x24   : > { %v356_v28 = vadd.f32 %v355_v11, %v354_v59  ;;  %v363_v29 = vadd.f32 %v362_v12, %v361_v60  ;;  %v524_v30 = vadd.f32 %v523_v13, %v522_v61  ;;  %v490_v31 = vrot.slane %v489_v15, 1  ;;  %v325_v59 = vld [vmem:[%s1376_s14 + $0x30] sm:$0xff] }
  0x25   : > { %v531_v32 = vadd.f32 %v530_v16, %v529_v63  ;;  %v538_v33 = vadd.f32 %v537_v17, %v536_v0  ;;  %v545_v34 = vadd.f32 %v544_v18, %v543_v1  ;;  %v1411_v36 = vadd.f32 %v469_v19, %v468_v3  ;;  %v329_v3 = vld [vmem:[%s1376_s14 + $0x50] sm:$0xff] }
  0x26   : > { %v552_v37 = vadd.f32 %v551_v20, %v550_v4  ;;  %v412_v38 = vadd.f32 %v411_v21, %v410_v5  ;;  %v369_v39 = vrot.slane %v368_v22, 2  ;;  %v1413_v40 = vadd.f32 %v476_v23, %v475_v7  ;;  %v330_v7 = vld [vmem:[%s1376_s14 + $0x58] sm:$0xff]  ;;  %v333_v13 = vld [vmem:[%s1376_s14 + $0x70] sm:$0xff]  ;;  %v340_v21 = vld [vmem:[%s1376_s14 + $0xa8] sm:$0xff] }
  0x27   : > { %v497_v41 = vrot.slane %v496_v24, 1  ;;  %v419_v42 = vadd.f32 %v418_v25, %v417_v10  ;;  %v375_v44 = vadd.f32 %v374_v26, %v373_v14  ;;  %v357_v45 = vrot.slane %v356_v28, 1  ;;  %v334_v14 = vld [vmem:[%s1376_s14 + $0x78] sm:$0xff] }
  0x28   : > { %v364_v46 = vrot.slane %v363_v29, 1  ;;  %v525_v47 = vrot.slane %v524_v30, 1  ;;  %v380_v48 = vsel %vm351_vm1, %v323_v35, 0.0  ;;  %v1417_v49 = vadd.f32 %v483_v27, %v482_v8  ;;  %v331_v8 = vld [vmem:[%s1376_s14 + $0x60] sm:$0xff]  ;;  %v349_v35 = vld [vmem:[%s1376_s14 + $0xf0] sm:$0xff] }
  0x29   : > { %v532_v50 = vrot.slane %v531_v32, 1  ;;  %v539_v51 = vrot.slane %v538_v33, 1  ;;  %v546_v52 = vrot.slane %v545_v34, 1  ;;  %v553_v53 = vrot.slane %v552_v37, 1 }
  0x2a   : > { %v413_v54 = vrot.slane %v412_v38, 1  ;;  %v370_v55 = vadd.f32 %v369_v39, %v368_v22  ;;  %v387_v56 = vsel %vm351_vm1, %v324_v43, 0.0  ;;  %v1420_v57 = vadd.f32 %v490_v31, %v489_v15  ;;  %v341_v22 = vld [vmem:[%s1376_s14 + $0xb0] sm:$0xff]  ;;  %v342_v31 = vld [vmem:[%s1376_s14 + $0xb8] sm:$0xff] }
  0x2b   : > { %v420_v58 = vrot.slane %v419_v42, 1  ;;  %v376_v60 = vrot.slane %v375_v44, 2  ;;  %v381_v61 = vrot.slane %v380_v48, 4  ;;  %v1423_v62 = vadd.f32 %v497_v41, %v496_v24 }
  0x2c   : > { %v1425_v63 = vadd.f32 %v357_v45, %v356_v28  ;;  %v1427_v0 = vadd.f32 %v364_v46, %v363_v29  ;;  %v1429_v1 = vadd.f32 %v525_v47, %v524_v30  ;;  %v1433_v4 = vadd.f32 %v532_v50, %v531_v32  ;;  %v348_v32 = vld [vmem:[%s1376_s14 + $0xe8] sm:$0xff] }
  0x2d   : > { %v1435_v5 = vadd.f32 %v539_v51, %v538_v33  ;;  %v1437_v6 = vadd.f32 %v546_v52, %v545_v34  ;;  %v388_v10 = vrot.slane %v387_v56, 4  ;;  %v1442_v11 = vadd.f32 %v553_v53, %v552_v37  ;;  %v350_v37 = vld [vmem:[%s1376_s14 + $0xf8] sm:$0xff] }
  0x2e   : > { %v1444_v12 = vadd.f32 %v413_v54, %v412_v38  ;;  %v371_v15 = vrot.slane %v370_v55, 1  ;;  %v394_v16 = vsel %vm351_vm1, %v325_v59, 0.0  ;;  %v1449_v17 = vadd.f32 %v420_v58, %v419_v42 }
  0x2f   : > { %v377_v18 = vadd.f32 %v376_v60, %v375_v44  ;;  %v1451_v19 = vadd.f32 %v381_v61, %v380_v48  ;;  %v401_v20 = vsel %vm351_vm1, %v326_v2, 0.0  ;;  %v422_v23 = vsel %vm351_vm1, %v329_v3, 0.0 }
  0x30   : > { %v429_v24 = vsel %vm351_vm1, %v330_v7, 0.0  ;;  %v436_v25 = vsel %vm351_vm1, %v331_v8, 0.0  ;;  %v443_v26 = vsel %vm351_vm1, %v332_v9, 0.0  ;;  %v389_v27 = vadd.f32 %v388_v10, %v387_v56 }
  0x31   : > { %v395_v28 = vrot.slane %v394_v16, 4  ;;  %v450_v29 = vsel %vm351_vm1, %v333_v13, 0.0  ;;  %v457_v30 = vsel %vm351_vm1, %v334_v14, 0.0  ;;  %v1464_v33 = vadd.f32 %v371_v15, %v370_v55 }
  0x32   : > { %v402_v34 = vrot.slane %v401_v20, 4  ;;  %v499_v38 = vsel %vm351_vm1, %v340_v21, 0.0  ;;  %v506_v39 = vsel %vm351_vm1, %v341_v22, 0.0  ;;  %v423_v41 = vrot.slane %v422_v23, 4 }
  0x33   : > { %v430_v42 = vrot.slane %v429_v24, 4  ;;  %v437_v43 = vrot.slane %v436_v25, 4  ;;  %v444_v44 = vrot.slane %v443_v26, 4  ;;  %v451_v45 = vrot.slane %v450_v29, 4 }
  0x34   : > { %v458_v46 = vrot.slane %v457_v30, 4  ;;  %v513_v47 = vsel %vm351_vm1, %v342_v31, 0.0  ;;  %v555_v48 = vsel %vm351_vm1, %v348_v32, 0.0  ;;  %v500_v50 = vrot.slane %v499_v38, 4 }
  0x35   : > { %v507_v51 = vrot.slane %v506_v39, 4  ;;  %v562_v52 = vsel %vm351_vm1, %v349_v35, 0.0  ;;  %v569_v53 = vsel %vm351_vm1, %v350_v37, 0.0  ;;  %v378_v54 = vrot.slane %v377_v18, 1 }
  0x36   : > { %v383_v55 = vrot.slane %v1451_v19, 2  ;;  %v396_v56 = vadd.f32 %v395_v28, %v394_v16  ;;  %v403_v58 = vadd.f32 %v402_v34, %v401_v20  ;;  %v424_v59 = vadd.f32 %v423_v41, %v422_v23 }
  0x37   : > { %v431_v60 = vadd.f32 %v430_v42, %v429_v24  ;;  %v514_v61 = vrot.slane %v513_v47, 4  ;;  %v556_v2 = vrot.slane %v555_v48, 4  ;;  %v438_v3 = vadd.f32 %v437_v43, %v436_v25 }
  0x38   : > { %v445_v7 = vadd.f32 %v444_v44, %v443_v26  ;;  %v563_v8 = vrot.slane %v562_v52, 4  ;;  %v570_v9 = vrot.slane %v569_v53, 4  ;;  %v452_v10 = vadd.f32 %v451_v45, %v450_v29 }
  0x39   : > { %v459_v13 = vadd.f32 %v458_v46, %v457_v30  ;;  %v501_v14 = vadd.f32 %v500_v50, %v499_v38  ;;  %v508_v15 = vadd.f32 %v507_v51, %v506_v39  ;;  %v1475_v21 = vadd.f32 %v378_v54, %v377_v18 }
  0x3a   : > { %v390_v22 = vrot.slane %v389_v27, 2  ;;  %v397_v31 = vrot.slane %v396_v56, 2  ;;  %v404_v32 = vrot.slane %v403_v58, 2  ;;  %v425_v35 = vrot.slane %v424_v59, 2 }
  0x3b   : > { %v432_v16 = vrot.slane %v431_v60, 2  ;;  %v515_v20 = vadd.f32 %v514_v61, %v513_v47  ;;  %v557_v23 = vadd.f32 %v556_v2, %v555_v48  ;;  %v439_v24 = vrot.slane %v438_v3, 2 }
  0x3c   : > { %v446_v28 = vrot.slane %v445_v7, 2  ;;  %v564_v34 = vadd.f32 %v563_v8, %v562_v52  ;;  %v571_v25 = vadd.f32 %v570_v9, %v569_v53  ;;  %v453_v26 = vrot.slane %v452_v10, 2 }
  0x3d   : > { %v460_v37 = vrot.slane %v459_v13, 2  ;;  %v502_v41 = vrot.slane %v501_v14, 2  ;;  %v509_v29 = vrot.slane %v508_v15, 2  ;;  %v384_v30 = vadd.f32 %v383_v55, %v1451_v19 }
  0x3e   : > { %v391_v38 = vadd.f32 %v390_v22, %v389_v27  ;;  %v398_v18 = vadd.f32 %v397_v31, %v396_v56  ;;  %v405_v39 = vadd.f32 %v404_v32, %v403_v58  ;;  %v426_v42 = vadd.f32 %v425_v35, %v424_v59 }
  0x3f   : > { %v433_v43 = vadd.f32 %v432_v16, %v431_v60  ;;  %v516_v44 = vrot.slane %v515_v20, 2  ;;  %v558_v45 = vrot.slane %v557_v23, 2  ;;  %v440_v46 = vadd.f32 %v439_v24, %v438_v3 }
  0x40   : > { %v447_v47 = vadd.f32 %v446_v28, %v445_v7  ;;  %v565_v48 = vrot.slane %v564_v34, 2  ;;  %v572_v50 = vrot.slane %v571_v25, 2  ;;  %v454_v51 = vadd.f32 %v453_v26, %v452_v10 }
  0x41   : > { %v461_v52 = vadd.f32 %v460_v37, %v459_v13  ;;  %v503_v53 = vadd.f32 %v502_v41, %v501_v14  ;;  %v510_v54 = vadd.f32 %v509_v29, %v508_v15  ;;  %v385_v61 = vrot.slane %v384_v30, 1 }
  0x42   : > { %v392_v2 = vrot.slane %v391_v38, 1  ;;  %v399_v8 = vrot.slane %v398_v18, 1  ;;  %v406_v9 = vrot.slane %v405_v39, 1  ;;  %v427_v19 = vrot.slane %v426_v42, 1 }
  0x43   : > { %v434_v27 = vrot.slane %v433_v43, 1  ;;  %v517_v55 = vadd.f32 %v516_v44, %v515_v20  ;;  %v559_v56 = vadd.f32 %v558_v45, %v557_v23  ;;  %v441_v58 = vrot.slane %v440_v46, 1 }
  0x44   : > { %v448_v59 = vrot.slane %v447_v47, 1  ;;  %v566_v60 = vadd.f32 %v565_v48, %v564_v34  ;;  %v573_v22 = vadd.f32 %v572_v50, %v571_v25  ;;  %v455_v3 = vrot.slane %v454_v51, 1 }
  0x45   : > { %v462_v7 = vrot.slane %v461_v52, 1  ;;  %v504_v31 = vrot.slane %v503_v53, 1  ;;  %v511_v10 = vrot.slane %v510_v54, 1  ;;  %v1478_v13 = vadd.f32 %v385_v61, %v384_v30 }
  0x46   : > { %v1480_v14 = vadd.f32 %v392_v2, %v391_v38  ;;  %v1482_v15 = vadd.f32 %v399_v8, %v398_v18  ;;  %v1484_v32 = vadd.f32 %v406_v9, %v405_v39  ;;  %v1486_v35 = vadd.f32 %v427_v19, %v426_v42 }
  0x47   : > { %v1488_v16 = vadd.f32 %v434_v27, %v433_v43  ;;  %v518_v20 = vrot.slane %v517_v55, 1  ;;  %v560_v23 = vrot.slane %v559_v56, 1  ;;  %v1490_v24 = vadd.f32 %v441_v58, %v440_v46 }
  0x48   : > { %v1492_v28 = vadd.f32 %v448_v59, %v447_v47  ;;  %v567_v34 = vrot.slane %v566_v60, 1  ;;  %v574_v25 = vrot.slane %v573_v22, 1  ;;  %v1498_v41 = vadd.f32 %v455_v3, %v454_v51 }
  0x49   : > { %v1500_v29 = vadd.f32 %v462_v7, %v461_v52  ;;  %v1502_v30 = vadd.f32 %v504_v31, %v503_v53  ;;  %v1504_v38 = vadd.f32 %v511_v10, %v510_v54  ;;  %v1513_v46 = vadd.f32 %v518_v20, %v517_v55 }
  0x4a   : > { %v1515_v47 = vadd.f32 %v560_v23, %v559_v56  ;;  %v1519_v51 = vadd.f32 %v567_v34, %v566_v60  ;;  %v1521_v52 = vadd.f32 %v574_v25, %v573_v22 }
  0x90   : > { %v1494_v26 = vpop.permute.xlu1 %590  ;;  %v1496_v37 = vpop.permute.xlu0 %582 }
  0x91   : > { %v610_v18 = vrot.slane %v1494_v26, 1  ;;  %v611_v39 = vrot.slane %v1494_v26, 2  ;;  %v612_v42 = vrot.slane %v1494_v26, 3  ;;  %v613_v43 = vrot.slane %v1494_v26, 4 }
  0x92   : > { %v672_v44 = vmul.f32 %v1494_v26, %v1411_v36  ;;  %v596_v45 = vrot.slane %v1496_v37, 1  ;;  %v614_v53 = vrot.slane %v1494_v26, 5  ;;  %v615_v54 = vrot.slane %v1494_v26, 6 }
  0x93   : > { %v673_v48 = vmul.f32 %v610_v18, %v1413_v40  ;;  %v674_v50 = vmul.f32 %v611_v39, %v1417_v49  ;;  %v1526_v36 = vmul.f32 %v612_v42, %v1420_v57  ;;  %v1529_v61 = vmul.f32 %v613_v43, %v1423_v62 }
  0x94   : > { %v1531_v2 = vpop.permute.xlu1 %594  ;;  %v807_v40 = vpack.c.bf16 %v672_v44, %v672_v44  ;;  %v597_v49 = vrot.slane %v1496_v37, 2  ;;  %v598_v9 = vrot.slane %v1496_v37, 3  ;;  %v1536_v56 = vmul.f32 %v596_v45, %v1427_v0  ;;  %v587_v0 = vpop.permute.xlu0 %586 }
  0x95   : > { %v755_v8 = vrot.slane %v673_v48, 7  ;;  %v757_v19 = vrot.slane %v674_v50, 6  ;;  %v808_v27 = vpack.c.bf16 %v673_v48, %v673_v48  ;;  %v809_v55 = vpack.c.bf16 %v674_v50, %v674_v50 }
  0x96   : > { %v617_v58 = vrot.slane %v1531_v2, 1  ;;  %v618_v62 = vrot.slane %v1531_v2, 2  ;;  %v619_v59 = vrot.slane %v1531_v2, 3  ;;  %v1548_v7 = vmul.f32 %v1496_v37, %v1425_v63 }
  0x97   : > { %v756_v57 = vsel %vm721_vm2, %v755_v8, %v672_v44  ;;  %v1544_v3 = vunpack.c.l.b16 %v808_v27  ;;  %v1550_v31 = vunpack.c.l.b16 %v807_v40  ;;  %v720_v10 = vrot.slane %v1536_v56, 7 }
  0x98   : > { %v620_v20 = vrot.slane %v1531_v2, 4  ;;  %v1556_v23 = vmul.f32 %v1531_v2, %v1429_v1  ;;  %v1559_v34 = vsel %vm724_vm3, %v757_v19, %v756_v57  ;;  %v1561_v25 = vunpack.c.l.b16 %v809_v55 }
  0x99   : > { %v1564_v18 = vmul.f32 %v617_v58, %v1433_v4  ;;  %v1567_v63 = vmul.f32 %v618_v62, %v1435_v5  ;;  %v621_v39 = vrot.slane %v1531_v2, 5  ;;  %v1571_v42 = vmul.f32 %v619_v59, %v1437_v6 }
  0x9a   : > { %v1574_v43 = vmul.f32 %v620_v20, %v1442_v11  ;;  %v603_v1 = vrot.slane %v587_v0, 1  ;;  %v622_v45 = vrot.slane %v1531_v2, 6  ;;  %v722_v5 = vsel %vm721_vm2, %v720_v10, %v1548_v7 }
  0x9b   : > { %v769_v48 = vrot.slane %v1564_v18, 7  ;;  %v771_v4 = vrot.slane %v1567_v63, 6  ;;  %v604_v27 = vrot.slane %v587_v0, 2  ;;  %v605_v57 = vrot.slane %v587_v0, 3 }
  0x9c   : > { %v1596_v58 = vmul.f32 %v603_v1, %v1449_v17  ;;  %v599_v62 = vrot.slane %v1496_v37, 4  ;;  %v1600_v59 = vmul.f32 %v587_v0, %v1444_v12  ;;  %v600_v10 = vrot.slane %v1496_v37, 5 }
  0x9d   : > { %v770_v8 = vsel %vm721_vm2, %v769_v48, %v1556_v23  ;;  %v601_v20 = vrot.slane %v1496_v37, 6  ;;  %v602_v48 = vrot.slane %v1496_v37, 7  ;;  %v607_v44 = vrot.slane %v587_v0, 5 }
  0x9e   : > { %v1593_v55 = vsel %vm724_vm3, %v771_v4, %v770_v8  ;;  %v741_v4 = vrot.slane %v1596_v58, 7  ;;  %v606_v8 = vrot.slane %v587_v0, 4  ;;  %v608_v50 = vrot.slane %v587_v0, 6 }
  0x9f   : > { %v609_v17 = vrot.slane %v587_v0, 7  ;;  %v658_v1 = vmul.f32 %v597_v49, %v1464_v33  ;;  %v659_v11 = vmul.f32 %v598_v9, %v1475_v21  ;;  %v660_v12 = vmul.f32 %v599_v62, %v1478_v13 }
  0xa0   : > { %v742_v6 = vsel %vm721_vm2, %v741_v4, %v1600_v59  ;;  %v661_v19 = vmul.f32 %v600_v10, %v1480_v14  ;;  %v662_v37 = vmul.f32 %v601_v20, %v1482_v15  ;;  %v663_v40 = vmul.f32 %v602_v48, %v1484_v32 }
  0xa1   : > { %v666_v22 = vmul.f32 %v604_v27, %v1486_v35  ;;  %v667_v60 = vmul.f32 %v605_v57, %v1488_v16  ;;  %v668_v0 = vmul.f32 %v606_v8, %v1490_v24  ;;  %v669_v33 = vmul.f32 %v607_v44, %v1492_v28 }
  0xa2   : > { %v670_v21 = vmul.f32 %v608_v50, %v1498_v41  ;;  %v671_v13 = vmul.f32 %v609_v17, %v1500_v29  ;;  %v723_v49 = vrot.slane %v658_v1, 6  ;;  %v726_v9 = vrot.slane %v659_v11, 5 }
  0xa3   : > { %v729_v62 = vrot.slane %v660_v12, 4  ;;  %v732_v14 = vrot.slane %v661_v19, 3  ;;  %v735_v15 = vrot.slane %v662_v37, 2  ;;  %v738_v10 = vrot.slane %v663_v40, 1 }
  0xa4   : > { %v725_v32 = vsel %vm724_vm3, %v723_v49, %v722_v5  ;;  %v743_v35 = vrot.slane %v666_v22, 6  ;;  %v745_v27 = vrot.slane %v667_v60, 5  ;;  %v747_v16 = vrot.slane %v668_v0, 4 }
  0xa5   : > { %v728_v24 = vsel %vm727_vm4, %v726_v9, %v725_v32  ;;  %v749_v57 = vrot.slane %v669_v33, 3  ;;  %v751_v28 = vrot.slane %v670_v21, 2  ;;  %v753_v44 = vrot.slane %v671_v13, 1 }
  0xa6   : > { %v731_v41 = vsel %vm730_vm5, %v729_v62, %v728_v24  ;;  %v744_v29 = vsel %vm724_vm3, %v743_v35, %v742_v6  ;;  %v791_v50 = vpack.c.bf16 %v1548_v7, %v1548_v7  ;;  %v792_v20 = vpack.c.bf16 %v1536_v56, %v1536_v56 }
  0xa7   : > { %v734_v5 = vsel %vm733_vm6, %v732_v14, %v731_v41  ;;  %v746_v48 = vsel %vm727_vm4, %v745_v27, %v744_v29  ;;  %v793_v4 = vpack.c.bf16 %v658_v1, %v658_v1  ;;  %v794_v8 = vpack.c.bf16 %v659_v11, %v659_v11 }
  0xa8   : > { %v737_v6 = vsel %vm736_vm7, %v735_v15, %v734_v5  ;;  %v748_v7 = vsel %vm730_vm5, %v747_v16, %v746_v48  ;;  %v795_v17 = vpack.c.bf16 %v660_v12, %v660_v12  ;;  %v796_v56 = vpack.c.bf16 %v661_v19, %v661_v19 }
  0xa9   : > { %v740_v49 = vsel %vm739_vm8, %v738_v10, %v737_v6  ;;  %v750_v9 = vsel %vm733_vm6, %v749_v57, %v748_v7  ;;  %v797_v62 = vpack.c.bf16 %v662_v37, %v662_v37  ;;  %v798_v32 = vpack.c.bf16 %v663_v40, %v663_v40 }
  0xaa   : > { %v752_v35 = vsel %vm736_vm7, %v751_v28, %v750_v9  ;;  %787 = vst.msk [vmem:[%s1633_s17] sm:$0xff] %vm351_vm1, %v740_v49  ;;  %v799_v11 = vpack.c.bf16 %v1600_v59, %v1600_v59  ;;  %v800_v1 = vpack.c.bf16 %v1596_v58, %v1596_v58  ;;  %v801_v14 = vpack.c.bf16 %v666_v22, %v666_v22 }
  0xab   : > { %v754_v12 = vsel %vm739_vm8, %v753_v44, %v752_v35  ;;  %v802_v19 = vpack.c.bf16 %v667_v60, %v667_v60  ;;  %v803_v15 = vpack.c.bf16 %v668_v0, %v668_v0  ;;  %v804_v10 = vpack.c.bf16 %v669_v33, %v669_v33 }
  0xac   : > { %788 = vst.msk [vmem:[%s1633_s17 + $0x8] sm:$0xff] %vm351_vm1, %v754_v12  ;;  %v805_v37 = vpack.c.bf16 %v670_v21, %v670_v21  ;;  %v806_v40 = vpack.c.bf16 %v671_v13, %v671_v13  ;;  %v863_v27 = vunpack.c.l.b16 %v791_v50  ;;  %v864_v16 = vunpack.c.l.b16 %v792_v20 }
  0xad   : > { %v865_v24 = vunpack.c.l.b16 %v793_v4  ;;  %v866_v57 = vunpack.c.l.b16 %v794_v8  ;;  %v867_v28 = vunpack.c.l.b16 %v795_v17  ;;  %v868_v41 = vunpack.c.l.b16 %v796_v56 }
  0xae   : > { %v869_v59 = vunpack.c.l.b16 %v797_v62  ;;  %v870_v29 = vunpack.c.l.b16 %v798_v32  ;;  %v871_v5 = vunpack.c.l.b16 %v799_v11  ;;  %v872_v58 = vunpack.c.l.b16 %v800_v1 }
  0xaf   : > { %v873_v22 = vunpack.c.l.b16 %v801_v14  ;;  %v874_v48 = vunpack.c.l.b16 %v802_v19  ;;  %v875_v44 = vunpack.c.l.b16 %v803_v15  ;;  %v876_v60 = vunpack.c.l.b16 %v804_v10 }
  0xb0   : > { %v877_v0 = vunpack.c.l.b16 %v805_v37  ;;  %v878_v33 = vunpack.c.l.b16 %v806_v40  ;;  %v895_v6 = vrot.slane %v864_v16, 7  ;;  %v897_v7 = vrot.slane %v865_v24, 6 }
  0xb1   : > { %v899_v21 = vrot.slane %v866_v57, 5  ;;  %v901_v13 = vrot.slane %v867_v28, 4  ;;  %v903_v50 = vrot.slane %v868_v41, 3  ;;  %v905_v20 = vrot.slane %v869_v59, 2 }
  0xb2   : > { %v896_v4 = vsel %vm721_vm2, %v895_v6, %v863_v27  ;;  %v907_v8 = vrot.slane %v870_v29, 1  ;;  %v909_v17 = vrot.slane %v872_v58, 7  ;;  %v911_v56 = vrot.slane %v873_v22, 6 }
  0xb3   : > { %v898_v49 = vsel %vm724_vm3, %v897_v7, %v896_v4  ;;  %v913_v9 = vrot.slane %v874_v48, 5  ;;  %v915_v62 = vrot.slane %v875_v44, 4  ;;  %v917_v32 = vrot.slane %v876_v60, 3 }
  0xb4   : > { %v900_v35 = vsel %vm727_vm4, %v899_v21, %v898_v49  ;;  %v910_v11 = vsel %vm721_vm2, %v909_v17, %v871_v5  ;;  %v919_v1 = vrot.slane %v877_v0, 2  ;;  %v921_v14 = vrot.slane %v878_v33, 1 }
  0xb5   : > { %v902_v12 = vsel %vm730_vm5, %v901_v13, %v900_v35  ;;  %v912_v19 = vsel %vm724_vm3, %v911_v56, %v910_v11  ;;  %v616_v15 = vrot.slane %v1494_v26, 7  ;;  %v623_v10 = vrot.slane %v1531_v2, 7 }
  0xb6   : > { %v904_v37 = vsel %vm733_vm6, %v903_v50, %v902_v12  ;;  %v914_v40 = vsel %vm727_vm4, %v913_v9, %v912_v19  ;;  %v677_v27 = vmul.f32 %v614_v53, %v1502_v30  ;;  %v678_v16 = vmul.f32 %v615_v54, %v1504_v38 }
  0xb7   : > { %v906_v24 = vsel %vm736_vm7, %v905_v20, %v904_v37  ;;  %v916_v57 = vsel %vm730_vm5, %v915_v62, %v914_v40  ;;  %v679_v28 = vmul.f32 %v616_v15, %v1513_v46  ;;  %v685_v41 = vmul.f32 %v621_v39, %v1515_v47 }
  0xb8   : > { %v908_v59 = vsel %vm739_vm8, %v907_v8, %v906_v24  ;;  %v918_v29 = vsel %vm733_vm6, %v917_v32, %v916_v57  ;;  %v686_v30 = vmul.f32 %v622_v45, %v1519_v51  ;;  %v687_v26 = vmul.f32 %v623_v10, %v1521_v52 }
  0xb9   : > { %v920_v38 = vsel %vm736_vm7, %v919_v1, %v918_v29  ;;  %v1772_v53 = vrot.slane %v1526_v36, 5  ;;  %v763_v54 = vrot.slane %v677_v27, 3  ;;  %v765_v5 = vrot.slane %v678_v16, 2 }
  0xba   : > { %v922_v47 = vsel %vm739_vm8, %v921_v14, %v920_v38  ;;  %v1773_v39 = vrot.slane %v1529_v61, 4  ;;  %v767_v22 = vrot.slane %v679_v28, 1  ;;  %v1774_v51 = vrot.slane %v1571_v42, 5 }
  0xbb   : > { %v760_v46 = vsel %vm727_vm4, %v1772_v53, %v1559_v34  ;;  %v951_v2 = vpack.c.b16 %v922_v47, %v908_v59  ;;  %v1775_v34 = vrot.slane %v1574_v43, 4  ;;  %v777_v44 = vrot.slane %v685_v41, 3 }
  0xbc   : > { %v762_v58 = vsel %vm730_vm5, %v1773_v39, %v760_v46  ;;  %v774_v52 = vsel %vm727_vm4, %v1774_v51, %v1593_v55  ;;  %v1776_v60 = vpack.c.bf16 %v1564_v18, %v1564_v18  ;;  %v779_v6 = vrot.slane %v686_v30, 2 }
  0xbd   : > { %v764_v45 = vsel %vm733_vm6, %v763_v54, %v762_v58  ;;  %v776_v48 = vsel %vm730_vm5, %v1775_v34, %v774_v52  ;;  %v810_v7 = vpack.c.bf16 %v1526_v36, %v1526_v36  ;;  %1270 = vmatprep.mubr.msk.bf16.mxu0 %vm351_vm1, %v951_v2  ;;  %v781_v13 = vrot.slane %v687_v26, 1 }
  0xbe   : > { %v888_v0 = vunpack.c.l.b16 %v1776_v60  ;;  %v766_v33 = vsel %vm736_vm7, %v765_v5, %v764_v45  ;;  %v778_v21 = vsel %vm733_vm6, %v777_v44, %v776_v48  ;;  %v811_v50 = vpack.c.bf16 %v1529_v61, %v1529_v61  ;;  %v1018_v48 = vld [vmem:[%s1768_s4] sm:$0xf] }
  0xbf   : > { %v768_v55 = vsel %vm739_vm8, %v767_v22, %v766_v33  ;;  %v1777_v18 = vpack.c.bf16 %v1567_v63, %v1567_v63  ;;  %v780_v4 = vsel %vm736_vm7, %v779_v6, %v778_v21  ;;  %v812_v36 = vpack.c.bf16 %v677_v27, %v677_v27  ;;  %1281 = vmatprep.subr.msk.bf16.mxu1 %vm1033_vm9, %v1018_v48  ;;  %v1246_v60 = vld [vmem:[%s1767_s3] ss:$0 sm:$0xff] }
  0xc0   : > { %789 = vst.msk [vmem:[%s1633_s17 + $0x10] sm:$0xff] %vm351_vm1, %v768_v55  ;;  %v818_v8 = vpack.c.bf16 %v1571_v42, %v1571_v42  ;;  %v782_v17 = vsel %vm739_vm8, %v781_v13, %v780_v4  ;;  %v813_v56 = vpack.c.bf16 %v678_v16, %v678_v16  ;;  %v819_v49 = vpack.c.bf16 %v1574_v43, %v1574_v43 }
  0xc1   : > { %v889_v20 = vunpack.c.l.b16 %v1777_v18  ;;  %v820_v9 = vpack.c.bf16 %v685_v41, %v685_v41  ;;  %v937_v61 = vrot.slane %v888_v0, 7  ;;  %790 = vst.msk [vmem:[%s1633_s17 + $0x18] sm:$0xff] %vm351_vm1, %v782_v17  ;;  %v814_v63 = vpack.c.bf16 %v679_v28, %v679_v28 }
  0xc2   : > { %v821_v62 = vpack.c.bf16 %v686_v30, %v686_v30  ;;  %v882_v32 = vunpack.c.l.b16 %v810_v7  ;;  %v822_v35 = vpack.c.bf16 %v687_v26, %v687_v26  ;;  %v883_v11 = vunpack.c.l.b16 %v811_v50 }
  0xc3   : > { %v890_v1 = vunpack.c.l.b16 %v818_v8  ;;  %v1778_v14 = vpack.c.bf16 %v1556_v23, %v1556_v23  ;;  %v884_v12 = vunpack.c.l.b16 %v812_v36  ;;  %v891_v19 = vunpack.c.l.b16 %v819_v49 }
  0xc4   : > { %v1779_v15 = vrot.slane %v1544_v3, 7  ;;  %v885_v10 = vunpack.c.l.b16 %v813_v56  ;;  %v892_v37 = vunpack.c.l.b16 %v820_v9  ;;  %v925_v40 = vrot.slane %v1561_v25, 6  ;;  %v1249_v56 = vld [vmem:[%s1769_s5] ss:$0 sm:$0xff] }
  0xc5   : > { %v887_v42 = vunpack.c.l.b16 %v1778_v14  ;;  %v927_v27 = vrot.slane %v882_v32, 5  ;;  %v886_v16 = vunpack.c.l.b16 %v814_v63  ;;  %v893_v24 = vunpack.c.l.b16 %v821_v62 }
  0xc6   : > { %v924_v43 = vsel %vm721_vm2, %v1779_v15, %v1550_v31  ;;  %v939_v28 = vrot.slane %v889_v20, 6  ;;  %v894_v41 = vunpack.c.l.b16 %v822_v35  ;;  %v929_v59 = vrot.slane %v883_v11, 4 }
  0xc7   : > { %v938_v57 = vsel %vm721_vm2, %v937_v61, %v887_v42  ;;  %v926_v23 = vsel %vm724_vm3, %v925_v40, %v924_v43  ;;  %v941_v29 = vrot.slane %v890_v1, 5  ;;  %v931_v3 = vrot.slane %v884_v12, 3 }
  0xc8   : > { %v928_v30 = vsel %vm727_vm4, %v927_v27, %v926_v23  ;;  %v940_v31 = vsel %vm724_vm3, %v939_v28, %v938_v57  ;;  %v943_v26 = vrot.slane %v891_v19, 4  ;;  %v933_v25 = vrot.slane %v885_v10, 2 }
  0xc9   : > { %v930_v38 = vsel %vm730_vm5, %v929_v59, %v928_v30  ;;  %v942_v53 = vsel %vm727_vm4, %v941_v29, %v940_v31  ;;  %v945_v46 = vrot.slane %v892_v37, 3  ;;  %v947_v47 = vrot.slane %v893_v24, 2 }
  0xca   : > { %v932_v54 = vsel %vm733_vm6, %v931_v3, %v930_v38  ;;  %v944_v5 = vsel %vm730_vm5, %v943_v26, %v942_v53  ;;  %v935_v58 = vrot.slane %v886_v16, 1  ;;  %v949_v51 = vrot.slane %v894_v41, 1 }
  0xcb   : > { %v934_v39 = vsel %vm736_vm7, %v933_v25, %v932_v54  ;;  %v946_v22 = vsel %vm733_vm6, %v945_v46, %v944_v5  ;;  %v1035_v44 = vsel %vm1033_vm9, %v1018_v48, 0 }
  0xcc   : > { %v948_v52 = vsel %vm736_vm7, %v947_v47, %v946_v22  ;;  %v936_v2 = vsel %vm739_vm8, %v935_v58, %v934_v39  ;;  %1275 = vmatpush3.bf16.msra.mxu1 %v1035_v44 }
  0xcd   : > { %v950_v45 = vsel %vm739_vm8, %v949_v51, %v948_v52 }
  0xce   : > { %v952_v34 = vpack.c.b16 %v950_v45, %v936_v2 }
  0xd0   : > { %1271 = vmatmul.mubr.msk.bf16.vlgmr.msra.gmra.mrb[0].mxu0 %vm351_vm1, %v952_v34 }
 0x1a3   : > { %v1272_v0 = vpop.f32.mrb[0].mxu0 }
 0x1a4   : > { %v997_v33 = vpop.f32.mrb[1].mxu0  ;;  %v1006_v55 = vadd.f32 %v1272_v0, %v1246_v60 }
 0x1a5   : > { %v998_v6 = vadd.f32 %v1246_v60, %v997_v33  ;;  %v1273_v7 = vpop.f32.mrb[2].mxu0 }
 0x1a6   : > { %v1009_v21 = vadd.f32 %v1273_v7, %v1246_v60  ;;  %v1000_v13 = vpop.f32.mrb[3].mxu0  ;;  %v1014_v36 = vmax.f32 %v1006_v55, 0.0 }
 0x1a7   : > { %v1001_v50 = vadd.f32 %v1246_v60, %v1000_v13  ;;  %v1012_v20 = vmax.f32 %v998_v6, 0.0 }
 0x1a8   : > { %v1015_v18 = vmax.f32 %v1009_v21, 0.0 }
 0x1a9   : > { %v1013_v4 = vmax.f32 %v1001_v50, 0.0 }
 0x1aa   : > { %v1017_v17 = vpack.c.bf16 %v1015_v18, %v1014_v36 }
 0x1ab   : > { %v1016_v8 = vpack.c.bf16 %v1013_v4, %v1012_v20 }
 0x1ad   : > { %1276 = vmatprep.mubr.msk.bf16.mxu1 %vm1026_vm10, %v1016_v8 }
 0x1ae   : > { %1277 = vmatmul.mubr.msk.bf16.vlgmr.msra.gmra.mrb[0].mxu1 %vm1026_vm10, %v1017_v17 }
 0x281   : > { %v1278_v49 = vpop.f32.mrb[0].mxu1 }
 0x282   : > { %v1080_v9 = vadd.f32 %v1278_v49, %v1249_v56  ;;  %v1071_v61 = vpop.f32.mrb[1].mxu1 }
 0x283   : > { %v1072_v63 = vadd.f32 %v1249_v56, %v1071_v61  ;;  %v1279_v62 = vpop.f32.mrb[2].mxu1 }
 0x284   : > { %v1083_v32 = vadd.f32 %v1279_v62, %v1249_v56  ;;  %v1074_v35 = vpop.f32.mrb[3].mxu1  ;;  %v1088_v1 = vmax.f32 %v1080_v9, 0.0 }
 0x285   : > { %v1075_v11 = vadd.f32 %v1249_v56, %v1074_v35  ;;  %v1086_v42 = vmax.f32 %v1072_v63, 0.0 }
 0x286   : > { %v1089_v14 = vmax.f32 %v1083_v32, 0.0 }
 0x287   : > { %v1087_v12 = vmax.f32 %v1075_v11, 0.0 }
 0x288   : > { %v1299_v19 = vpack.i.bf16 %v1089_v14, %v1088_v1 }
 0x289   : > { %v1294_v15 = vpack.i.bf16 %v1087_v12, %v1086_v42 }
 0x28a   : > { %1300 = vrot.lane.b32.xlu1 %v1299_v19, %s1313_s25 }
 0x28b   : > { %1295 = vrot.lane.b32.xlu0 %v1294_v15, %s1313_s25 }
 0x2fc   : > { %v1301_v43 = vpop.permute.xlu1 %1300 }
 0x2fd   : > { %v1303_v10 = vunpack.i.h.bf16 %v1301_v43  ;;  %v1302_v37 = vunpack.i.l.bf16 %v1301_v43  ;;  %v1296_v40 = vpop.permute.xlu0 %1295 }
 0x2fe   : > { %v1298_v27 = vunpack.i.h.bf16 %v1296_v40  ;;  %v1297_v16 = vunpack.i.l.bf16 %v1296_v40 }
 0x2ff   : > { %v1108_v24 = vsel %vm1026_vm10, %v1014_v36, %v1302_v37  ;;  %v1109_v41 = vsel %vm1026_vm10, %v1015_v18, %v1303_v10 }
 0x300   : > { %v1107_v57 = vsel %vm1026_vm10, %v1013_v4, %v1298_v27  ;;  %v1106_v28 = vsel %vm1026_vm10, %v1012_v20, %v1297_v16  ;;  %v1260_v29 = vpack.c.bf16 %v1108_v24, %v1108_v24  ;;  %v1261_v30 = vpack.c.bf16 %v1109_v41, %v1109_v41 }
 0x301   : > { %v1259_v23 = vpack.c.bf16 %v1107_v57, %v1107_v57  ;;  %v1258_v59 = vpack.c.bf16 %v1106_v28, %v1106_v28 }
 0x302   : > { %1129 = vst.msk [vmem:[%s316_s30 + $0x8] sm:$0xf] %vm1126_vm11, %v1260_v29  ;;  %1130 = vst.msk [vmem:[%s316_s30 + $0xc] sm:$0xf] %vm1126_vm11, %v1261_v30 }
 0x303   : > { %1127 = vst.msk [vmem:[%s316_s30] sm:$0xf] %vm1126_vm11, %v1258_v59  ;;  %1128 = vst.msk [vmem:[%s316_s30 + $0x4] sm:$0xf] %vm1126_vm11, %v1259_v23 }
 0x304 PF: > { %s18_s24 = sadd.s32 1, %s1310_s24  }
 0x305   : > { %p15_p5 = scmp.ge.s32.totalorder %s18_s24, 4  }
 0x307   :  { %17 = sbr.rel (!%p15_p5) target bundleno = 1 (0x1), region = 89 }

// kernel: forward.3
= control target key start
LH: loop header
LB: loop body
LE: loop exit
PB: predicated region body
PF: predicated region fallthrough
CT: control target
= control target key end

     0   :  { %s13489_s0 = inlined_call_operand.vmem [shape: bf16[2,512,4], index: 0, kind: input, shape index: {}]   ;;  %s13490_s1 = inlined_call_operand.vmem [shape: bf16[2,512,11], index: 1, kind: input, shape index: {}]   ;;  %s13491_s2 = inlined_call_operand.vmem [shape: bf16[2,512,19], index: 2, kind: input, shape index: {}]   ;;  %s13492_s3 = inlined_call_operand.vmem [shape: f32[64,4,16], index: 3, kind: input, shape index: {}]   ;;  %s13493_s4 = inlined_call_operand.vmem [shape: f32[64,4], index: 4, kind: input, shape index: {}]   ;;  %s13494_s5 = inlined_call_operand.vmem [shape: bf16[2,4,8], index: 5, kind: input, shape index: {}]   ;;  %s13495_s6 = inlined_call_operand.vmem [shape: f32[2,1,8], index: 6, kind: input, shape index: {}]   ;;  %s13496_s7 = inlined_call_operand.vmem [shape: bf16[2,8,8], index: 7, kind: input, shape index: {}]   ;;  %s13497_s8 = inlined_call_operand.vmem [shape: f32[2,1,8], index: 8, kind: input, shape index: {}]   ;;  %s13498_s9 = inlined_call_operand.vmem [shape: bf16[2,11,8], index: 9, kind: input, shape index: {}]   ;;  %s13499_s10 = inlined_call_operand.vmem [shape: f32[2,1,8], index: 10, kind: input, shape index: {}]   ;;  %s13500_s11 = inlined_call_operand.vmem [shape: bf16[2,8,16], index: 11, kind: input, shape index: {}]   ;;  %s13501_s12 = inlined_call_operand.vmem [shape: f32[2,1,16], index: 12, kind: input, shape index: {}]   ;;  %s13502_s13 = inlined_call_operand.vmem [shape: bf16[2,19,16], index: 13, kind: input, shape index: {}]   ;;  %s13503_s14 = inlined_call_operand.vmem [shape: f32[2,1,16], index: 14, kind: input, shape index: {}]   ;;  %s13504_s15 = inlined_call_operand.vmem [shape: bf16[2,16,16], index: 15, kind: input, shape index: {}]   ;;  %s13505_s16 = inlined_call_operand.vmem [shape: f32[2,1,16], index: 16, kind: input, shape index: {}]   ;;  %s13506_s17 = inlined_call_operand.vmem [shape: bf16[96,16], index: 17, kind: input, shape index: {}]   ;;  %s13507_s18 = inlined_call_operand.vmem [shape: f32[1,16], index: 18, kind: input, shape index: {}]   ;;  %s13508_s19 = inlined_call_operand.vmem [shape: f32[64,128], index: 19, kind: output, shape index: {}]  }
   0x1   :  { %13556 = sst [smem:[#allocation117_spill]] %s13489_s0 }
   0x2   :  { %13557 = sst [smem:[#allocation118_spill]] %s13490_s1 }
   0x3   :  { %13558 = sst [smem:[#allocation119_spill]] %s13491_s2 }
   0x4   :  { %13559 = sst [smem:[#allocation120_spill]] %s13492_s3 }
   0x5   :  { %s9908_s0 = smov 0   ;;  %s9910_s30 = smov 0  }
   0x6   :  { %s9912_s20 = smov 0  }
   0x7 LB: > { %s9925_s1 = sadd.s32 1, %s9794_s20   ;;  %s36_s2 = sadd.s32 1, %s9790_s30  ;;  %s9794_s20 = sphi %s9912_s20, %s13987_s20   ;;  %s9790_s30 = sphi %s9910_s30, %s13986_s30   ;;  %s9786_s0 = sphi %s9908_s0, %s13985_s0  }
   0x8   : > { %s33_s22 = ssub.s32 %s9794_s20, %s9925_s1  ;;  %p43_p1 = scmp.ne.s32.totalorder %s9790_s30, %s9786_s0 }
   0x9   : > { %p34_p0 = scmp.eq.s32.totalorder %s33_s22, 0  ;;  %p44_p2 = scmp.eq.s32.totalorder %s9794_s20, 0 }
   0xa   : > { %p8474_p4 = scmp.ge.s32.totalorder %s9794_s20, 2 }
   0xb   : > { %s9934_s23 = scalar_select %p34_p0, %s9790_s30, %s36_s2  }
   0xc   : > { %p9936_p3 = por %p44_p2, %p43_p1  ;;  %535 = sbr.rel (%p8474_p4) target bundleno = 97 (0x61), region = 72 }
  0x13   : > { %538 = sbr.rel (!%p9936_p3) target bundleno = 45 (0x2d), region = 76  ;;  %s540_s25 = sand.u32 (%p9936_p3), 1, %s9790_s30  }
  0x14   : > { %s8925_s3 = sshll.u32 (%p9936_p3), %s9794_s20, 7  ;;  %s8475_s26 = sshll.u32 (%p9936_p3), %s540_s25, 8 }
  0x15   : > { %s13561_s29 = sld [smem:[#allocation117_spill]] (%p9936_p3)  ;;  %s9953_s2 = scalar_lea.vmem (%p9936_p3), [#allocation2], %s8475_s26 }
  0x1b   : > { %s9948_s22 = scalar_lea.vmem %s13561_s29, %s8925_s3 }
  0x1c   : > { %v561_v0 = vld [vmem:[%s9948_s22] sm:$0xff]   ;;  %v565_v1 = vld [vmem:[%s9948_s22 + $0x8] sm:$0xff]   ;;  %v569_v2 = vld [vmem:[%s9948_s22 + $0x10] sm:$0xff]  }
  0x1d   : > { %562 = vst [vmem:[%s9953_s2] sm:$0xff] %v561_v0   ;;  %566 = vst [vmem:[%s9953_s2 + $0x8] sm:$0xff] %v565_v1   ;;  %v573_v3 = vld [vmem:[%s9948_s22 + $0x18] sm:$0xff]   ;;  %v577_v4 = vld [vmem:[%s9948_s22 + $0x20] sm:$0xff]  }
  0x1e   : > { %570 = vst [vmem:[%s9953_s2 + $0x10] sm:$0xff] %v569_v2   ;;  %v581_v5 = vld [vmem:[%s9948_s22 + $0x28] sm:$0xff]   ;;  %574 = vst [vmem:[%s9953_s2 + $0x18] sm:$0xff] %v573_v3   ;;  %v585_v6 = vld [vmem:[%s9948_s22 + $0x30] sm:$0xff]  }
  0x1f   : > { %578 = vst [vmem:[%s9953_s2 + $0x20] sm:$0xff] %v577_v4   ;;  %582 = vst [vmem:[%s9953_s2 + $0x28] sm:$0xff] %v581_v5   ;;  %v589_v7 = vld [vmem:[%s9948_s22 + $0x38] sm:$0xff]   ;;  %v593_v8 = vld [vmem:[%s9948_s22 + $0x40] sm:$0xff]  }
  0x20   : > { %586 = vst [vmem:[%s9953_s2 + $0x30] sm:$0xff] %v585_v6   ;;  %590 = vst [vmem:[%s9953_s2 + $0x38] sm:$0xff] %v589_v7   ;;  %v597_v9 = vld [vmem:[%s9948_s22 + $0x48] sm:$0xff]   ;;  %v601_v10 = vld [vmem:[%s9948_s22 + $0x50] sm:$0xff]  }
  0x21   : > { %594 = vst [vmem:[%s9953_s2 + $0x40] sm:$0xff] %v593_v8   ;;  %v605_v11 = vld [vmem:[%s9948_s22 + $0x58] sm:$0xff]   ;;  %598 = vst [vmem:[%s9953_s2 + $0x48] sm:$0xff] %v597_v9   ;;  %v609_v12 = vld [vmem:[%s9948_s22 + $0x60] sm:$0xff]  }
  0x22   : > { %602 = vst [vmem:[%s9953_s2 + $0x50] sm:$0xff] %v601_v10   ;;  %606 = vst [vmem:[%s9953_s2 + $0x58] sm:$0xff] %v605_v11   ;;  %v613_v13 = vld [vmem:[%s9948_s22 + $0x68] sm:$0xff]   ;;  %v617_v14 = vld [vmem:[%s9948_s22 + $0x70] sm:$0xff]  }
  0x23   : > { %610 = vst [vmem:[%s9953_s2 + $0x60] sm:$0xff] %v609_v12   ;;  %614 = vst [vmem:[%s9953_s2 + $0x68] sm:$0xff] %v613_v13   ;;  %v621_v15 = vld [vmem:[%s9948_s22 + $0x78] sm:$0xff]   ;;  %v625_v16 = vld [vmem:[%s9948_s22 + $0x100] sm:$0xff]  }
  0x24   : > { %618 = vst [vmem:[%s9953_s2 + $0x70] sm:$0xff] %v617_v14   ;;  %v629_v17 = vld [vmem:[%s9948_s22 + $0x108] sm:$0xff]   ;;  %622 = vst [vmem:[%s9953_s2 + $0x78] sm:$0xff] %v621_v15   ;;  %v633_v18 = vld [vmem:[%s9948_s22 + $0x110] sm:$0xff]  }
  0x25   : > { %626 = vst [vmem:[%s9953_s2 + $0x80] sm:$0xff] %v625_v16   ;;  %630 = vst [vmem:[%s9953_s2 + $0x88] sm:$0xff] %v629_v17   ;;  %v637_v19 = vld [vmem:[%s9948_s22 + $0x118] sm:$0xff]   ;;  %v641_v20 = vld [vmem:[%s9948_s22 + $0x120] sm:$0xff]  }
  0x26   : > { %634 = vst [vmem:[%s9953_s2 + $0x90] sm:$0xff] %v633_v18   ;;  %638 = vst [vmem:[%s9953_s2 + $0x98] sm:$0xff] %v637_v19   ;;  %v645_v21 = vld [vmem:[%s9948_s22 + $0x128] sm:$0xff]   ;;  %v649_v22 = vld [vmem:[%s9948_s22 + $0x130] sm:$0xff]  }
  0x27   : > { %642 = vst [vmem:[%s9953_s2 + $0xa0] sm:$0xff] %v641_v20   ;;  %v653_v23 = vld [vmem:[%s9948_s22 + $0x138] sm:$0xff]   ;;  %646 = vst [vmem:[%s9953_s2 + $0xa8] sm:$0xff] %v645_v21   ;;  %v657_v24 = vld [vmem:[%s9948_s22 + $0x140] sm:$0xff]  }
  0x28   : > { %650 = vst [vmem:[%s9953_s2 + $0xb0] sm:$0xff] %v649_v22   ;;  %654 = vst [vmem:[%s9953_s2 + $0xb8] sm:$0xff] %v653_v23   ;;  %v661_v25 = vld [vmem:[%s9948_s22 + $0x148] sm:$0xff]   ;;  %v665_v26 = vld [vmem:[%s9948_s22 + $0x150] sm:$0xff]  }
  0x29   : > { %658 = vst [vmem:[%s9953_s2 + $0xc0] sm:$0xff] %v657_v24   ;;  %662 = vst [vmem:[%s9953_s2 + $0xc8] sm:$0xff] %v661_v25   ;;  %v669_v27 = vld [vmem:[%s9948_s22 + $0x158] sm:$0xff]   ;;  %v673_v28 = vld [vmem:[%s9948_s22 + $0x160] sm:$0xff]  }
  0x2a   : > { %666 = vst [vmem:[%s9953_s2 + $0xd0] sm:$0xff] %v665_v26   ;;  %v677_v29 = vld [vmem:[%s9948_s22 + $0x168] sm:$0xff]   ;;  %670 = vst [vmem:[%s9953_s2 + $0xd8] sm:$0xff] %v669_v27   ;;  %v681_v30 = vld [vmem:[%s9948_s22 + $0x170] sm:$0xff]  }
  0x2b   : > { %674 = vst [vmem:[%s9953_s2 + $0xe0] sm:$0xff] %v673_v28   ;;  %678 = vst [vmem:[%s9953_s2 + $0xe8] sm:$0xff] %v677_v29   ;;  %v685_v31 = vld [vmem:[%s9948_s22 + $0x178] sm:$0xff]  }
  0x2c   : > { %682 = vst [vmem:[%s9953_s2 + $0xf0] sm:$0xff] %v681_v30   ;;  %686 = vst [vmem:[%s9953_s2 + $0xf8] sm:$0xff] %v685_v31  }
  0x2d PF: > { %839 = sbr.rel (!%p9936_p3) target bundleno = 71 (0x47), region = 117  ;;  %s841_s25 = sand.u32 (%p9936_p3), 1, %s9790_s30  }
  0x2e   : > { %s8926_s3 = sshll.u32 (%p9936_p3), %s9794_s20, 7  ;;  %s8478_s26 = sshll.u32 (%p9936_p3), %s841_s25, 8 }
  0x2f   : > { %s13562_s29 = sld [smem:[#allocation118_spill]] (%p9936_p3)  ;;  %s10028_s22 = scalar_lea.vmem (%p9936_p3), [#allocation3], %s8478_s26 }
  0x35   : > { %s10023_s21 = scalar_lea.vmem %s13562_s29, %s8926_s3 }
  0x36   : > { %v862_v32 = vld [vmem:[%s10023_s21] sm:$0xff]   ;;  %v866_v33 = vld [vmem:[%s10023_s21 + $0x8] sm:$0xff]   ;;  %v870_v34 = vld [vmem:[%s10023_s21 + $0x10] sm:$0xff]  }
  0x37   : > { %863 = vst [vmem:[%s10028_s22] sm:$0xff] %v862_v32   ;;  %867 = vst [vmem:[%s10028_s22 + $0x8] sm:$0xff] %v866_v33   ;;  %v874_v35 = vld [vmem:[%s10023_s21 + $0x18] sm:$0xff]   ;;  %v878_v36 = vld [vmem:[%s10023_s21 + $0x20] sm:$0xff]  }
  0x38   : > { %871 = vst [vmem:[%s10028_s22 + $0x10] sm:$0xff] %v870_v34   ;;  %v882_v37 = vld [vmem:[%s10023_s21 + $0x28] sm:$0xff]   ;;  %875 = vst [vmem:[%s10028_s22 + $0x18] sm:$0xff] %v874_v35   ;;  %v886_v38 = vld [vmem:[%s10023_s21 + $0x30] sm:$0xff]  }
  0x39   : > { %879 = vst [vmem:[%s10028_s22 + $0x20] sm:$0xff] %v878_v36   ;;  %883 = vst [vmem:[%s10028_s22 + $0x28] sm:$0xff] %v882_v37   ;;  %v890_v39 = vld [vmem:[%s10023_s21 + $0x38] sm:$0xff]   ;;  %v894_v40 = vld [vmem:[%s10023_s21 + $0x40] sm:$0xff]  }
  0x3a   : > { %887 = vst [vmem:[%s10028_s22 + $0x30] sm:$0xff] %v886_v38   ;;  %891 = vst [vmem:[%s10028_s22 + $0x38] sm:$0xff] %v890_v39   ;;  %v898_v41 = vld [vmem:[%s10023_s21 + $0x48] sm:$0xff]   ;;  %v902_v42 = vld [vmem:[%s10023_s21 + $0x50] sm:$0xff]  }
  0x3b   : > { %895 = vst [vmem:[%s10028_s22 + $0x40] sm:$0xff] %v894_v40   ;;  %v906_v43 = vld [vmem:[%s10023_s21 + $0x58] sm:$0xff]   ;;  %899 = vst [vmem:[%s10028_s22 + $0x48] sm:$0xff] %v898_v41   ;;  %v910_v44 = vld [vmem:[%s10023_s21 + $0x60] sm:$0xff]  }
  0x3c   : > { %903 = vst [vmem:[%s10028_s22 + $0x50] sm:$0xff] %v902_v42   ;;  %907 = vst [vmem:[%s10028_s22 + $0x58] sm:$0xff] %v906_v43   ;;  %v914_v45 = vld [vmem:[%s10023_s21 + $0x68] sm:$0xff]   ;;  %v918_v46 = vld [vmem:[%s10023_s21 + $0x70] sm:$0xff]  }
  0x3d   : > { %911 = vst [vmem:[%s10028_s22 + $0x60] sm:$0xff] %v910_v44   ;;  %915 = vst [vmem:[%s10028_s22 + $0x68] sm:$0xff] %v914_v45   ;;  %v922_v47 = vld [vmem:[%s10023_s21 + $0x78] sm:$0xff]   ;;  %v926_v48 = vld [vmem:[%s10023_s21 + $0x100] sm:$0xff]  }
  0x3e   : > { %919 = vst [vmem:[%s10028_s22 + $0x70] sm:$0xff] %v918_v46   ;;  %v930_v49 = vld [vmem:[%s10023_s21 + $0x108] sm:$0xff]   ;;  %923 = vst [vmem:[%s10028_s22 + $0x78] sm:$0xff] %v922_v47   ;;  %v934_v50 = vld [vmem:[%s10023_s21 + $0x110] sm:$0xff]  }
  0x3f   : > { %927 = vst [vmem:[%s10028_s22 + $0x80] sm:$0xff] %v926_v48   ;;  %931 = vst [vmem:[%s10028_s22 + $0x88] sm:$0xff] %v930_v49   ;;  %v938_v51 = vld [vmem:[%s10023_s21 + $0x118] sm:$0xff]   ;;  %v942_v52 = vld [vmem:[%s10023_s21 + $0x120] sm:$0xff]  }
  0x40   : > { %935 = vst [vmem:[%s10028_s22 + $0x90] sm:$0xff] %v934_v50   ;;  %939 = vst [vmem:[%s10028_s22 + $0x98] sm:$0xff] %v938_v51   ;;  %v946_v53 = vld [vmem:[%s10023_s21 + $0x128] sm:$0xff]   ;;  %v950_v54 = vld [vmem:[%s10023_s21 + $0x130] sm:$0xff]  }
  0x41   : > { %943 = vst [vmem:[%s10028_s22 + $0xa0] sm:$0xff] %v942_v52   ;;  %v954_v55 = vld [vmem:[%s10023_s21 + $0x138] sm:$0xff]   ;;  %947 = vst [vmem:[%s10028_s22 + $0xa8] sm:$0xff] %v946_v53   ;;  %v958_v56 = vld [vmem:[%s10023_s21 + $0x140] sm:$0xff]  }
  0x42   : > { %951 = vst [vmem:[%s10028_s22 + $0xb0] sm:$0xff] %v950_v54   ;;  %955 = vst [vmem:[%s10028_s22 + $0xb8] sm:$0xff] %v954_v55   ;;  %v962_v57 = vld [vmem:[%s10023_s21 + $0x148] sm:$0xff]   ;;  %v966_v58 = vld [vmem:[%s10023_s21 + $0x150] sm:$0xff]  }
  0x43   : > { %959 = vst [vmem:[%s10028_s22 + $0xc0] sm:$0xff] %v958_v56   ;;  %963 = vst [vmem:[%s10028_s22 + $0xc8] sm:$0xff] %v962_v57   ;;  %v970_v59 = vld [vmem:[%s10023_s21 + $0x158] sm:$0xff]   ;;  %v974_v60 = vld [vmem:[%s10023_s21 + $0x160] sm:$0xff]  }
  0x44   : > { %967 = vst [vmem:[%s10028_s22 + $0xd0] sm:$0xff] %v966_v58   ;;  %v978_v61 = vld [vmem:[%s10023_s21 + $0x168] sm:$0xff]   ;;  %971 = vst [vmem:[%s10028_s22 + $0xd8] sm:$0xff] %v970_v59   ;;  %v982_v62 = vld [vmem:[%s10023_s21 + $0x170] sm:$0xff]  }
  0x45   : > { %975 = vst [vmem:[%s10028_s22 + $0xe0] sm:$0xff] %v974_v60   ;;  %979 = vst [vmem:[%s10028_s22 + $0xe8] sm:$0xff] %v978_v61   ;;  %v986_v63 = vld [vmem:[%s10023_s21 + $0x178] sm:$0xff]  }
  0x46   : > { %983 = vst [vmem:[%s10028_s22 + $0xf0] sm:$0xff] %v982_v62   ;;  %987 = vst [vmem:[%s10028_s22 + $0xf8] sm:$0xff] %v986_v63  }
  0x47 PF: > { %1140 = sbr.rel (!%p9936_p3) target bundleno = 97 (0x61), region = 158  ;;  %s1142_s2 = sand.u32 (%p9936_p3), 1, %s9790_s30  }
  0x48   : > { %s8927_s25 = sshll.u32 (%p9936_p3), %s9794_s20, 7  ;;  %s8481_s3 = sshll.u32 (%p9936_p3), %s1142_s2, 8 }
  0x49   : > { %s13563_s28 = sld [smem:[#allocation119_spill]] (%p9936_p3)  ;;  %s10103_s21 = scalar_lea.vmem (%p9936_p3), [#allocation4], %s8481_s3 }
  0x4f   : > { %s10098_s29 = scalar_lea.vmem %s13563_s28, %s8927_s25 }
  0x50   : > { %v1163_v0 = vld [vmem:[%s10098_s29] sm:$0xff]   ;;  %v1167_v1 = vld [vmem:[%s10098_s29 + $0x8] sm:$0xff]   ;;  %v1171_v2 = vld [vmem:[%s10098_s29 + $0x10] sm:$0xff]  }
  0x51   : > { %1164 = vst [vmem:[%s10103_s21] sm:$0xff] %v1163_v0   ;;  %1168 = vst [vmem:[%s10103_s21 + $0x8] sm:$0xff] %v1167_v1   ;;  %v1175_v3 = vld [vmem:[%s10098_s29 + $0x18] sm:$0xff]   ;;  %v1179_v4 = vld [vmem:[%s10098_s29 + $0x20] sm:$0xff]  }
  0x52   : > { %1172 = vst [vmem:[%s10103_s21 + $0x10] sm:$0xff] %v1171_v2   ;;  %v1183_v5 = vld [vmem:[%s10098_s29 + $0x28] sm:$0xff]   ;;  %1176 = vst [vmem:[%s10103_s21 + $0x18] sm:$0xff] %v1175_v3   ;;  %v1187_v6 = vld [vmem:[%s10098_s29 + $0x30] sm:$0xff]  }
  0x53   : > { %1180 = vst [vmem:[%s10103_s21 + $0x20] sm:$0xff] %v1179_v4   ;;  %1184 = vst [vmem:[%s10103_s21 + $0x28] sm:$0xff] %v1183_v5   ;;  %v1191_v7 = vld [vmem:[%s10098_s29 + $0x38] sm:$0xff]   ;;  %v1195_v8 = vld [vmem:[%s10098_s29 + $0x40] sm:$0xff]  }
  0x54   : > { %1188 = vst [vmem:[%s10103_s21 + $0x30] sm:$0xff] %v1187_v6   ;;  %1192 = vst [vmem:[%s10103_s21 + $0x38] sm:$0xff] %v1191_v7   ;;  %v1199_v9 = vld [vmem:[%s10098_s29 + $0x48] sm:$0xff]   ;;  %v1203_v10 = vld [vmem:[%s10098_s29 + $0x50] sm:$0xff]  }
  0x55   : > { %1196 = vst [vmem:[%s10103_s21 + $0x40] sm:$0xff] %v1195_v8   ;;  %v1207_v11 = vld [vmem:[%s10098_s29 + $0x58] sm:$0xff]   ;;  %1200 = vst [vmem:[%s10103_s21 + $0x48] sm:$0xff] %v1199_v9   ;;  %v1211_v12 = vld [vmem:[%s10098_s29 + $0x60] sm:$0xff]  }
  0x56   : > { %1204 = vst [vmem:[%s10103_s21 + $0x50] sm:$0xff] %v1203_v10   ;;  %1208 = vst [vmem:[%s10103_s21 + $0x58] sm:$0xff] %v1207_v11   ;;  %v1215_v13 = vld [vmem:[%s10098_s29 + $0x68] sm:$0xff]   ;;  %v1219_v14 = vld [vmem:[%s10098_s29 + $0x70] sm:$0xff]  }
  0x57   : > { %1212 = vst [vmem:[%s10103_s21 + $0x60] sm:$0xff] %v1211_v12   ;;  %1216 = vst [vmem:[%s10103_s21 + $0x68] sm:$0xff] %v1215_v13   ;;  %v1223_v15 = vld [vmem:[%s10098_s29 + $0x78] sm:$0xff]   ;;  %v1227_v16 = vld [vmem:[%s10098_s29 + $0x100] sm:$0xff]  }
  0x58   : > { %1220 = vst [vmem:[%s10103_s21 + $0x70] sm:$0xff] %v1219_v14   ;;  %v1231_v17 = vld [vmem:[%s10098_s29 + $0x108] sm:$0xff]   ;;  %1224 = vst [vmem:[%s10103_s21 + $0x78] sm:$0xff] %v1223_v15   ;;  %v1235_v18 = vld [vmem:[%s10098_s29 + $0x110] sm:$0xff]  }
  0x59   : > { %1228 = vst [vmem:[%s10103_s21 + $0x80] sm:$0xff] %v1227_v16   ;;  %1232 = vst [vmem:[%s10103_s21 + $0x88] sm:$0xff] %v1231_v17   ;;  %v1239_v19 = vld [vmem:[%s10098_s29 + $0x118] sm:$0xff]   ;;  %v1243_v20 = vld [vmem:[%s10098_s29 + $0x120] sm:$0xff]  }
  0x5a   : > { %1236 = vst [vmem:[%s10103_s21 + $0x90] sm:$0xff] %v1235_v18   ;;  %1240 = vst [vmem:[%s10103_s21 + $0x98] sm:$0xff] %v1239_v19   ;;  %v1247_v21 = vld [vmem:[%s10098_s29 + $0x128] sm:$0xff]   ;;  %v1251_v22 = vld [vmem:[%s10098_s29 + $0x130] sm:$0xff]  }
  0x5b   : > { %1244 = vst [vmem:[%s10103_s21 + $0xa0] sm:$0xff] %v1243_v20   ;;  %v1255_v23 = vld [vmem:[%s10098_s29 + $0x138] sm:$0xff]   ;;  %1248 = vst [vmem:[%s10103_s21 + $0xa8] sm:$0xff] %v1247_v21   ;;  %v1259_v24 = vld [vmem:[%s10098_s29 + $0x140] sm:$0xff]  }
  0x5c   : > { %1252 = vst [vmem:[%s10103_s21 + $0xb0] sm:$0xff] %v1251_v22   ;;  %1256 = vst [vmem:[%s10103_s21 + $0xb8] sm:$0xff] %v1255_v23   ;;  %v1263_v25 = vld [vmem:[%s10098_s29 + $0x148] sm:$0xff]   ;;  %v1267_v26 = vld [vmem:[%s10098_s29 + $0x150] sm:$0xff]  }
  0x5d   : > { %1260 = vst [vmem:[%s10103_s21 + $0xc0] sm:$0xff] %v1259_v24   ;;  %1264 = vst [vmem:[%s10103_s21 + $0xc8] sm:$0xff] %v1263_v25   ;;  %v1271_v27 = vld [vmem:[%s10098_s29 + $0x158] sm:$0xff]   ;;  %v1275_v28 = vld [vmem:[%s10098_s29 + $0x160] sm:$0xff]  }
  0x5e   : > { %1268 = vst [vmem:[%s10103_s21 + $0xd0] sm:$0xff] %v1267_v26   ;;  %v1279_v29 = vld [vmem:[%s10098_s29 + $0x168] sm:$0xff]   ;;  %1272 = vst [vmem:[%s10103_s21 + $0xd8] sm:$0xff] %v1271_v27   ;;  %v1283_v30 = vld [vmem:[%s10098_s29 + $0x170] sm:$0xff]  }
  0x5f   : > { %1276 = vst [vmem:[%s10103_s21 + $0xe0] sm:$0xff] %v1275_v28   ;;  %1280 = vst [vmem:[%s10103_s21 + $0xe8] sm:$0xff] %v1279_v29   ;;  %v1287_v31 = vld [vmem:[%s10098_s29 + $0x178] sm:$0xff]  }
  0x60   : > { %1284 = vst [vmem:[%s10103_s21 + $0xf0] sm:$0xff] %v1283_v30   ;;  %1288 = vst [vmem:[%s10103_s21 + $0xf8] sm:$0xff] %v1287_v31  }
  0x61 PF: > { %p8484_p5 = scmp.ge.s32.totalorder %s9794_s20, 1  ;;  %p1458_p6 = scmp.lt.s32.totalorder %s9794_s20, 3 }
  0x63   : > { %p1459_p7 = pnand %p8484_p5, %p1458_p6 }
  0x65   : > { %1462 = sbr.rel (%p1459_p7) target bundleno = 1675 (0x68b), region = 207 }
  0x6c   : > { %v1606_v32 = vld [vmem:[%s13494_s5] sm:$0x3]  ;;  %vm1743_vm0 = vcmask 1041408   ;;  %s1465_s2 = sand.u32 1, %s9786_s0   ;;  %v8576_v34 = vld [vmem:[%s13494_s5 + $0x2] sm:$0x3] }
  0x6d   : > { %9570 = vmatprep.subr.msk.bf16.mxu0 %vm1743_vm0, %v1606_v32  ;;  %v1745_v33 = vsel %vm1743_vm0, %v1606_v32, 0  ;;  %s10174_s25 = sshll.u32 %s1465_s2, 8  ;;  %vm1694_vm1 = vcmask 31744   ;;  %v2606_v37 = vsel %vm1743_vm0, %v8576_v34, 0  ;;  %vm3470_vm2 = vcmask 1044480   ;;  %v9673_v17 = vld [vmem:[%s13502_s13] sm:$0xff]  }
  0x6e   : > { %9143 = vmatpush3.bf16.msra.mxu0 %v1745_v33  ;;  %s10180_s27 = scalar_lea.vmem [#allocation2], %s10174_s25  ;;  %vm3471_vm3 = vcmask 1045504   ;;  %v9796_v41 = vmov 65535   ;;  %v9639_v46 = vld [vmem:[%s13498_s9] sm:$0x3f]   ;;  %s10209_s29 = scalar_lea.vmem [#allocation3], %s10174_s25 }
  0x6f   : > { %v9622_v35 = vld [vmem:[%s10180_s27] sm:$0xff]   ;;  %9572 = vmatprep.subr.msk.bf16.mxu0 %vm1743_vm0, %v8576_v34  ;;  %v9623_v36 = vld [vmem:[%s10180_s27 + $0x8] sm:$0xff]   ;;  %v9624_v38 = vld [vmem:[%s10180_s27 + $0x10] sm:$0xff]   ;;  %v3472_v42 = vsel %vm3470_vm2, 4294967295, %v9796_v41  ;;  %s10231_s22 = scalar_lea.vmem [#allocation4], %s10174_s25  ;;  %vm2013_vm4 = vcmask 1043456  }
  0x70   : > { %9144 = vmatprep.mubr.msk.bf16.mxu0 %vm1694_vm1, %v9622_v35  ;;  %v9625_v39 = vld [vmem:[%s10180_s27 + $0x18] sm:$0xff]   ;;  %v9626_v40 = vld [vmem:[%s10180_s27 + $0x20] sm:$0xff]   ;;  %v9627_v43 = vld [vmem:[%s10180_s27 + $0x28] sm:$0xff]   ;;  %v3473_v45 = vsel %vm3471_vm3, %v3472_v42, 0  ;;  %vm3421_vm5 = vcmask 89088   ;;  %vm5210_vm6 = vcmask 1040384  }
  0x71   : > { %9145 = vmatmul.mubr.msk.bf16.vlgmr.msra.gmra.mrb[0].mxu0 %vm1694_vm1, %v9623_v36  ;;  %v9628_v44 = vld [vmem:[%s10180_s27 + $0x30] sm:$0xff]   ;;  %v3475_v47 = vand.u32 %v9639_v46, %v3473_v45  ;;  %v9629_v48 = vld [vmem:[%s10180_s27 + $0x38] sm:$0xff]   ;;  %v9630_v49 = vld [vmem:[%s10180_s27 + $0x40] sm:$0xff]   ;;  %v5211_v32 = vsel %vm5210_vm6, 4294967295, %v9796_v41  ;;  %vm1964_vm7 = vcmask 64512   ;;  %s13564_s28 = sadd.s32 4294967295, %s9794_s20  }
  0x72   : > { %9211 = vmatpush3.bf16.msra.mxu0 %v2606_v37  ;;  %9148 = vmatprep.mubr.msk.bf16.mxu0 %vm1694_vm1, %v9624_v38  ;;  %v9631_v50 = vld [vmem:[%s10180_s27 + $0x48] sm:$0xff]   ;;  %v9632_v51 = vld [vmem:[%s10180_s27 + $0x50] sm:$0xff]   ;;  %v9633_v52 = vld [vmem:[%s10180_s27 + $0x58] sm:$0xff]   ;;  %v10315_v34 = vsel %vm1743_vm0, %v5211_v32, 0  ;;  %v9798_v32 = vmov 0   ;;  %vm5161_vm8 = vcmask 154624  }
  0x73   : > { %9278 = vmatprep.subr.bf16.mxu0 %v3475_v47  ;;  %v9634_v53 = vld [vmem:[%s10180_s27 + $0x60] sm:$0xff]   ;;  %v9635_v54 = vld [vmem:[%s10180_s27 + $0x68] sm:$0xff]   ;;  %v9636_v55 = vld [vmem:[%s10180_s27 + $0x70] sm:$0xff]   ;;  %9613 = vset.pattern.permute.xlu1 %v9798_v32  ;;  %vm7653_vm9 = vcmask 1041409   ;;  %vm7655_vm10 = vcmask 1042434   ;;  %vm3938_vm11 = vcmask 130048  }
  0x74   : > { %v9637_v56 = vld [vmem:[%s10180_s27 + $0x78] sm:$0xff]   ;;  %v9638_v57 = vld [vmem:[%s10180_s27 + $0x80] sm:$0xff]   ;;  %v9656_v58 = vld [vmem:[%s13498_s9 + $0x8] sm:$0x3f]   ;;  %vm7657_vm12 = vcmask 1043459   ;;  %vm7659_vm13 = vcmask 1044484  }
  0x75   : > { %v9640_v59 = vld [vmem:[%s10180_s27 + $0x88] sm:$0xff]   ;;  %v9641_v60 = vld [vmem:[%s10180_s27 + $0x90] sm:$0xff]   ;;  %v4341_v61 = vand.u32 %v9656_v58, %v3473_v45  ;;  %v9642_v62 = vld [vmem:[%s10180_s27 + $0x98] sm:$0xff]   ;;  %vm7661_vm14 = vcmask 1045509   ;;  %vm7663_vm15 = vcmask 1046534   ;;  %vm7665_vm0 = vcmask 1047559  }
  0x76   : > { %v9643_v63 = vld [vmem:[%s10180_s27 + $0xa0] sm:$0xff]   ;;  %v9644_v0 = vld [vmem:[%s10180_s27 + $0xa8] sm:$0xff]   ;;  %v9645_v1 = vld [vmem:[%s10180_s27 + $0xb0] sm:$0xff]   ;;  %s9802_s0 = smov 8   ;;  %s9804_s24 = smov 32   ;;  %vm8165_vm2 = vcmask 392192  }
  0x77   : > { %v9646_v2 = vld [vmem:[%s10180_s27 + $0xb8] sm:$0xff]   ;;  %v9647_v3 = vld [vmem:[%s10180_s27 + $0xc0] sm:$0xff]   ;;  %v9648_v6 = vld [vmem:[%s10180_s27 + $0xc8] sm:$0xff]   ;;  %s9805_s3 = smov 48   ;;  %vm8170_vm3 = vcmask 523264  }
  0x78   : > { %v1956_v4 = vld [vmem:[%s13496_s7] sm:$0xf]  ;;  %v9649_v7 = vld [vmem:[%s10180_s27 + $0xd0] sm:$0xff]   ;;  %v10259_v8 = vld [vmem:[%s13496_s7 + $0x4] sm:$0xf] }
  0x79   : > { %9149 = vmatmul.mubr.msk.bf16.gmra.mrb[4].mxu0 %vm1694_vm1, %v9625_v39  ;;  %9571 = vmatprep.subr.msk.bf16.mxu1 %vm2013_vm4, %v1956_v4  ;;  %v2015_v5 = vsel %vm2013_vm4, %v1956_v4, 0  ;;  %v9650_v9 = vld [vmem:[%s10180_s27 + $0xd8] sm:$0xff]   ;;  %v9651_v10 = vld [vmem:[%s10180_s27 + $0xe0] sm:$0xff]   ;;  %v9652_v11 = vld [vmem:[%s10180_s27 + $0xe8] sm:$0xff]  }
  0x7a   : > { %9152 = vmatprep.mubr.msk.bf16.mxu0 %vm1694_vm1, %v9626_v40  ;;  %9177 = vmatpush3.bf16.msra.mxu1 %v2015_v5  ;;  %v9653_v12 = vld [vmem:[%s10180_s27 + $0xf0] sm:$0xff]   ;;  %v9654_v13 = vld [vmem:[%s10180_s27 + $0xf8] sm:$0xff]   ;;  %v9655_v14 = vld [vmem:[%s10209_s29] sm:$0xff]   ;;  %s8490_s27 = sshll.u32 %s13564_s28, 2 }
  0x7b   : > { %9573 = vmatprep.subr.msk.bf16.mxu1 %vm2013_vm4, %v10259_v8  ;;  %v9657_v15 = vld [vmem:[%s10209_s29 + $0x8] sm:$0xff]   ;;  %v9658_v16 = vld [vmem:[%s10209_s29 + $0x10] sm:$0xff]   ;;  %v9659_v18 = vld [vmem:[%s10209_s29 + $0x18] sm:$0xff]   ;;  %p1562_p8 = scmp.lt.s32.totalorder %s8490_s27, 7 }
  0x7c   : > { %v9660_v19 = vld [vmem:[%s10209_s29 + $0x20] sm:$0xff]   ;;  %v9661_v20 = vld [vmem:[%s10209_s29 + $0x28] sm:$0xff]   ;;  %v9662_v21 = vld [vmem:[%s10209_s29 + $0x30] sm:$0xff]  }
  0x7d   : > { %v9663_v22 = vld [vmem:[%s10209_s29 + $0x38] sm:$0xff]   ;;  %v9664_v23 = vld [vmem:[%s10209_s29 + $0x40] sm:$0xff]   ;;  %v9665_v24 = vld [vmem:[%s10209_s29 + $0x48] sm:$0xff]   ;;  %s13989_s27 = smov (!%p1562_p8, %s8490_s27), 7 }
  0x7e   : > { %v9666_v25 = vld [vmem:[%s10209_s29 + $0x50] sm:$0xff]   ;;  %v9667_v26 = vld [vmem:[%s10209_s29 + $0x58] sm:$0xff]   ;;  %v9668_v27 = vld [vmem:[%s10209_s29 + $0x60] sm:$0xff]   ;;  %s8491_s21 = sshll.u32 %s13989_s27, 3 }
  0x7f   : > { %v9669_v28 = vld [vmem:[%s10209_s29 + $0x68] sm:$0xff]   ;;  %v9670_v29 = vld [vmem:[%s10209_s29 + $0x70] sm:$0xff]   ;;  %v9671_v30 = vld [vmem:[%s10209_s29 + $0x78] sm:$0xff]   ;;  %s10378_s25 = scalar_lea.vmem %s13493_s4, %s8491_s21 }
  0x80   : > { %v9672_v31 = vld [vmem:[%s10209_s29 + $0x80] sm:$0xff]   ;;  %v9682_v33 = vld [vmem:[%s13502_s13 + $0x8] ss:$0 sps:$4 sm:$0x33]   ;;  %v9675_v36 = vld [vmem:[%s10209_s29 + $0x90] sm:$0xff]  }
  0x81   : > { %9153 = vmatmul.mubr.msk.bf16.gmra.mrb[8].mxu0 %vm1694_vm1, %v9627_v43  ;;  %v9674_v35 = vld [vmem:[%s10209_s29 + $0x88] sm:$0xff]   ;;  %v5214_v37 = vand.u32 %v9682_v33, %v10315_v34  ;;  %v9676_v39 = vld [vmem:[%s10209_s29 + $0x98] sm:$0xff]   ;;  %v9677_v40 = vld [vmem:[%s10209_s29 + $0xa0] sm:$0xff]  }
  0x82   : > { %9156 = vmatprep.mubr.msk.bf16.mxu0 %vm1694_vm1, %v9628_v44  ;;  %v10325_v38 = vld [vmem:[%s13502_s13 + $0xc] sm:$0xff]   ;;  %v10338_v43 = vld [vmem:[%s13495_s6] ss:$0 sm:$0xff] }
  0x83   : > { %v9678_v41 = vld [vmem:[%s10209_s29 + $0xa8] sm:$0xff]   ;;  %v9679_v42 = vld [vmem:[%s10209_s29 + $0xb0] sm:$0xff]   ;;  %v10359_v4 = vld [vmem:[%s13500_s11] sm:$0xf] }
  0x89   : > { %9157 = vmatmul.mubr.msk.bf16.gmra.mrb[12].mxu0 %vm1694_vm1, %v9629_v48 }
  0x8a   : > { %9160 = vmatprep.mubr.msk.bf16.mxu0 %vm1694_vm1, %v9630_v49 }
  0x91   : > { %9161 = vmatmul.mubr.msk.bf16.gmra.mrb[16].mxu0 %vm1694_vm1, %v9631_v50  ;;  %v9681_v50 = vld [vmem:[%s10209_s29 + $0xc0] sm:$0xff]  }
  0x92   : > { %9164 = vmatprep.mubr.msk.bf16.mxu0 %vm1694_vm1, %v9632_v51 }
  0x99   : > { %9165 = vmatmul.mubr.msk.bf16.gmra.mrb[20].mxu0 %vm1694_vm1, %v9633_v52 }
  0x9a   : > { %9168 = vmatprep.mubr.msk.bf16.mxu0 %vm1694_vm1, %v9634_v53 }
  0xa1   : > { %9169 = vmatmul.mubr.msk.bf16.gmra.mrb[24].mxu0 %vm1694_vm1, %v9635_v54 }
  0xa2   : > { %9172 = vmatprep.mubr.msk.bf16.mxu0 %vm1694_vm1, %v9636_v55 }
  0xa9   : > { %9173 = vmatmul.mubr.msk.bf16.gmra.mrb[28].mxu0 %vm1694_vm1, %v9637_v56 }
  0xaa   : > { %9212 = vmatprep.mubr.msk.bf16.mxu0 %vm1694_vm1, %v9638_v57 }
  0xb1   : > { %9213 = vmatmul.mubr.msk.bf16.vlgmr.msra.gmra.mrb[32].mxu0 %vm1694_vm1, %v9640_v59 }
  0xb2   : > { %9279 = vmatpush3.bf16.msra.mxu0 %v3475_v47  ;;  %9216 = vmatprep.mubr.msk.bf16.mxu0 %vm1694_vm1, %v9641_v60  ;;  %v9680_v47 = vld [vmem:[%s10209_s29 + $0xb8] sm:$0xff]  }
  0xb3   : > { %9346 = vmatprep.subr.bf16.mxu0 %v4341_v61 }
  0xb9   : > { %9217 = vmatmul.mubr.msk.bf16.gmra.mrb[36].mxu0 %vm1694_vm1, %v9642_v62 }
  0xba   : > { %9220 = vmatprep.mubr.msk.bf16.mxu0 %vm1694_vm1, %v9643_v63  ;;  %v2876_v63 = vsel %vm2013_vm4, %v10259_v8, 0 }
  0xc1   : > { %9221 = vmatmul.mubr.msk.bf16.gmra.mrb[40].mxu0 %vm1694_vm1, %v9644_v0  ;;  %v9683_v0 = vld [vmem:[%s10209_s29 + $0xc8] sm:$0xff]  }
  0xc2   : > { %9224 = vmatprep.mubr.msk.bf16.mxu0 %vm1694_vm1, %v9645_v1 }
  0xc9   : > { %9225 = vmatmul.mubr.msk.bf16.gmra.mrb[44].mxu0 %vm1694_vm1, %v9646_v2 }
  0xca   : > { %9228 = vmatprep.mubr.msk.bf16.mxu0 %vm1694_vm1, %v9647_v3  ;;  %v9684_v3 = vld [vmem:[%s10209_s29 + $0xd0] sm:$0xff]  }
  0xd1   : > { %9229 = vmatmul.mubr.msk.bf16.gmra.mrb[48].mxu0 %vm1694_vm1, %v9648_v6 }
  0xd2   : > { %9232 = vmatprep.mubr.msk.bf16.mxu0 %vm1694_vm1, %v9649_v7 }
  0xd9   : > { %9233 = vmatmul.mubr.msk.bf16.gmra.mrb[52].mxu0 %vm1694_vm1, %v9650_v9 }
  0xda   : > { %9236 = vmatprep.mubr.msk.bf16.mxu0 %vm1694_vm1, %v9651_v10 }
  0xe1   : > { %9237 = vmatmul.mubr.msk.bf16.gmra.mrb[56].mxu0 %vm1694_vm1, %v9652_v11 }
  0xe2   : > { %9240 = vmatprep.mubr.msk.bf16.mxu0 %vm1694_vm1, %v9653_v12 }
  0xe9   : > { %9241 = vmatmul.mubr.msk.bf16.gmra.mrb[60].mxu0 %vm1694_vm1, %v9654_v13  ;;  %vm8160_vm1 = vcmask 261120  }
  0xea   : > { %9280 = vmatprep.mubr.msk.bf16.mxu0 %vm3421_vm5, %v9655_v14 }
  0xf1   : > { %9281 = vmatmul.mubr.msk.bf16.vlgmr.msra.gmra.mrb[64].mxu0 %vm3421_vm5, %v9657_v15 }
  0xf2   : > { %9347 = vmatpush3.bf16.msra.mxu0 %v4341_v61  ;;  %9284 = vmatprep.mubr.msk.bf16.mxu0 %vm3421_vm5, %v9658_v16 }
  0xf3   : > { %9414 = vmatprep.subr.bf16.mxu0 %v9673_v17 }
  0xf9   : > { %9285 = vmatmul.mubr.msk.bf16.gmra.mrb[68].mxu0 %vm3421_vm5, %v9659_v18  ;;  %v9797_v18 = vmov 1  }
  0xfa   : > { %9288 = vmatprep.mubr.msk.bf16.mxu0 %vm3421_vm5, %v9660_v19  ;;  %9612 = vset.pattern.permute.xlu0 %v9797_v18  ;;  %v10383_v19 = vld [vmem:[%s10378_s25] sm:$0xff] }
  0xfb   : > { %6926 = vperm.xlu0 %9612, %v10383_v19   ;;  %6819 = vperm.xlu1 %9613, %v10383_v19  }
 0x101   : > { %9289 = vmatmul.mubr.msk.bf16.gmra.mrb[72].mxu0 %vm3421_vm5, %v9661_v20 }
 0x102   : > { %9292 = vmatprep.mubr.msk.bf16.mxu0 %vm3421_vm5, %v9662_v21 }
 0x109   : > { %9293 = vmatmul.mubr.msk.bf16.gmra.mrb[76].mxu0 %vm3421_vm5, %v9663_v22  ;;  %v9686_v22 = vld [vmem:[%s10209_s29 + $0xe0] sm:$0xff]  }
 0x10a   : > { %9296 = vmatprep.mubr.msk.bf16.mxu0 %vm3421_vm5, %v9664_v23 }
 0x111   : > { %9297 = vmatmul.mubr.msk.bf16.gmra.mrb[80].mxu0 %vm3421_vm5, %v9665_v24 }
 0x112   : > { %9300 = vmatprep.mubr.msk.bf16.mxu0 %vm3421_vm5, %v9666_v25 }
 0x119   : > { %9301 = vmatmul.mubr.msk.bf16.gmra.mrb[84].mxu0 %vm3421_vm5, %v9667_v26 }
 0x11a   : > { %9304 = vmatprep.mubr.msk.bf16.mxu0 %vm3421_vm5, %v9668_v27 }
 0x121   : > { %9305 = vmatmul.mubr.msk.bf16.gmra.mrb[88].mxu0 %vm3421_vm5, %v9669_v28  ;;  %v10394_v28 = vld [vmem:[%s10378_s25 + $0x8] sm:$0xff] }
 0x122   : > { %9308 = vmatprep.mubr.msk.bf16.mxu0 %vm3421_vm5, %v9670_v29  ;;  %6929 = vperm.xlu0 %9612, %v10394_v28  }
 0x123   : > { %6823 = vperm.xlu1 %9613, %v10394_v28  }
 0x127   : > { %9614 = vset.pattern.permute.xlu1 %v9797_v18 }
 0x129   : > { %9309 = vmatmul.mubr.msk.bf16.gmra.mrb[92].mxu0 %vm3421_vm5, %v9671_v30 }
 0x12a   : > { %9348 = vmatprep.mubr.msk.bf16.mxu0 %vm3421_vm5, %v9672_v31 }
 0x131   : > { %9349 = vmatmul.mubr.msk.bf16.vlgmr.msra.gmra.mrb[96].mxu0 %vm3421_vm5, %v9674_v35 }
 0x132   : > { %9415 = vmatpush3.bf16.msra.mxu0 %v9673_v17  ;;  %9352 = vmatprep.mubr.msk.bf16.mxu0 %vm3421_vm5, %v9675_v36  ;;  %v9685_v17 = vld [vmem:[%s10209_s29 + $0xd8] sm:$0xff]  }
 0x133   : > { %9416 = vmatprep.subr.bf16.mxu0 %v5214_v37 }
 0x136   : > { %9417 = vmatpush3.bf16.msra.mxu0 %v5214_v37 }
 0x137   : > { %9484 = vmatprep.subr.bf16.mxu0 %v10325_v38 }
 0x139   : > { %9353 = vmatmul.mubr.msk.bf16.gmra.mrb[100].mxu0 %vm3421_vm5, %v9676_v39  ;;  %v9687_v39 = vld [vmem:[%s10209_s29 + $0xe8] sm:$0xff]  }
 0x13a   : > { %9356 = vmatprep.mubr.msk.bf16.mxu0 %vm3421_vm5, %v9677_v40  ;;  %v10403_v40 = vld [vmem:[%s10378_s25 + $0x10] sm:$0xff] }
 0x13b   : > { %6932 = vperm.xlu0 %9612, %v10403_v40  }
 0x141   : > { %9357 = vmatmul.mubr.msk.bf16.gmra.mrb[104].mxu0 %vm3421_vm5, %v9678_v41 }
 0x142   : > { %9360 = vmatprep.mubr.msk.bf16.mxu0 %vm3421_vm5, %v9679_v42 }
 0x144   : > { %v9146_v44 = vpop.f32.mrb[0].mxu0 }
 0x145   : > { %v1790_v45 = vadd.f32 %v9146_v44, %v10338_v43  ;;  %v1781_v46 = vpop.f32.mrb[1].mxu0  ;;  %v9688_v44 = vld [vmem:[%s10209_s29 + $0xf0] sm:$0xff]  }
 0x146   : > { %v1782_v48 = vadd.f32 %v10338_v43, %v1781_v46  ;;  %v9147_v49 = vpop.f32.mrb[2].mxu0 }
 0x147   : > { %v1793_v51 = vadd.f32 %v9147_v49, %v10338_v43  ;;  %v1784_v52 = vpop.f32.mrb[3].mxu0  ;;  %v1910_v54 = vmax.f32 %v1790_v45, 0.0 }
 0x148   : > { %v1785_v53 = vadd.f32 %v10338_v43, %v1784_v52  ;;  %v1908_v56 = vmax.f32 %v1782_v48, 0.0  ;;  %v9799_v52 = vmov 2  }
 0x149   : > { %v1911_v55 = vmax.f32 %v1793_v51, 0.0  ;;  %9361 = vmatmul.mubr.msk.bf16.gmra.mrb[108].mxu0 %vm3421_vm5, %v9680_v47  ;;  %9615 = vset.pattern.permute.xlu0 %v9799_v52 }
 0x14a   : > { %v1909_v57 = vmax.f32 %v1785_v53, 0.0  ;;  %9364 = vmatprep.mubr.msk.bf16.mxu0 %vm3421_vm5, %v9681_v50  ;;  %7158 = vperm.xlu0 %9615, %v10383_v19  }
 0x14b   : > { %v1941_v58 = vpack.c.bf16 %v1911_v55, %v1910_v54 }
 0x14c   : > { %v9150_v59 = vpop.f32.mrb[4].mxu0  ;;  %v1940_v60 = vpack.c.bf16 %v1909_v57, %v1908_v56  ;;  %v10417_v56 = vld [vmem:[%s10378_s25 + $0x18] sm:$0xff]  ;;  %s13567_s25 = sld [smem:[#allocation120_spill]] }
 0x14d   : > { %v1806_v61 = vadd.f32 %v9150_v59, %v10338_v43  ;;  %v1797_v62 = vpop.f32.mrb[5].mxu0  ;;  %v9689_v59 = vld [vmem:[%s10209_s29 + $0xf8] sm:$0xff]   ;;  %6935 = vperm.xlu1 %9614, %v10417_v56  }
 0x14e   : > { %v1798_v1 = vadd.f32 %v10338_v43, %v1797_v62  ;;  %v9151_v2 = vpop.f32.mrb[6].mxu0  ;;  %9178 = vmatprep.mubr.msk.bf16.mxu1 %vm1964_vm7, %v1940_v60  ;;  %v9690_v62 = vld [vmem:[%s10231_s22] sm:$0xff]   ;;  %9618 = vset.pattern.permute.xlu0 %v9798_v32 }
 0x14f   : > { %v1809_v5 = vadd.f32 %v9151_v2, %v10338_v43  ;;  %v1800_v6 = vpop.f32.mrb[7].mxu0  ;;  %9179 = vmatmul.mubr.msk.bf16.vlgmr.msra.gmra.mrb[0].mxu1 %vm1964_vm7, %v1941_v58  ;;  %v1914_v8 = vmax.f32 %v1806_v61, 0.0  ;;  %6831 = vperm.xlu0 %9618, %v10417_v56  }
 0x150   : > { %v1801_v7 = vadd.f32 %v10338_v43, %v1800_v6  ;;  %9245 = vmatpush3.bf16.msra.mxu1 %v2876_v63  ;;  %v1912_v10 = vmax.f32 %v1798_v1, 0.0 }
 0x151   : > { %v1915_v9 = vmax.f32 %v1809_v5, 0.0  ;;  %9365 = vmatmul.mubr.msk.bf16.gmra.mrb[112].mxu0 %vm3421_vm5, %v9683_v0  ;;  %9574 = vmatprep.subr.msk.bf16.mxu1 %vm2013_vm4, %v10359_v4 }
 0x152   : > { %v1913_v11 = vmax.f32 %v1801_v7, 0.0  ;;  %9368 = vmatprep.mubr.msk.bf16.mxu0 %vm3421_vm5, %v9684_v3  ;;  %9616 = vset.pattern.permute.xlu1 %v9799_v52 }
 0x153   : > { %v1943_v12 = vpack.c.bf16 %v1915_v9, %v1914_v8  ;;  %7161 = vperm.xlu1 %9616, %v10394_v28   ;;  %v9700_v8 = vld [vmem:[%s13502_s13 + $0x14] ss:$0 sps:$4 sm:$0x33]  }
 0x154   : > { %v1942_v13 = vpack.c.bf16 %v1913_v11, %v1912_v10  ;;  %v9154_v14 = vpop.f32.mrb[8].mxu0  ;;  %v9800_v11 = vmov 3  }
 0x155   : > { %v1822_v15 = vadd.f32 %v9154_v14, %v10338_v43  ;;  %v1813_v16 = vpop.f32.mrb[9].mxu0  ;;  %9620 = vset.pattern.permute.xlu0 %v9800_v11  ;;  %v9692_v14 = vld [vmem:[%s10231_s22 + $0x8] sm:$0xff]  }
 0x156   : > { %v1814_v20 = vadd.f32 %v10338_v43, %v1813_v16  ;;  %v9155_v21 = vpop.f32.mrb[10].mxu0  ;;  %9182 = vmatprep.mubr.msk.bf16.mxu1 %vm1964_vm7, %v1942_v13  ;;  %7390 = vperm.xlu0 %9620, %v10383_v19  }
 0x157   : > { %v1825_v23 = vadd.f32 %v9155_v21, %v10338_v43  ;;  %v1816_v24 = vpop.f32.mrb[11].mxu0  ;;  %9183 = vmatmul.mubr.msk.bf16.gmra.mrb[4].mxu1 %vm1964_vm7, %v1943_v12  ;;  %v1918_v26 = vmax.f32 %v1822_v15, 0.0  ;;  %9617 = vset.pattern.permute.xlu1 %v9798_v32  ;;  %v6088_v21 = vand.u32 %v9700_v8, %v10315_v34 }
 0x158   : > { %v1817_v25 = vadd.f32 %v10338_v43, %v1816_v24  ;;  %v1916_v29 = vmax.f32 %v1814_v20, 0.0  ;;  %6827 = vperm.xlu1 %9617, %v10403_v40  }
 0x159   : > { %v1919_v27 = vmax.f32 %v1825_v23, 0.0  ;;  %9369 = vmatmul.mubr.msk.bf16.gmra.mrb[116].mxu0 %vm3421_vm5, %v9685_v17  ;;  %v9693_v17 = vld [vmem:[%s10231_s22 + $0x10] sm:$0xff]  }
 0x15a   : > { %v1917_v30 = vmax.f32 %v1817_v25, 0.0  ;;  %9372 = vmatprep.mubr.msk.bf16.mxu0 %vm3421_vm5, %v9686_v22  ;;  %7399 = vperm.xlu0 %9620, %v10417_v56  }
 0x15b   : > { %v1945_v31 = vpack.c.bf16 %v1919_v27, %v1918_v26 }
 0x15c   : > { %v1944_v33 = vpack.c.bf16 %v1917_v30, %v1916_v29  ;;  %v9158_v35 = vpop.f32.mrb[12].mxu0  ;;  %9619 = vset.pattern.permute.xlu1 %v9799_v52 }
 0x15d   : > { %v1838_v36 = vadd.f32 %v9158_v35, %v10338_v43  ;;  %v1829_v37 = vpop.f32.mrb[13].mxu0  ;;  %7164 = vperm.xlu1 %9619, %v10403_v40   ;;  %v9695_v35 = vld [vmem:[%s10231_s22 + $0x20] sm:$0xff]  }
 0x15e   : > { %v1830_v41 = vadd.f32 %v10338_v43, %v1829_v37  ;;  %v9159_v42 = vpop.f32.mrb[14].mxu0  ;;  %9186 = vmatprep.mubr.msk.bf16.mxu1 %vm1964_vm7, %v1944_v33 }
 0x15f   : > { %v1841_v45 = vadd.f32 %v9159_v42, %v10338_v43  ;;  %v1832_v46 = vpop.f32.mrb[15].mxu0  ;;  %9187 = vmatmul.mubr.msk.bf16.gmra.mrb[8].mxu1 %vm1964_vm7, %v1945_v31  ;;  %v1922_v48 = vmax.f32 %v1838_v36, 0.0  ;;  %v9694_v31 = vld [vmem:[%s10231_s22 + $0x18] sm:$0xff]  }
 0x160   : > { %v1833_v47 = vadd.f32 %v10338_v43, %v1832_v46  ;;  %v1920_v50 = vmax.f32 %v1830_v41, 0.0 }
 0x161   : > { %v1923_v49 = vmax.f32 %v1841_v45, 0.0  ;;  %9373 = vmatmul.mubr.msk.bf16.gmra.mrb[120].mxu0 %vm3421_vm5, %v9687_v39  ;;  %7167 = vperm.xlu1 %9619, %v10417_v56  }
 0x162   : > { %v1921_v51 = vmax.f32 %v1833_v47, 0.0  ;;  %9376 = vmatprep.mubr.msk.bf16.mxu0 %vm3421_vm5, %v9688_v44 }
 0x163   : > { %v1947_v53 = vpack.c.bf16 %v1923_v49, %v1922_v48 }
 0x164   : > { %v1946_v54 = vpack.c.bf16 %v1921_v51, %v1920_v50  ;;  %v9162_v55 = vpop.f32.mrb[16].mxu0  ;;  %v9696_v50 = vld [vmem:[%s10231_s22 + $0x28] sm:$0xff]  }
 0x165   : > { %v1854_v57 = vadd.f32 %v9162_v55, %v10338_v43  ;;  %v1845_v58 = vpop.f32.mrb[17].mxu0  ;;  %9621 = vset.pattern.permute.xlu1 %v9800_v11 }
 0x166   : > { %v1846_v60 = vadd.f32 %v10338_v43, %v1845_v58  ;;  %v9163_v61 = vpop.f32.mrb[18].mxu0  ;;  %9190 = vmatprep.mubr.msk.bf16.mxu1 %vm1964_vm7, %v1946_v54  ;;  %7393 = vperm.xlu1 %9621, %v10394_v28  }
 0x167   : > { %v1857_v63 = vadd.f32 %v9163_v61, %v10338_v43  ;;  %v1848_v0 = vpop.f32.mrb[19].mxu0  ;;  %9191 = vmatmul.mubr.msk.bf16.gmra.mrb[12].mxu1 %vm1964_vm7, %v1947_v53  ;;  %v1926_v2 = vmax.f32 %v1854_v57, 0.0  ;;  %v9697_v53 = vld [vmem:[%s10231_s22 + $0x30] sm:$0xff]  }
 0x168   : > { %v1849_v1 = vadd.f32 %v10338_v43, %v1848_v0  ;;  %v1924_v5 = vmax.f32 %v1846_v60, 0.0  ;;  %v10478_v60 = vld [vmem:[%s13495_s6 + $0x1] ss:$0 sm:$0xff] }
 0x169   : > { %v1927_v3 = vmax.f32 %v1857_v63, 0.0  ;;  %9377 = vmatmul.mubr.msk.bf16.gmra.mrb[124].mxu0 %vm3421_vm5, %v9689_v59  ;;  %vm8237_vm5 = vcmask 785408  }
 0x16a   : > { %v1925_v6 = vmax.f32 %v1849_v1, 0.0  ;;  %9418 = vmatprep.mubr.msk.bf16.mxu0 %vm5161_vm8, %v9690_v62  ;;  %7396 = vperm.xlu1 %9621, %v10403_v40   ;;  %v9698_v1 = vld [vmem:[%s10231_s22 + $0x38] sm:$0xff]  }
 0x16b   : > { %v1949_v7 = vpack.c.bf16 %v1927_v3, %v1926_v2  ;;  %v9699_v3 = vld [vmem:[%s10231_s22 + $0x40] sm:$0xff]  }
 0x16c   : > { %v1948_v9 = vpack.c.bf16 %v1925_v6, %v1924_v5  ;;  %v9166_v10 = vpop.f32.mrb[20].mxu0 }
 0x16d   : > { %v1870_v12 = vadd.f32 %v9166_v10, %v10338_v43  ;;  %v1861_v13 = vpop.f32.mrb[21].mxu0 }
 0x16e   : > { %v1862_v15 = vadd.f32 %v10338_v43, %v1861_v13  ;;  %v9167_v16 = vpop.f32.mrb[22].mxu0  ;;  %9194 = vmatprep.mubr.msk.bf16.mxu1 %vm1964_vm7, %v1948_v9 }
 0x16f   : > { %v1873_v18 = vadd.f32 %v9167_v16, %v10338_v43  ;;  %v1864_v20 = vpop.f32.mrb[23].mxu0  ;;  %9195 = vmatmul.mubr.msk.bf16.gmra.mrb[16].mxu1 %vm1964_vm7, %v1949_v7  ;;  %v1930_v19 = vmax.f32 %v1870_v12, 0.0 }
 0x170   : > { %v1865_v22 = vadd.f32 %v10338_v43, %v1864_v20  ;;  %v1928_v24 = vmax.f32 %v1862_v15, 0.0 }
 0x171   : > { %v1931_v23 = vmax.f32 %v1873_v18, 0.0  ;;  %9419 = vmatmul.mubr.msk.bf16.vlgmr.msra.gmra.mrb[128].mxu0 %vm5161_vm8, %v9692_v14  ;;  %v9701_v18 = vld [vmem:[%s10231_s22 + $0x48] sm:$0xff]  }
 0x172   : > { %v1929_v25 = vmax.f32 %v1865_v22, 0.0  ;;  %9485 = vmatpush3.bf16.msra.mxu0 %v10325_v38  ;;  %9422 = vmatprep.mubr.msk.bf16.mxu0 %vm5161_vm8, %v9693_v17  ;;  %v3743_v17 = vsel %vm2013_vm4, %v10359_v4, 0  ;;  %v9702_v22 = vld [vmem:[%s10231_s22 + $0x50] sm:$0xff]  }
 0x173   : > { %v1951_v26 = vpack.c.bf16 %v1931_v23, %v1930_v19  ;;  %9486 = vmatprep.subr.bf16.mxu0 %v6088_v21  ;;  %v10501_v19 = vld [vmem:[%s13500_s11 + $0x4] sm:$0xf] }
 0x174   : > { %v1950_v34 = vpack.c.bf16 %v1929_v25, %v1928_v24  ;;  %v9170_v27 = vpop.f32.mrb[24].mxu0 }
 0x175   : > { %v1886_v29 = vadd.f32 %v9170_v27, %v10338_v43  ;;  %v1877_v30 = vpop.f32.mrb[25].mxu0 }
 0x176   : > { %v1878_v32 = vadd.f32 %v10338_v43, %v1877_v30  ;;  %v9171_v33 = vpop.f32.mrb[26].mxu0  ;;  %9198 = vmatprep.mubr.msk.bf16.mxu1 %vm1964_vm7, %v1950_v34  ;;  %9487 = vmatpush3.bf16.msra.mxu0 %v6088_v21 }
 0x177   : > { %v1889_v38 = vadd.f32 %v9171_v33, %v10338_v43  ;;  %v1880_v36 = vpop.f32.mrb[27].mxu0  ;;  %9199 = vmatmul.mubr.msk.bf16.gmra.mrb[20].mxu1 %vm1964_vm7, %v1951_v26  ;;  %v1934_v39 = vmax.f32 %v1886_v29, 0.0 }
 0x178   : > { %v1881_v37 = vadd.f32 %v10338_v43, %v1880_v36  ;;  %v1932_v42 = vmax.f32 %v1878_v32, 0.0 }
 0x179   : > { %v1935_v41 = vmax.f32 %v1889_v38, 0.0  ;;  %9423 = vmatmul.mubr.msk.bf16.gmra.mrb[132].mxu0 %vm5161_vm8, %v9694_v31 }
 0x17a   : > { %v1933_v44 = vmax.f32 %v1881_v37, 0.0  ;;  %9426 = vmatprep.mubr.msk.bf16.mxu0 %vm5161_vm8, %v9695_v35  ;;  %v9703_v35 = vld [vmem:[%s10231_s22 + $0x58] sm:$0xff]   ;;  %v9704_v37 = vld [vmem:[%s10231_s22 + $0x60] sm:$0xff]  }
 0x17b   : > { %v1953_v45 = vpack.c.bf16 %v1935_v41, %v1934_v39 }
 0x17c   : > { %v1952_v46 = vpack.c.bf16 %v1933_v44, %v1932_v42  ;;  %v9174_v47 = vpop.f32.mrb[28].mxu0 }
 0x17d   : > { %v1902_v48 = vadd.f32 %v9174_v47, %v10338_v43  ;;  %v1893_v49 = vpop.f32.mrb[29].mxu0 }
 0x17e   : > { %v1894_v51 = vadd.f32 %v10338_v43, %v1893_v49  ;;  %v9175_v52 = vpop.f32.mrb[30].mxu0  ;;  %9202 = vmatprep.mubr.msk.bf16.mxu1 %vm1964_vm7, %v1952_v46 }
 0x17f   : > { %v1905_v54 = vadd.f32 %v9175_v52, %v10338_v43  ;;  %v1896_v55 = vpop.f32.mrb[31].mxu0  ;;  %9203 = vmatmul.mubr.msk.bf16.gmra.mrb[24].mxu1 %vm1964_vm7, %v1953_v45  ;;  %v1938_v57 = vmax.f32 %v1902_v48, 0.0 }
 0x180   : > { %v1897_v56 = vadd.f32 %v10338_v43, %v1896_v55  ;;  %v1936_v28 = vmax.f32 %v1894_v51, 0.0 }
 0x181   : > { %v1939_v58 = vmax.f32 %v1905_v54, 0.0  ;;  %9427 = vmatmul.mubr.msk.bf16.gmra.mrb[136].mxu0 %vm5161_vm8, %v9696_v50 }
 0x182   : > { %v1937_v59 = vmax.f32 %v1897_v56, 0.0  ;;  %9430 = vmatprep.mubr.msk.bf16.mxu0 %vm5161_vm8, %v9697_v53  ;;  %v9705_v53 = vld [vmem:[%s10231_s22 + $0x68] sm:$0xff]   ;;  %v9706_v56 = vld [vmem:[%s10231_s22 + $0x70] sm:$0xff]  }
 0x183   : > { %v1955_v61 = vpack.c.bf16 %v1939_v58, %v1938_v57 }
 0x184   : > { %v1954_v62 = vpack.c.bf16 %v1937_v59, %v1936_v28  ;;  %v9214_v63 = vpop.f32.mrb[32].mxu0 }
 0x185   : > { %v2651_v43 = vadd.f32 %v9214_v63, %v10478_v60  ;;  %v2642_v0 = vpop.f32.mrb[33].mxu0 }
 0x186   : > { %v2643_v2 = vadd.f32 %v10478_v60, %v2642_v0  ;;  %9206 = vmatprep.mubr.msk.bf16.mxu1 %vm1964_vm7, %v1954_v62  ;;  %v9215_v40 = vpop.f32.mrb[34].mxu0 }
 0x187   : > { %v2654_v5 = vadd.f32 %v9215_v40, %v10478_v60  ;;  %9207 = vmatmul.mubr.msk.bf16.gmra.mrb[28].mxu1 %vm1964_vm7, %v1955_v61  ;;  %v2645_v6 = vpop.f32.mrb[35].mxu0  ;;  %v2771_v8 = vmax.f32 %v2651_v43, 0.0 }
 0x188   : > { %v2646_v7 = vadd.f32 %v10478_v60, %v2645_v6  ;;  %v2769_v10 = vmax.f32 %v2643_v2, 0.0 }
 0x189   : > { %v2772_v9 = vmax.f32 %v2654_v5, 0.0  ;;  %9431 = vmatmul.mubr.msk.bf16.gmra.mrb[140].mxu0 %vm5161_vm8, %v9698_v1 }
 0x18a   : > { %v2770_v11 = vmax.f32 %v2646_v7, 0.0  ;;  %9434 = vmatprep.mubr.msk.bf16.mxu0 %vm5161_vm8, %v9699_v3  ;;  %v9707_v3 = vld [vmem:[%s10231_s22 + $0x78] sm:$0xff]   ;;  %v9708_v7 = vld [vmem:[%s10231_s22 + $0x80] sm:$0xff]  }
 0x18b   : > { %v2802_v12 = vpack.c.bf16 %v2772_v9, %v2771_v8 }
 0x18c   : > { %v2801_v13 = vpack.c.bf16 %v2770_v11, %v2769_v10  ;;  %v9218_v14 = vpop.f32.mrb[36].mxu0 }
 0x18d   : > { %v2667_v15 = vadd.f32 %v9218_v14, %v10478_v60  ;;  %v2658_v16 = vpop.f32.mrb[37].mxu0 }
 0x18e   : > { %v2659_v20 = vadd.f32 %v10478_v60, %v2658_v16  ;;  %v9219_v21 = vpop.f32.mrb[38].mxu0  ;;  %9246 = vmatprep.mubr.msk.bf16.mxu1 %vm1964_vm7, %v2801_v13 }
 0x18f   : > { %v2670_v23 = vadd.f32 %v9219_v21, %v10478_v60  ;;  %v2661_v24 = vpop.f32.mrb[39].mxu0  ;;  %9247 = vmatmul.mubr.msk.bf16.vlgmr.msra.gmra.mrb[32].mxu1 %vm1964_vm7, %v2802_v12  ;;  %v2775_v25 = vmax.f32 %v2667_v15, 0.0  ;;  %v9709_v21 = vld [vmem:[%s10231_s22 + $0x88] sm:$0xff]  }
 0x190   : > { %v2662_v4 = vadd.f32 %v10478_v60, %v2661_v24  ;;  %9313 = vmatpush3.bf16.msra.mxu1 %v3743_v17  ;;  %v2773_v34 = vmax.f32 %v2659_v20, 0.0  ;;  %v9710_v24 = vld [vmem:[%s10231_s22 + $0x90] sm:$0xff]  }
 0x191   : > { %v2776_v26 = vmax.f32 %v2670_v23, 0.0  ;;  %9435 = vmatmul.mubr.msk.bf16.gmra.mrb[144].mxu0 %vm5161_vm8, %v9701_v18  ;;  %9575 = vmatprep.subr.msk.bf16.mxu1 %vm2013_vm4, %v10501_v19 }
 0x192   : > { %v2774_v27 = vmax.f32 %v2662_v4, 0.0  ;;  %9438 = vmatprep.mubr.msk.bf16.mxu0 %vm5161_vm8, %v9702_v22 }
 0x193   : > { %v2804_v29 = vpack.c.bf16 %v2776_v26, %v2775_v25 }
 0x194   : > { %v2803_v30 = vpack.c.bf16 %v2774_v27, %v2773_v34  ;;  %v9222_v31 = vpop.f32.mrb[40].mxu0 }
 0x195   : > { %v2683_v32 = vadd.f32 %v9222_v31, %v10478_v60  ;;  %v2674_v33 = vpop.f32.mrb[41].mxu0 }
 0x196   : > { %v2675_v38 = vadd.f32 %v10478_v60, %v2674_v33  ;;  %v9223_v36 = vpop.f32.mrb[42].mxu0  ;;  %9250 = vmatprep.mubr.msk.bf16.mxu1 %vm1964_vm7, %v2803_v30 }
 0x197   : > { %v2686_v39 = vadd.f32 %v9223_v36, %v10478_v60  ;;  %v2677_v41 = vpop.f32.mrb[43].mxu0  ;;  %9251 = vmatmul.mubr.msk.bf16.gmra.mrb[36].mxu1 %vm1964_vm7, %v2804_v29  ;;  %v2779_v44 = vmax.f32 %v2683_v32, 0.0  ;;  %v9711_v36 = vld [vmem:[%s10231_s22 + $0x98] sm:$0xff]  }
 0x198   : > { %v2678_v42 = vadd.f32 %v10478_v60, %v2677_v41  ;;  %v2777_v46 = vmax.f32 %v2675_v38, 0.0  ;;  %v9712_v41 = vld [vmem:[%s10231_s22 + $0xa0] sm:$0xff]  }
 0x199   : > { %v2780_v45 = vmax.f32 %v2686_v39, 0.0  ;;  %9439 = vmatmul.mubr.msk.bf16.gmra.mrb[148].mxu0 %vm5161_vm8, %v9703_v35 }
 0x19a   : > { %v2778_v47 = vmax.f32 %v2678_v42, 0.0  ;;  %9442 = vmatprep.mubr.msk.bf16.mxu0 %vm5161_vm8, %v9704_v37 }
 0x19b   : > { %v2806_v48 = vpack.c.bf16 %v2780_v45, %v2779_v44 }
 0x19c   : > { %v2805_v49 = vpack.c.bf16 %v2778_v47, %v2777_v46  ;;  %v9226_v50 = vpop.f32.mrb[44].mxu0 }
 0x19d   : > { %v2699_v51 = vadd.f32 %v9226_v50, %v10478_v60  ;;  %v2690_v52 = vpop.f32.mrb[45].mxu0 }
 0x19e   : > { %v2691_v54 = vadd.f32 %v10478_v60, %v2690_v52  ;;  %v9227_v55 = vpop.f32.mrb[46].mxu0  ;;  %9254 = vmatprep.mubr.msk.bf16.mxu1 %vm1964_vm7, %v2805_v49 }
 0x19f   : > { %v2702_v57 = vadd.f32 %v9227_v55, %v10478_v60  ;;  %v2693_v58 = vpop.f32.mrb[47].mxu0  ;;  %9255 = vmatmul.mubr.msk.bf16.gmra.mrb[40].mxu1 %vm1964_vm7, %v2806_v48  ;;  %v2783_v59 = vmax.f32 %v2699_v51, 0.0  ;;  %v9713_v55 = vld [vmem:[%s10231_s22 + $0xa8] sm:$0xff]  }
 0x1a0   : > { %v2694_v28 = vadd.f32 %v10478_v60, %v2693_v58  ;;  %v2781_v62 = vmax.f32 %v2691_v54, 0.0  ;;  %v9714_v58 = vld [vmem:[%s10231_s22 + $0xb0] sm:$0xff]  }
 0x1a1   : > { %v2784_v61 = vmax.f32 %v2702_v57, 0.0  ;;  %9443 = vmatmul.mubr.msk.bf16.gmra.mrb[152].mxu0 %vm5161_vm8, %v9705_v53 }
 0x1a2   : > { %v2782_v63 = vmax.f32 %v2694_v28, 0.0  ;;  %9446 = vmatprep.mubr.msk.bf16.mxu0 %vm5161_vm8, %v9706_v56 }
 0x1a3   : > { %v2808_v43 = vpack.c.bf16 %v2784_v61, %v2783_v59 }
 0x1a4   : > { %v2807_v0 = vpack.c.bf16 %v2782_v63, %v2781_v62  ;;  %v9230_v1 = vpop.f32.mrb[48].mxu0 }
 0x1a5   : > { %v2715_v2 = vadd.f32 %v9230_v1, %v10478_v60  ;;  %v2706_v40 = vpop.f32.mrb[49].mxu0  ;;  %v10572_v1 = vld [vmem:[%s13499_s10] ss:$0 sm:$0xff] }
 0x1a6   : > { %v2707_v5 = vadd.f32 %v10478_v60, %v2706_v40  ;;  %v9231_v6 = vpop.f32.mrb[50].mxu0  ;;  %9258 = vmatprep.mubr.msk.bf16.mxu1 %vm1964_vm7, %v2807_v0 }
 0x1a7   : > { %v2718_v8 = vadd.f32 %v9231_v6, %v10478_v60  ;;  %v2709_v9 = vpop.f32.mrb[51].mxu0  ;;  %9259 = vmatmul.mubr.msk.bf16.gmra.mrb[44].mxu1 %vm1964_vm7, %v2808_v43  ;;  %v2787_v11 = vmax.f32 %v2715_v2, 0.0  ;;  %v9715_v6 = vld [vmem:[%s10231_s22 + $0xb8] sm:$0xff]  }
 0x1a8   : > { %v2710_v10 = vadd.f32 %v10478_v60, %v2709_v9  ;;  %v2785_v13 = vmax.f32 %v2707_v5, 0.0  ;;  %v9716_v9 = vld [vmem:[%s10231_s22 + $0xc0] sm:$0xff]  }
 0x1a9   : > { %v2788_v12 = vmax.f32 %v2718_v8, 0.0  ;;  %9447 = vmatmul.mubr.msk.bf16.gmra.mrb[156].mxu0 %vm5161_vm8, %v9707_v3 }
 0x1aa   : > { %v2786_v14 = vmax.f32 %v2710_v10, 0.0  ;;  %9488 = vmatprep.mubr.msk.bf16.mxu0 %vm5161_vm8, %v9708_v7 }
 0x1ab   : > { %v2810_v15 = vpack.c.bf16 %v2788_v12, %v2787_v11 }
 0x1ac   : > { %v2809_v16 = vpack.c.bf16 %v2786_v14, %v2785_v13  ;;  %v9234_v17 = vpop.f32.mrb[52].mxu0 }
 0x1ad   : > { %v2731_v18 = vadd.f32 %v9234_v17, %v10478_v60  ;;  %v2722_v20 = vpop.f32.mrb[53].mxu0 }
 0x1ae   : > { %v2723_v22 = vadd.f32 %v10478_v60, %v2722_v20  ;;  %v9235_v23 = vpop.f32.mrb[54].mxu0  ;;  %9262 = vmatprep.mubr.msk.bf16.mxu1 %vm1964_vm7, %v2809_v16 }
 0x1af   : > { %v2734_v4 = vadd.f32 %v9235_v23, %v10478_v60  ;;  %v2725_v25 = vpop.f32.mrb[55].mxu0  ;;  %9263 = vmatmul.mubr.msk.bf16.gmra.mrb[48].mxu1 %vm1964_vm7, %v2810_v15  ;;  %v2791_v34 = vmax.f32 %v2731_v18, 0.0  ;;  %v4611_v23 = vsel %vm2013_vm4, %v10501_v19, 0  ;;  %vm8175_vm4 = vcmask 654336  }
 0x1b0   : > { %v2726_v26 = vadd.f32 %v10478_v60, %v2725_v25  ;;  %v2789_v29 = vmax.f32 %v2723_v22, 0.0 }
 0x1b1   : > { %v2792_v27 = vmax.f32 %v2734_v4, 0.0  ;;  %9489 = vmatmul.mubr.msk.bf16.vlgmr.msra.gmra.mrb[160].mxu0 %vm5161_vm8, %v9709_v21  ;;  %v10592_v4 = vld [vmem:[%s13504_s15] sm:$0xff]  }
 0x1b2   : > { %v2790_v30 = vmax.f32 %v2726_v26, 0.0  ;;  %9492 = vmatprep.mubr.msk.bf16.mxu0 %vm5161_vm8, %v9710_v24  ;;  %v9717_v24 = vld [vmem:[%s10231_s22 + $0xc8] sm:$0xff]  }
 0x1b3   : > { %v2812_v31 = vpack.c.bf16 %v2792_v27, %v2791_v34  ;;  %v9718_v34 = vld [vmem:[%s10231_s22 + $0xd0] sm:$0xff]  }
 0x1b4   : > { %v2811_v32 = vpack.c.bf16 %v2790_v30, %v2789_v29  ;;  %v9238_v33 = vpop.f32.mrb[56].mxu0 }
 0x1b5   : > { %v2747_v35 = vadd.f32 %v9238_v33, %v10478_v60  ;;  %v2738_v38 = vpop.f32.mrb[57].mxu0 }
 0x1b6   : > { %v2739_v37 = vadd.f32 %v10478_v60, %v2738_v38  ;;  %v9239_v39 = vpop.f32.mrb[58].mxu0  ;;  %9266 = vmatprep.mubr.msk.bf16.mxu1 %vm1964_vm7, %v2811_v32 }
 0x1b7   : > { %v2750_v42 = vadd.f32 %v9239_v39, %v10478_v60  ;;  %v2741_v44 = vpop.f32.mrb[59].mxu0  ;;  %9267 = vmatmul.mubr.msk.bf16.gmra.mrb[52].mxu1 %vm1964_vm7, %v2812_v31  ;;  %v2795_v46 = vmax.f32 %v2747_v35, 0.0 }
 0x1b8   : > { %v2742_v45 = vadd.f32 %v10478_v60, %v2741_v44  ;;  %v2793_v48 = vmax.f32 %v2739_v37, 0.0 }
 0x1b9   : > { %v2796_v47 = vmax.f32 %v2750_v42, 0.0  ;;  %9493 = vmatmul.mubr.msk.bf16.gmra.mrb[164].mxu0 %vm5161_vm8, %v9711_v36 }
 0x1ba   : > { %v2794_v49 = vmax.f32 %v2742_v45, 0.0  ;;  %9496 = vmatprep.mubr.msk.bf16.mxu0 %vm5161_vm8, %v9712_v41  ;;  %v9719_v41 = vld [vmem:[%s10231_s22 + $0xd8] sm:$0xff]   ;;  %v9720_v45 = vld [vmem:[%s10231_s22 + $0xe0] sm:$0xff]  }
 0x1bb   : > { %v2814_v50 = vpack.c.bf16 %v2796_v47, %v2795_v46 }
 0x1bc   : > { %v2813_v51 = vpack.c.bf16 %v2794_v49, %v2793_v48  ;;  %v9242_v52 = vpop.f32.mrb[60].mxu0 }
 0x1bd   : > { %v2763_v53 = vadd.f32 %v9242_v52, %v10478_v60  ;;  %v2754_v54 = vpop.f32.mrb[61].mxu0 }
 0x1be   : > { %v2755_v56 = vadd.f32 %v10478_v60, %v2754_v54  ;;  %v9243_v57 = vpop.f32.mrb[62].mxu0  ;;  %9270 = vmatprep.mubr.msk.bf16.mxu1 %vm1964_vm7, %v2813_v51 }
 0x1bf   : > { %v2766_v28 = vadd.f32 %v9243_v57, %v10478_v60  ;;  %v2757_v59 = vpop.f32.mrb[63].mxu0  ;;  %9271 = vmatmul.mubr.msk.bf16.gmra.mrb[56].mxu1 %vm1964_vm7, %v2814_v50  ;;  %v2799_v62 = vmax.f32 %v2763_v53, 0.0 }
 0x1c0   : > { %v2758_v61 = vadd.f32 %v10478_v60, %v2757_v59  ;;  %v2797_v43 = vmax.f32 %v2755_v56, 0.0 }
 0x1c1   : > { %v2800_v63 = vmax.f32 %v2766_v28, 0.0  ;;  %9497 = vmatmul.mubr.msk.bf16.gmra.mrb[168].mxu0 %vm5161_vm8, %v9713_v55 }
 0x1c2   : > { %v2798_v0 = vmax.f32 %v2758_v61, 0.0  ;;  %9500 = vmatprep.mubr.msk.bf16.mxu0 %vm5161_vm8, %v9714_v58  ;;  %v9721_v58 = vld [vmem:[%s10231_s22 + $0xe8] sm:$0xff]   ;;  %v9722_v61 = vld [vmem:[%s10231_s22 + $0xf0] sm:$0xff]  }
 0x1c3   : > { %v2816_v2 = vpack.c.bf16 %v2800_v63, %v2799_v62 }
 0x1c4   : > { %v2815_v40 = vpack.c.bf16 %v2798_v0, %v2797_v43  ;;  %v9282_v3 = vpop.f32.mrb[64].mxu0 }
 0x1c5   : > { %v3520_v5 = vadd.f32 %v9282_v3, %v10572_v1  ;;  %v3511_v60 = vpop.f32.mrb[65].mxu0 }
 0x1c6   : > { %v3512_v7 = vadd.f32 %v10572_v1, %v3511_v60  ;;  %9274 = vmatprep.mubr.msk.bf16.mxu1 %vm1964_vm7, %v2815_v40  ;;  %v9283_v8 = vpop.f32.mrb[66].mxu0 }
 0x1c7   : > { %v3523_v10 = vadd.f32 %v9283_v8, %v10572_v1  ;;  %9275 = vmatmul.mubr.msk.bf16.gmra.mrb[60].mxu1 %vm1964_vm7, %v2816_v2  ;;  %v3514_v11 = vpop.f32.mrb[67].mxu0  ;;  %v3640_v13 = vmax.f32 %v3520_v5, 0.0 }
 0x1c8   : > { %v3515_v12 = vadd.f32 %v10572_v1, %v3514_v11  ;;  %v3638_v15 = vmax.f32 %v3512_v7, 0.0 }
 0x1c9   : > { %v3641_v14 = vmax.f32 %v3523_v10, 0.0  ;;  %9501 = vmatmul.mubr.msk.bf16.gmra.mrb[172].mxu0 %vm5161_vm8, %v9715_v6 }
 0x1ca   : > { %v3639_v16 = vmax.f32 %v3515_v12, 0.0  ;;  %9504 = vmatprep.mubr.msk.bf16.mxu0 %vm5161_vm8, %v9716_v9  ;;  %v9723_v9 = vld [vmem:[%s10231_s22 + $0xf8] sm:$0xff]   ;;  %s13565_s22 = sadd.s32 4294967295, %s9794_s20  }
 0x1cb   : > { %v3671_v17 = vpack.c.bf16 %v3641_v14, %v3640_v13  ;;  %s8488_s26 = sshll.u32 %s13565_s22, 5  ;;  %s9806_s22 = smov 64  }
 0x1cc   : > { %v3670_v18 = vpack.c.bf16 %v3639_v16, %v3638_v15  ;;  %v9286_v20 = vpop.f32.mrb[68].mxu0  ;;  %p1556_p9 = scmp.lt.s32.totalorder %s8488_s26, 63 }
 0x1cd   : > { %v3536_v21 = vadd.f32 %v9286_v20, %v10572_v1  ;;  %v3527_v22 = vpop.f32.mrb[69].mxu0 }
 0x1ce   : > { %v3528_v25 = vadd.f32 %v10572_v1, %v3527_v22  ;;  %v9287_v26 = vpop.f32.mrb[70].mxu0  ;;  %9314 = vmatprep.mubr.msk.bf16.mxu1 %vm1964_vm7, %v3670_v18  ;;  %s13991_s26 = smov (!%p1556_p9, %s8488_s26), 63 }
 0x1cf   : > { %v3539_v27 = vadd.f32 %v9287_v26, %v10572_v1  ;;  %v3530_v29 = vpop.f32.mrb[71].mxu0  ;;  %9315 = vmatmul.mubr.msk.bf16.vlgmr.msra.gmra.mrb[64].mxu1 %vm1964_vm7, %v3671_v17  ;;  %v3644_v30 = vmax.f32 %v3536_v21, 0.0  ;;  %s8489_s20 = sshll.u32 %s13991_s26, 2  ;;  %s9803_s26 = smov 16  }
 0x1d0   : > { %v3531_v19 = vadd.f32 %v10572_v1, %v3530_v29  ;;  %9381 = vmatpush3.bf16.msra.mxu1 %v4611_v23  ;;  %v3642_v32 = vmax.f32 %v3528_v25, 0.0  ;;  %s10661_s29 = scalar_lea.vmem %s13567_s25, %s8489_s20  ;;  %s9801_s20 = smov 80  }
 0x1d1   : > { %v3645_v31 = vmax.f32 %v3539_v27, 0.0  ;;  %9505 = vmatmul.mubr.msk.bf16.gmra.mrb[176].mxu0 %vm5161_vm8, %v9717_v24  ;;  %9450 = vmatprep.subr.bf16.mxu1 %v10592_v4 }
 0x1d2   : > { %v3643_v33 = vmax.f32 %v3531_v19, 0.0  ;;  %9508 = vmatprep.mubr.msk.bf16.mxu0 %vm5161_vm8, %v9718_v34 }
 0x1d3   : > { %v3673_v35 = vpack.c.bf16 %v3645_v31, %v3644_v30 }
 0x1d4   : > { %v3672_v38 = vpack.c.bf16 %v3643_v33, %v3642_v32  ;;  %v9290_v36 = vpop.f32.mrb[72].mxu0 }
 0x1d5   : > { %v3552_v37 = vadd.f32 %v9290_v36, %v10572_v1  ;;  %v3543_v39 = vpop.f32.mrb[73].mxu0 }
 0x1d6   : > { %v3544_v42 = vadd.f32 %v10572_v1, %v3543_v39  ;;  %v9291_v44 = vpop.f32.mrb[74].mxu0  ;;  %9318 = vmatprep.mubr.msk.bf16.mxu1 %vm1964_vm7, %v3672_v38 }
 0x1d7   : > { %v3555_v46 = vadd.f32 %v9291_v44, %v10572_v1  ;;  %v3546_v47 = vpop.f32.mrb[75].mxu0  ;;  %9319 = vmatmul.mubr.msk.bf16.gmra.mrb[68].mxu1 %vm1964_vm7, %v3673_v35  ;;  %v3648_v49 = vmax.f32 %v3552_v37, 0.0 }
 0x1d8   : > { %v3547_v48 = vadd.f32 %v10572_v1, %v3546_v47  ;;  %v3646_v51 = vmax.f32 %v3544_v42, 0.0 }
 0x1d9   : > { %v3649_v50 = vmax.f32 %v3555_v46, 0.0  ;;  %9509 = vmatmul.mubr.msk.bf16.gmra.mrb[180].mxu0 %vm5161_vm8, %v9719_v41 }
 0x1da   : > { %v3647_v52 = vmax.f32 %v3547_v48, 0.0  ;;  %9512 = vmatprep.mubr.msk.bf16.mxu0 %vm5161_vm8, %v9720_v45 }
 0x1db   : > { %v3675_v53 = vpack.c.bf16 %v3649_v50, %v3648_v49 }
 0x1dc   : > { %v3674_v54 = vpack.c.bf16 %v3647_v52, %v3646_v51  ;;  %v9294_v55 = vpop.f32.mrb[76].mxu0 }
 0x1dd   : > { %v3568_v56 = vadd.f32 %v9294_v55, %v10572_v1  ;;  %v3559_v57 = vpop.f32.mrb[77].mxu0 }
 0x1de   : > { %v3560_v28 = vadd.f32 %v10572_v1, %v3559_v57  ;;  %v9295_v59 = vpop.f32.mrb[78].mxu0  ;;  %9322 = vmatprep.mubr.msk.bf16.mxu1 %vm1964_vm7, %v3674_v54 }
 0x1df   : > { %v3571_v62 = vadd.f32 %v9295_v59, %v10572_v1  ;;  %v3562_v63 = vpop.f32.mrb[79].mxu0  ;;  %9323 = vmatmul.mubr.msk.bf16.gmra.mrb[72].mxu1 %vm1964_vm7, %v3675_v53  ;;  %v3652_v0 = vmax.f32 %v3568_v56, 0.0 }
 0x1e0   : > { %v3563_v43 = vadd.f32 %v10572_v1, %v3562_v63  ;;  %v3650_v40 = vmax.f32 %v3560_v28, 0.0  ;;  %v10650_v28 = vpop.permute.xlu0 %6926 }
 0x1e1   : > { %v3653_v2 = vmax.f32 %v3571_v62, 0.0  ;;  %9513 = vmatmul.mubr.msk.bf16.gmra.mrb[184].mxu0 %vm5161_vm8, %v9721_v58  ;;  %13566 = vst [vmem:[#allocation5_spill] sm:$0xff] %v10650_v28 }
 0x1e2   : > { %v3651_v3 = vmax.f32 %v3563_v43, 0.0  ;;  %9516 = vmatprep.mubr.msk.bf16.mxu0 %vm5161_vm8, %v9722_v61 }
 0x1e3   : > { %v3677_v5 = vpack.c.bf16 %v3653_v2, %v3652_v0  ;;  %v10656_v0 = vld [vmem:[%s13499_s10 + $0x1] ss:$0 sm:$0xff]  ;;  %v6937_v2 = vrot.slane %v10650_v28, 7 }
 0x1e4   : > { %v3676_v60 = vpack.c.bf16 %v3651_v3, %v3650_v40  ;;  %v9298_v6 = vpop.f32.mrb[80].mxu0 }
 0x1e5   : > { %v3584_v7 = vadd.f32 %v9298_v6, %v10572_v1  ;;  %v3575_v8 = vpop.f32.mrb[81].mxu0 }
 0x1e6   : > { %v3576_v10 = vadd.f32 %v10572_v1, %v3575_v8  ;;  %v9299_v11 = vpop.f32.mrb[82].mxu0  ;;  %9326 = vmatprep.mubr.msk.bf16.mxu1 %vm1964_vm7, %v3676_v60  ;;  %v6938_v60 = vrot.slane %v10650_v28, 1  ;;  %v10670_v8 = vld [vmem:[%s10661_s29 + $0x4] sm:$0xf] }
 0x1e7   : > { %v3587_v12 = vadd.f32 %v9299_v11, %v10572_v1  ;;  %v3578_v13 = vpop.f32.mrb[83].mxu0  ;;  %9327 = vmatmul.mubr.msk.bf16.gmra.mrb[76].mxu1 %vm1964_vm7, %v3677_v5  ;;  %v3656_v15 = vmax.f32 %v3584_v7, 0.0  ;;  %v10665_v5 = vld [vmem:[%s10661_s29] sm:$0xf]  ;;  %v10676_v11 = vpop.permute.xlu0 %6929 }
 0x1e8   : > { %v3579_v14 = vadd.f32 %v10572_v1, %v3578_v13  ;;  %v3654_v17 = vmax.f32 %v3576_v10, 0.0  ;;  %v6939_v10 = vrot.slane %v10650_v28, 2  ;;  %13568 = vst [vmem:[#allocation6_spill] sm:$0xff] %v10676_v11 }
 0x1e9   : > { %v3657_v16 = vmax.f32 %v3587_v12, 0.0  ;;  %9517 = vmatmul.mubr.msk.bf16.gmra.mrb[188].mxu0 %vm5161_vm8, %v9723_v9  ;;  %v10673_v9 = vld [vmem:[%s10661_s29 + $0x8] sm:$0xf] }
 0x1ea   : > { %v3655_v18 = vmax.f32 %v3579_v14, 0.0  ;;  %v6784_v14 = vld [vmem:[%s10661_s29 + $0xc] sm:$0xf] }
 0x1eb   : > { %v3679_v20 = vpack.c.bf16 %v3657_v16, %v3656_v15  ;;  %v6944_v15 = vrot.slane %v10676_v11, 7 }
 0x1ec   : > { %v3678_v21 = vpack.c.bf16 %v3655_v18, %v3654_v17  ;;  %v9302_v22 = vpop.f32.mrb[84].mxu0  ;;  %v10685_v18 = vmul.f32 %v6937_v2, %v10665_v5 }
 0x1ed   : > { %v3600_v23 = vadd.f32 %v9302_v22, %v10572_v1  ;;  %v3591_v24 = vpop.f32.mrb[85].mxu0  ;;  %v6945_v22 = vrot.slane %v10676_v11, 1 }
 0x1ee   : > { %v3592_v25 = vadd.f32 %v10572_v1, %v3591_v24  ;;  %v9303_v26 = vpop.f32.mrb[86].mxu0  ;;  %9330 = vmatprep.mubr.msk.bf16.mxu1 %vm1964_vm7, %v3678_v21  ;;  %v10691_v21 = vld [vmem:[%s10661_s29 + $0x24] sm:$0xf] }
 0x1ef   : > { %v3603_v34 = vadd.f32 %v9303_v26, %v10572_v1  ;;  %v3594_v27 = vpop.f32.mrb[87].mxu0  ;;  %9331 = vmatmul.mubr.msk.bf16.gmra.mrb[80].mxu1 %vm1964_vm7, %v3679_v20  ;;  %v3660_v19 = vmax.f32 %v3600_v23, 0.0  ;;  %v10688_v20 = vld [vmem:[%s10661_s29 + $0x20] sm:$0xf]  ;;  %v10701_v26 = vmul.f32 %v6938_v60, %v10673_v9  ;;  %v6799_v60 = vld [vmem:[%s10661_s29 + $0x48] sm:$0xf] }
 0x1f0   : > { %v3595_v29 = vadd.f32 %v10572_v1, %v3594_v27  ;;  %v3658_v31 = vmax.f32 %v3592_v25, 0.0  ;;  %v10698_v25 = vmul.f32 %v10650_v28, %v10670_v8 }
 0x1f1   : > { %v3661_v30 = vmax.f32 %v3603_v34, 0.0  ;;  %13569 = vst [vmem:[#allocation7_spill] sm:$0xff] %v10701_v26  ;;  %v10704_v34 = vld [vmem:[%s10661_s29 + $0x28] sm:$0xf] }
 0x1f2   : > { %v3659_v32 = vmax.f32 %v3595_v29, 0.0 }
 0x1f3   : > { %v3681_v33 = vpack.c.bf16 %v3661_v30, %v3660_v19  ;;  %v10706_v19 = vmul.f32 %v6939_v10, %v6784_v14  ;;  %v6946_v30 = vrot.slane %v10676_v11, 2 }
 0x1f4   : > { %v3680_v35 = vpack.c.bf16 %v3659_v32, %v3658_v31  ;;  %v9306_v38 = vpop.f32.mrb[88].mxu0 }
 0x1f5   : > { %v3616_v36 = vadd.f32 %v9306_v38, %v10572_v1  ;;  %v3607_v37 = vpop.f32.mrb[89].mxu0  ;;  %13570 = vst [vmem:[#allocation8_spill] sm:$0xff] %v10706_v19  ;;  %v10715_v38 = vmul.f32 %v10676_v11, %v10691_v21 }
 0x1f6   : > { %v3608_v39 = vadd.f32 %v10572_v1, %v3607_v37  ;;  %v9307_v41 = vpop.f32.mrb[90].mxu0  ;;  %9334 = vmatprep.mubr.msk.bf16.mxu1 %vm1964_vm7, %v3680_v35  ;;  %v10711_v35 = vmul.f32 %v6944_v15, %v10688_v20 }
 0x1f7   : > { %v3619_v42 = vadd.f32 %v9307_v41, %v10572_v1  ;;  %v3610_v44 = vpop.f32.mrb[91].mxu0  ;;  %9335 = vmatmul.mubr.msk.bf16.gmra.mrb[84].mxu1 %vm1964_vm7, %v3681_v33  ;;  %v3664_v46 = vmax.f32 %v3616_v36, 0.0  ;;  %v6792_v33 = vld [vmem:[%s10661_s29 + $0x2c] sm:$0xf]  ;;  %v10717_v36 = vpop.permute.xlu1 %6819  ;;  %v10721_v41 = vmul.f32 %v6945_v22, %v10704_v34 }
 0x1f8   : > { %v3611_v45 = vadd.f32 %v10572_v1, %v3610_v44  ;;  %v3662_v48 = vmax.f32 %v3608_v39, 0.0  ;;  %13571 = vst [vmem:[#allocation9_spill] sm:$0xff] %v10717_v36  ;;  %v7061_v39 = vrot.slane %v10685_v18, 1  ;;  %v6893_v2 = vmul.f32 %v10717_v36, %v10665_v5 }
 0x1f9   : > { %v3665_v47 = vmax.f32 %v3619_v42, 0.0  ;;  %13572 = vst [vmem:[#allocation10_spill] sm:$0xff] %v10721_v41  ;;  %v6833_v42 = vrot.slane %v10717_v36, 1 }
 0x1fa   : > { %v3663_v49 = vmax.f32 %v3611_v45, 0.0 }
 0x1fb   : > { %v3683_v50 = vpack.c.bf16 %v3665_v47, %v3664_v46  ;;  %v7062_v46 = vrot.slane %v10698_v25, 1 }
 0x1fc   : > { %v3682_v51 = vpack.c.bf16 %v3663_v49, %v3662_v48  ;;  %v9310_v52 = vpop.f32.mrb[92].mxu0  ;;  %v6834_v48 = vrot.slane %v10717_v36, 2  ;;  %v10727_v49 = vpop.permute.xlu0 %6932 }
 0x1fd   : > { %v3632_v53 = vadd.f32 %v9310_v52, %v10572_v1  ;;  %v3623_v54 = vpop.f32.mrb[93].mxu0  ;;  %13573 = vst [vmem:[#allocation11_spill] sm:$0xff] %v10727_v49  ;;  %v10733_v52 = vld [vmem:[%s13504_s15 + $0x8] sm:$0xff]   ;;  %v6953_v15 = vrot.slane %v10727_v49, 2 }
 0x1fe   : > { %v3624_v55 = vadd.f32 %v10572_v1, %v3623_v54  ;;  %v9311_v56 = vpop.f32.mrb[94].mxu0  ;;  %9338 = vmatprep.mubr.msk.bf16.mxu1 %vm1964_vm7, %v3682_v51  ;;  %v10736_v54 = vmul.f32 %v6946_v30, %v6792_v33 }
 0x1ff   : > { %v3635_v57 = vadd.f32 %v9311_v56, %v10572_v1  ;;  %v3626_v58 = vpop.f32.mrb[95].mxu0  ;;  %9339 = vmatmul.mubr.msk.bf16.gmra.mrb[88].mxu1 %vm1964_vm7, %v3683_v50  ;;  %v3668_v61 = vmax.f32 %v3632_v53, 0.0 }
 0x200   : > { %v3627_v59 = vadd.f32 %v10572_v1, %v3626_v58  ;;  %v3666_v63 = vmax.f32 %v3624_v55, 0.0  ;;  %13574 = vst [vmem:[#allocation12_spill] sm:$0xff] %v10736_v54  ;;  %v6951_v55 = vrot.slane %v10727_v49, 7  ;;  %v7069_v58 = vrot.slane %v10711_v35, 1 }
 0x201   : > { %v3669_v62 = vmax.f32 %v3635_v57, 0.0 }
 0x202   : > { %v3667_v43 = vmax.f32 %v3627_v59, 0.0  ;;  %v7070_v59 = vrot.slane %v10715_v38, 1 }
 0x203   : > { %v3685_v1 = vpack.c.bf16 %v3669_v62, %v3668_v61  ;;  %v6797_v61 = vld [vmem:[%s10661_s29 + $0x40] sm:$0xf]  ;;  %v6952_v62 = vrot.slane %v10727_v49, 1 }
 0x204   : > { %v3684_v40 = vpack.c.bf16 %v3667_v43, %v3666_v63  ;;  %v9350_v3 = vpop.f32.mrb[96].mxu0 }
 0x205   : > { %v4386_v6 = vadd.f32 %v9350_v3, %v10656_v0  ;;  %v4377_v7 = vpop.f32.mrb[97].mxu0  ;;  %v6798_v3 = vld [vmem:[%s10661_s29 + $0x44] sm:$0xf]  ;;  %v10770_v25 = vmul.f32 %v6952_v62, %v6799_v60 }
 0x206   : > { %v4378_v12 = vadd.f32 %v10656_v0, %v4377_v7  ;;  %9342 = vmatprep.mubr.msk.bf16.mxu1 %vm1964_vm7, %v3684_v40  ;;  %v9351_v13 = vpop.f32.mrb[98].mxu0  ;;  %v6894_v40 = vmul.f32 %v6833_v42, %v10670_v8 }
 0x207   : > { %v4389_v16 = vadd.f32 %v9351_v13, %v10656_v0  ;;  %9343 = vmatmul.mubr.msk.bf16.gmra.mrb[92].mxu1 %vm1964_vm7, %v3685_v1  ;;  %v4380_v17 = vpop.f32.mrb[99].mxu0  ;;  %v4506_v27 = vmax.f32 %v4386_v6, 0.0  ;;  %13578 = vst [vmem:[#allocation16_spill] sm:$0xff] %v10770_v25 }
 0x208   : > { %v4381_v23 = vadd.f32 %v10656_v0, %v4380_v17  ;;  %v4504_v31 = vmax.f32 %v4378_v12, 0.0  ;;  %v10758_v12 = vmul.f32 %v6834_v48, %v10673_v9  ;;  %v10764_v17 = vpop.permute.xlu1 %6823  ;;  %v10774_v30 = vadd.f32 %v7062_v46, %v6894_v40 }
 0x209   : > { %v4507_v29 = vmax.f32 %v4389_v16, 0.0  ;;  %v10762_v16 = vmul.f32 %v6951_v55, %v6797_v61  ;;  %13576 = vst [vmem:[#allocation14_spill] sm:$0xff] %v10764_v17  ;;  %v6901_v42 = vmul.f32 %v10764_v17, %v10688_v20 }
 0x20a   : > { %v4505_v32 = vmax.f32 %v4381_v23, 0.0  ;;  %13575 = vst [vmem:[#allocation13_spill] sm:$0xff] %v10758_v12  ;;  %v10768_v23 = vmul.f32 %v10727_v49, %v6798_v3  ;;  %13580 = vst [vmem:[#allocation18_spill] sm:$0xff] %v10774_v30 }
 0x20b   : > { %v4537_v37 = vpack.c.bf16 %v4507_v29, %v4506_v27  ;;  %v10772_v29 = vadd.f32 %v7061_v39, %v6893_v2 }
 0x20c   : > { %v4536_v44 = vpack.c.bf16 %v4505_v32, %v4504_v31  ;;  %v9354_v45 = vpop.f32.mrb[100].mxu0  ;;  %13577 = vst [vmem:[#allocation15_spill] sm:$0xff] %v10768_v23  ;;  %v6840_v31 = vrot.slane %v10764_v17, 1  ;;  %v10798_v3 = vpop.permute.xlu1 %6935 }
 0x20d   : > { %v4402_v50 = vadd.f32 %v9354_v45, %v10656_v0  ;;  %v4393_v51 = vpop.f32.mrb[101].mxu0  ;;  %13579 = vst [vmem:[#allocation17_spill] sm:$0xff] %v10772_v29  ;;  %13583 = vst [vmem:[#allocation21_spill] sm:$0xff] %v10798_v3 }
 0x20e   : > { %v4394_v56 = vadd.f32 %v10656_v0, %v4393_v51  ;;  %v9355_v57 = vpop.f32.mrb[102].mxu0  ;;  %9382 = vmatprep.mubr.msk.bf16.mxu1 %vm1964_vm7, %v4536_v44  ;;  %v10781_v44 = vpop.permute.xlu0 %7158  ;;  %v6902_v40 = vmul.f32 %v6840_v31, %v10691_v21  ;;  %v6959_v31 = vrot.slane %v10798_v3, 1 }
 0x20f   : > { %v4405_v63 = vadd.f32 %v9355_v57, %v10656_v0  ;;  %v4396_v43 = vpop.f32.mrb[103].mxu0  ;;  %9383 = vmatmul.mubr.msk.bf16.vlgmr.msra.gmra.mrb[96].mxu1 %vm1964_vm7, %v4537_v37  ;;  %v4510_v13 = vmax.f32 %v4402_v50, 0.0  ;;  %v6841_v37 = vrot.slane %v10764_v17, 2  ;;  %13581 = vst [vmem:[#allocation19_spill] sm:$0xff] %v10781_v44  ;;  %v7169_v50 = vrot.slane %v10781_v44, 6 }
 0x210   : > { %v4397_v6 = vadd.f32 %v10656_v0, %v4396_v43  ;;  %9451 = vmatpush3.bf16.msra.mxu1 %v10592_v4  ;;  %v4508_v18 = vmax.f32 %v4394_v56, 0.0  ;;  %v6800_v4 = vld [vmem:[%s10661_s29 + $0x4c] sm:$0xf]  ;;  %v7170_v61 = vrot.slane %v10781_v44, 7  ;;  %v10859_v47 = vpop.permute.xlu1 %7161 }
 0x211   : > { %v4511_v14 = vmax.f32 %v4405_v63, 0.0  ;;  %9520 = vmatprep.subr.bf16.mxu1 %v10733_v52  ;;  %v10784_v39 = vmul.f32 %v6953_v15, %v6800_v4  ;;  %v6958_v15 = vrot.slane %v10798_v3, 7  ;;  %v10809_v4 = vmul.f32 %v7169_v50, %v10665_v5  ;;  %13594 = vst [vmem:[#allocation32_spill] sm:$0xff] %v10859_v47 }
 0x212   : > { %v4509_v22 = vmax.f32 %v4397_v6, 0.0  ;;  %v10802_v6 = vmul.f32 %v6841_v37, %v10704_v34  ;;  %v6807_v37 = vld [vmem:[%s10661_s29 + $0x68] sm:$0xf] }
 0x213   : > { %v4539_v27 = vpack.c.bf16 %v4511_v14, %v4510_v13  ;;  %13582 = vst [vmem:[#allocation20_spill] sm:$0xff] %v10784_v39  ;;  %v10804_v13 = vadd.f32 %v7069_v58, %v6901_v42  ;;  %v6805_v14 = vld [vmem:[%s10661_s29 + $0x60] sm:$0xf]  ;;  %13586 = vst [vmem:[#allocation24_spill] sm:$0xff] %v10809_v4  ;;  %v10818_v58 = vmul.f32 %v10781_v44, %v10673_v9 }
 0x214   : > { %v4538_v32 = vpack.c.bf16 %v4509_v22, %v4508_v18  ;;  %v9358_v33 = vpop.f32.mrb[104].mxu0  ;;  %13584 = vst [vmem:[#allocation22_spill] sm:$0xff] %v10802_v6 }
 0x215   : > { %v4418_v45 = vadd.f32 %v9358_v33, %v10656_v0  ;;  %v4409_v48 = vpop.f32.mrb[105].mxu0  ;;  %13585 = vst [vmem:[#allocation23_spill] sm:$0xff] %v10804_v13  ;;  %13588 = vst [vmem:[#allocation26_spill] sm:$0xff] %v10818_v58 }
 0x216   : > { %v4410_v51 = vadd.f32 %v10656_v0, %v4409_v48  ;;  %v9359_v55 = vpop.f32.mrb[106].mxu0  ;;  %9386 = vmatprep.mubr.msk.bf16.mxu1 %vm1964_vm7, %v4538_v32  ;;  %v10814_v48 = vmul.f32 %v7170_v61, %v10670_v8  ;;  %v6960_v8 = vrot.slane %v10798_v3, 2 }
 0x217   : > { %v4421_v62 = vadd.f32 %v9359_v55, %v10656_v0  ;;  %v4412_v63 = vpop.f32.mrb[107].mxu0  ;;  %9387 = vmatmul.mubr.msk.bf16.gmra.mrb[100].mxu1 %vm1964_vm7, %v4539_v27  ;;  %v4514_v18 = vmax.f32 %v4418_v45, 0.0  ;;  %v6806_v27 = vld [vmem:[%s10661_s29 + $0x64] sm:$0xf]  ;;  %v10823_v45 = vadd.f32 %v7070_v59, %v6902_v40  ;;  %v7021_v55 = vmul.f32 %v6958_v15, %v6805_v14  ;;  %v6808_v40 = vld [vmem:[%s10661_s29 + $0x6c] sm:$0xf] }
 0x218   : > { %v4413_v60 = vadd.f32 %v10656_v0, %v4412_v63  ;;  %v4512_v32 = vmax.f32 %v4410_v51, 0.0  ;;  %13587 = vst [vmem:[#allocation25_spill] sm:$0xff] %v10814_v48  ;;  %v7022_v61 = vmul.f32 %v10798_v3, %v6806_v27  ;;  %v10852_v43 = vmul.f32 %v6960_v8, %v6808_v40 }
 0x219   : > { %v4515_v22 = vmax.f32 %v4421_v62, 0.0  ;;  %13589 = vst [vmem:[#allocation27_spill] sm:$0xff] %v10823_v45  ;;  %v10826_v62 = vpop.permute.xlu0 %6831 }
 0x21a   : > { %v4513_v33 = vmax.f32 %v4413_v60, 0.0  ;;  %13590 = vst [vmem:[#allocation28_spill] sm:$0xff] %v10826_v62  ;;  %v6854_v9 = vrot.slane %v10826_v62, 1  ;;  %v6855_v35 = vrot.slane %v10826_v62, 2  ;;  %v6917_v2 = vmul.f32 %v10826_v62, %v6805_v14  ;;  %13592 = vst [vmem:[#allocation30_spill] sm:$0xff] %v10852_v43 }
 0x21b   : > { %v4541_v42 = vpack.c.bf16 %v4515_v22, %v4514_v18  ;;  %v10835_v22 = vmul.f32 %v6959_v31, %v6807_v37  ;;  %v7085_v31 = vrot.slane %v7021_v55, 1  ;;  %v7086_v57 = vrot.slane %v7022_v61, 1 }
 0x21c   : > { %v4540_v51 = vpack.c.bf16 %v4513_v33, %v4512_v32  ;;  %v9362_v63 = vpop.f32.mrb[108].mxu0  ;;  %v6918_v33 = vmul.f32 %v6854_v9, %v6806_v27  ;;  %v10857_v50 = vmul.f32 %v6855_v35, %v6807_v37  ;;  %v7176_v9 = vrot.slane %v10859_v47, 6 }
 0x21d   : > { %v4434_v60 = vadd.f32 %v9362_v63, %v10656_v0  ;;  %v4425_v18 = vpop.f32.mrb[109].mxu0  ;;  %13591 = vst [vmem:[#allocation29_spill] sm:$0xff] %v10835_v22  ;;  %v10862_v27 = vadd.f32 %v7085_v31, %v6917_v2 }
 0x21e   : > { %v4426_v15 = vadd.f32 %v10656_v0, %v4425_v18  ;;  %v9363_v32 = vpop.f32.mrb[110].mxu0  ;;  %9390 = vmatprep.mubr.msk.bf16.mxu1 %vm1964_vm7, %v4540_v51  ;;  %v10850_v51 = vld [vmem:[%s13497_s8] ss:$0 sm:$0xff]  ;;  %13593 = vst [vmem:[#allocation31_spill] sm:$0xff] %v10857_v50 }
 0x21f   : > { %v4437_v63 = vadd.f32 %v9363_v32, %v10656_v0  ;;  %v4428_v1 = vpop.f32.mrb[111].mxu0  ;;  %9391 = vmatmul.mubr.msk.bf16.gmra.mrb[104].mxu1 %vm1964_vm7, %v4541_v42  ;;  %v4518_v32 = vmax.f32 %v4434_v60, 0.0  ;;  %13595 = vst [vmem:[#allocation33_spill] sm:$0xff] %v10862_v27 }
 0x220   : > { %v4429_v18 = vadd.f32 %v10656_v0, %v4428_v1  ;;  %v4516_v55 = vmax.f32 %v4426_v15, 0.0  ;;  %v10880_v1 = vmul.f32 %v7176_v9, %v10688_v20 }
 0x221   : > { %v4519_v59 = vmax.f32 %v4437_v63, 0.0 }
 0x222   : > { %v4517_v38 = vmax.f32 %v4429_v18, 0.0  ;;  %v9180_v14 = vpop.f32.mrb[0].mxu1  ;;  %v10866_v18 = vadd.f32 %v7086_v57, %v6918_v33  ;;  %13597 = vst [vmem:[#allocation35_spill] sm:$0xff] %v10880_v1 }
 0x223   : > { %v4543_v24 = vpack.c.bf16 %v4519_v59, %v4518_v32  ;;  %v2060_v8 = vadd.f32 %v9180_v14, %v10850_v51  ;;  %v2051_v61 = vpop.f32.mrb[1].mxu1 }
 0x224   : > { %v4542_v60 = vpack.c.bf16 %v4517_v38, %v4516_v55  ;;  %v2052_v40 = vadd.f32 %v10850_v51, %v2051_v61  ;;  %v9181_v15 = vpop.f32.mrb[2].mxu1  ;;  %v9366_v63 = vpop.f32.mrb[112].mxu0  ;;  %13596 = vst [vmem:[#allocation34_spill] sm:$0xff] %v10866_v18 }
 0x225   : > { %v2180_v37 = vmax.f32 %v2060_v8, 0.0  ;;  %v2063_v42 = vadd.f32 %v9181_v15, %v10850_v51  ;;  %v4450_v59 = vadd.f32 %v9366_v63, %v10656_v0  ;;  %v2054_v32 = vpop.f32.mrb[3].mxu1  ;;  %v4441_v14 = vpop.f32.mrb[113].mxu0 }
 0x226   : > { %v2178_v31 = vmax.f32 %v2052_v40, 0.0  ;;  %v2055_v38 = vadd.f32 %v10850_v51, %v2054_v32  ;;  %v4442_v55 = vadd.f32 %v10656_v0, %v4441_v14  ;;  %v9367_v61 = vpop.f32.mrb[114].mxu0  ;;  %9394 = vmatprep.mubr.msk.bf16.mxu1 %vm1964_vm7, %v4542_v60 }
 0x227   : > { %v2224_v33 = vsel %vm1964_vm7, %v2180_v37, -inf  ;;  %v2181_v8 = vmax.f32 %v2063_v42, 0.0  ;;  %v4453_v15 = vadd.f32 %v9367_v61, %v10656_v0  ;;  %v4444_v63 = vpop.f32.mrb[115].mxu0  ;;  %9395 = vmatmul.mubr.msk.bf16.gmra.mrb[108].mxu1 %vm1964_vm7, %v4543_v24  ;;  %v4522_v14 = vmax.f32 %v4450_v59, 0.0 }
 0x228   : > { %v2225_v40 = vrot.slane %v2224_v33, 4  ;;  %v2210_v32 = vsel %vm1964_vm7, %v2178_v31, -inf  ;;  %v2179_v53 = vmax.f32 %v2055_v38, 0.0  ;;  %v4445_v37 = vadd.f32 %v10656_v0, %v4444_v63 }
 0x229   : > { %v2211_v2 = vrot.slane %v2210_v32, 4  ;;  %v2231_v60 = vsel %vm1964_vm7, %v2181_v8, -inf  ;;  %v4523_v57 = vmax.f32 %v4453_v15, 0.0  ;;  %v4520_v7 = vmax.f32 %v4442_v55, 0.0 }
 0x22a   : > { %v2226_v42 = vmax.f32 %v2224_v33, %v2225_v40  ;;  %v2232_v10 = vrot.slane %v2231_v60, 4  ;;  %v2217_v61 = vsel %vm1964_vm7, %v2179_v53, -inf  ;;  %v9184_v24 = vpop.f32.mrb[4].mxu1  ;;  %v4521_v46 = vmax.f32 %v4445_v37, 0.0 }
 0x22b   : > { %v2212_v56 = vmax.f32 %v2210_v32, %v2211_v2  ;;  %v2218_v20 = vrot.slane %v2217_v61, 4  ;;  %v4545_v9 = vpack.c.bf16 %v4523_v57, %v4522_v14  ;;  %v2067_v35 = vpop.f32.mrb[5].mxu1  ;;  %v2076_v38 = vadd.f32 %v9184_v24, %v10850_v51 }
 0x22c   : > { %v2227_v31 = vrot.slane %v2226_v42, 2  ;;  %v2233_v59 = vmax.f32 %v2231_v60, %v2232_v10  ;;  %v2068_v8 = vadd.f32 %v10850_v51, %v2067_v35  ;;  %v9185_v15 = vpop.f32.mrb[6].mxu1  ;;  %v9370_v63 = vpop.f32.mrb[116].mxu0  ;;  %v4544_v53 = vpack.c.bf16 %v4521_v46, %v4520_v7 }
 0x22d   : > { %v2213_v33 = vrot.slane %v2212_v56, 2  ;;  %v2219_v40 = vmax.f32 %v2217_v61, %v2218_v20  ;;  %v2079_v55 = vadd.f32 %v9185_v15, %v10850_v51  ;;  %v2070_v2 = vpop.f32.mrb[7].mxu1  ;;  %v4457_v32 = vpop.f32.mrb[117].mxu0  ;;  %v2184_v14 = vmax.f32 %v2076_v38, 0.0 }
 0x22e   : > { %v2228_v57 = vmax.f32 %v2226_v42, %v2227_v31  ;;  %v2182_v37 = vmax.f32 %v2068_v8, 0.0  ;;  %v9371_v18 = vpop.f32.mrb[118].mxu0  ;;  %v10891_v10 = vmul.f32 %v10859_v47, %v10704_v34  ;;  %v2234_v35 = vrot.slane %v2233_v59, 2  ;;  %9398 = vmatprep.mubr.msk.bf16.mxu1 %vm1964_vm7, %v4544_v53  ;;  %v10894_v7 = vpop.permute.xlu0 %7390 }
 0x22f   : > { %v2214_v60 = vmax.f32 %v2212_v56, %v2213_v33  ;;  %v2220_v24 = vrot.slane %v2219_v40, 2  ;;  %v2185_v27 = vmax.f32 %v2079_v55, 0.0  ;;  %v4460_v61 = vpop.f32.mrb[119].mxu0  ;;  %v2252_v46 = vsel %vm1964_vm7, %v2184_v14, -inf  ;;  %9399 = vmatmul.mubr.msk.bf16.gmra.mrb[112].mxu1 %vm1964_vm7, %v4545_v9 }
 0x230   : > { %13598 = vst [vmem:[#allocation36_spill] sm:$0xff] %v10891_v10  ;;  %v2238_v42 = vsel %vm1964_vm7, %v2182_v37, -inf  ;;  %v13599_v20 = vrot.slane %v10859_v47, 7  ;;  %v7401_v56 = vrot.slane %v10894_v7, 5  ;;  %v2253_v8 = vrot.slane %v2252_v46, 4 }
 0x231   : > { %v2215_v31 = vrot.slane %v2214_v60, 1  ;;  %v2221_v38 = vmax.f32 %v2219_v40, %v2220_v24  ;;  %v2239_v15 = vrot.slane %v2238_v42, 4  ;;  %v2229_v33 = vrot.slane %v2228_v57, 1 }
 0x232   : > { %v10902_v34 = vmul.f32 %v13599_v20, %v10691_v21  ;;  %v2259_v53 = vsel %vm1964_vm7, %v2185_v27, -inf  ;;  %v9188_v55 = vpop.f32.mrb[8].mxu1  ;;  %v2235_v9 = vmax.f32 %v2233_v59, %v2234_v35  ;;  %v2254_v50 = vmax.f32 %v2252_v46, %v2253_v8 }
 0x233   : > { %v2222_v22 = vrot.slane %v2221_v38, 1  ;;  %v4466_v21 = vadd.f32 %v9370_v63, %v10656_v0  ;;  %v2083_v20 = vpop.f32.mrb[9].mxu1  ;;  %v2216_v43 = vmax.f32 %v2214_v60, %v2215_v31  ;;  %v2260_v3 = vrot.slane %v2259_v53, 4 }
 0x234   : > { %13600 = vst [vmem:[#allocation37_spill] sm:$0xff] %v10902_v34  ;;  %v2071_v40 = vadd.f32 %v10850_v51, %v2070_v2  ;;  %v4458_v24 = vadd.f32 %v10656_v0, %v4457_v32  ;;  %v9189_v62 = vpop.f32.mrb[10].mxu1  ;;  %v9374_v25 = vpop.f32.mrb[120].mxu0  ;;  %v2255_v39 = vrot.slane %v2254_v50, 2  ;;  %v2240_v49 = vmax.f32 %v2238_v42, %v2239_v15 }
 0x235   : > { %v2223_v27 = vmax.f32 %v2221_v38, %v2222_v22  ;;  %v4469_v14 = vadd.f32 %v9371_v18, %v10656_v0  ;;  %v2086_v37 = vpop.f32.mrb[11].mxu1  ;;  %v4473_v59 = vpop.f32.mrb[121].mxu0  ;;  %v2230_v35 = vmax.f32 %v2228_v57, %v2229_v33  ;;  %v2261_v46 = vmax.f32 %v2259_v53, %v2260_v3 }
 0x236   : > { %v2183_v8 = vmax.f32 %v2071_v40, 0.0  ;;  %v4461_v63 = vadd.f32 %v10656_v0, %v4460_v61  ;;  %v9375_v60 = vpop.f32.mrb[122].mxu0  ;;  %v2236_v31 = vrot.slane %v2235_v9, 1  ;;  %v4526_v45 = vmax.f32 %v4466_v21, 0.0 }
 0x237   : > { %v7654_v2 = vsel %vm7653_vm9, %v2223_v27, %v2216_v43  ;;  %v4527_v32 = vmax.f32 %v4469_v14, 0.0  ;;  %v4476_v1 = vpop.f32.mrb[123].mxu0  ;;  %v4524_v18 = vmax.f32 %v4458_v24, 0.0  ;;  %v10918_v15 = vmax.f32 %v2254_v50, %v2255_v39 }
 0x238   : > { %v10915_v22 = vsel %vm7655_vm10, %v2230_v35, %v7654_v2  ;;  %v2245_v42 = vsel %vm1964_vm7, %v2183_v8, -inf  ;;  %v4525_v38 = vmax.f32 %v4461_v63, 0.0  ;;  %v2241_v3 = vrot.slane %v2240_v49, 2 }
 0x239   : > { %13601 = vst [vmem:[#allocation38_spill] sm:$0xff] %v10915_v22  ;;  %v4547_v57 = vpack.c.bf16 %v4527_v32, %v4526_v45  ;;  %v2262_v33 = vrot.slane %v2261_v46, 2  ;;  %v2092_v43 = vadd.f32 %v9188_v55, %v10850_v51  ;;  %v2084_v14 = vadd.f32 %v10850_v51, %v2083_v20 }
 0x23a   : > { %v4546_v53 = vpack.c.bf16 %v4525_v38, %v4524_v18  ;;  %v9192_v21 = vpop.f32.mrb[12].mxu1  ;;  %v2246_v40 = vrot.slane %v2245_v42, 4  ;;  %v2095_v27 = vadd.f32 %v9189_v62, %v10850_v51  ;;  %v10926_v50 = vmax.f32 %v2235_v9, %v2236_v31 }
 0x23b   : > { %v2099_v35 = vpop.f32.mrb[13].mxu1  ;;  %v2188_v45 = vmax.f32 %v2092_v43, 0.0  ;;  %v2186_v8 = vmax.f32 %v2084_v14, 0.0  ;;  %v10930_v55 = vmul.f32 %v7401_v56, %v10665_v5  ;;  %v10932_v20 = vmax.f32 %v2240_v49, %v2241_v3 }
 0x23c   : > { %13602 = vst [vmem:[#allocation39_spill] sm:$0xff] %v10926_v50  ;;  %9402 = vmatprep.mubr.msk.bf16.mxu1 %vm1964_vm7, %v4546_v53  ;;  %v9193_v63 = vpop.f32.mrb[14].mxu1  ;;  %v9378_v2 = vpop.f32.mrb[124].mxu0  ;;  %v2189_v32 = vmax.f32 %v2095_v27, 0.0  ;;  %v4482_v62 = vadd.f32 %v9374_v25, %v10656_v0  ;;  %v2087_v18 = vadd.f32 %v10850_v51, %v2086_v37  ;;  %v10942_v53 = vmax.f32 %v2261_v46, %v2262_v33 }
 0x23d   : > { %13603 = vst [vmem:[#allocation40_spill] sm:$0xff] %v10930_v55  ;;  %9403 = vmatmul.mubr.msk.bf16.gmra.mrb[116].mxu1 %vm1964_vm7, %v4547_v57  ;;  %v10937_v9 = vpop.f32.mrb[15].mxu1  ;;  %v10939_v31 = vpop.f32.mrb[125].mxu0  ;;  %v2280_v5 = vsel %vm1964_vm7, %v2188_v45, -inf  ;;  %v2266_v49 = vsel %vm1964_vm7, %v2186_v8, -inf  ;;  %v2247_v3 = vmax.f32 %v2245_v42, %v2246_v40  ;;  %v4474_v61 = vadd.f32 %v10656_v0, %v4473_v59 }
 0x23e   : > { %v10946_v56 = vpop.f32.mrb[126].mxu0  ;;  %v2281_v25 = vrot.slane %v2280_v5, 4  ;;  %v2267_v43 = vrot.slane %v2266_v49, 4  ;;  %v2287_v37 = vsel %vm1964_vm7, %v2189_v32, -inf  ;;  %v2187_v27 = vmax.f32 %v2087_v18, 0.0 }
 0x23f   : > { %v10949_v57 = vpop.f32.mrb[127].mxu0  ;;  %v2288_v14 = vrot.slane %v2287_v37, 4  ;;  %v4485_v46 = vadd.f32 %v9375_v60, %v10656_v0  ;;  %v4530_v45 = vmax.f32 %v4482_v62, 0.0  ;;  %v4477_v8 = vadd.f32 %v10656_v0, %v4476_v1 }
 0x240   : > { %v2282_v33 = vmax.f32 %v2280_v5, %v2281_v25  ;;  %v2268_v24 = vmax.f32 %v2266_v49, %v2267_v43  ;;  %v2273_v42 = vsel %vm1964_vm7, %v2187_v27, -inf  ;;  %v2108_v38 = vadd.f32 %v9192_v21, %v10850_v51 }
 0x241   : > { %v2289_v39 = vmax.f32 %v2287_v37, %v2288_v14  ;;  %v4531_v40 = vmax.f32 %v4485_v46, 0.0  ;;  %v2248_v50 = vrot.slane %v2247_v3, 2  ;;  %v2274_v10 = vrot.slane %v2273_v42, 4 }
 0x242   : > { %v10956_v32 = vpop.f32.mrb[16].mxu1  ;;  %v2283_v22 = vrot.slane %v2282_v33, 2  ;;  %v2269_v18 = vrot.slane %v2268_v24, 2  ;;  %v4528_v60 = vmax.f32 %v4474_v61, 0.0  ;;  %v4529_v49 = vmax.f32 %v4477_v8, 0.0 }
 0x243   : > { %v10958_v59 = vpop.f32.mrb[17].mxu1  ;;  %v4549_v5 = vpack.c.bf16 %v4531_v40, %v4530_v45  ;;  %v2192_v62 = vmax.f32 %v2108_v38, 0.0  ;;  %v2275_v14 = vmax.f32 %v2273_v42, %v2274_v10  ;;  %v2100_v21 = vadd.f32 %v10850_v51, %v2099_v35 }
 0x244   : > { %v10960_v25 = vpop.f32.mrb[18].mxu1  ;;  %v10962_v1 = vpop.f32.mrb[128].mxu0  ;;  %v2284_v43 = vmax.f32 %v2282_v33, %v2283_v22  ;;  %v2270_v37 = vmax.f32 %v2268_v24, %v2269_v18  ;;  %v2290_v34 = vrot.slane %v2289_v39, 2  ;;  %v4548_v13 = vpack.c.bf16 %v4529_v49, %v4528_v60 }
 0x245   : > { %v10965_v27 = vpop.f32.mrb[19].mxu1  ;;  %v10967_v46 = vpop.f32.mrb[129].mxu0  ;;  %v2308_v61 = vsel %vm1964_vm7, %v2192_v62, -inf  ;;  %v2111_v45 = vadd.f32 %v9193_v63, %v10850_v51  ;;  %v2276_v47 = vrot.slane %v2275_v14, 2  ;;  %v2243_v10 = vrot.slane %v10932_v20, 1 }
 0x246   : > { %v10971_v38 = vpop.f32.mrb[130].mxu0  ;;  %v2285_v8 = vrot.slane %v2284_v43, 1  ;;  %v2271_v40 = vrot.slane %v2270_v37, 1  ;;  %v2309_v22 = vrot.slane %v2308_v61, 4  ;;  %v2190_v35 = vmax.f32 %v2100_v21, 0.0  ;;  %9406 = vmatprep.mubr.msk.bf16.mxu1 %vm1964_vm7, %v4548_v13 }
 0x247   : > { %v10973_v24 = vpop.f32.mrb[131].mxu0  ;;  %v2193_v33 = vmax.f32 %v2111_v45, 0.0  ;;  %v4498_v42 = vadd.f32 %v9378_v2, %v10656_v0  ;;  %v2264_v18 = vrot.slane %v10942_v53, 1  ;;  %v2249_v60 = vmax.f32 %v2247_v3, %v2248_v50  ;;  %9407 = vmatmul.mubr.msk.bf16.gmra.mrb[120].mxu1 %vm1964_vm7, %v4549_v5 }
 0x248   : > { %v2277_v63 = vmax.f32 %v2275_v14, %v2276_v47  ;;  %v2310_v49 = vmax.f32 %v2308_v61, %v2309_v22  ;;  %v2286_v62 = vmax.f32 %v2284_v43, %v2285_v8  ;;  %v2291_v41 = vmax.f32 %v2289_v39, %v2290_v34 }
 0x249   : > { %v2294_v6 = vsel %vm1964_vm7, %v2190_v35, -inf  ;;  %v2315_v54 = vsel %vm1964_vm7, %v2193_v33, -inf  ;;  %v2272_v21 = vmax.f32 %v2270_v37, %v2271_v40  ;;  %v4534_v17 = vmax.f32 %v4498_v42, 0.0 }
 0x24a   : > { %v10982_v11 = vpop.f32.mrb[20].mxu1  ;;  %v2278_v45 = vrot.slane %v2277_v63, 1  ;;  %v2295_v2 = vrot.slane %v2294_v6, 4  ;;  %v2103_v47 = vadd.f32 %v10850_v51, %v10937_v9  ;;  %v4490_v50 = vadd.f32 %v10656_v0, %v10939_v31 }
 0x24b   : > { %v10984_v13 = vpop.f32.mrb[21].mxu1  ;;  %v4501_v34 = vadd.f32 %v10946_v56, %v10656_v0  ;;  %v4493_v39 = vadd.f32 %v10656_v0, %v10949_v57  ;;  %v2311_v37 = vrot.slane %v2310_v49, 2  ;;  %v2316_v61 = vrot.slane %v2315_v54, 4 }
 0x24c   : > { %v10994_v3 = vpop.f32.mrb[22].mxu1  ;;  %v10996_v5 = vpop.f32.mrb[132].mxu0  ;;  %v2279_v43 = vmax.f32 %v2277_v63, %v2278_v45  ;;  %v2296_v14 = vmax.f32 %v2294_v6, %v2295_v2  ;;  %v2191_v40 = vmax.f32 %v2103_v47, 0.0  ;;  %v4532_v31 = vmax.f32 %v4490_v50, 0.0 }
 0x24d   : > { %v10998_v8 = vpop.f32.mrb[23].mxu1  ;;  %v11000_v9 = vpop.f32.mrb[133].mxu0  ;;  %v4535_v22 = vmax.f32 %v4501_v34, 0.0  ;;  %v4533_v35 = vmax.f32 %v4493_v39, 0.0  ;;  %v13604_v0 = vrot.slane %v10918_v15, 1  ;;  %v2250_v33 = vrot.slane %v2249_v60, 1 }
 0x24e   : > { %v11002_v56 = vpop.f32.mrb[134].mxu0  ;;  %v2292_v42 = vrot.slane %v2291_v41, 1  ;;  %v7667_v6 = vsel %vm7653_vm9, %v2279_v43, %v2272_v21  ;;  %v2301_v2 = vsel %vm1964_vm7, %v2191_v40, -inf  ;;  %v11017_v34 = vmax.f32 %v10932_v20, %v2243_v10  ;;  %v11024_v21 = vld [vmem:[%s13503_s14] ss:$0 sm:$0xff] }
 0x24f   : > { %v11007_v57 = vmax.f32 %v10918_v15, %v13604_v0  ;;  %v11010_v63 = vpop.f32.mrb[135].mxu0  ;;  %v11013_v45 = vsel %vm7655_vm10, %v2286_v62, %v7667_v6  ;;  %v4551_v47 = vpack.c.bf16 %v4535_v22, %v4534_v17  ;;  %v4550_v50 = vpack.c.bf16 %v4533_v35, %v4532_v31 }
 0x250   : > { %13606 = vst [vmem:[#allocation42_spill] sm:$0xff] %v11013_v45  ;;  %13607 = vst [vmem:[#allocation43_spill] sm:$0xff] %v11017_v34  ;;  %v11019_v39 = vmax.f32 %v2310_v49, %v2311_v37  ;;  %v2297_v15 = vrot.slane %v2296_v14, 2  ;;  %v2317_v0 = vmax.f32 %v2315_v54, %v2316_v61  ;;  %v11027_v43 = vmax.f32 %v10942_v53, %v2264_v18 }
 0x251   : > { %13605 = vst [vmem:[#allocation41_spill] sm:$0xff] %v11007_v57  ;;  %v2124_v62 = vadd.f32 %v10956_v32, %v10850_v51  ;;  %v2116_v17 = vadd.f32 %v10850_v51, %v10958_v59  ;;  %v2127_v20 = vadd.f32 %v10960_v25, %v10850_v51  ;;  %9410 = vmatprep.mubr.msk.bf16.mxu1 %vm1964_vm7, %v4550_v50  ;;  %v2302_v37 = vrot.slane %v2301_v2, 4 }
 0x252   : > { %13608 = vst [vmem:[#allocation44_spill] sm:$0xff] %v11027_v43  ;;  %v11036_v54 = vpop.f32.mrb[24].mxu1  ;;  %v11038_v10 = vmax.f32 %v2249_v60, %v2250_v33  ;;  %v11040_v49 = vmax.f32 %v2291_v41, %v2292_v42  ;;  %v2119_v53 = vadd.f32 %v10850_v51, %v10965_v27  ;;  %9411 = vmatmul.mubr.msk.bf16.gmra.mrb[124].mxu1 %vm1964_vm7, %v4551_v47  ;;  %v2318_v27 = vrot.slane %v2317_v0, 2 }
 0x253   : > { %v11045_v32 = vpop.f32.mrb[25].mxu1  ;;  %v2196_v59 = vmax.f32 %v2124_v62, 0.0  ;;  %v2194_v18 = vmax.f32 %v2116_v17, 0.0  ;;  %v2197_v25 = vmax.f32 %v2127_v20, 0.0  ;;  %v5259_v61 = vadd.f32 %v10962_v1, %v11024_v21 }
 0x254   : > { %13609 = vst [vmem:[#allocation45_spill] sm:$0xff] %v11038_v10  ;;  %13610 = vst [vmem:[#allocation46_spill] sm:$0xff] %v11040_v49  ;;  %v11049_v40 = vpop.f32.mrb[26].mxu1  ;;  %v11051_v60 = vpop.f32.mrb[136].mxu0  ;;  %v11054_v31 = vmax.f32 %v2296_v14, %v2297_v15  ;;  %v2195_v22 = vmax.f32 %v2119_v53, 0.0  ;;  %v5251_v47 = vadd.f32 %v11024_v21, %v10967_v46  ;;  %v2303_v62 = vmax.f32 %v2301_v2, %v2302_v37 }
 0x255   : > { %v11056_v35 = vpop.f32.mrb[27].mxu1  ;;  %v11058_v33 = vpop.f32.mrb[137].mxu0  ;;  %v2336_v42 = vsel %vm1964_vm7, %v2196_v59, -inf  ;;  %v2322_v6 = vsel %vm1964_vm7, %v2194_v18, -inf  ;;  %v2343_v1 = vsel %vm1964_vm7, %v2197_v25, -inf  ;;  %v5379_v53 = vmax.f32 %v5259_v61, 0.0 }
 0x256   : > { %v11065_v50 = vpop.f32.mrb[138].mxu0  ;;  %v2337_v14 = vrot.slane %v2336_v42, 4  ;;  %v2323_v15 = vrot.slane %v2322_v6, 4  ;;  %v2344_v17 = vrot.slane %v2343_v1, 4  ;;  %v2329_v41 = vsel %vm1964_vm7, %v2195_v22, -inf }
 0x257   : > { %v11067_v20 = vpop.f32.mrb[139].mxu0  ;;  %v5262_v59 = vadd.f32 %v10971_v38, %v11024_v21  ;;  %v5254_v18 = vadd.f32 %v11024_v21, %v10973_v24  ;;  %v5377_v45 = vmax.f32 %v5251_v47, 0.0  ;;  %v2330_v43 = vrot.slane %v2329_v41, 4 }
 0x258   : > { %v2338_v25 = vmax.f32 %v2336_v42, %v2337_v14  ;;  %v2324_v49 = vmax.f32 %v2322_v6, %v2323_v15  ;;  %v2345_v46 = vmax.f32 %v2343_v1, %v2344_v17  ;;  %v2140_v57 = vadd.f32 %v10982_v11, %v10850_v51 }
 0x259   : > { %v5380_v2 = vmax.f32 %v5262_v59, 0.0  ;;  %v5378_v37 = vmax.f32 %v5254_v18, 0.0  ;;  %v11078_v61 = vmax.f32 %v2317_v0, %v2318_v27  ;;  %v2304_v22 = vrot.slane %v2303_v62, 2 }
 0x25a   : > { %v11076_v10 = vpop.f32.mrb[28].mxu1  ;;  %v2339_v34 = vrot.slane %v2338_v25, 2  ;;  %v2325_v38 = vrot.slane %v2324_v49, 2  ;;  %v2331_v24 = vmax.f32 %v2329_v41, %v2330_v43  ;;  %v2200_v1 = vmax.f32 %v2140_v57, 0.0 }
 0x25b   : > { %v11080_v55 = vpop.f32.mrb[29].mxu1  ;;  %v5410_v42 = vpack.c.bf16 %v5380_v2, %v5379_v53  ;;  %v5409_v6 = vpack.c.bf16 %v5378_v37, %v5377_v45  ;;  %v2346_v11 = vrot.slane %v2345_v46, 2  ;;  %v2132_v0 = vadd.f32 %v10850_v51, %v10984_v13 }
 0x25c   : > { %v11082_v47 = vpop.f32.mrb[30].mxu1  ;;  %v11084_v14 = vpop.f32.mrb[140].mxu0  ;;  %v2340_v15 = vmax.f32 %v2338_v25, %v2339_v34  ;;  %v2326_v17 = vmax.f32 %v2324_v49, %v2325_v38  ;;  %v2332_v18 = vrot.slane %v2331_v24, 2  ;;  %v2364_v43 = vsel %vm1964_vm7, %v2200_v1, -inf }
 0x25d   : > { %v11088_v27 = vpop.f32.mrb[31].mxu1  ;;  %v11090_v59 = vpop.f32.mrb[141].mxu0  ;;  %v2143_v57 = vadd.f32 %v10994_v3, %v10850_v51  ;;  %v5275_v45 = vadd.f32 %v10996_v5, %v11024_v21  ;;  %9452 = vmatprep.mubr.msk.bf16.mxu1 %vm3938_vm11, %v5409_v6  ;;  %v2299_v49 = vrot.slane %v11054_v31, 1  ;;  %v2320_v13 = vrot.slane %v11078_v61, 1 }
 0x25e   : > { %v11098_v34 = vpop.f32.mrb[142].mxu0  ;;  %v2327_v41 = vrot.slane %v2326_v17, 1  ;;  %v2365_v53 = vrot.slane %v2364_v43, 4  ;;  %9453 = vmatmul.mubr.msk.bf16.vlgmr.msra.gmra.mrb[128].mxu1 %vm3938_vm11, %v5410_v42  ;;  %v2305_v2 = vmax.f32 %v2303_v62, %v2304_v22  ;;  %v2333_v37 = vmax.f32 %v2331_v24, %v2332_v18 }
 0x25f   : > { %v11103_v25 = vpop.f32.mrb[143].mxu0  ;;  %v2198_v3 = vmax.f32 %v2132_v0, 0.0  ;;  %v2201_v38 = vmax.f32 %v2143_v57, 0.0  ;;  %9521 = vmatpush3.bf16.msra.mxu1 %v10733_v52  ;;  %v2341_v5 = vrot.slane %v2340_v15, 1  ;;  %v2347_v1 = vmax.f32 %v2345_v46, %v2346_v11 }
 0x260   : > { %v2328_v6 = vmax.f32 %v2326_v17, %v2327_v41  ;;  %v5383_v58 = vmax.f32 %v5275_v45, 0.0  ;;  %v2334_v48 = vrot.slane %v2333_v37, 1  ;;  %v2135_v42 = vadd.f32 %v10850_v51, %v10998_v8 }
 0x261   : > { %v2350_v30 = vsel %vm1964_vm7, %v2198_v3, -inf  ;;  %v2371_v4 = vsel %vm1964_vm7, %v2201_v38, -inf  ;;  %v2366_v62 = vmax.f32 %v2364_v43, %v2365_v53  ;;  %v5267_v52 = vadd.f32 %v11024_v21, %v11000_v9 }
 0x262   : > { %v11110_v29 = vpop.f32.mrb[32].mxu1  ;;  %v2351_v22 = vrot.slane %v2350_v30, 4  ;;  %v2372_v24 = vrot.slane %v2371_v4, 4  ;;  %v2335_v46 = vmax.f32 %v2333_v37, %v2334_v48  ;;  %v2199_v17 = vmax.f32 %v2135_v42, 0.0 }
 0x263   : > { %v11114_v0 = vpop.f32.mrb[33].mxu1  ;;  %v5278_v11 = vadd.f32 %v11002_v56, %v11024_v21  ;;  %v5270_v18 = vadd.f32 %v11024_v21, %v11010_v63  ;;  %v2342_v43 = vmax.f32 %v2340_v15, %v2341_v5  ;;  %v5381_v53 = vmax.f32 %v5267_v52, 0.0 }
 0x264   : > { %v11120_v57 = vpop.f32.mrb[34].mxu1  ;;  %v11122_v8 = vpop.f32.mrb[144].mxu0  ;;  %v2352_v45 = vmax.f32 %v2350_v30, %v2351_v22  ;;  %v2373_v41 = vmax.f32 %v2371_v4, %v2372_v24  ;;  %v7674_v48 = vsel %vm7653_vm9, %v2335_v46, %v2328_v6  ;;  %v2357_v37 = vsel %vm1964_vm7, %v2199_v17, -inf }
 0x265   : > { %v11124_v3 = vpop.f32.mrb[35].mxu1  ;;  %v11126_v9 = vpop.f32.mrb[145].mxu0  ;;  %v5384_v56 = vmax.f32 %v5278_v11, 0.0  ;;  %v5382_v38 = vmax.f32 %v5270_v18, 0.0  ;;  %v2306_v63 = vrot.slane %v2305_v2, 1  ;;  %v2348_v44 = vrot.slane %v2347_v1, 1 }
 0x266   : > { %v11130_v42 = vpop.f32.mrb[146].mxu0  ;;  %v11133_v26 = vsel %vm7655_vm10, %v2342_v43, %v7674_v48  ;;  %v2367_v30 = vrot.slane %v2366_v62, 2  ;;  %v2358_v15 = vrot.slane %v2357_v37, 4  ;;  %v2156_v6 = vadd.f32 %v11036_v54, %v10850_v51 }
 0x267   : > { %13611 = vst [vmem:[#allocation47_spill] sm:$0xff] %v11133_v26  ;;  %v11135_v4 = vpop.f32.mrb[147].mxu0  ;;  %v5412_v5 = vpack.c.bf16 %v5384_v56, %v5383_v58  ;;  %v5411_v22 = vpack.c.bf16 %v5382_v38, %v5381_v53  ;;  %v13612_v24 = vrot.slane %v11019_v39, 1  ;;  %v11145_v46 = vmax.f32 %v11054_v31, %v2299_v49 }
 0x268   : > { %v2353_v17 = vrot.slane %v2352_v45, 2  ;;  %v2148_v11 = vadd.f32 %v10850_v51, %v11045_v32  ;;  %v11150_v18 = vmax.f32 %v11078_v61, %v2320_v13  ;;  %v2374_v58 = vrot.slane %v2373_v41, 2 }
 0x269   : > { %v11142_v52 = vmax.f32 %v11019_v39, %v13612_v24  ;;  %13614 = vst [vmem:[#allocation49_spill] sm:$0xff] %v11145_v46  ;;  %v2204_v43 = vmax.f32 %v2156_v6, 0.0  ;;  %v2159_v54 = vadd.f32 %v11049_v40, %v10850_v51  ;;  %9456 = vmatprep.mubr.msk.bf16.mxu1 %vm3938_vm11, %v5411_v22  ;;  %v11157_v39 = vmax.f32 %v2305_v2, %v2306_v63 }
 0x26a   : > { %13615 = vst [vmem:[#allocation50_spill] sm:$0xff] %v11150_v18  ;;  %v11155_v53 = vpop.f32.mrb[36].mxu1  ;;  %v11159_v31 = vmax.f32 %v2347_v1, %v2348_v44  ;;  %v2202_v49 = vmax.f32 %v2148_v11, 0.0  ;;  %v2151_v32 = vadd.f32 %v10850_v51, %v11056_v35  ;;  %9457 = vmatmul.mubr.msk.bf16.gmra.mrb[132].mxu1 %vm3938_vm11, %v5412_v5  ;;  %v11166_v13 = vmax.f32 %v2366_v62, %v2367_v30 }
 0x26b   : > { %13613 = vst [vmem:[#allocation48_spill] sm:$0xff] %v11142_v52  ;;  %13616 = vst [vmem:[#allocation51_spill] sm:$0xff] %v11157_v39  ;;  %v11164_v61 = vpop.f32.mrb[37].mxu1  ;;  %v2359_v48 = vmax.f32 %v2357_v37, %v2358_v15  ;;  %v2392_v40 = vsel %vm1964_vm7, %v2204_v43, -inf  ;;  %v2205_v56 = vmax.f32 %v2159_v54, 0.0  ;;  %v11173_v44 = vmax.f32 %v2352_v45, %v2353_v17 }
 0x26c   : > { %13617 = vst [vmem:[#allocation52_spill] sm:$0xff] %v11159_v31  ;;  %v11169_v38 = vpop.f32.mrb[38].mxu1  ;;  %v11171_v2 = vpop.f32.mrb[148].mxu0  ;;  %v2393_v1 = vrot.slane %v2392_v40, 4  ;;  %v2378_v63 = vsel %vm1964_vm7, %v2202_v49, -inf  ;;  %v5291_v35 = vadd.f32 %v11051_v60, %v11024_v21  ;;  %v11182_v37 = vmax.f32 %v2373_v41, %v2374_v58 }
 0x26d   : > { %v11178_v5 = vpop.f32.mrb[39].mxu1  ;;  %v11180_v62 = vpop.f32.mrb[149].mxu0  ;;  %v2379_v30 = vrot.slane %v2378_v63, 4  ;;  %v2399_v15 = vsel %vm1964_vm7, %v2205_v56, -inf  ;;  %v2203_v22 = vmax.f32 %v2151_v32, 0.0  ;;  %v5283_v17 = vadd.f32 %v11024_v21, %v11058_v33 }
 0x26e   : > { %v11185_v6 = vpop.f32.mrb[150].mxu0  ;;  %v2394_v45 = vmax.f32 %v2392_v40, %v2393_v1  ;;  %v2400_v24 = vrot.slane %v2399_v15, 4  ;;  %v5294_v60 = vadd.f32 %v11065_v50, %v11024_v21  ;;  %v2360_v43 = vrot.slane %v2359_v48, 2 }
 0x26f   : > { %v11191_v11 = vpop.f32.mrb[151].mxu0  ;;  %v2380_v54 = vmax.f32 %v2378_v63, %v2379_v30  ;;  %v2385_v41 = vsel %vm1964_vm7, %v2203_v22, -inf  ;;  %v5286_v58 = vadd.f32 %v11024_v21, %v11067_v20  ;;  %v5387_v56 = vmax.f32 %v5291_v35, 0.0 }
 0x270   : > { %v2395_v49 = vrot.slane %v2394_v45, 2  ;;  %v2401_v32 = vmax.f32 %v2399_v15, %v2400_v24  ;;  %v2386_v40 = vrot.slane %v2385_v41, 4  ;;  %v5385_v31 = vmax.f32 %v5283_v17, 0.0 }
 0x271   : > { %v2381_v1 = vrot.slane %v2380_v54, 2  ;;  %v5388_v26 = vmax.f32 %v5294_v60, 0.0  ;;  %v5386_v33 = vmax.f32 %v5286_v58, 0.0  ;;  %v2172_v63 = vadd.f32 %v11076_v10, %v10850_v51 }
 0x272   : > { %v11196_v18 = vpop.f32.mrb[40].mxu1  ;;  %v2396_v50 = vmax.f32 %v2394_v45, %v2395_v49  ;;  %v2402_v52 = vrot.slane %v2401_v32, 2  ;;  %v2387_v39 = vmax.f32 %v2385_v41, %v2386_v40  ;;  %v2164_v35 = vadd.f32 %v10850_v51, %v11080_v55 }
 0x273   : > { %v11200_v30 = vpop.f32.mrb[41].mxu1  ;;  %v2382_v22 = vmax.f32 %v2380_v54, %v2381_v1  ;;  %v5414_v20 = vpack.c.bf16 %v5388_v26, %v5387_v56  ;;  %v5413_v46 = vpack.c.bf16 %v5386_v33, %v5385_v31  ;;  %v2369_v17 = vrot.slane %v11166_v13, 1 }
 0x274   : > { %v11204_v15 = vpop.f32.mrb[42].mxu1  ;;  %v11206_v24 = vpop.f32.mrb[152].mxu0  ;;  %v11209_v45 = vmax.f32 %v2359_v48, %v2360_v43  ;;  %v2388_v60 = vrot.slane %v2387_v39, 2  ;;  %v2208_v41 = vmax.f32 %v2172_v63, 0.0  ;;  %v2355_v26 = vrot.slane %v11173_v44, 1 }
 0x275   : > { %v11211_v58 = vpop.f32.mrb[43].mxu1  ;;  %v11213_v10 = vpop.f32.mrb[153].mxu0  ;;  %v2383_v31 = vrot.slane %v2382_v22, 1  ;;  %v2206_v54 = vmax.f32 %v2164_v35, 0.0  ;;  %v2175_v55 = vadd.f32 %v11082_v47, %v10850_v51  ;;  %9460 = vmatprep.mubr.msk.bf16.mxu1 %vm3938_vm11, %v5413_v46  ;;  %v2376_v48 = vrot.slane %v11182_v37, 1 }
 0x276   : > { %v11219_v49 = vpop.f32.mrb[154].mxu0  ;;  %v2397_v43 = vrot.slane %v2396_v50, 1  ;;  %v2389_v56 = vmax.f32 %v2387_v39, %v2388_v60  ;;  %v2420_v40 = vsel %vm1964_vm7, %v2208_v41, -inf  ;;  %9461 = vmatmul.mubr.msk.bf16.gmra.mrb[136].mxu1 %vm3938_vm11, %v5414_v20  ;;  %v2403_v33 = vmax.f32 %v2401_v32, %v2402_v52 }
 0x277   : > { %v11224_v1 = vpop.f32.mrb[155].mxu0  ;;  %v2421_v63 = vrot.slane %v2420_v40, 4  ;;  %v2406_v35 = vsel %vm1964_vm7, %v2206_v54, -inf  ;;  %v2209_v12 = vmax.f32 %v2175_v55, 0.0  ;;  %v2362_v47 = vrot.slane %v11209_v45, 1 }
 0x278   : > { %v2390_v46 = vrot.slane %v2389_v56, 1  ;;  %v2407_v19 = vrot.slane %v2406_v35, 4  ;;  %v5307_v28 = vadd.f32 %v11084_v14, %v11024_v21  ;;  %v2384_v36 = vmax.f32 %v2382_v22, %v2383_v31 }
 0x279   : > { %v2427_v39 = vsel %vm1964_vm7, %v2209_v12, -inf  ;;  %v2167_v20 = vadd.f32 %v10850_v51, %v11088_v27  ;;  %v5299_v52 = vadd.f32 %v11024_v21, %v11090_v59  ;;  %v2422_v41 = vmax.f32 %v2420_v40, %v2421_v63 }
 0x27a   : > { %v11235_v32 = vpop.f32.mrb[44].mxu1  ;;  %v2391_v60 = vmax.f32 %v2389_v56, %v2390_v46  ;;  %v2428_v54 = vrot.slane %v2427_v39, 4  ;;  %v5310_v55 = vadd.f32 %v11098_v34, %v11024_v21  ;;  %v2398_v14 = vmax.f32 %v2396_v50, %v2397_v43  ;;  %v11251_v34 = vld [vmem:[%s13497_s8 + $0x1] ss:$0 sm:$0xff] }
 0x27b   : > { %v11239_v23 = vpop.f32.mrb[45].mxu1  ;;  %v2404_v22 = vrot.slane %v2403_v33, 1  ;;  %v2207_v31 = vmax.f32 %v2167_v20, 0.0  ;;  %v5302_v12 = vadd.f32 %v11024_v21, %v11103_v25  ;;  %v2408_v56 = vmax.f32 %v2406_v35, %v2407_v19 }
 0x27c   : > { %v11243_v51 = vpop.f32.mrb[46].mxu1  ;;  %v11245_v27 = vpop.f32.mrb[156].mxu0  ;;  %v7681_v59 = vsel %vm7653_vm9, %v2391_v60, %v2384_v36  ;;  %v5391_v40 = vmax.f32 %v5307_v28, 0.0  ;;  %v5392_v63 = vmax.f32 %v5310_v55, 0.0  ;;  %v5389_v20 = vmax.f32 %v5299_v52, 0.0 }
 0x27d   : > { %13618 = vst [vmem:[#allocation53_spill] sm:$0xff] %v11243_v51  ;;  %13619 = vst [vmem:[#allocation54_spill] sm:$0xff] %v11245_v27  ;;  %v11253_v50 = vpop.f32.mrb[47].mxu1  ;;  %v11255_v43 = vpop.f32.mrb[157].mxu0  ;;  %v11258_v25 = vsel %vm7655_vm10, %v2398_v14, %v7681_v59  ;;  %v2413_v46 = vsel %vm1964_vm7, %v2207_v31, -inf  ;;  %v5390_v27 = vmax.f32 %v5302_v12, 0.0  ;;  %v2429_v19 = vmax.f32 %v2427_v39, %v2428_v54 }
 0x27e   : > { %13620 = vst [vmem:[#allocation55_spill] sm:$0xff] %v11253_v50  ;;  %13621 = vst [vmem:[#allocation56_spill] sm:$0xff] %v11258_v25  ;;  %v11261_v36 = vpop.f32.mrb[158].mxu0  ;;  %v2423_v28 = vrot.slane %v2422_v41, 2  ;;  %v2414_v35 = vrot.slane %v2413_v46, 4  ;;  %v5416_v60 = vpack.c.bf16 %v5392_v63, %v5391_v40  ;;  %v11266_v51 = vmax.f32 %v11166_v13, %v2369_v17 }
 0x27f   : > { %v11263_v55 = vpop.f32.mrb[159].mxu0  ;;  %v5415_v50 = vpack.c.bf16 %v5390_v27, %v5389_v20  ;;  %v2921_v14 = vadd.f32 %v11110_v29, %v11251_v34  ;;  %v2913_v31 = vadd.f32 %v11251_v34, %v11114_v0  ;;  %v11273_v52 = vmax.f32 %v11173_v44, %v2355_v26 }
 0x280   : > { %13622 = vst [vmem:[#allocation57_spill] sm:$0xff] %v11266_v51  ;;  %v2409_v12 = vrot.slane %v2408_v56, 2  ;;  %v2415_v59 = vmax.f32 %v2413_v46, %v2414_v35  ;;  %v2924_v39 = vadd.f32 %v11120_v57, %v11251_v34  ;;  %v11278_v54 = vmax.f32 %v11182_v37, %v2376_v48 }
 0x281   : > { %13623 = vst [vmem:[#allocation58_spill] sm:$0xff] %v11273_v52  ;;  %v11281_v13 = vmax.f32 %v11209_v45, %v2362_v47  ;;  %v3041_v17 = vmax.f32 %v2921_v14, 0.0  ;;  %v3039_v27 = vmax.f32 %v2913_v31, 0.0  ;;  %9464 = vmatprep.mubr.msk.bf16.mxu1 %vm3938_vm11, %v5415_v50  ;;  %v11286_v0 = vmax.f32 %v2403_v33, %v2404_v22 }
 0x282   : > { %13624 = vst [vmem:[#allocation59_spill] sm:$0xff] %v11278_v54  ;;  %v11284_v29 = vpop.f32.mrb[48].mxu1  ;;  %v11288_v44 = vmax.f32 %v2422_v41, %v2423_v28  ;;  %v2430_v26 = vrot.slane %v2429_v19, 2  ;;  %v3042_v40 = vmax.f32 %v2924_v39, 0.0  ;;  %9465 = vmatmul.mubr.msk.bf16.gmra.mrb[140].mxu1 %vm3938_vm11, %v5416_v60  ;;  %v5323_v48 = vadd.f32 %v11122_v8, %v11024_v21 }
 0x283   : > { %13625 = vst [vmem:[#allocation60_spill] sm:$0xff] %v11281_v13  ;;  %13626 = vst [vmem:[#allocation61_spill] sm:$0xff] %v11286_v0  ;;  %v11291_v57 = vpop.f32.mrb[49].mxu1  ;;  %v3085_v37 = vsel %vm1964_vm7, %v3041_v17, -inf  ;;  %v3071_v45 = vsel %vm1964_vm7, %v3039_v27, -inf  ;;  %v2916_v47 = vadd.f32 %v11251_v34, %v11124_v3  ;;  %v11303_v22 = vmax.f32 %v2408_v56, %v2409_v12 }
 0x284   : > { %v11299_v33 = vpop.f32.mrb[50].mxu1  ;;  %v11301_v41 = vpop.f32.mrb[160].mxu0  ;;  %v2416_v63 = vrot.slane %v2415_v59, 2  ;;  %v3086_v50 = vrot.slane %v3085_v37, 4  ;;  %v3072_v46 = vrot.slane %v3071_v45, 4  ;;  %v3092_v35 = vsel %vm1964_vm7, %v3042_v40, -inf }
 0x285   : > { %v11305_v20 = vpop.f32.mrb[51].mxu1  ;;  %v11307_v28 = vpop.f32.mrb[161].mxu0  ;;  %v3040_v60 = vmax.f32 %v2916_v47, 0.0  ;;  %v5315_v8 = vadd.f32 %v11024_v21, %v11126_v9  ;;  %v5326_v3 = vadd.f32 %v11130_v42, %v11024_v21  ;;  %v11316_v56 = vmax.f32 %v2429_v19, %v2430_v26 }
 0x286   : > { %v11314_v14 = vpop.f32.mrb[162].mxu0  ;;  %v3087_v31 = vmax.f32 %v3085_v37, %v3086_v50  ;;  %v3073_v12 = vmax.f32 %v3071_v45, %v3072_v46  ;;  %v3093_v39 = vrot.slane %v3092_v35, 4  ;;  %v5395_v27 = vmax.f32 %v5323_v48, 0.0 }
 0x287   : > { %v11318_v17 = vpop.f32.mrb[163].mxu0  ;;  %v3078_v0 = vsel %vm1964_vm7, %v3040_v60, -inf  ;;  %v5396_v40 = vmax.f32 %v5326_v3, 0.0  ;;  %v5318_v47 = vadd.f32 %v11024_v21, %v11135_v4  ;;  %v11323_v9 = vmax.f32 %v2415_v59, %v2416_v63 }
 0x288   : > { %v3074_v25 = vrot.slane %v3073_v12, 2  ;;  %v3094_v42 = vmax.f32 %v3092_v35, %v3093_v39  ;;  %v5393_v54 = vmax.f32 %v5315_v8, 0.0  ;;  %v3079_v51 = vrot.slane %v3078_v0, 4 }
 0x289   : > { %v5418_v19 = vpack.c.bf16 %v5396_v40, %v5395_v27  ;;  %v5394_v26 = vmax.f32 %v5318_v47, 0.0  ;;  %v2937_v37 = vadd.f32 %v11155_v53, %v11251_v34  ;;  %v3088_v48 = vrot.slane %v3087_v31, 2 }
 0x28a   : > { %v11327_v45 = vpop.f32.mrb[52].mxu1  ;;  %v3075_v50 = vmax.f32 %v3073_v12, %v3074_v25  ;;  %v3095_v46 = vrot.slane %v3094_v42, 2  ;;  %v2929_v60 = vadd.f32 %v11251_v34, %v11164_v61  ;;  %v2425_v59 = vrot.slane %v11288_v44, 1 }
 0x28b   : > { %v11331_v4 = vpop.f32.mrb[53].mxu1  ;;  %v3080_v63 = vmax.f32 %v3078_v0, %v3079_v51  ;;  %v5417_v35 = vpack.c.bf16 %v5394_v26, %v5393_v54  ;;  %v3045_v8 = vmax.f32 %v2937_v37, 0.0  ;;  %v2940_v51 = vadd.f32 %v11169_v38, %v11251_v34 }
 0x28c   : > { %v11334_v3 = vpop.f32.mrb[54].mxu1  ;;  %v11336_v39 = vpop.f32.mrb[164].mxu0  ;;  %v3076_v25 = vrot.slane %v3075_v50, 1  ;;  %v3043_v12 = vmax.f32 %v2929_v60, 0.0  ;;  %v5339_v54 = vadd.f32 %v11171_v2, %v11024_v21  ;;  %v2418_v26 = vrot.slane %v11323_v9, 1 }
 0x28d   : > { %13627 = vst [vmem:[#allocation62_spill] sm:$0xff] %v11336_v39  ;;  %v11340_v40 = vpop.f32.mrb[55].mxu1  ;;  %v11342_v61 = vpop.f32.mrb[165].mxu0  ;;  %v3081_v47 = vrot.slane %v3080_v63, 2  ;;  %v3113_v13 = vsel %vm1964_vm7, %v3045_v8, -inf  ;;  %9468 = vmatprep.mubr.msk.bf16.mxu1 %vm3938_vm11, %v5417_v35  ;;  %v3089_v37 = vmax.f32 %v3087_v31, %v3088_v48  ;;  %v3096_v60 = vmax.f32 %v3094_v42, %v3095_v46 }
 0x28e   : > { %13628 = vst [vmem:[#allocation63_spill] sm:$0xff] %v11340_v40  ;;  %13629 = vst [vmem:[#allocation64_spill] sm:$0xff] %v11342_v61  ;;  %v11350_v0 = vpop.f32.mrb[166].mxu0  ;;  %v3114_v27 = vrot.slane %v3113_v13, 4  ;;  %9469 = vmatmul.mubr.msk.bf16.gmra.mrb[144].mxu1 %vm3938_vm11, %v5418_v19  ;;  %v3077_v8 = vmax.f32 %v3075_v50, %v3076_v25  ;;  %v3099_v38 = vsel %vm1964_vm7, %v3043_v12, -inf  ;;  %v3046_v61 = vmax.f32 %v2940_v51, 0.0 }
 0x28f   : > { %13630 = vst [vmem:[#allocation65_spill] sm:$0xff] %v11350_v0  ;;  %v11354_v53 = vpop.f32.mrb[167].mxu0  ;;  %v3082_v52 = vmax.f32 %v3080_v63, %v3081_v47  ;;  %v3100_v2 = vrot.slane %v3099_v38, 4  ;;  %v5399_v40 = vmax.f32 %v5339_v54, 0.0  ;;  %v2932_v35 = vadd.f32 %v11251_v34, %v11178_v5 }
 0x290   : > { %13631 = vst [vmem:[#allocation66_spill] sm:$0xff] %v11354_v53  ;;  %v3115_v39 = vmax.f32 %v3113_v13, %v3114_v27  ;;  %v3120_v31 = vsel %vm1964_vm7, %v3046_v61, -inf  ;;  %v5331_v42 = vadd.f32 %v11024_v21, %v11180_v62  ;;  %v5342_v19 = vadd.f32 %v11185_v6, %v11024_v21  ;;  %v11366_v27 = vpop.permute.xlu1 %6827 }
 0x291   : > { %v3083_v0 = vrot.slane %v3082_v52, 1  ;;  %v3101_v46 = vmax.f32 %v3099_v38, %v3100_v2  ;;  %v3121_v63 = vrot.slane %v3120_v31, 4  ;;  %v3044_v13 = vmax.f32 %v2932_v35, 0.0  ;;  %13633 = vst [vmem:[#allocation68_spill] sm:$0xff] %v11366_v27 }
 0x292   : > { %v11364_v48 = vpop.f32.mrb[56].mxu1  ;;  %v3116_v50 = vrot.slane %v3115_v39, 2  ;;  %v5397_v12 = vmax.f32 %v5331_v42, 0.0  ;;  %v5400_v47 = vmax.f32 %v5342_v19, 0.0  ;;  %v5334_v61 = vadd.f32 %v11024_v21, %v11191_v11 }
 0x293   : > { %13632 = vst [vmem:[#allocation67_spill] sm:$0xff] %v11364_v48  ;;  %v11368_v25 = vpop.f32.mrb[57].mxu1  ;;  %v3084_v5 = vmax.f32 %v3082_v52, %v3083_v0  ;;  %v3102_v54 = vrot.slane %v3101_v46, 2  ;;  %v3122_v48 = vmax.f32 %v3120_v31, %v3121_v63  ;;  %v3106_v38 = vsel %vm1964_vm7, %v3044_v13, -inf }
 0x294   : > { %13634 = vst [vmem:[#allocation69_spill] sm:$0xff] %v11368_v25  ;;  %v11372_v62 = vpop.f32.mrb[58].mxu1  ;;  %v11374_v51 = vpop.f32.mrb[168].mxu0  ;;  %v3117_v6 = vmax.f32 %v3115_v39, %v3116_v50  ;;  %v3107_v0 = vrot.slane %v3106_v38, 4  ;;  %v5420_v42 = vpack.c.bf16 %v5400_v47, %v5399_v40  ;;  %v5398_v11 = vmax.f32 %v5334_v61, 0.0 }
 0x295   : > { %13635 = vst [vmem:[#allocation70_spill] sm:$0xff] %v11372_v62  ;;  %13636 = vst [vmem:[#allocation71_spill] sm:$0xff] %v11374_v51  ;;  %v11377_v2 = vpop.f32.mrb[59].mxu1  ;;  %v11379_v35 = vpop.f32.mrb[169].mxu0  ;;  %v11382_v52 = vsel %vm7653_vm9, %v3084_v5, %v3077_v8  ;;  %v11387_v51 = vmax.f32 %v11288_v44, %v2425_v59  ;;  %v3090_v39 = vrot.slane %v3089_v37, 1  ;;  %v3097_v31 = vrot.slane %v3096_v60, 1 }
 0x296   : > { %13637 = vst [vmem:[#allocation72_spill] sm:$0xff] %v11377_v2  ;;  %13638 = vst [vmem:[#allocation73_spill] sm:$0xff] %v11379_v35  ;;  %v11384_v19 = vpop.f32.mrb[170].mxu0  ;;  %v3103_v50 = vmax.f32 %v3101_v46, %v3102_v54  ;;  %v3118_v13 = vrot.slane %v3117_v6, 1  ;;  %v3123_v2 = vrot.slane %v3122_v48, 2  ;;  %v3108_v35 = vmax.f32 %v3106_v38, %v3107_v0 }
 0x297   : > { %13639 = vst [vmem:[#allocation74_spill] sm:$0xff] %v11384_v19  ;;  %13640 = vst [vmem:[#allocation75_spill] sm:$0xff] %v11387_v51  ;;  %v11389_v63 = vpop.f32.mrb[171].mxu0  ;;  %v5419_v62 = vpack.c.bf16 %v5398_v11, %v5397_v12  ;;  %v13642_v8 = vrot.slane %v11303_v22, 1  ;;  %v13644_v40 = vrot.slane %v11316_v56, 1  ;;  %v11402_v44 = vmax.f32 %v11323_v9, %v2418_v26 }
 0x298   : > { %13641 = vst [vmem:[#allocation76_spill] sm:$0xff] %v11389_v63  ;;  %v9748_v59 = vld [vmem:[%s10661_s29 + $0x4] sm:$0xf]  ;;  %v13647_v46 = vrot.slane %v10894_v7, 6  ;;  %v3104_v54 = vrot.slane %v3103_v50, 1  ;;  %v3109_v12 = vrot.slane %v3108_v35, 2  ;;  %v11416_v9 = vmax.f32 %v3096_v60, %v3097_v31 }
 0x299   : > { %v11394_v5 = vmax.f32 %v11303_v22, %v13642_v8  ;;  %v11399_v47 = vmax.f32 %v11316_v56, %v13644_v40  ;;  %13646 = vst [vmem:[#allocation79_spill] sm:$0xff] %v11402_v44  ;;  %v6847_v38 = vrot.slane %v11366_v27, 1  ;;  %v6848_v22 = vrot.slane %v11366_v27, 2  ;;  %9472 = vmatprep.mubr.msk.bf16.mxu1 %vm3938_vm11, %v5419_v62  ;;  %v11422_v8 = vpop.permute.xlu1 %7164  ;;  %v9751_v51 = vld [vmem:[%s10661_s29 + $0x48] sm:$0xf] }
 0x29a   : > { %v11407_v61 = vmul.f32 %v9748_v59, %v13647_v46  ;;  %v11412_v0 = vpop.f32.mrb[60].mxu1  ;;  %v11414_v56 = vmax.f32 %v3089_v37, %v3090_v39  ;;  %v2953_v26 = vadd.f32 %v11196_v18, %v11251_v34  ;;  %v2945_v11 = vadd.f32 %v11251_v34, %v11200_v30  ;;  %13649 = vst [vmem:[#allocation81_spill] sm:$0xff] %v11422_v8  ;;  %v9749_v39 = vld [vmem:[%s10661_s29 + $0x40] sm:$0xf] }
 0x29b   : > { %13643 = vst [vmem:[#allocation77_spill] sm:$0xff] %v11394_v5  ;;  %13645 = vst [vmem:[#allocation78_spill] sm:$0xff] %v11399_v47  ;;  %9473 = vmatmul.mubr.msk.bf16.gmra.mrb[148].mxu1 %vm3938_vm11, %v5420_v42  ;;  %v11425_v40 = vpop.f32.mrb[61].mxu1  ;;  %v11427_v62 = vmax.f32 %v3117_v6, %v3118_v13  ;;  %v11429_v37 = vmax.f32 %v3122_v48, %v3123_v2  ;;  %v6909_v18 = vmul.f32 %v9749_v39, %v11366_v27  ;;  %v9750_v2 = vld [vmem:[%s10661_s29 + $0x44] sm:$0xf] }
 0x29c   : > { %13648 = vst [vmem:[#allocation80_spill] sm:$0xff] %v11412_v0  ;;  %13650 = vst [vmem:[#allocation82_spill] sm:$0xff] %v11425_v40  ;;  %v11434_v31 = vpop.f32.mrb[62].mxu1  ;;  %v11436_v30 = vpop.f32.mrb[172].mxu0  ;;  %v11438_v59 = vmax.f32 %v3108_v35, %v3109_v12  ;;  %v3049_v42 = vmax.f32 %v2953_v26, 0.0  ;;  %v3047_v46 = vmax.f32 %v2945_v11, 0.0  ;;  %v11443_v13 = vmax.f32 %v3103_v50, %v3104_v54 }
 0x29d   : > { %13651 = vst [vmem:[#allocation83_spill] sm:$0xff] %v11434_v31  ;;  %13652 = vst [vmem:[#allocation84_spill] sm:$0xff] %v11436_v30  ;;  %v7183_v47 = vrot.slane %v11422_v8, 6  ;;  %v11441_v6 = vpop.f32.mrb[63].mxu1  ;;  %v6910_v60 = vmul.f32 %v9750_v2, %v6847_v38  ;;  %v11448_v44 = vmul.f32 %v9751_v51, %v6848_v22  ;;  %v11450_v5 = vpop.f32.mrb[173].mxu0  ;;  %v7184_v26 = vrot.slane %v11422_v8, 7 }
 0x29e   : > { %13653 = vst [vmem:[#allocation85_spill] sm:$0xff] %v11441_v6  ;;  %13655 = vst [vmem:[#allocation87_spill] sm:$0xff] %v11450_v5  ;;  %v3141_v35 = vsel %vm1964_vm7, %v3049_v42, -inf  ;;  %v3127_v12 = vsel %vm1964_vm7, %v3047_v46, -inf  ;;  %v2956_v11 = vadd.f32 %v11204_v15, %v11251_v34  ;;  %v11457_v50 = vpop.f32.mrb[174].mxu0  ;;  %v13657_v38 = vrot.slane %v10762_v16, 1 }
 0x29f   : > { %13654 = vst [vmem:[#allocation86_spill] sm:$0xff] %v11448_v44  ;;  %13656 = vst [vmem:[#allocation88_spill] sm:$0xff] %v11457_v50  ;;  %v3142_v22 = vrot.slane %v3141_v35, 4  ;;  %v3128_v44 = vrot.slane %v3127_v12, 4  ;;  %v11464_v27 = vpop.f32.mrb[175].mxu0  ;;  %v3111_v42 = vrot.slane %v11438_v59, 1  ;;  %v11467_v46 = vmul.f32 %v9749_v39, %v7183_v47 }
 0x2a0   : > { %v11462_v48 = vadd.f32 %v13657_v38, %v6909_v18  ;;  %13659 = vst [vmem:[#allocation90_spill] sm:$0xff] %v11464_v27  ;;  %v3050_v5 = vmax.f32 %v2956_v11, 0.0  ;;  %v5355_v15 = vadd.f32 %v11206_v24, %v11024_v21  ;;  %v2948_v54 = vadd.f32 %v11251_v34, %v11211_v58 }
 0x2a1   : > { %13660 = vst [vmem:[#allocation91_spill] sm:$0xff] %v11467_v46  ;;  %v3143_v6 = vmax.f32 %v3141_v35, %v3142_v22  ;;  %v3129_v50 = vmax.f32 %v3127_v12, %v3128_v44  ;;  %v5347_v16 = vadd.f32 %v11024_v21, %v11213_v10  ;;  %v11477_v38 = vmul.f32 %v9750_v2, %v7184_v26 }
 0x2a2   : > { %13658 = vst [vmem:[#allocation89_spill] sm:$0xff] %v11462_v48  ;;  %v11475_v18 = vpop.f32.mrb[64].mxu1  ;;  %v3148_v48 = vsel %vm1964_vm7, %v3050_v5, -inf  ;;  %v5358_v47 = vadd.f32 %v11219_v49, %v11024_v21  ;;  %v5350_v24 = vadd.f32 %v11024_v21, %v11224_v1  ;;  %v3048_v12 = vmax.f32 %v2948_v54, 0.0  ;;  %v13667_v54 = vld [vmem:[#allocation15_spill] sm:$0xff] }
 0x2a3   : > { %13661 = vst [vmem:[#allocation92_spill] sm:$0xff] %v11475_v18  ;;  %13662 = vst [vmem:[#allocation93_spill] sm:$0xff] %v11477_v38  ;;  %v11484_v39 = vpop.f32.mrb[65].mxu1  ;;  %v3144_v44 = vrot.slane %v3143_v6, 2  ;;  %v3130_v35 = vrot.slane %v3129_v50, 2  ;;  %v3149_v58 = vrot.slane %v3148_v48, 4  ;;  %v11488_v49 = vmul.f32 %v9751_v51, %v11422_v8 }
 0x2a4   : > { %13663 = vst [vmem:[#allocation94_spill] sm:$0xff] %v11484_v39  ;;  %v5403_v11 = vmax.f32 %v5355_v15, 0.0  ;;  %v5401_v10 = vmax.f32 %v5347_v16, 0.0  ;;  %v5404_v22 = vmax.f32 %v5358_v47, 0.0  ;;  %v5402_v18 = vmax.f32 %v5350_v24, 0.0  ;;  %v11490_v39 = vpop.permute.xlu1 %7167  ;;  %v11492_v40 = vpop.f32.mrb[66].mxu1 }
 0x2a5   : > { %v3145_v2 = vmax.f32 %v3143_v6, %v3144_v44  ;;  %v3131_v26 = vmax.f32 %v3129_v50, %v3130_v35  ;;  %v3150_v27 = vmax.f32 %v3148_v48, %v3149_v58  ;;  %v3134_v5 = vsel %vm1964_vm7, %v3048_v12, -inf  ;;  %13664 = vst [vmem:[#allocation95_spill] sm:$0xff] %v11488_v49  ;;  %13665 = vst [vmem:[#allocation96_spill] sm:$0xff] %v11490_v39  ;;  %v11500_v47 = vpop.f32.mrb[176].mxu0  ;;  %v11502_v51 = vpop.f32.mrb[67].mxu1  ;;  %v13680_v6 = vld [vmem:[#allocation53_spill] sm:$0xff] }
 0x2a6   : > { %v3135_v30 = vrot.slane %v3134_v5, 4  ;;  %v5422_v1 = vpack.c.bf16 %v5404_v22, %v5403_v11  ;;  %v5421_v31 = vpack.c.bf16 %v5402_v18, %v5401_v10  ;;  %13666 = vst [vmem:[#allocation97_spill] sm:$0xff] %v11492_v40  ;;  %v13668_v15 = vrot.slane %v13667_v54, 1  ;;  %13670 = vst [vmem:[#allocation98_spill] sm:$0xff] %v11500_v47  ;;  %v11523_v11 = vpop.f32.mrb[177].mxu0 }
 0x2a7   : > { %v3151_v50 = vrot.slane %v3150_v27, 2  ;;  %v7190_v48 = vrot.slane %v11490_v39, 6  ;;  %13671 = vst [vmem:[#allocation99_spill] sm:$0xff] %v11502_v51  ;;  %v3146_v24 = vrot.slane %v3145_v2, 1  ;;  %v7191_v35 = vrot.slane %v11490_v39, 7  ;;  %13673 = vst [vmem:[#allocation101_spill] sm:$0xff] %v11523_v11 }
 0x2a8   : > { %v11496_v16 = vadd.f32 %v13668_v15, %v6910_v60  ;;  %v3136_v44 = vmax.f32 %v3134_v5, %v3135_v30  ;;  %9476 = vmatprep.mubr.msk.bf16.mxu1 %vm3938_vm11, %v5421_v31  ;;  %v11508_v60 = vmax.f32 %v11438_v59, %v3111_v42  ;;  %v3132_v58 = vrot.slane %v3131_v26, 1  ;;  %v9752_v42 = vld [vmem:[%s10661_s29 + $0x60] sm:$0xf]  ;;  %v9753_v10 = vld [vmem:[%s10661_s29 + $0x64] sm:$0xf]  ;;  %v11532_v31 = vpop.f32.mrb[178].mxu0 }
 0x2a9   : > { %9477 = vmatmul.mubr.msk.bf16.gmra.mrb[152].mxu1 %vm3938_vm11, %v5422_v1  ;;  %v3152_v22 = vmax.f32 %v3150_v27, %v3151_v50  ;;  %v2969_v30 = vadd.f32 %v11235_v32, %v11251_v34  ;;  %v11519_v5 = vmul.f32 %v9752_v42, %v7190_v48  ;;  %v2961_v15 = vadd.f32 %v11251_v34, %v11239_v23  ;;  %v9754_v18 = vld [vmem:[%s10661_s29 + $0x68] sm:$0xf]  ;;  %v11538_v23 = vpop.permute.xlu1 %7393 }
 0x2aa   : > { %13669 = vst [vmem:[#allocation15_spill] sm:$0xff] %v11496_v16  ;;  %v3137_v54 = vrot.slane %v3136_v44, 2  ;;  %v11525_v1 = vpop.f32.mrb[68].mxu1  ;;  %v11527_v27 = vmax.f32 %v3145_v2, %v3146_v24  ;;  %v11530_v12 = vmul.f32 %v9753_v10, %v7191_v35  ;;  %13677 = vst [vmem:[#allocation105_spill] sm:$0xff] %v11532_v31  ;;  %v3133_v59 = vmax.f32 %v3131_v26, %v3132_v58  ;;  %v11542_v2 = vpop.f32.mrb[179].mxu0  ;;  %v13684_v16 = vld [vmem:[#allocation54_spill] sm:$0xff] }
 0x2ab   : > { %13672 = vst [vmem:[#allocation100_spill] sm:$0xff] %v11519_v5  ;;  %13674 = vst [vmem:[#allocation102_spill] sm:$0xff] %v11525_v1  ;;  %v3053_v32 = vmax.f32 %v2969_v30, 0.0  ;;  %v11536_v48 = vmul.f32 %v9754_v18, %v11490_v39  ;;  %v3051_v42 = vmax.f32 %v2961_v15, 0.0  ;;  %v2972_v49 = vadd.f32 %v13680_v6, %v11251_v34  ;;  %v13682_v18 = vld [vmem:[#allocation55_spill] sm:$0xff]  ;;  %v11549_v15 = vpop.f32.mrb[69].mxu1 }
 0x2ac   : > { %13675 = vst [vmem:[#allocation103_spill] sm:$0xff] %v11527_v27  ;;  %v3138_v50 = vmax.f32 %v3136_v44, %v3137_v54  ;;  %13676 = vst [vmem:[#allocation104_spill] sm:$0xff] %v11530_v12  ;;  %v3153_v24 = vrot.slane %v3152_v22, 1  ;;  %v7408_v10 = vrot.slane %v11538_v23, 5  ;;  %v2964_v30 = vadd.f32 %v11251_v34, %v13682_v18  ;;  %v11597_v12 = vld [vmem:[%s10661_s29 + $0x18] sm:$0xf] }
 0x2ad   : > { %13678 = vst [vmem:[#allocation106_spill] sm:$0xff] %v11536_v48  ;;  %13679 = vst [vmem:[#allocation107_spill] sm:$0xff] %v11538_v23  ;;  %v3169_v35 = vsel %vm1964_vm7, %v3053_v32, -inf  ;;  %v3155_v26 = vsel %vm1964_vm7, %v3051_v42, -inf  ;;  %v3054_v58 = vmax.f32 %v2972_v49, 0.0  ;;  %v7409_v6 = vrot.slane %v11538_v23, 6 }
 0x2ae   : > { %13681 = vst [vmem:[#allocation53_spill] sm:$0xff] %v11542_v2  ;;  %v3139_v44 = vrot.slane %v3138_v50, 1  ;;  %v3170_v54 = vrot.slane %v3169_v35, 4  ;;  %13683 = vst [vmem:[#allocation55_spill] sm:$0xff] %v11549_v15  ;;  %v3156_v38 = vrot.slane %v3155_v26, 4  ;;  %v11554_v46 = vadd.f32 %v13684_v16, %v11024_v21  ;;  %v11556_v32 = vpop.f32.mrb[70].mxu1 }
 0x2af   : > { %13685 = vst [vmem:[#allocation54_spill] sm:$0xff] %v11556_v32  ;;  %v3176_v42 = vsel %vm1964_vm7, %v3054_v58, -inf  ;;  %v3052_v49 = vmax.f32 %v2964_v30, 0.0  ;;  %v11561_v18 = vadd.f32 %v11024_v21, %v11255_v43  ;;  %v9756_v21 = vld [vmem:[%s10661_s29 + $0x24] sm:$0xf] }
 0x2b0   : > { %v3140_v39 = vmax.f32 %v3138_v50, %v3139_v44  ;;  %v3171_v8 = vmax.f32 %v3169_v35, %v3170_v54  ;;  %v11563_v50 = vpop.f32.mrb[180].mxu0  ;;  %v11565_v44 = vpop.f32.mrb[71].mxu1  ;;  %v3157_v35 = vmax.f32 %v3155_v26, %v3156_v38  ;;  %v3177_v54 = vrot.slane %v3176_v42, 4  ;;  %v11584_v38 = vld [vmem:[%s10661_s29 + $0x14] sm:$0xf]  ;;  %v13691_v26 = vld [vmem:[#allocation9_spill] sm:$0xff] }
 0x2b1   : > { %13686 = vst [vmem:[#allocation108_spill] sm:$0xff] %v11563_v50  ;;  %13687 = vst [vmem:[#allocation109_spill] sm:$0xff] %v11565_v44  ;;  %v3162_v43 = vsel %vm1964_vm7, %v3052_v49, -inf  ;;  %v11576_v50 = vld [vmem:[%s10661_s29 + $0x10] sm:$0xf]  ;;  %v11578_v44 = vmax.f32 %v3152_v22, %v3153_v24  ;;  %v6837_v58 = vrot.slane %v13691_v26, 5  ;;  %v11592_v49 = vmul.f32 %v9756_v21, %v7409_v6 }
 0x2b2   : > { %v11568_v16 = vsel %vm7653_vm9, %v3140_v39, %v3133_v59  ;;  %v3172_v39 = vrot.slane %v3171_v8, 2  ;;  %v9755_v59 = vld [vmem:[%s10661_s29 + $0x20] sm:$0xf]  ;;  %v11587_v30 = vpop.f32.mrb[181].mxu0  ;;  %v11589_v48 = vpop.f32.mrb[72].mxu1  ;;  %v3158_v5 = vrot.slane %v3157_v35, 2  ;;  %v11602_v32 = vmax.f32 %v3176_v42, %v3177_v54 }
 0x2b3   : > { %13688 = vst [vmem:[#allocation110_spill] sm:$0xff] %v11568_v16  ;;  %13689 = vst [vmem:[#allocation111_spill] sm:$0xff] %v11578_v44  ;;  %v11581_v15 = vmul.f32 %v9755_v59, %v7408_v10  ;;  %v6838_v10 = vrot.slane %v13691_v26, 6  ;;  %v11600_v59 = vpop.f32.mrb[182].mxu0  ;;  %v3163_v1 = vrot.slane %v3162_v43, 4  ;;  %v13697_v22 = vrot.slane %v13691_v26, 3 }
 0x2b4   : > { %13692 = vst [vmem:[#allocation9_spill] sm:$0xff] %v11587_v30  ;;  %13693 = vst [vmem:[#allocation113_spill] sm:$0xff] %v11589_v48  ;;  %v11605_v30 = vld [vmem:[%s10661_s29 + $0x1c] sm:$0xf]  ;;  %v6839_v48 = vrot.slane %v13691_v26, 7  ;;  %v11608_v6 = vpop.f32.mrb[183].mxu0  ;;  %v11616_v47 = vmax.f32 %v3171_v8, %v3172_v39  ;;  %v6898_v51 = vmul.f32 %v6837_v58, %v11584_v38  ;;  %v11629_v8 = vmax.f32 %v3157_v35, %v3158_v5 }
 0x2b5   : > { %13690 = vst [vmem:[#allocation112_spill] sm:$0xff] %v11581_v15  ;;  %13694 = vst [vmem:[#allocation114_spill] sm:$0xff] %v11592_v49  ;;  %v9757_v21 = vld [vmem:[%s10661_s29 + $0xc] sm:$0xf]  ;;  %v13698_v2 = vld [vmem:[#allocation5_spill] sm:$0xff]  ;;  %v13699_v42 = vrot.slane %v13691_v26, 4 }
 0x2b6   : > { %13695 = vst [vmem:[#allocation115_spill] sm:$0xff] %v11600_v59  ;;  %13696 = vst [vmem:[#allocation116_spill] sm:$0xff] %v11608_v6  ;;  %v6896_v24 = vmul.f32 %v9757_v21, %v13697_v22  ;;  %v6941_v31 = vrot.slane %v13698_v2, 4  ;;  %v6942_v11 = vrot.slane %v13698_v2, 5  ;;  %v6943_v59 = vrot.slane %v13698_v2, 6  ;;  %v11634_v27 = vpop.f32.mrb[73].mxu1 }
 0x2b7   : > { %v6897_v54 = vmul.f32 %v13699_v42, %v11576_v50  ;;  %v13700_v6 = vrot.slane %v13698_v2, 3  ;;  %v6899_v22 = vmul.f32 %v6838_v10, %v11597_v12  ;;  %v6900_v26 = vmul.f32 %v6839_v48, %v11605_v30  ;;  %v13701_v42 = vld [vmem:[#allocation8_spill] sm:$0xff]  ;;  %13702 = vst [vmem:[#allocation5_spill] sm:$0xff] %v11634_v27  ;;  %v13706_v16 = vld [vmem:[#allocation19_spill] sm:$0xff] }
 0x2b8   : > { %v7002_v0 = vmul.f32 %v6941_v31, %v11584_v38  ;;  %v7003_v63 = vmul.f32 %v6942_v11, %v11597_v12  ;;  %v7004_v19 = vmul.f32 %v6943_v59, %v11605_v30  ;;  %v7064_v58 = vrot.slane %v13701_v42, 1  ;;  %v13703_v11 = vld [vmem:[#allocation13_spill] sm:$0xff]  ;;  %v13704_v59 = vld [vmem:[#allocation7_spill] sm:$0xff] }
 0x2b9   : > { %v7001_v40 = vmul.f32 %v13700_v6, %v11576_v50  ;;  %v11637_v10 = vmax.f32 %v3162_v43, %v3163_v1  ;;  %v13705_v5 = vrot.slane %v13704_v59, 1  ;;  %v7173_v39 = vrot.slane %v13706_v16, 3  ;;  %v13709_v59 = vld [vmem:[#allocation17_spill] sm:$0xff] }
 0x2ba   : > { %v7066_v25 = vrot.slane %v7002_v0, 1  ;;  %v7067_v2 = vrot.slane %v7003_v63, 1  ;;  %v7068_v6 = vrot.slane %v7004_v19, 1  ;;  %v7128_v53 = vadd.f32 %v7064_v58, %v6896_v24 }
 0x2bb   : > { %v7065_v44 = vrot.slane %v7001_v40, 1  ;;  %v7127_v35 = vadd.f32 %v13705_v5, %v13703_v11  ;;  %v7174_v63 = vrot.slane %v13706_v16, 4  ;;  %v7175_v19 = vrot.slane %v13706_v16, 5  ;;  %v13710_v5 = vld [vmem:[#allocation24_spill] sm:$0xff] }
 0x2bc   : > { %v7130_v49 = vadd.f32 %v7066_v25, %v6898_v51  ;;  %v7131_v42 = vadd.f32 %v7067_v2, %v6899_v22  ;;  %v7132_v40 = vadd.f32 %v7068_v6, %v6900_v26  ;;  %v13707_v0 = vrot.slane %v13706_v16, 1  ;;  %v13712_v25 = vld [vmem:[#allocation18_spill] sm:$0xff]  ;;  %v13713_v51 = vld [vmem:[#allocation25_spill] sm:$0xff] }
 0x2bd   : > { %v7129_v48 = vadd.f32 %v7065_v44, %v6897_v54  ;;  %v13708_v1 = vrot.slane %v13706_v16, 2  ;;  %v7234_v11 = vmul.f32 %v7173_v39, %v11584_v38  ;;  %v13711_v24 = vrot.slane %v13710_v5, 2  ;;  %v13715_v6 = vld [vmem:[#allocation26_spill] sm:$0xff] }
 0x2be   : > { %v7232_v31 = vmul.f32 %v9757_v21, %v13707_v0  ;;  %v13714_v54 = vrot.slane %v13713_v51, 2  ;;  %v7235_v26 = vmul.f32 %v7174_v63, %v11597_v12  ;;  %v7236_v58 = vmul.f32 %v7175_v19, %v11605_v30 }
 0x2bf   : > { %v7233_v43 = vmul.f32 %v13708_v1, %v11576_v50  ;;  %v7357_v44 = vadd.f32 %v13711_v24, %v13709_v59  ;;  %v13716_v0 = vrot.slane %v13715_v6, 2  ;;  %v11661_v1 = vpop.f32.mrb[74].mxu1  ;;  %v7298_v27 = vrot.slane %v7234_v11, 2  ;;  %v11665_v24 = vpop.f32.mrb[184].mxu0 }
 0x2c0   : > { %v7358_v22 = vadd.f32 %v13714_v54, %v13712_v25  ;;  %v7296_v2 = vrot.slane %v7232_v31, 2  ;;  %13717 = vst [vmem:[#allocation8_spill] sm:$0xff] %v11661_v1  ;;  %v7404_v5 = vrot.slane %v10894_v7, 1  ;;  %v7405_v59 = vrot.slane %v10894_v7, 2  ;;  %13718 = vst [vmem:[#allocation13_spill] sm:$0xff] %v11665_v24  ;;  %v11667_v25 = vpop.f32.mrb[75].mxu1 }
 0x2c1   : > { %v7359_v16 = vadd.f32 %v13716_v0, %v7127_v35  ;;  %v7297_v39 = vrot.slane %v7233_v43, 2  ;;  %13719 = vst [vmem:[#allocation7_spill] sm:$0xff] %v11667_v25  ;;  %v7299_v63 = vrot.slane %v7235_v26, 2  ;;  %v7300_v51 = vrot.slane %v7236_v58, 2  ;;  %v9758_v0 = vld [vmem:[%s10661_s29 + $0x8] sm:$0xf] }
 0x2c2   : > { %v7360_v19 = vadd.f32 %v7296_v2, %v7128_v53  ;;  %v7406_v31 = vrot.slane %v10894_v7, 3  ;;  %v7362_v6 = vadd.f32 %v7298_v27, %v7130_v49  ;;  %v7407_v35 = vrot.slane %v10894_v7, 4  ;;  %v11676_v25 = vpop.f32.mrb[185].mxu0  ;;  %v11678_v26 = vpop.f32.mrb[76].mxu1 }
 0x2c3   : > { %v7361_v54 = vadd.f32 %v7297_v39, %v7129_v48  ;;  %v13720_v43 = vrot.slane %v10894_v7, 7  ;;  %v7363_v1 = vadd.f32 %v7299_v63, %v7131_v42  ;;  %v7364_v15 = vadd.f32 %v7300_v51, %v7132_v40  ;;  %v13721_v48 = vld [vmem:[#allocation40_spill] sm:$0xff]  ;;  %v11684_v2 = vpop.f32.mrb[186].mxu0 }
 0x2c4   : > { %v7464_v23 = vmul.f32 %v9757_v21, %v10894_v7  ;;  %v7465_v24 = vmul.f32 %v7404_v5, %v11576_v50  ;;  %v7466_v53 = vmul.f32 %v7405_v59, %v11584_v38  ;;  %v7467_v27 = vmul.f32 %v7406_v31, %v11597_v12  ;;  %v11687_v50 = vpop.f32.mrb[187].mxu0  ;;  %v11689_v38 = vpop.f32.mrb[77].mxu1 }
 0x2c5   : > { %v7463_v11 = vmul.f32 %v9758_v0, %v13720_v43  ;;  %v7468_v49 = vmul.f32 %v7407_v35, %v11605_v30  ;;  %v7525_v58 = vrot.slane %v13721_v48, 3  ;;  %v7526_v42 = vrot.slane %v11407_v61, 3  ;;  %v11691_v35 = vpop.f32.mrb[78].mxu1  ;;  %v11693_v0 = vpop.f32.mrb[188].mxu0 }
 0x2c6   : > { %v7528_v7 = vrot.slane %v7464_v23, 3  ;;  %v7529_v21 = vrot.slane %v7465_v24, 3  ;;  %v7530_v39 = vrot.slane %v7466_v53, 3  ;;  %v7531_v5 = vrot.slane %v7467_v27, 3  ;;  %v11695_v24 = vpop.f32.mrb[79].mxu1 }
 0x2c7   : > { %v7527_v40 = vrot.slane %v7463_v11, 3  ;;  %v7532_v63 = vrot.slane %v7468_v49, 3  ;;  %v7589_v51 = vadd.f32 %v7525_v58, %v7357_v44  ;;  %v7590_v12 = vadd.f32 %v7526_v42, %v7358_v22 }
 0x2c8   : > { %v7592_v30 = vadd.f32 %v7528_v7, %v7360_v19  ;;  %v7593_v31 = vadd.f32 %v7529_v21, %v7361_v54  ;;  %v7594_v61 = vadd.f32 %v7530_v39, %v7362_v6  ;;  %v7595_v43 = vadd.f32 %v7531_v5, %v7363_v1  ;;  %v9759_v6 = vld [vmem:[%s13503_s14] ss:$0 sm:$0xff]  ;;  %v11714_v21 = vpop.f32.mrb[189].mxu0 }
 0x2c9   : > { %v7591_v59 = vadd.f32 %v7527_v40, %v7359_v16  ;;  %v7596_v23 = vadd.f32 %v7532_v63, %v7364_v15  ;;  %v8084_v44 = vrot.slane %v7590_v12, 7  ;;  %v5374_v15 = vadd.f32 %v9759_v6, %v11261_v36  ;;  %v11721_v63 = vpop.f32.mrb[190].mxu0 }
 0x2ca   : > { %v8088_v22 = vrot.slane %v7592_v30, 5  ;;  %v8090_v16 = vrot.slane %v7593_v31, 4  ;;  %v8092_v19 = vrot.slane %v7594_v61, 3  ;;  %v8094_v54 = vrot.slane %v7595_v43, 2 }
 0x2cb   : > { %v8086_v11 = vrot.slane %v7591_v59, 6  ;;  %v8096_v53 = vrot.slane %v7596_v23, 1  ;;  %v8085_v1 = vsel %vm7653_vm9, %v8084_v44, %v7589_v51  ;;  %v5366_v27 = vadd.f32 %v9759_v6, %v11263_v55  ;;  %v11716_v55 = vpop.f32.mrb[80].mxu1  ;;  %v11728_v59 = vpop.f32.mrb[191].mxu0 }
 0x2cc   : > { %v2985_v49 = vadd.f32 %v11284_v29, %v11251_v34  ;;  %v13722_v48 = vrot.slane %v11429_v37, 1  ;;  %v5408_v40 = vmax.f32 %v5374_v15, 0.0  ;;  %v7725_v7 = vsel %vm7655_vm10, %v11414_v56, %v11382_v52  ;;  %v11757_v6 = vpop.f32.mrb[81].mxu1 }
 0x2cd   : > { %v8087_v42 = vsel %vm7655_vm10, %v8086_v11, %v8085_v1  ;;  %v2977_v36 = vadd.f32 %v11251_v34, %v11291_v57  ;;  %v5406_v39 = vmax.f32 %v5366_v27, 0.0  ;;  %v13723_v52 = vmax.f32 %v11554_v46, 0.0  ;;  %v11739_v46 = vld [vmem:[%s13503_s14 + $0x1] ss:$0 sm:$0xff] }
 0x2ce   : > { %v3126_v58 = vmax.f32 %v11429_v37, %v13722_v48  ;;  %v8089_v29 = vsel %vm7657_vm12, %v8088_v22, %v8087_v42  ;;  %v3057_v5 = vmax.f32 %v2985_v49, 0.0  ;;  %v7726_v37 = vsel %vm7657_vm12, %v11416_v9, %v7725_v7  ;;  %v11764_v49 = vpop.f32.mrb[82].mxu1 }
 0x2cf   : > { %v8091_v51 = vsel %vm7659_vm13, %v8090_v16, %v8089_v29  ;;  %v5424_v56 = vpack.c.bf16 %v5408_v40, %v13723_v52  ;;  %v7727_v57 = vsel %vm7659_vm13, %v11443_v13, %v7726_v37  ;;  %v3055_v12 = vmax.f32 %v2977_v36, 0.0 }
 0x2d0   : > { %v8093_v30 = vsel %vm7661_vm14, %v8092_v19, %v8091_v51  ;;  %v13724_v31 = vmax.f32 %v11561_v18, 0.0  ;;  %v3197_v9 = vsel %vm1964_vm7, %v3057_v5, -inf  ;;  %v7728_v43 = vsel %vm7661_vm14, %v11508_v60, %v7727_v57 }
 0x2d1   : > { %v8095_v13 = vsel %vm7663_vm15, %v8094_v54, %v8093_v30  ;;  %v3198_v23 = vrot.slane %v3197_v9, 4  ;;  %v7729_v44 = vsel %vm7663_vm15, %v11427_v62, %v7728_v43  ;;  %v3183_v11 = vsel %vm1964_vm7, %v3055_v12, -inf }
 0x2d2   : > { %v5423_v61 = vpack.c.bf16 %v5406_v39, %v13724_v31  ;;  %v8097_v18 = vsel %vm7665_vm0, %v8096_v53, %v8095_v13  ;;  %v7730_v22 = vsel %vm7665_vm0, %v3126_v58, %v7729_v44  ;;  %v3184_v16 = vrot.slane %v3183_v11, 4 }
 0x2d3   : > { %v2988_v60 = vadd.f32 %v11299_v33, %v11251_v34  ;;  %8140 = vrot.lane.b32.xlu1 %v8097_v18, %s9801_s20  ;;  %v3199_v19 = vmax.f32 %v3197_v9, %v3198_v23  ;;  %v6133_v54 = vadd.f32 %v11301_v41, %v11739_v46  ;;  %v2980_v62 = vadd.f32 %v11251_v34, %v11305_v20 }
 0x2d4   : > { %9480 = vmatprep.mubr.msk.bf16.mxu1 %vm3938_vm11, %v5423_v61  ;;  %v6125_v53 = vadd.f32 %v11739_v46, %v11307_v28  ;;  %v3185_v15 = vmax.f32 %v3183_v11, %v3184_v16  ;;  %v6136_v33 = vadd.f32 %v11314_v14, %v11739_v46  ;;  %v6128_v27 = vadd.f32 %v11739_v46, %v11318_v17  ;;  %v11767_v28 = vpop.f32.mrb[83].mxu1 }
 0x2d5   : > { %v3058_v1 = vmax.f32 %v2988_v60, 0.0  ;;  %9481 = vmatmul.mubr.msk.bf16.gmra.mrb[156].mxu1 %vm3938_vm11, %v5424_v56  ;;  %v3165_v41 = vrot.slane %v11637_v10, 2  ;;  %v6253_v20 = vmax.f32 %v6133_v54, 0.0  ;;  %v3056_v48 = vmax.f32 %v2980_v62, 0.0  ;;  %13725 = vst [vmem:[#allocation19_spill] sm:$0xff] %v11767_v28  ;;  %v11786_v13 = vpop.f32.mrb[84].mxu1 }
 0x2d6   : > { %v6251_v58 = vmax.f32 %v6125_v53, 0.0  ;;  %v3186_v42 = vrot.slane %v3185_v15, 2  ;;  %v6254_v7 = vmax.f32 %v6136_v33, 0.0  ;;  %v6252_v36 = vmax.f32 %v6128_v27, 0.0  ;;  %13727 = vst [vmem:[#allocation17_spill] sm:$0xff] %v11786_v13  ;;  %v11789_v18 = vpop.f32.mrb[85].mxu1 }
 0x2d7   : > { %v3204_v40 = vsel %vm1964_vm7, %v3058_v1, -inf  ;;  %v3200_v14 = vrot.slane %v3199_v19, 2  ;;  %7752 = vrot.lane.b32.xlu1 %v7730_v22, %s9802_s0  ;;  %v3190_v17 = vsel %vm1964_vm7, %v3056_v48, -inf  ;;  %v3001_v39 = vadd.f32 %v11327_v45, %v11251_v34  ;;  %13728 = vst [vmem:[#allocation24_spill] sm:$0xff] %v11789_v18  ;;  %v13731_v53 = vld [vmem:[#allocation63_spill] sm:$0xff] }
 0x2d8   : > { %v3205_v29 = vrot.slane %v3204_v40, 4  ;;  %v3187_v5 = vmax.f32 %v3185_v15, %v3186_v42  ;;  %v3191_v37 = vrot.slane %v3190_v17, 4  ;;  %v6284_v51 = vpack.c.bf16 %v6254_v7, %v6253_v20 }
 0x2d9   : > { %v6283_v52 = vpack.c.bf16 %v6252_v36, %v6251_v58  ;;  %v3160_v56 = vrot.slane %v11629_v8, 1  ;;  %v3061_v12 = vmax.f32 %v3001_v39, 0.0  ;;  %v2993_v30 = vadd.f32 %v11251_v34, %v11331_v4 }
 0x2da   : > { %v3206_v57 = vmax.f32 %v3204_v40, %v3205_v29  ;;  %v13726_v31 = vrot.slane %v11602_v32, 2  ;;  %v3166_v9 = vmax.f32 %v11637_v10, %v3165_v41  ;;  %v3192_v43 = vmax.f32 %v3190_v17, %v3191_v37  ;;  %v11792_v10 = vpop.f32.mrb[86].mxu1  ;;  %v13734_v29 = vld [vmem:[#allocation62_spill] sm:$0xff] }
 0x2db   : > { %v3004_v45 = vadd.f32 %v11334_v3, %v11251_v34  ;;  %9522 = vmatprep.mubr.msk.bf16.mxu1 %vm3938_vm11, %v6283_v52  ;;  %v3201_v23 = vmax.f32 %v3199_v19, %v3200_v14  ;;  %v3225_v11 = vsel %vm1964_vm7, %v3061_v12, -inf  ;;  %v3059_v4 = vmax.f32 %v2993_v30, 0.0  ;;  %13729 = vst [vmem:[#allocation18_spill] sm:$0xff] %v11792_v10  ;;  %v11802_v1 = vpop.f32.mrb[87].mxu1 }
 0x2dc   : > { %v11780_v61 = vmax.f32 %v11602_v32, %v13726_v31  ;;  %v3207_v44 = vrot.slane %v3206_v57, 2  ;;  %v3188_v22 = vrot.slane %v3187_v5, 1  ;;  %v3193_v32 = vrot.slane %v3192_v43, 2  ;;  %13732 = vst [vmem:[#allocation25_spill] sm:$0xff] %v11802_v1  ;;  %v11805_v7 = vpop.f32.mrb[88].mxu1 }
 0x2dd   : > { %v3226_v16 = vrot.slane %v3225_v11, 4  ;;  %v3062_v60 = vmax.f32 %v3004_v45, 0.0  ;;  %9523 = vmatmul.mubr.msk.bf16.vlgmr.msra.gmra.mrb[160].mxu1 %vm3938_vm11, %v6284_v51  ;;  %v13730_v3 = vrot.slane %v11616_v47, 1  ;;  %v3211_v62 = vsel %vm1964_vm7, %v3059_v4, -inf  ;;  %13733 = vst [vmem:[#allocation26_spill] sm:$0xff] %v11805_v7  ;;  %v13735_v51 = vld [vmem:[#allocation64_spill] sm:$0xff] }
 0x2de   : > { %v3208_v19 = vmax.f32 %v3206_v57, %v3207_v44  ;;  %v2996_v15 = vadd.f32 %v11251_v34, %v13731_v53  ;;  %v3194_v33 = vmax.f32 %v3192_v43, %v3193_v32  ;;  %v3212_v41 = vrot.slane %v3211_v62, 4  ;;  %v13736_v32 = vld [vmem:[#allocation14_spill] sm:$0xff] }
 0x2df   : > { %v11797_v54 = vmax.f32 %v11616_v47, %v13730_v3  ;;  %v3227_v27 = vmax.f32 %v3225_v11, %v3226_v16  ;;  %v3232_v20 = vsel %vm1964_vm7, %v3062_v60, -inf  ;;  %v3167_v48 = vrot.slane %v3166_v9, 1  ;;  %v11839_v60 = vld [vmem:[%s10661_s29 + $0x34] sm:$0xf] }
 0x2e0   : > { %v3202_v58 = vrot.slane %v3201_v23, 1  ;;  %v3233_v42 = vrot.slane %v3232_v20, 4  ;;  %v3060_v40 = vmax.f32 %v2996_v15, 0.0  ;;  %v3189_v47 = vmax.f32 %v3187_v5, %v3188_v22  ;;  %v11829_v22 = vld [vmem:[%s10661_s29 + $0x30] sm:$0xf] }
 0x2e1   : > { %v3195_v36 = vrot.slane %v3194_v33, 1  ;;  %v3213_v14 = vmax.f32 %v3211_v62, %v3212_v41  ;;  %v11809_v34 = vadd.f32 %v13734_v29, %v11739_v46  ;;  %v3209_v17 = vrot.slane %v3208_v19, 1  ;;  %v11842_v62 = vpop.f32.mrb[89].mxu1  ;;  %v11849_v41 = vld [vmem:[%s10661_s29 + $0x38] sm:$0xf] }
 0x2e2   : > { %v3228_v39 = vrot.slane %v3227_v27, 2  ;;  %v3218_v37 = vsel %vm1964_vm7, %v3060_v40, -inf  ;;  %v11814_v52 = vadd.f32 %v11739_v46, %v13735_v51  ;;  %v3234_v30 = vmax.f32 %v3232_v20, %v3233_v42  ;;  %13737 = vst [vmem:[#allocation40_spill] sm:$0xff] %v11842_v62  ;;  %v11852_v20 = vld [vmem:[%s10661_s29 + $0x3c] sm:$0xf] }
 0x2e3   : > { %v3196_v57 = vmax.f32 %v3194_v33, %v3195_v36  ;;  %v3214_v12 = vrot.slane %v3213_v14, 2  ;;  %v3219_v5 = vrot.slane %v3218_v37, 4  ;;  %v11817_v31 = vmax.f32 %v11629_v8, %v3160_v56  ;;  %v13748_v62 = vld [vmem:[#allocation32_spill] sm:$0xff] }
 0x2e4   : > { %v11820_v45 = vmax.f32 %v3166_v9, %v3167_v48  ;;  %v11822_v44 = vmax.f32 %v3201_v23, %v3202_v58  ;;  %v6844_v16 = vrot.slane %v13736_v32, 5  ;;  %v6845_v8 = vrot.slane %v13736_v32, 6  ;;  %v11857_v58 = vpop.f32.mrb[90].mxu1 }
 0x2e5   : > { %v11825_v11 = vsel %vm7653_vm9, %v3196_v57, %v3189_v47  ;;  %v11833_v56 = vmax.f32 %v3208_v19, %v3209_v17  ;;  %v11835_v9 = vmax.f32 %v3227_v27, %v3228_v39  ;;  %v6846_v3 = vrot.slane %v13736_v32, 7  ;;  %v9760_v19 = vld [vmem:[%s10661_s29 + $0x2c] sm:$0xf]  ;;  %13739 = vst [vmem:[#allocation63_spill] sm:$0xff] %v11857_v58  ;;  %v11865_v17 = vpop.f32.mrb[91].mxu1 }
 0x2e6   : > { %v11844_v53 = vmax.f32 %v3213_v14, %v3214_v12  ;;  %v3235_v15 = vrot.slane %v3234_v30, 2  ;;  %v11846_v33 = vmax.f32 %v3218_v37, %v3219_v5  ;;  %v13738_v27 = vrot.slane %v13736_v32, 3  ;;  %v13741_v47 = vld [vmem:[#allocation6_spill] sm:$0xff]  ;;  %13742 = vst [vmem:[#allocation62_spill] sm:$0xff] %v11865_v17  ;;  %v13744_v12 = vld [vmem:[#allocation12_spill] sm:$0xff] }
 0x2e7   : > { %v13740_v42 = vrot.slane %v13736_v32, 4  ;;  %v6948_v36 = vrot.slane %v13741_v47, 4  ;;  %v6949_v14 = vrot.slane %v13741_v47, 5  ;;  %v6950_v29 = vrot.slane %v13741_v47, 6  ;;  %v13746_v17 = vld [vmem:[#allocation10_spill] sm:$0xff] }
 0x2e8   : > { %v6904_v48 = vmul.f32 %v9760_v19, %v13738_v27  ;;  %v6906_v39 = vmul.f32 %v6844_v16, %v11839_v60  ;;  %v6907_v37 = vmul.f32 %v6845_v8, %v11849_v41  ;;  %v13743_v51 = vrot.slane %v13741_v47, 3  ;;  %v13745_v16 = vld [vmem:[#allocation22_spill] sm:$0xff] }
 0x2e9   : > { %v6905_v40 = vmul.f32 %v13740_v42, %v11829_v22  ;;  %v7072_v5 = vrot.slane %v13744_v12, 1  ;;  %v6908_v32 = vmul.f32 %v6846_v3, %v11852_v20  ;;  %v7010_v27 = vmul.f32 %v6948_v36, %v11839_v60 }
 0x2ea   : > { %v7009_v57 = vmul.f32 %v13743_v51, %v11829_v22  ;;  %v7011_v42 = vmul.f32 %v6949_v14, %v11849_v41  ;;  %v7012_v23 = vmul.f32 %v6950_v29, %v11852_v20  ;;  %v11877_v4 = vmax.f32 %v3234_v30, %v3235_v15  ;;  %v11887_v15 = vpop.f32.mrb[92].mxu1 }
 0x2eb   : > { %v13747_v8 = vrot.slane %v13746_v17, 1  ;;  %v7180_v47 = vrot.slane %v13748_v62, 3  ;;  %v7074_v51 = vrot.slane %v7010_v27, 1  ;;  %v7181_v3 = vrot.slane %v13748_v62, 4  ;;  %13750 = vst [vmem:[#allocation64_spill] sm:$0xff] %v11887_v15 }
 0x2ec   : > { %v7073_v43 = vrot.slane %v7009_v57, 1  ;;  %v7075_v7 = vrot.slane %v7011_v42, 1  ;;  %v7076_v12 = vrot.slane %v7012_v23, 1  ;;  %v7136_v1 = vadd.f32 %v7072_v5, %v6904_v48  ;;  %v11892_v42 = vpop.f32.mrb[93].mxu1 }
 0x2ed   : > { %v7135_v58 = vadd.f32 %v13747_v8, %v13745_v16  ;;  %v7182_v14 = vrot.slane %v13748_v62, 5  ;;  %v13749_v29 = vrot.slane %v13748_v62, 1  ;;  %v7138_v57 = vadd.f32 %v7074_v51, %v6906_v39  ;;  %13752 = vst [vmem:[#allocation14_spill] sm:$0xff] %v11892_v42  ;;  %v11897_v5 = vpop.f32.mrb[94].mxu1  ;;  %v13755_v39 = vld [vmem:[#allocation35_spill] sm:$0xff]  ;;  %v13758_v51 = vld [vmem:[#allocation37_spill] sm:$0xff] }
 0x2ee   : > { %v7137_v36 = vadd.f32 %v7073_v43, %v6905_v40  ;;  %v7139_v10 = vadd.f32 %v7075_v7, %v6907_v37  ;;  %v7140_v17 = vadd.f32 %v7076_v12, %v6908_v32  ;;  %v13751_v16 = vrot.slane %v13748_v62, 2  ;;  %13753 = vst [vmem:[#allocation6_spill] sm:$0xff] %v11897_v5  ;;  %v13757_v32 = vld [vmem:[#allocation27_spill] sm:$0xff]  ;;  %v11907_v15 = vpop.f32.mrb[95].mxu1 }
 0x2ef   : > { %v7240_v30 = vmul.f32 %v9760_v19, %v13749_v29  ;;  %v7242_v23 = vmul.f32 %v7180_v47, %v11839_v60  ;;  %v7243_v43 = vmul.f32 %v7181_v3, %v11849_v41  ;;  %v7244_v48 = vmul.f32 %v7182_v14, %v11852_v20  ;;  %v13754_v29 = vld [vmem:[#allocation23_spill] sm:$0xff] }
 0x2f0   : > { %v7241_v27 = vmul.f32 %v13751_v16, %v11829_v22  ;;  %v13756_v7 = vrot.slane %v13755_v39, 2  ;;  %v13759_v62 = vrot.slane %v13758_v51, 2  ;;  %v13760_v16 = vld [vmem:[#allocation36_spill] sm:$0xff] }
 0x2f1   : > { %v7304_v40 = vrot.slane %v7240_v30, 2  ;;  %v13761_v42 = vrot.slane %v13760_v16, 2  ;;  %v7306_v3 = vrot.slane %v7242_v23, 2  ;;  %v7307_v14 = vrot.slane %v7243_v43, 2 }
 0x2f2   : > { %v7305_v8 = vrot.slane %v7241_v27, 2  ;;  %v7365_v37 = vadd.f32 %v13756_v7, %v13754_v29  ;;  %v7366_v12 = vadd.f32 %v13759_v62, %v13757_v32  ;;  %v7308_v30 = vrot.slane %v7244_v48, 2  ;;  %v13762_v27 = vld [vmem:[#allocation107_spill] sm:$0xff]  ;;  %v9761_v62 = vld [vmem:[%s10661_s29 + $0x28] sm:$0xf] }
 0x2f3   : > { %v7367_v47 = vadd.f32 %v13761_v42, %v7135_v58  ;;  %v7368_v18 = vadd.f32 %v7304_v40, %v7136_v1  ;;  %v7411_v13 = vrot.slane %v13762_v27, 1  ;;  %v7412_v39 = vrot.slane %v13762_v27, 2  ;;  %v13764_v40 = vld [vmem:[#allocation112_spill] sm:$0xff] }
 0x2f4   : > { %v7369_v5 = vadd.f32 %v7305_v8, %v7137_v36  ;;  %v7413_v29 = vrot.slane %v13762_v27, 3  ;;  %v7370_v7 = vadd.f32 %v7306_v3, %v7138_v57  ;;  %v7371_v51 = vadd.f32 %v7307_v14, %v7139_v10  ;;  %v13765_v10 = vld [vmem:[#allocation114_spill] sm:$0xff]  ;;  %v11923_v8 = vpop.f32.mrb[96].mxu1 }
 0x2f5   : > { %v7372_v28 = vadd.f32 %v7308_v30, %v7140_v17  ;;  %v7414_v32 = vrot.slane %v13762_v27, 4  ;;  %v13763_v58 = vrot.slane %v13762_v27, 7  ;;  %v7472_v23 = vmul.f32 %v9760_v19, %v13762_v27 }
 0x2f6   : > { %v7473_v1 = vmul.f32 %v7411_v13, %v11829_v22  ;;  %v7474_v36 = vmul.f32 %v7412_v39, %v11839_v60  ;;  %v7475_v43 = vmul.f32 %v7413_v29, %v11849_v41  ;;  %v7533_v57 = vrot.slane %v13764_v40, 3  ;;  %v11925_v29 = vpop.f32.mrb[97].mxu1  ;;  %v13766_v40 = vld [vmem:[#allocation65_spill] sm:$0xff] }
 0x2f7   : > { %v7471_v42 = vmul.f32 %v9761_v62, %v13763_v58  ;;  %v7476_v48 = vmul.f32 %v7414_v32, %v11852_v20  ;;  %v7534_v17 = vrot.slane %v13765_v10, 3  ;;  %v7536_v3 = vrot.slane %v7472_v23, 3 }
 0x2f8   : > { %v7537_v14 = vrot.slane %v7473_v1, 3  ;;  %v7538_v30 = vrot.slane %v7474_v36, 3  ;;  %v7539_v62 = vrot.slane %v7475_v43, 3  ;;  %v7597_v27 = vadd.f32 %v7533_v57, %v7365_v37 }
 0x2f9   : > { %v7535_v16 = vrot.slane %v7471_v42, 3  ;;  %v7540_v19 = vrot.slane %v7476_v48, 3  ;;  %v7598_v13 = vadd.f32 %v7534_v17, %v7366_v12  ;;  %v7600_v60 = vadd.f32 %v7536_v3, %v7368_v18 }
 0x2fa   : > { %v7601_v39 = vadd.f32 %v7537_v14, %v7369_v5  ;;  %v7602_v41 = vadd.f32 %v7538_v30, %v7370_v7  ;;  %v7603_v20 = vadd.f32 %v7539_v62, %v7371_v51  ;;  %v6152_v10 = vadd.f32 %v13766_v40, %v11739_v46  ;;  %v13767_v5 = vld [vmem:[#allocation66_spill] sm:$0xff]  ;;  %v13768_v51 = vld [vmem:[#allocation67_spill] sm:$0xff] }
 0x2fb   : > { %v7599_v22 = vadd.f32 %v7535_v16, %v7367_v47  ;;  %v7604_v32 = vadd.f32 %v7540_v19, %v7372_v28  ;;  %v8098_v58 = vrot.slane %v7598_v13, 7  ;;  %v8102_v23 = vrot.slane %v7600_v60, 5  ;;  %v11936_v28 = vld [vmem:[%s13497_s8 + $0x1] ss:$0 sm:$0xff]  ;;  %v11943_v16 = vpop.f32.mrb[98].mxu1  ;;  %v13771_v62 = vld [vmem:[#allocation110_spill] sm:$0xff] }
 0x2fc   : > { %v8104_v1 = vrot.slane %v7601_v39, 4  ;;  %v8106_v36 = vrot.slane %v7602_v41, 3  ;;  %v8108_v37 = vrot.slane %v7603_v20, 2  ;;  %v6258_v47 = vmax.f32 %v6152_v10, 0.0  ;;  %v13772_v19 = vld [vmem:[#allocation103_spill] sm:$0xff]  ;;  %v13773_v13 = vld [vmem:[#allocation69_spill] sm:$0xff] }
 0x2fd   : > { %v8100_v42 = vrot.slane %v7599_v22, 6  ;;  %v8099_v43 = vsel %vm7653_vm9, %v8098_v58, %v7597_v27  ;;  %v8110_v12 = vrot.slane %v7604_v32, 1  ;;  %v6144_v7 = vadd.f32 %v11739_v46, %v13767_v5  ;;  %v11953_v60 = vpop.f32.mrb[99].mxu1  ;;  %v13774_v20 = vld [vmem:[#allocation111_spill] sm:$0xff]  ;;  %v13775_v10 = vld [vmem:[#allocation70_spill] sm:$0xff] }
 0x2fe   : > { %v3017_v48 = vadd.f32 %v11936_v28, %v13768_v51  ;;  %v13769_v57 = vrot.slane %v11780_v61, 1  ;;  %v13770_v14 = vmax.f32 %v11809_v34, 0.0  ;;  %v7732_v27 = vsel %vm7655_vm10, %v13772_v19, %v13771_v62  ;;  %v13780_v19 = vld [vmem:[#allocation74_spill] sm:$0xff] }
 0x2ff   : > { %v8101_v18 = vsel %vm7655_vm10, %v8100_v42, %v8099_v43  ;;  %v3009_v22 = vadd.f32 %v11936_v28, %v13773_v13  ;;  %v6256_v41 = vmax.f32 %v6144_v7, 0.0  ;;  %v7733_v32 = vsel %vm7657_vm12, %v13774_v20, %v7732_v27 }
 0x300   : > { %v3182_v17 = vmax.f32 %v11780_v61, %v13769_v57  ;;  %v8103_v3 = vsel %vm7657_vm12, %v8102_v23, %v8101_v18  ;;  %v6286_v30 = vpack.c.bf16 %v6258_v47, %v13770_v14  ;;  %v3065_v61 = vmax.f32 %v3017_v48, 0.0  ;;  %v13777_v48 = vld [vmem:[#allocation71_spill] sm:$0xff]  ;;  %v13779_v14 = vld [vmem:[#allocation73_spill] sm:$0xff] }
 0x301   : > { %v8105_v39 = vsel %vm7659_vm13, %v8104_v1, %v8103_v3  ;;  %v7734_v34 = vsel %vm7659_vm13, %v11817_v31, %v7733_v32  ;;  %v3063_v40 = vmax.f32 %v3009_v22, 0.0  ;;  %v3020_v42 = vadd.f32 %v11936_v28, %v13775_v10  ;;  %v13778_v3 = vld [vmem:[#allocation72_spill] sm:$0xff] }
 0x302   : > { %v8107_v58 = vsel %vm7661_vm14, %v8106_v36, %v8105_v39  ;;  %v13776_v43 = vmax.f32 %v11814_v52, 0.0  ;;  %v3253_v1 = vsel %vm1964_vm7, %v3065_v61, -inf  ;;  %v7735_v18 = vsel %vm7661_vm14, %v11820_v45, %v7734_v34  ;;  %v11978_v45 = vpop.f32.mrb[100].mxu1 }
 0x303   : > { %v8109_v23 = vsel %vm7663_vm15, %v8108_v37, %v8107_v58  ;;  %v3254_v36 = vrot.slane %v3253_v1, 4  ;;  %v7736_v31 = vsel %vm7663_vm15, %v11797_v54, %v7735_v18  ;;  %v3239_v7 = vsel %vm1964_vm7, %v3063_v40, -inf  ;;  %v11988_v27 = vpop.f32.mrb[101].mxu1 }
 0x304   : > { %v6285_v47 = vpack.c.bf16 %v6256_v41, %v13776_v43  ;;  %v8111_v5 = vsel %vm7665_vm0, %v8110_v12, %v8109_v23  ;;  %v7737_v37 = vsel %vm7665_vm0, %v3182_v17, %v7736_v31  ;;  %v3240_v51 = vrot.slane %v3239_v7, 4  ;;  %13781 = vst [vmem:[#allocation12_spill] sm:$0xff] %v11988_v27  ;;  %v13782_v41 = vld [vmem:[#allocation76_spill] sm:$0xff]  ;;  %v11993_v20 = vpop.f32.mrb[102].mxu1 }
 0x305   : > { %8142 = vrot.lane.b32.xlu0 %v8111_v5, %s9801_s20  ;;  %v3066_v52 = vmax.f32 %v3020_v42, 0.0  ;;  %v6165_v57 = vadd.f32 %v13777_v48, %v11739_v46  ;;  %v3221_v12 = vrot.slane %v11846_v33, 2  ;;  %v3012_v54 = vadd.f32 %v11936_v28, %v13778_v3  ;;  %13783 = vst [vmem:[#allocation22_spill] sm:$0xff] %v11993_v20  ;;  %v11995_v10 = vpop.f32.mrb[103].mxu1  ;;  %v13785_v43 = vld [vmem:[#allocation80_spill] sm:$0xff] }
 0x306   : > { %9526 = vmatprep.mubr.msk.bf16.mxu1 %vm3938_vm11, %v6285_v47  ;;  %v6157_v62 = vadd.f32 %v11739_v46, %v13779_v14  ;;  %v6168_v17 = vadd.f32 %v13780_v19, %v11739_v46  ;;  %v3255_v13 = vmax.f32 %v3253_v1, %v3254_v36  ;;  %v3241_v22 = vmax.f32 %v3239_v7, %v3240_v51  ;;  %v13786_v36 = vld [vmem:[#allocation82_spill] sm:$0xff] }
 0x307   : > { %9527 = vmatmul.mubr.msk.bf16.gmra.mrb[164].mxu1 %vm3938_vm11, %v6286_v30  ;;  %v3260_v39 = vsel %vm1964_vm7, %v3066_v52, -inf  ;;  %v6160_v61 = vadd.f32 %v11739_v46, %v13782_v41  ;;  %v6261_v58 = vmax.f32 %v6165_v57, 0.0  ;;  %v3064_v34 = vmax.f32 %v3012_v54, 0.0  ;;  %13784 = vst [vmem:[#allocation10_spill] sm:$0xff] %v11995_v10  ;;  %v13796_v10 = vld [vmem:[#allocation92_spill] sm:$0xff] }
 0x308   : > { %v3261_v32 = vrot.slane %v3260_v39, 4  ;;  %v6259_v40 = vmax.f32 %v6157_v62, 0.0  ;;  %v3242_v30 = vrot.slane %v3241_v22, 2  ;;  %v6262_v42 = vmax.f32 %v6168_v17, 0.0  ;;  %v12009_v17 = vpop.f32.mrb[104].mxu1 }
 0x309   : > { %7754 = vrot.lane.b32.xlu0 %v7737_v37, %s9802_s0  ;;  %v6260_v23 = vmax.f32 %v6160_v61, 0.0  ;;  %v3033_v47 = vadd.f32 %v11936_v28, %v13785_v43  ;;  %v3222_v1 = vmax.f32 %v11846_v33, %v3221_v12  ;;  %v3246_v5 = vsel %vm1964_vm7, %v3064_v34, -inf  ;;  %v13787_v33 = vld [vmem:[#allocation83_spill] sm:$0xff]  ;;  %13788 = vst [vmem:[#allocation32_spill] sm:$0xff] %v12009_v17 }
 0x30a   : > { %v3262_v18 = vmax.f32 %v3260_v39, %v3261_v32  ;;  %v3025_v31 = vadd.f32 %v11936_v28, %v13786_v36  ;;  %v3256_v7 = vrot.slane %v3255_v13, 2  ;;  %v3247_v51 = vrot.slane %v3246_v5, 4  ;;  %v12019_v36 = vpop.f32.mrb[105].mxu1 }
 0x30b   : > { %v6288_v52 = vpack.c.bf16 %v6262_v42, %v6261_v58  ;;  %v6287_v48 = vpack.c.bf16 %v6260_v23, %v6259_v40  ;;  %v3230_v37 = vrot.slane %v11835_v9, 1  ;;  %v3243_v57 = vmax.f32 %v3241_v22, %v3242_v30  ;;  %v13789_v23 = vld [vmem:[#allocation84_spill] sm:$0xff]  ;;  %13791 = vst [vmem:[#allocation23_spill] sm:$0xff] %v12019_v36 }
 0x30c   : > { %v3069_v3 = vmax.f32 %v3033_v47, 0.0  ;;  %v3067_v54 = vmax.f32 %v3025_v31, 0.0  ;;  %v3216_v14 = vrot.slane %v11844_v53, 1  ;;  %v3263_v62 = vrot.slane %v3262_v18, 2  ;;  %v13790_v47 = vld [vmem:[#allocation85_spill] sm:$0xff] }
 0x30d   : > { %v3248_v19 = vmax.f32 %v3246_v5, %v3247_v51  ;;  %v3036_v12 = vadd.f32 %v11936_v28, %v13787_v33  ;;  %9530 = vmatprep.mubr.msk.bf16.mxu1 %vm3938_vm11, %v6287_v48  ;;  %v3223_v41 = vrot.slane %v3222_v1, 1  ;;  %v3257_v32 = vmax.f32 %v3255_v13, %v3256_v7  ;;  %v13792_v7 = vld [vmem:[#allocation87_spill] sm:$0xff]  ;;  %v13793_v33 = vld [vmem:[#allocation88_spill] sm:$0xff] }
 0x30e   : > { %v3281_v61 = vsel %vm1964_vm7, %v3069_v3, -inf  ;;  %v3267_v22 = vsel %vm1964_vm7, %v3067_v54, -inf  ;;  %v3244_v30 = vrot.slane %v3243_v57, 1  ;;  %v6181_v43 = vadd.f32 %v13789_v23, %v11739_v46  ;;  %v12029_v23 = vld [vmem:[%s13501_s12] ss:$0 sm:$0xff] }
 0x30f   : > { %9531 = vmatmul.mubr.msk.bf16.gmra.mrb[168].mxu1 %vm3938_vm11, %v6288_v52  ;;  %v3249_v58 = vrot.slane %v3248_v19, 2  ;;  %v3282_v34 = vrot.slane %v3281_v61, 4  ;;  %v3268_v40 = vrot.slane %v3267_v22, 4  ;;  %v3070_v42 = vmax.f32 %v3036_v12, 0.0 }
 0x310   : > { %v3028_v5 = vadd.f32 %v11936_v28, %v13790_v47  ;;  %v3264_v31 = vmax.f32 %v3262_v18, %v3263_v62  ;;  %v6173_v54 = vadd.f32 %v11739_v46, %v13792_v7  ;;  %v6184_v12 = vadd.f32 %v13793_v33, %v11739_v46 }
 0x311   : > { %v3250_v51 = vmax.f32 %v3248_v19, %v3249_v58  ;;  %v3283_v48 = vmax.f32 %v3281_v61, %v3282_v34  ;;  %v3269_v3 = vmax.f32 %v3267_v22, %v3268_v40  ;;  %v3288_v52 = vsel %vm1964_vm7, %v3070_v42, -inf  ;;  %v12031_v19 = vpop.f32.mrb[106].mxu1  ;;  %v13795_v34 = vld [vmem:[#allocation90_spill] sm:$0xff] }
 0x312   : > { %v3068_v13 = vmax.f32 %v3028_v5, 0.0  ;;  %v3258_v28 = vrot.slane %v3257_v32, 1  ;;  %13794 = vst [vmem:[#allocation35_spill] sm:$0xff] %v12031_v19  ;;  %v3245_v61 = vmax.f32 %v3243_v57, %v3244_v30  ;;  %v6265_v22 = vmax.f32 %v6181_v43, 0.0 }
 0x313   : > { %v3251_v47 = vrot.slane %v3250_v51, 1  ;;  %v3284_v18 = vrot.slane %v3283_v48, 2  ;;  %v3270_v62 = vrot.slane %v3269_v3, 2  ;;  %v6266_v58 = vmax.f32 %v6184_v12, 0.0 }
 0x314   : > { %v6176_v40 = vadd.f32 %v11739_v46, %v13795_v34  ;;  %v3265_v42 = vrot.slane %v3264_v31, 1  ;;  %v3289_v7 = vrot.slane %v3288_v52, 4  ;;  %v3274_v33 = vsel %vm1964_vm7, %v3068_v13, -inf }
 0x315   : > { %v3252_v5 = vmax.f32 %v3250_v51, %v3251_v47  ;;  %v6263_v39 = vmax.f32 %v6173_v54, 0.0  ;;  %v6290_v36 = vpack.c.bf16 %v6266_v58, %v6265_v22  ;;  %v3788_v20 = vadd.f32 %v13796_v10, %v12029_v23  ;;  %v12042_v47 = vpop.f32.mrb[107].mxu1 }
 0x316   : > { %v6264_v17 = vmax.f32 %v6176_v40, 0.0  ;;  %v3217_v27 = vmax.f32 %v11844_v53, %v3216_v14  ;;  %v3285_v30 = vmax.f32 %v3283_v48, %v3284_v18  ;;  %v3271_v43 = vmax.f32 %v3269_v3, %v3270_v62  ;;  %v13800_v18 = vld [vmem:[#allocation99_spill] sm:$0xff]  ;;  %v12073_v40 = vpop.f32.mrb[108].mxu1 }
 0x317   : > { %v12040_v57 = vsel %vm7653_vm9, %v3252_v5, %v3245_v61  ;;  %v3224_v12 = vmax.f32 %v3222_v1, %v3223_v41  ;;  %v3275_v34 = vrot.slane %v3274_v33, 4  ;;  %v3908_v51 = vmax.f32 %v3788_v20, 0.0  ;;  %v13798_v41 = vld [vmem:[#allocation97_spill] sm:$0xff]  ;;  %v13801_v61 = vld [vmem:[#allocation98_spill] sm:$0xff] }
 0x318   : > { %v6289_v19 = vpack.c.bf16 %v6264_v17, %v6263_v39  ;;  %v3231_v13 = vmax.f32 %v11835_v9, %v3230_v37  ;;  %v12045_v54 = vmax.f32 %v3257_v32, %v3258_v28  ;;  %v12047_v22 = vmax.f32 %v3264_v31, %v3265_v42  ;;  %v13797_v17 = vld [vmem:[#allocation94_spill] sm:$0xff] }
 0x319   : > { %v7739_v53 = vsel %vm7655_vm10, %v11822_v44, %v11825_v11  ;;  %v3290_v10 = vmax.f32 %v3288_v52, %v3289_v7  ;;  %v3953_v14 = vsel %vm3938_vm11, %v3908_v51, -inf  ;;  %v3780_v20 = vadd.f32 %v12029_v23, %v13797_v17  ;;  %v13802_v51 = vld [vmem:[#allocation101_spill] sm:$0xff] }
 0x31a   : > { %v7740_v1 = vsel %vm7657_vm12, %v11833_v56, %v7739_v53  ;;  %9534 = vmatprep.mubr.msk.bf16.mxu1 %vm3938_vm11, %v6289_v19  ;;  %v3286_v9 = vrot.slane %v3285_v30, 1  ;;  %v3272_v37 = vrot.slane %v3271_v43, 1  ;;  %v3791_v32 = vadd.f32 %v13798_v41, %v12029_v23  ;;  %v13803_v53 = vld [vmem:[#allocation105_spill] sm:$0xff] }
 0x31b   : > { %v7741_v39 = vsel %vm7659_vm13, %v3217_v27, %v7740_v1  ;;  %9535 = vmatmul.mubr.msk.bf16.gmra.mrb[172].mxu1 %vm3938_vm11, %v6290_v36  ;;  %v3276_v44 = vmax.f32 %v3274_v33, %v3275_v34  ;;  %v13799_v11 = vrot.slane %v11877_v4, 1  ;;  %v3906_v48 = vmax.f32 %v3780_v20, 0.0  ;;  %v12079_v33 = vpop.f32.mrb[109].mxu1 }
 0x31c   : > { %v7742_v56 = vsel %vm7661_vm14, %v3224_v12, %v7741_v39  ;;  %v3954_v3 = vrot.slane %v3953_v14, 4  ;;  %v3909_v28 = vmax.f32 %v3791_v32, 0.0  ;;  %v3783_v27 = vadd.f32 %v12029_v23, %v13800_v18  ;;  %v12088_v41 = vpop.f32.mrb[110].mxu1 }
 0x31d   : > { %v3238_v31 = vmax.f32 %v11877_v4, %v13799_v11  ;;  %v7743_v52 = vsel %vm7663_vm15, %v3231_v13, %v7742_v56  ;;  %v3291_v62 = vrot.slane %v3290_v10, 2  ;;  %v3939_v36 = vsel %vm3938_vm11, %v3906_v48, -inf  ;;  %v12090_v48 = vpop.f32.mrb[111].mxu1 }
 0x31e   : > { %v6197_v58 = vadd.f32 %v13801_v61, %v11739_v46  ;;  %v12075_v4 = vmax.f32 %v3285_v30, %v3286_v9  ;;  %v3940_v42 = vrot.slane %v3939_v36, 4  ;;  %v3960_v5 = vsel %vm3938_vm11, %v3909_v28, -inf  ;;  %v13804_v9 = vld [vmem:[#allocation53_spill] sm:$0xff]  ;;  %13805 = vst [vmem:[#allocation27_spill] sm:$0xff] %v12090_v48  ;;  %v13807_v61 = vld [vmem:[#allocation55_spill] sm:$0xff] }
 0x31f   : > { %v7744_v19 = vsel %vm7665_vm0, %v3238_v31, %v7743_v52  ;;  %v3907_v7 = vmax.f32 %v3783_v27, 0.0  ;;  %v3277_v12 = vrot.slane %v3276_v44, 2  ;;  %v3961_v34 = vrot.slane %v3960_v5, 4  ;;  %v13806_v27 = vld [vmem:[#allocation102_spill] sm:$0xff] }
 0x320   : > { %7756 = vrot.lane.b32.xlu1 %v7744_v19, %s9802_s0  ;;  %v6189_v13 = vadd.f32 %v11739_v46, %v13802_v51  ;;  %v6200_v1 = vadd.f32 %v13803_v53, %v11739_v46  ;;  %v3955_v17 = vmax.f32 %v3953_v14, %v3954_v3  ;;  %v3941_v20 = vmax.f32 %v3939_v36, %v3940_v42 }
 0x321   : > { %v3946_v30 = vsel %vm3938_vm11, %v3907_v7, -inf  ;;  %v6192_v39 = vadd.f32 %v11739_v46, %v13804_v9  ;;  %v3962_v32 = vmax.f32 %v3960_v5, %v3961_v34  ;;  %v6269_v11 = vmax.f32 %v6197_v58, 0.0 }
 0x322   : > { %v3947_v31 = vrot.slane %v3946_v30, 4  ;;  %v6270_v56 = vmax.f32 %v6200_v1, 0.0  ;;  %v3942_v52 = vrot.slane %v3941_v20, 2  ;;  %v6267_v28 = vmax.f32 %v6189_v13, 0.0  ;;  %v13808_v13 = vld [vmem:[#allocation54_spill] sm:$0xff] }
 0x323   : > { %v6268_v18 = vmax.f32 %v6192_v39, 0.0  ;;  %v3804_v14 = vadd.f32 %v13806_v27, %v12029_v23  ;;  %v12094_v3 = vmax.f32 %v3271_v43, %v3272_v37  ;;  %v3796_v42 = vadd.f32 %v12029_v23, %v13807_v61  ;;  %v12100_v39 = vpop.f32.mrb[112].mxu1 }
 0x324   : > { %v3948_v19 = vmax.f32 %v3946_v30, %v3947_v31  ;;  %v6292_v36 = vpack.c.bf16 %v6270_v56, %v6269_v11  ;;  %v3956_v7 = vrot.slane %v3955_v17, 2  ;;  %v3943_v5 = vmax.f32 %v3941_v20, %v3942_v52  ;;  %13809 = vst [vmem:[#allocation37_spill] sm:$0xff] %v12100_v39  ;;  %v13810_v30 = vld [vmem:[#allocation109_spill] sm:$0xff]  ;;  %v12106_v20 = vpop.f32.mrb[113].mxu1 }
 0x325   : > { %v6291_v58 = vpack.c.bf16 %v6268_v18, %v6267_v28  ;;  %v3912_v34 = vmax.f32 %v3804_v14, 0.0  ;;  %v3963_v51 = vrot.slane %v3962_v32, 2  ;;  %v3910_v1 = vmax.f32 %v3796_v42, 0.0  ;;  %13811 = vst [vmem:[#allocation36_spill] sm:$0xff] %v12106_v20 }
 0x326   : > { %v3949_v53 = vrot.slane %v3948_v19, 2  ;;  %v3807_v9 = vadd.f32 %v13808_v13, %v12029_v23  ;;  %v3292_v27 = vmax.f32 %v3290_v10, %v3291_v62  ;;  %v3278_v43 = vmax.f32 %v3276_v44, %v3277_v12  ;;  %v13812_v44 = vld [vmem:[#allocation108_spill] sm:$0xff] }
 0x327   : > { %v3981_v37 = vsel %vm3938_vm11, %v3912_v34, -inf  ;;  %v3799_v11 = vadd.f32 %v12029_v23, %v13810_v30  ;;  %9538 = vmatprep.mubr.msk.bf16.mxu1 %vm3938_vm11, %v6291_v58  ;;  %v3944_v31 = vrot.slane %v3943_v5, 1  ;;  %v3967_v28 = vsel %vm3938_vm11, %v3910_v1, -inf }
 0x328   : > { %v3950_v56 = vmax.f32 %v3948_v19, %v3949_v53  ;;  %v3982_v52 = vrot.slane %v3981_v37, 4  ;;  %9539 = vmatmul.mubr.msk.bf16.gmra.mrb[176].mxu1 %vm3938_vm11, %v6292_v36  ;;  %v3957_v18 = vmax.f32 %v3955_v17, %v3956_v7  ;;  %v3968_v14 = vrot.slane %v3967_v28, 4  ;;  %v13813_v19 = vld [vmem:[#allocation115_spill] sm:$0xff]  ;;  %v13814_v36 = vld [vmem:[#allocation9_spill] sm:$0xff] }
 0x329   : > { %v3913_v10 = vmax.f32 %v3807_v9, 0.0  ;;  %v6213_v62 = vadd.f32 %v13812_v44, %v11739_v46  ;;  %v3964_v12 = vmax.f32 %v3962_v32, %v3963_v51  ;;  %v3911_v34 = vmax.f32 %v3799_v11, 0.0  ;;  %v12118_v9 = vpop.f32.mrb[114].mxu1 }
 0x32a   : > { %v3951_v61 = vrot.slane %v3950_v56, 1  ;;  %v3983_v42 = vmax.f32 %v3981_v37, %v3982_v52  ;;  %v3279_v58 = vrot.slane %v3278_v43, 1  ;;  %v3969_v13 = vmax.f32 %v3967_v28, %v3968_v14  ;;  %13815 = vst [vmem:[#allocation107_spill] sm:$0xff] %v12118_v9 }
 0x32b   : > { %v3988_v30 = vsel %vm3938_vm11, %v3913_v10, -inf  ;;  %v6216_v53 = vadd.f32 %v13813_v19, %v11739_v46  ;;  %v3945_v1 = vmax.f32 %v3943_v5, %v3944_v31  ;;  %v3974_v17 = vsel %vm3938_vm11, %v3911_v34, -inf  ;;  %v13816_v10 = vld [vmem:[#allocation116_spill] sm:$0xff]  ;;  %v12127_v19 = vpop.f32.mrb[115].mxu1 }
 0x32c   : > { %v3952_v20 = vmax.f32 %v3950_v56, %v3951_v61  ;;  %v6205_v7 = vadd.f32 %v11739_v46, %v13814_v36  ;;  %v3958_v32 = vrot.slane %v3957_v18, 1  ;;  %v3984_v51 = vrot.slane %v3983_v42, 2  ;;  %v13817_v61 = vld [vmem:[#allocation113_spill] sm:$0xff]  ;;  %13818 = vst [vmem:[#allocation112_spill] sm:$0xff] %v12127_v19 }
 0x32d   : > { %v6273_v37 = vmax.f32 %v6213_v62, 0.0  ;;  %v6274_v11 = vmax.f32 %v6216_v53, 0.0  ;;  %v3965_v52 = vrot.slane %v3964_v12, 1  ;;  %v3989_v14 = vrot.slane %v3988_v30, 4 }
 0x32e   : > { %v12121_v28 = vsel %vm7653_vm9, %v3952_v20, %v3945_v1  ;;  %v6208_v5 = vadd.f32 %v11739_v46, %v13816_v10  ;;  %v3970_v31 = vrot.slane %v3969_v13, 2  ;;  %v3975_v56 = vrot.slane %v3974_v17, 4 }
 0x32f   : > { %v6294_v44 = vpack.c.bf16 %v6274_v11, %v6273_v37  ;;  %v3820_v34 = vadd.f32 %v13817_v61, %v12029_v23  ;;  %v3293_v36 = vrot.slane %v3292_v27, 1  ;;  %v3280_v9 = vmax.f32 %v3278_v43, %v3279_v58 }
 0x330   : > { %v6271_v62 = vmax.f32 %v6205_v7, 0.0  ;;  %v6272_v53 = vmax.f32 %v6208_v5, 0.0  ;;  %v12129_v39 = vmax.f32 %v3957_v18, %v3958_v32  ;;  %v3985_v20 = vmax.f32 %v3983_v42, %v3984_v51  ;;  %v13822_v5 = vld [vmem:[#allocation7_spill] sm:$0xff] }
 0x331   : > { %v3916_v1 = vmax.f32 %v3820_v34, 0.0  ;;  %v7746_v10 = vsel %vm7655_vm10, %v12045_v54, %v12040_v57  ;;  %v12134_v48 = vmax.f32 %v3964_v12, %v3965_v52  ;;  %v3990_v37 = vmax.f32 %v3988_v30, %v3989_v14  ;;  %v13819_v57 = vld [vmem:[#allocation5_spill] sm:$0xff]  ;;  %v12147_v12 = vpop.f32.mrb[116].mxu1  ;;  %v13820_v30 = vld [vmem:[#allocation8_spill] sm:$0xff] }
 0x332   : > { %v6293_v11 = vpack.c.bf16 %v6272_v53, %v6271_v62  ;;  %v7747_v61 = vsel %vm7657_vm12, %v12047_v22, %v7746_v10  ;;  %v12138_v19 = vmax.f32 %v3969_v13, %v3970_v31  ;;  %v3976_v43 = vmax.f32 %v3974_v17, %v3975_v56 }
 0x333   : > { %v4009_v58 = vsel %vm3938_vm11, %v3916_v1, -inf  ;;  %v7748_v18 = vsel %vm7659_vm13, %v12094_v3, %v7747_v61  ;;  %v3294_v7 = vmax.f32 %v3292_v27, %v3293_v36  ;;  %v3812_v54 = vadd.f32 %v12029_v23, %v13819_v57  ;;  %v13821_v3 = vld [vmem:[#allocation13_spill] sm:$0xff]  ;;  %v12156_v27 = vpop.f32.mrb[117].mxu1 }
 0x334   : > { %v4010_v42 = vrot.slane %v4009_v58, 4  ;;  %v7749_v32 = vsel %vm7661_vm14, %v3280_v9, %v7748_v18  ;;  %9542 = vmatprep.mubr.msk.bf16.mxu1 %vm3938_vm11, %v6293_v11  ;;  %v3986_v22 = vrot.slane %v3985_v20, 1  ;;  %v3823_v17 = vadd.f32 %v13820_v30, %v12029_v23  ;;  %v12168_v10 = vpop.f32.mrb[118].mxu1 }
 0x335   : > { %v7750_v13 = vsel %vm7663_vm15, %v12075_v4, %v7749_v32  ;;  %v6229_v51 = vadd.f32 %v13821_v3, %v11739_v46  ;;  %9543 = vmatmul.mubr.msk.bf16.gmra.mrb[180].mxu1 %vm3938_vm11, %v6294_v44  ;;  %v3991_v9 = vrot.slane %v3990_v37, 2  ;;  %v3914_v14 = vmax.f32 %v3812_v54, 0.0  ;;  %v12173_v32 = vpop.f32.mrb[119].mxu1 }
 0x336   : > { %v7751_v52 = vsel %vm7665_vm0, %v3294_v7, %v7750_v13  ;;  %v3815_v31 = vadd.f32 %v12029_v23, %v13822_v5  ;;  %v3972_v56 = vrot.slane %v12138_v19, 1  ;;  %v3977_v4 = vrot.slane %v3976_v43, 2  ;;  %v12176_v54 = vpop.f32.mrb[120].mxu1 }
 0x337   : > { %7758 = vrot.lane.b32.xlu0 %v7751_v52, %s9802_s0  ;;  %v3917_v34 = vmax.f32 %v3823_v17, 0.0  ;;  %v6221_v36 = vadd.f32 %v11739_v46, %v11676_v25  ;;  %v4011_v62 = vmax.f32 %v4009_v58, %v4010_v42  ;;  %v3995_v44 = vsel %vm3938_vm11, %v3914_v14, -inf  ;;  %v12180_v3 = vpop.f32.mrb[121].mxu1  ;;  %s1571_s0 = scalar_lea.vmem %s13508_s19, %s8491_s21 }
 0x338   : > { %v3915_v53 = vmax.f32 %v3815_v31, 0.0  ;;  %v6232_v1 = vadd.f32 %v11684_v2, %v11739_v46  ;;  %v3996_v11 = vrot.slane %v3995_v44, 4  ;;  %v6277_v18 = vmax.f32 %v6229_v51, 0.0  ;;  %13823 = vst [vmem:[#allocation114_spill] sm:$0xff] %v12180_v3 }
 0x339   : > { %v4016_v61 = vsel %vm3938_vm11, %v3917_v34, -inf  ;;  %v6224_v7 = vadd.f32 %v11739_v46, %v11687_v50  ;;  %v6275_v58 = vmax.f32 %v6221_v36, 0.0  ;;  %v3836_v17 = vadd.f32 %v11678_v26, %v12029_v23 }
 0x33a   : > { %v4017_v57 = vrot.slane %v4016_v61, 4  ;;  %v4002_v25 = vsel %vm3938_vm11, %v3915_v53, -inf  ;;  %v6278_v42 = vmax.f32 %v6232_v1, 0.0  ;;  %v3997_v13 = vmax.f32 %v3995_v44, %v3996_v11 }
 0x33b   : > { %v4003_v2 = vrot.slane %v4002_v25, 4  ;;  %v6276_v30 = vmax.f32 %v6224_v7, 0.0  ;;  %v4012_v51 = vrot.slane %v4011_v62, 2  ;;  %v3828_v14 = vadd.f32 %v12029_v23, %v11689_v38 }
 0x33c   : > { %v4018_v52 = vmax.f32 %v4016_v61, %v4017_v57  ;;  %v6296_v50 = vpack.c.bf16 %v6278_v42, %v6277_v18  ;;  %v3998_v5 = vrot.slane %v3997_v13, 2  ;;  %v3920_v36 = vmax.f32 %v3836_v17, 0.0 }
 0x33d   : > { %v4004_v31 = vmax.f32 %v4002_v25, %v4003_v2  ;;  %v6295_v34 = vpack.c.bf16 %v6276_v30, %v6275_v58  ;;  %v12184_v53 = vmax.f32 %v3985_v20, %v3986_v22  ;;  %v12186_v44 = vmax.f32 %v3990_v37, %v3991_v9 }
 0x33e   : > { %v3918_v1 = vmax.f32 %v3828_v14, 0.0  ;;  %v3839_v26 = vadd.f32 %v11691_v35, %v12029_v23  ;;  %v3978_v11 = vmax.f32 %v3976_v43, %v3977_v4  ;;  %v3999_v7 = vmax.f32 %v3997_v13, %v3998_v5 }
 0x33f   : > { %v4005_v3 = vrot.slane %v4004_v31, 2  ;;  %v4037_v61 = vsel %vm3938_vm11, %v3920_v36, -inf  ;;  %9546 = vmatprep.mubr.msk.bf16.mxu1 %vm3938_vm11, %v6295_v34  ;;  %v4013_v38 = vmax.f32 %v4011_v62, %v4012_v51  ;;  %v4019_v37 = vrot.slane %v4018_v52, 2  ;;  %v12199_v62 = vpop.f32.mrb[122].mxu1 }
 0x340   : > { %v4038_v18 = vrot.slane %v4037_v61, 4  ;;  %v4023_v57 = vsel %vm3938_vm11, %v3918_v1, -inf  ;;  %v3921_v25 = vmax.f32 %v3839_v26, 0.0  ;;  %9547 = vmatmul.mubr.msk.bf16.gmra.mrb[184].mxu1 %vm3938_vm11, %v6296_v50  ;;  %v4000_v20 = vrot.slane %v3999_v7, 1  ;;  %v9763_v50 = vld [vmem:[%s13503_s14 + $0x1] ss:$0 sm:$0xff] }
 0x341   : > { %v4006_v22 = vmax.f32 %v4004_v31, %v4005_v3  ;;  %v4024_v9 = vrot.slane %v4023_v57, 4  ;;  %v6245_v43 = vadd.f32 %v11693_v0, %v11739_v46  ;;  %v3831_v4 = vadd.f32 %v12029_v23, %v11695_v24  ;;  %v12206_v0 = vpop.f32.mrb[123].mxu1 }
 0x342   : > { %v4039_v58 = vmax.f32 %v4037_v61, %v4038_v18  ;;  %v4044_v35 = vsel %vm3938_vm11, %v3921_v25, -inf  ;;  %v3973_v42 = vmax.f32 %v12138_v19, %v3972_v56  ;;  %v3979_v17 = vrot.slane %v3978_v11, 1 }
 0x343   : > { %v4007_v13 = vrot.slane %v4006_v22, 1  ;;  %v4025_v2 = vmax.f32 %v4023_v57, %v4024_v9  ;;  %v4045_v30 = vrot.slane %v4044_v35, 4  ;;  %v4014_v51 = vrot.slane %v4013_v38, 1 }
 0x344   : > { %v3919_v3 = vmax.f32 %v3831_v4, 0.0  ;;  %v6237_v14 = vadd.f32 %v9763_v50, %v11714_v21  ;;  %v4001_v46 = vmax.f32 %v3999_v7, %v4000_v20  ;;  %v12208_v24 = vmax.f32 %v4018_v52, %v4019_v37 }
 0x345   : > { %v4008_v5 = vmax.f32 %v4006_v22, %v4007_v13  ;;  %v6248_v19 = vadd.f32 %v9763_v50, %v11721_v63  ;;  %v4040_v56 = vrot.slane %v4039_v58, 2  ;;  %v6281_v31 = vmax.f32 %v6245_v43, 0.0  ;;  %v12226_v43 = vpop.f32.mrb[124].mxu1 }
 0x346   : > { %v4030_v34 = vsel %vm3938_vm11, %v3919_v3, -inf  ;;  %v6240_v36 = vadd.f32 %v9763_v50, %v11728_v59  ;;  %v4026_v26 = vrot.slane %v4025_v2, 2  ;;  %v12216_v61 = vmax.f32 %v4044_v35, %v4045_v30  ;;  %v13824_v50 = vld [vmem:[#allocation19_spill] sm:$0xff] }
 0x347   : > { %v12214_v1 = vsel %vm7653_vm9, %v4008_v5, %v4001_v46  ;;  %v4031_v21 = vrot.slane %v4030_v34, 4  ;;  %v6279_v18 = vmax.f32 %v6237_v14, 0.0  ;;  %v6282_v7 = vmax.f32 %v6248_v19, 0.0  ;;  %v13825_v5 = vld [vmem:[#allocation17_spill] sm:$0xff] }
 0x348   : > { %v6280_v52 = vmax.f32 %v6240_v36, 0.0  ;;  %v3852_v57 = vadd.f32 %v11716_v55, %v12029_v23  ;;  %v3993_v63 = vrot.slane %v12186_v44, 1  ;;  %v3980_v25 = vmax.f32 %v3978_v11, %v3979_v17  ;;  %v12234_v11 = vpop.f32.mrb[125].mxu1 }
 0x349   : > { %v12221_v20 = vmax.f32 %v4013_v38, %v4014_v51  ;;  %v4021_v59 = vrot.slane %v12208_v24, 1  ;;  %v12224_v37 = vmax.f32 %v4039_v58, %v4040_v56  ;;  %v6298_v22 = vpack.c.bf16 %v6282_v7, %v6281_v31  ;;  %v12244_v51 = vpop.f32.mrb[126].mxu1 }
 0x34a   : > { %v6297_v9 = vpack.c.bf16 %v6280_v52, %v6279_v18  ;;  %v3924_v35 = vmax.f32 %v3852_v57, 0.0  ;;  %v12228_v4 = vmax.f32 %v4025_v2, %v4026_v26  ;;  %v4047_v13 = vrot.slane %v12216_v61, 2 }
 0x34b   : > { %v4032_v30 = vmax.f32 %v4030_v34, %v4031_v21  ;;  %v7797_v55 = vsel %vm7655_vm10, %v12129_v39, %v12121_v28  ;;  %v3844_v17 = vadd.f32 %v12029_v23, %v11757_v6  ;;  %v3855_v2 = vadd.f32 %v11764_v49, %v12029_v23 }
 0x34c   : > { %v4065_v38 = vsel %vm3938_vm11, %v3924_v35, -inf  ;;  %v7798_v58 = vsel %vm7657_vm12, %v12134_v48, %v7797_v55  ;;  %9550 = vmatprep.mubr.msk.bf16.mxu1 %vm3938_vm11, %v6297_v9  ;;  %v3994_v39 = vmax.f32 %v12186_v44, %v3993_v63  ;;  %v3847_v14 = vadd.f32 %v12029_v23, %v13824_v50  ;;  %v12251_v48 = vpop.f32.mrb[127].mxu1  ;;  %v13826_v9 = vld [vmem:[#allocation24_spill] sm:$0xff]  ;;  %v13827_v55 = vld [vmem:[#allocation18_spill] sm:$0xff] }
 0x34d   : > { %v4066_v3 = vrot.slane %v4065_v38, 4  ;;  %v7799_v28 = vsel %vm7659_vm13, %v3973_v42, %v7798_v58  ;;  %9551 = vmatmul.mubr.msk.bf16.gmra.mrb[188].mxu1 %vm3938_vm11, %v6298_v22  ;;  %v3922_v46 = vmax.f32 %v3844_v17, 0.0  ;;  %v3925_v49 = vmax.f32 %v3855_v2, 0.0  ;;  %v12256_v56 = vpop.f32.mrb[128].mxu1 }
 0x34e   : > { %v7800_v6 = vsel %vm7661_vm14, %v3980_v25, %v7799_v28  ;;  %v3868_v19 = vadd.f32 %v13825_v5, %v12029_v23  ;;  %v4033_v31 = vrot.slane %v4032_v30, 2  ;;  %v3923_v34 = vmax.f32 %v3847_v14, 0.0  ;;  %v12263_v7 = vpop.f32.mrb[129].mxu1  ;;  %v13828_v14 = vld [vmem:[#allocation25_spill] sm:$0xff] }
 0x34f   : > { %v4067_v44 = vmax.f32 %v4065_v38, %v4066_v3  ;;  %v7801_v42 = vsel %vm7663_vm15, %v12184_v53, %v7800_v6  ;;  %v4051_v26 = vsel %vm3938_vm11, %v3922_v46, -inf  ;;  %v4072_v21 = vsel %vm3938_vm11, %v3925_v49, -inf }
 0x350   : > { %v7802_v36 = vsel %vm7665_vm0, %v3994_v39, %v7801_v42  ;;  %v3928_v18 = vmax.f32 %v3868_v19, 0.0  ;;  %v4028_v52 = vrot.slane %v12228_v4, 1  ;;  %v4052_v63 = vrot.slane %v4051_v26, 4 }
 0x351   : > { %v4068_v57 = vrot.slane %v4067_v44, 2  ;;  %7824 = vrot.lane.b32.xlu1 %v7802_v36, %s9803_s26  ;;  %v4073_v25 = vrot.slane %v4072_v21, 4  ;;  %v4058_v53 = vsel %vm3938_vm11, %v3923_v34, -inf  ;;  %v3860_v35 = vadd.f32 %v12029_v23, %v13826_v9 }
 0x352   : > { %v4093_v22 = vsel %vm3938_vm11, %v3928_v18, -inf  ;;  %v3871_v38 = vadd.f32 %v13827_v55, %v12029_v23  ;;  %v4034_v58 = vmax.f32 %v4032_v30, %v4033_v31  ;;  %v4053_v17 = vmax.f32 %v4051_v26, %v4052_v63  ;;  %v12277_v30 = vpop.f32.mrb[130].mxu1 }
 0x353   : > { %v4074_v2 = vmax.f32 %v4072_v21, %v4073_v25  ;;  %v4059_v3 = vrot.slane %v4058_v53, 4  ;;  %v4094_v39 = vrot.slane %v4093_v22, 4  ;;  %v3926_v28 = vmax.f32 %v3860_v35, 0.0 }
 0x354   : > { %v3929_v50 = vmax.f32 %v3871_v38, 0.0  ;;  %v3863_v6 = vadd.f32 %v12029_v23, %v13828_v14  ;;  %v4069_v46 = vmax.f32 %v4067_v44, %v4068_v57  ;;  %v4054_v49 = vrot.slane %v4053_v17, 2 }
 0x355   : > { %v4075_v5 = vrot.slane %v4074_v2, 2  ;;  %v4060_v19 = vmax.f32 %v4058_v53, %v4059_v3  ;;  %v4095_v42 = vmax.f32 %v4093_v22, %v4094_v39  ;;  %v4079_v34 = vsel %vm3938_vm11, %v3926_v28, -inf }
 0x356   : > { %v4100_v36 = vsel %vm3938_vm11, %v3929_v50, -inf  ;;  %v3927_v18 = vmax.f32 %v3863_v6, 0.0  ;;  %v4048_v31 = vmax.f32 %v12216_v61, %v4047_v13  ;;  %v4055_v26 = vmax.f32 %v4053_v17, %v4054_v49  ;;  %v13829_v61 = vld [vmem:[#allocation26_spill] sm:$0xff] }
 0x357   : > { %v4076_v21 = vmax.f32 %v4074_v2, %v4075_v5  ;;  %v4061_v63 = vrot.slane %v4060_v19, 2  ;;  %v4096_v25 = vrot.slane %v4095_v42, 2  ;;  %v4080_v9 = vrot.slane %v4079_v34, 4 }
 0x358   : > { %v4101_v35 = vrot.slane %v4100_v36, 4  ;;  %v4086_v44 = vsel %vm3938_vm11, %v3927_v18, -inf  ;;  %v4022_v57 = vmax.f32 %v12208_v24, %v4021_v59  ;;  %v4035_v53 = vrot.slane %v4034_v58, 1  ;;  %v12290_v59 = vpop.f32.mrb[131].mxu1 }
 0x359   : > { %v4056_v22 = vrot.slane %v4055_v26, 1  ;;  %v4062_v55 = vmax.f32 %v4060_v19, %v4061_v63  ;;  %v4042_v38 = vrot.slane %v12224_v37, 1  ;;  %v4070_v3 = vrot.slane %v4069_v46, 1 }
 0x35a   : > { %v4087_v39 = vrot.slane %v4086_v44, 4  ;;  %v3884_v13 = vadd.f32 %v13829_v61, %v12029_v23  ;;  %v4029_v17 = vmax.f32 %v12228_v4, %v4028_v52  ;;  %v4081_v28 = vmax.f32 %v4079_v34, %v4080_v9 }
 0x35b   : > { %v4063_v2 = vrot.slane %v4062_v55, 1  ;;  %v4102_v50 = vmax.f32 %v4100_v36, %v4101_v35  ;;  %v4049_v14 = vrot.slane %v4048_v31, 1  ;;  %v4077_v6 = vrot.slane %v4076_v21, 1  ;;  %v12299_v36 = vpop.f32.mrb[132].mxu1 }
 0x35c   : > { %v12288_v49 = vmax.f32 %v4095_v42, %v4096_v25  ;;  %v3932_v24 = vmax.f32 %v3884_v13, 0.0  ;;  %v4036_v5 = vmax.f32 %v4034_v58, %v4035_v53  ;;  %v4057_v19 = vmax.f32 %v4055_v26, %v4056_v22  ;;  %v12305_v9 = vpop.f32.mrb[133].mxu1  ;;  %v13834_v13 = vld [vmem:[#allocation62_spill] sm:$0xff] }
 0x35d   : > { %v4064_v18 = vmax.f32 %v4062_v55, %v4063_v2  ;;  %v7804_v63 = vsel %vm7655_vm10, %v12221_v20, %v12214_v1  ;;  %v4043_v61 = vmax.f32 %v12224_v37, %v4042_v38  ;;  %v12296_v4 = vmax.f32 %v4069_v46, %v4070_v3  ;;  %13830 = vst [vmem:[#allocation65_spill] sm:$0xff] %v12305_v9  ;;  %v13831_v37 = vld [vmem:[#allocation40_spill] sm:$0xff]  ;;  %v13832_v55 = vld [vmem:[#allocation63_spill] sm:$0xff]  ;;  %v12316_v3 = vpop.f32.mrb[134].mxu1 }
 0x35e   : > { %v4088_v52 = vmax.f32 %v4086_v44, %v4087_v39  ;;  %v4121_v34 = vsel %vm3938_vm11, %v3932_v24, -inf  ;;  %v4082_v25 = vrot.slane %v4081_v28, 2  ;;  %v4103_v58 = vrot.slane %v4102_v50, 2  ;;  %13833 = vst [vmem:[#allocation66_spill] sm:$0xff] %v12316_v3 }
 0x35f   : > { %v12302_v42 = vsel %vm7653_vm9, %v4064_v18, %v4057_v19  ;;  %v7805_v26 = vsel %vm7657_vm12, %v4022_v57, %v7804_v63  ;;  %v12307_v35 = vmax.f32 %v4076_v21, %v4077_v6  ;;  %v3876_v46 = vadd.f32 %v12029_v23, %v13831_v37  ;;  %v13836_v18 = vld [vmem:[#allocation64_spill] sm:$0xff] }
 0x360   : > { %v7806_v20 = vsel %vm7659_vm13, %v4029_v17, %v7805_v26  ;;  %v4122_v44 = vrot.slane %v4121_v34, 4  ;;  %v4050_v53 = vmax.f32 %v4048_v31, %v4049_v14  ;;  %v3887_v38 = vadd.f32 %v13832_v55, %v12029_v23  ;;  %v12321_v17 = vpop.f32.mrb[135].mxu1 }
 0x361   : > { %v7807_v22 = vsel %vm7661_vm14, %v4036_v5, %v7806_v20  ;;  %v4089_v57 = vrot.slane %v4088_v52, 2  ;;  %v3930_v39 = vmax.f32 %v3876_v46, 0.0  ;;  %v3879_v2 = vadd.f32 %v12029_v23, %v13834_v13  ;;  %13835 = vst [vmem:[#allocation67_spill] sm:$0xff] %v12321_v17 }
 0x362   : > { %v7808_v21 = vsel %vm7663_vm15, %v4043_v61, %v7807_v22  ;;  %v4083_v6 = vmax.f32 %v4081_v28, %v4082_v25  ;;  %v12323_v24 = vmax.f32 %v4102_v50, %v4103_v58  ;;  %v3933_v14 = vmax.f32 %v3887_v38, 0.0  ;;  %v13837_v61 = vld [vmem:[#allocation14_spill] sm:$0xff]  ;;  %v12335_v58 = vpop.f32.mrb[136].mxu1 }
 0x363   : > { %v7809_v31 = vsel %vm7665_vm0, %v4050_v53, %v7808_v21  ;;  %v4107_v5 = vsel %vm3938_vm11, %v3930_v39, -inf  ;;  %v3931_v19 = vmax.f32 %v3879_v2, 0.0  ;;  %v3900_v63 = vadd.f32 %v13836_v18, %v12029_v23  ;;  %v13838_v50 = vld [vmem:[#allocation6_spill] sm:$0xff]  ;;  %13839 = vst [vmem:[#allocation110_spill] sm:$0xff] %v12335_v58  ;;  %v12338_v38 = vpop.f32.mrb[137].mxu1 }
 0x364   : > { %7826 = vrot.lane.b32.xlu0 %v7809_v31, %s9803_s26  ;;  %v3892_v26 = vadd.f32 %v12029_v23, %v13837_v61  ;;  %v4123_v20 = vmax.f32 %v4121_v34, %v4122_v44  ;;  %v4108_v37 = vrot.slane %v4107_v5, 4  ;;  %v4128_v28 = vsel %vm3938_vm11, %v3933_v14, -inf  ;;  %13840 = vst [vmem:[#allocation103_spill] sm:$0xff] %v12338_v38 }
 0x365   : > { %v3903_v25 = vadd.f32 %v13838_v50, %v12029_v23  ;;  %v4129_v46 = vrot.slane %v4128_v28, 4  ;;  %v4114_v53 = vsel %vm3938_vm11, %v3931_v19, -inf  ;;  %v3936_v22 = vmax.f32 %v3900_v63, 0.0  ;;  %v12347_v63 = vld [vmem:[%s13501_s12 + $0x1] ss:$0 sm:$0xff] }
 0x366   : > { %v3934_v55 = vmax.f32 %v3892_v26, 0.0  ;;  %v4090_v21 = vmax.f32 %v4088_v52, %v4089_v57  ;;  %v4109_v39 = vmax.f32 %v4107_v5, %v4108_v37  ;;  %v4115_v13 = vrot.slane %v4114_v53, 4 }
 0x367   : > { %v3937_v2 = vmax.f32 %v3903_v25, 0.0  ;;  %v4130_v34 = vmax.f32 %v4128_v28, %v4129_v46  ;;  %v4149_v44 = vsel %vm3938_vm11, %v3936_v22, -inf  ;;  %v3895_v14 = vadd.f32 %v12029_v23, %v11907_v15 }
 0x368   : > { %v4135_v31 = vsel %vm3938_vm11, %v3934_v55, -inf  ;;  %v4124_v18 = vrot.slane %v4123_v20, 2  ;;  %v4110_v61 = vrot.slane %v4109_v39, 2  ;;  %v4116_v50 = vmax.f32 %v4114_v53, %v4115_v13 }
 0x369   : > { %v4150_v19 = vrot.slane %v4149_v44, 4  ;;  %v4131_v52 = vrot.slane %v4130_v34, 2  ;;  %v4136_v57 = vrot.slane %v4135_v31, 4  ;;  %v4156_v5 = vsel %vm3938_vm11, %v3937_v2, -inf }
 0x36a   : > { %v3935_v26 = vmax.f32 %v3895_v14, 0.0  ;;  %v4111_v37 = vmax.f32 %v4109_v39, %v4110_v61  ;;  %v4117_v28 = vrot.slane %v4116_v50, 2  ;;  %v4157_v46 = vrot.slane %v4156_v5, 4 }
 0x36b   : > { %v4151_v25 = vmax.f32 %v4149_v44, %v4150_v19  ;;  %v4084_v22 = vrot.slane %v4083_v6, 1  ;;  %v4137_v15 = vmax.f32 %v4135_v31, %v4136_v57  ;;  %v4656_v53 = vadd.f32 %v11923_v8, %v12347_v63  ;;  %v12356_v19 = vpop.f32.mrb[138].mxu1 }
 0x36c   : > { %v4142_v23 = vsel %vm3938_vm11, %v3935_v26, -inf  ;;  %v4112_v55 = vrot.slane %v4111_v37, 1  ;;  %v4118_v13 = vmax.f32 %v4116_v50, %v4117_v28  ;;  %v4158_v38 = vmax.f32 %v4156_v5, %v4157_v46  ;;  %v12359_v28 = vpop.f32.mrb[139].mxu1 }
 0x36d   : > { %v4152_v1 = vrot.slane %v4151_v25, 2  ;;  %v4091_v58 = vrot.slane %v4090_v21, 1  ;;  %v4125_v17 = vmax.f32 %v4123_v20, %v4124_v18  ;;  %v4143_v3 = vrot.slane %v4142_v23, 4 }
 0x36e   : > { %v4776_v2 = vmax.f32 %v4656_v53, 0.0  ;;  %v13841_v39 = vrot.slane %v12288_v49, 1  ;;  %v4132_v14 = vmax.f32 %v4130_v34, %v4131_v52  ;;  %v4119_v61 = vrot.slane %v4118_v13, 1 }
 0x36f   : > { %v4138_v31 = vrot.slane %v4137_v15, 2  ;;  %v4085_v57 = vmax.f32 %v4083_v6, %v4084_v22  ;;  %v4153_v26 = vmax.f32 %v4151_v25, %v4152_v1  ;;  %v4144_v8 = vmax.f32 %v4142_v23, %v4143_v3  ;;  %v12368_v25 = vpop.f32.mrb[140].mxu1 }
 0x370   : > { %v4099_v44 = vmax.f32 %v12288_v49, %v13841_v39  ;;  %v4820_v50 = vsel %vm3938_vm11, %v4776_v2, -inf  ;;  %v4113_v5 = vmax.f32 %v4111_v37, %v4112_v55  ;;  %v4120_v20 = vmax.f32 %v4118_v13, %v4119_v61 }
 0x371   : > { %v4159_v18 = vrot.slane %v4158_v38, 2  ;;  %v4821_v46 = vrot.slane %v4820_v50, 4  ;;  %v4105_v53 = vrot.slane %v12323_v24, 1  ;;  %v4092_v9 = vmax.f32 %v4090_v21, %v4091_v58  ;;  %v12374_v21 = vpop.f32.mrb[141].mxu1 }
 0x372   : > { %v4126_v49 = vrot.slane %v4125_v17, 1  ;;  %v7811_v34 = vsel %vm7655_vm10, %v12296_v4, %v12302_v42  ;;  %v4133_v52 = vrot.slane %v4132_v14, 1  ;;  %v12366_v1 = vsel %vm7653_vm9, %v4120_v20, %v4113_v5  ;;  %v12383_v13 = vpop.f32.mrb[142].mxu1 }
 0x373   : > { %v4139_v3 = vmax.f32 %v4137_v15, %v4138_v31  ;;  %v4822_v6 = vmax.f32 %v4820_v50, %v4821_v46  ;;  %v4154_v37 = vrot.slane %v4153_v26, 1  ;;  %v4145_v22 = vrot.slane %v4144_v8, 2 }
 0x374   : > { %v7812_v23 = vsel %vm7657_vm12, %v12307_v35, %v7811_v34  ;;  %v4648_v58 = vadd.f32 %v12347_v63, %v11925_v29  ;;  %v12376_v55 = vmax.f32 %v4158_v38, %v4159_v18  ;;  %v4659_v42 = vadd.f32 %v11943_v16, %v12347_v63  ;;  %v12389_v38 = vpop.f32.mrb[143].mxu1 }
 0x375   : > { %v7813_v4 = vsel %vm7659_vm13, %v4085_v57, %v7812_v23  ;;  %v4651_v15 = vadd.f32 %v12347_v63, %v11953_v60  ;;  %v4106_v2 = vmax.f32 %v12323_v24, %v4105_v53  ;;  %v4672_v29 = vadd.f32 %v11978_v45, %v12347_v63  ;;  %13842 = vst [vmem:[#allocation69_spill] sm:$0xff] %v12389_v38  ;;  %v12394_v24 = vpop.f32.mrb[144].mxu1 }
 0x376   : > { %v7814_v35 = vsel %vm7661_vm14, %v4092_v9, %v7813_v4  ;;  %v4774_v39 = vmax.f32 %v4648_v58, 0.0  ;;  %v4823_v61 = vrot.slane %v4822_v6, 2  ;;  %v4777_v57 = vmax.f32 %v4659_v42, 0.0  ;;  %13843 = vst [vmem:[#allocation111_spill] sm:$0xff] %v12394_v24  ;;  %v12399_v53 = vpop.f32.mrb[145].mxu1 }
 0x377   : > { %v7815_v31 = vsel %vm7663_vm15, %v4099_v44, %v7814_v35  ;;  %v4775_v16 = vmax.f32 %v4651_v15, 0.0  ;;  %v4146_v50 = vmax.f32 %v4144_v8, %v4145_v22  ;;  %v4780_v20 = vmax.f32 %v4672_v29, 0.0  ;;  %13844 = vst [vmem:[#allocation70_spill] sm:$0xff] %v12399_v53  ;;  %v13845_v22 = vld [vmem:[#allocation12_spill] sm:$0xff] }
 0x378   : > { %v7816_v60 = vsel %vm7665_vm0, %v4106_v2, %v7815_v31  ;;  %v4806_v5 = vsel %vm3938_vm11, %v4774_v39, -inf  ;;  %v4140_v9 = vrot.slane %v4139_v3, 1  ;;  %v4827_v45 = vsel %vm3938_vm11, %v4777_v57, -inf }
 0x379   : > { %7828 = vrot.lane.b32.xlu1 %v7816_v60, %s9803_s26  ;;  %v4807_v18 = vrot.slane %v4806_v5, 4  ;;  %v4813_v46 = vsel %vm3938_vm11, %v4775_v16, -inf  ;;  %v4828_v44 = vrot.slane %v4827_v45, 4  ;;  %v4848_v8 = vsel %vm3938_vm11, %v4780_v20, -inf }
 0x37a   : > { %v4814_v34 = vrot.slane %v4813_v46, 4  ;;  %v4664_v23 = vadd.f32 %v12347_v63, %v13845_v22  ;;  %v4127_v58 = vmax.f32 %v4125_v17, %v4126_v49  ;;  %v4824_v4 = vmax.f32 %v4822_v6, %v4823_v61  ;;  %v13846_v6 = vld [vmem:[#allocation22_spill] sm:$0xff] }
 0x37b   : > { %v4808_v42 = vmax.f32 %v4806_v5, %v4807_v18  ;;  %v4849_v15 = vrot.slane %v4848_v8, 4  ;;  %v4134_v2 = vmax.f32 %v4132_v14, %v4133_v52  ;;  %v4147_v35 = vrot.slane %v4146_v50, 1  ;;  %v12410_v5 = vpop.permute.xlu1 %7396  ;;  %v13849_v18 = vld [vmem:[#allocation32_spill] sm:$0xff] }
 0x37c   : > { %v4815_v39 = vmax.f32 %v4813_v46, %v4814_v34  ;;  %v4778_v29 = vmax.f32 %v4664_v23, 0.0  ;;  %v12404_v31 = vmax.f32 %v4153_v26, %v4154_v37  ;;  %v4161_v57 = vrot.slane %v12376_v55, 1  ;;  %13847 = vst [vmem:[#allocation71_spill] sm:$0xff] %v12410_v5  ;;  %v13848_v26 = vld [vmem:[#allocation10_spill] sm:$0xff] }
 0x37d   : > { %v4809_v16 = vrot.slane %v4808_v42, 2  ;;  %v4829_v60 = vmax.f32 %v4827_v45, %v4828_v44  ;;  %v4141_v53 = vmax.f32 %v4139_v3, %v4140_v9  ;;  %v4850_v20 = vmax.f32 %v4848_v8, %v4849_v15  ;;  %v12417_v15 = vpop.f32.mrb[146].mxu1 }
 0x37e   : > { %v4816_v24 = vrot.slane %v4815_v39, 2  ;;  %v4834_v38 = vsel %vm3938_vm11, %v4778_v29, -inf  ;;  %v4825_v22 = vrot.slane %v4824_v4, 1  ;;  %v4675_v14 = vadd.f32 %v13846_v6, %v12347_v63  ;;  %13850 = vst [vmem:[#allocation72_spill] sm:$0xff] %v12417_v15 }
 0x37f   : > { %v4810_v17 = vmax.f32 %v4808_v42, %v4809_v16  ;;  %v4835_v49 = vrot.slane %v4834_v38, 4  ;;  %v4148_v52 = vmax.f32 %v4146_v50, %v4147_v35  ;;  %v4667_v37 = vadd.f32 %v12347_v63, %v13848_v26 }
 0x380   : > { %v4817_v61 = vmax.f32 %v4815_v39, %v4816_v24  ;;  %v4688_v3 = vadd.f32 %v13849_v18, %v12347_v63  ;;  %v4830_v45 = vrot.slane %v4829_v60, 2  ;;  %v7415_v46 = vrot.slane %v12410_v5, 5 }
 0x381   : > { %v4811_v9 = vrot.slane %v4810_v17, 1  ;;  %v4781_v44 = vmax.f32 %v4675_v14, 0.0  ;;  %v4851_v8 = vrot.slane %v4850_v20, 2  ;;  %v4779_v23 = vmax.f32 %v4667_v37, 0.0  ;;  %v12424_v14 = vpop.f32.mrb[147].mxu1  ;;  %v13855_v37 = vld [vmem:[#allocation39_spill] sm:$0xff] }
 0x382   : > { %v4818_v34 = vrot.slane %v4817_v61, 1  ;;  %v4784_v42 = vmax.f32 %v4688_v3, 0.0  ;;  %v12419_v50 = vmax.f32 %v4824_v4, %v4825_v22  ;;  %v4836_v24 = vmax.f32 %v4834_v38, %v4835_v49  ;;  %v9764_v22 = vld [vmem:[%s10661_s29 + $0x40] sm:$0xf] }
 0x383   : > { %v4855_v39 = vsel %vm3938_vm11, %v4781_v44, -inf  ;;  %v4812_v29 = vmax.f32 %v4810_v17, %v4811_v9  ;;  %v4841_v26 = vsel %vm3938_vm11, %v4779_v23, -inf  ;;  %v4831_v18 = vmax.f32 %v4829_v60, %v4830_v45  ;;  %v12438_v45 = vpop.f32.mrb[148].mxu1 }
 0x384   : > { %v4819_v16 = vmax.f32 %v4817_v61, %v4818_v34  ;;  %v4856_v6 = vrot.slane %v4855_v39, 4  ;;  %v4842_v3 = vrot.slane %v4841_v26, 4  ;;  %v4876_v15 = vsel %vm3938_vm11, %v4784_v42, -inf  ;;  %v13852_v34 = vld [vmem:[#allocation23_spill] sm:$0xff] }
 0x385   : > { %v4852_v38 = vmax.f32 %v4850_v20, %v4851_v8  ;;  %v12432_v49 = vmul.f32 %v9764_v22, %v7415_v46  ;;  %v4877_v17 = vrot.slane %v4876_v15, 4  ;;  %v4837_v61 = vrot.slane %v4836_v24, 2  ;;  %v13853_v20 = vld [vmem:[#allocation35_spill] sm:$0xff]  ;;  %v12443_v46 = vpop.f32.mrb[149].mxu1 }
 0x386   : > { %v12429_v4 = vsel %vm7653_vm9, %v4819_v16, %v4812_v29  ;;  %v4843_v9 = vmax.f32 %v4841_v26, %v4842_v3  ;;  %v7818_v44 = vsel %vm7655_vm10, %v4127_v58, %v12366_v1  ;;  %v4680_v60 = vadd.f32 %v12347_v63, %v13852_v34  ;;  %v12446_v1 = vpop.f32.mrb[150].mxu1 }
 0x387   : > { %13851 = vst [vmem:[#allocation73_spill] sm:$0xff] %v12432_v49  ;;  %v4857_v23 = vmax.f32 %v4855_v39, %v4856_v6  ;;  %v4878_v42 = vmax.f32 %v4876_v15, %v4877_v17  ;;  %v7819_v29 = vsel %vm7657_vm12, %v4134_v2, %v7818_v44  ;;  %v4691_v8 = vadd.f32 %v13853_v20, %v12347_v63  ;;  %v12450_v6 = vpop.f32.mrb[151].mxu1  ;;  %v13854_v20 = vld [vmem:[#allocation38_spill] sm:$0xff]  ;;  %v13861_v49 = vld [vmem:[#allocation44_spill] sm:$0xff] }
 0x388   : > { %v4832_v16 = vrot.slane %v4831_v18, 1  ;;  %v4844_v22 = vrot.slane %v4843_v9, 2  ;;  %v7820_v26 = vsel %vm7659_vm13, %v4141_v53, %v7819_v29  ;;  %v4782_v3 = vmax.f32 %v4680_v60, 0.0  ;;  %v12458_v60 = vpop.f32.mrb[152].mxu1 }
 0x389   : > { %v4879_v58 = vrot.slane %v4878_v42, 2  ;;  %v4162_v34 = vmax.f32 %v12376_v55, %v4161_v57  ;;  %v7821_v39 = vsel %vm7661_vm14, %v4148_v52, %v7820_v26  ;;  %v4785_v15 = vmax.f32 %v4691_v8, 0.0  ;;  %13856 = vst [vmem:[#allocation74_spill] sm:$0xff] %v12458_v60  ;;  %v12467_v26 = vpop.f32.mrb[153].mxu1  ;;  %v13870_v60 = vld [vmem:[#allocation36_spill] sm:$0xff] }
 0x38a   : > { %v4838_v2 = vmax.f32 %v4836_v24, %v4837_v61  ;;  %v7822_v17 = vsel %vm7663_vm15, %v12404_v31, %v7821_v39  ;;  %v4862_v44 = vsel %vm3938_vm11, %v4782_v3, -inf  ;;  %v7658_v53 = vsel %vm7657_vm12, %v13855_v37, %v13854_v20  ;;  %v13857_v61 = vld [vmem:[#allocation43_spill] sm:$0xff]  ;;  %13858 = vst [vmem:[#allocation76_spill] sm:$0xff] %v12467_v26  ;;  %v13859_v20 = vld [vmem:[#allocation45_spill] sm:$0xff] }
 0x38b   : > { %v4853_v29 = vrot.slane %v4852_v38, 1  ;;  %v4858_v35 = vrot.slane %v4857_v23, 2  ;;  %v7823_v55 = vsel %vm7665_vm0, %v4162_v34, %v7822_v17  ;;  %v4863_v57 = vrot.slane %v4862_v44, 4 }
 0x38c   : > { %v4845_v52 = vmax.f32 %v4843_v9, %v4844_v22  ;;  %7830 = vrot.lane.b32.xlu0 %v7823_v55, %s9803_s26  ;;  %v4883_v24 = vsel %vm3938_vm11, %v4785_v15, -inf  ;;  %v7660_v31 = vsel %vm7659_vm13, %v13857_v61, %v7658_v53  ;;  %v4683_v8 = vadd.f32 %v12347_v63, %v12042_v47  ;;  %v13860_v22 = vld [vmem:[#allocation41_spill] sm:$0xff] }
 0x38d   : > { %v4880_v37 = vmax.f32 %v4878_v42, %v4879_v58  ;;  %v4864_v3 = vmax.f32 %v4862_v44, %v4863_v57  ;;  %v4884_v39 = vrot.slane %v4883_v24, 4  ;;  %v7662_v34 = vsel %vm7661_vm14, %v13859_v20, %v7660_v31 }
 0x38e   : > { %v4839_v9 = vrot.slane %v4838_v2, 1  ;;  %v7664_v17 = vsel %vm7663_vm15, %v13860_v22, %v7662_v34  ;;  %v4783_v15 = vmax.f32 %v4683_v8, 0.0  ;;  %v4704_v53 = vadd.f32 %v12073_v40, %v12347_v63  ;;  %v9765_v8 = vld [vmem:[%s10661_s29 + $0x44] sm:$0xf] }
 0x38f   : > { %v12475_v55 = vmax.f32 %v4857_v23, %v4858_v35  ;;  %v4865_v47 = vrot.slane %v4864_v3, 2  ;;  %v4885_v61 = vmax.f32 %v4883_v24, %v4884_v39  ;;  %v12479_v42 = vsel %vm7665_vm0, %v13861_v49, %v7664_v17 }
 0x390   : > { %13862 = vst [vmem:[#allocation80_spill] sm:$0xff] %v12479_v42  ;;  %v4846_v58 = vrot.slane %v4845_v52, 1  ;;  %v4869_v44 = vsel %vm3938_vm11, %v4783_v15, -inf  ;;  %v4788_v57 = vmax.f32 %v4704_v53, 0.0  ;;  %v4696_v31 = vadd.f32 %v12347_v63, %v12079_v33 }
 0x391   : > { %v4833_v20 = vmax.f32 %v4831_v18, %v4832_v16  ;;  %v13863_v34 = vrot.slane %v12410_v5, 6  ;;  %v4881_v35 = vrot.slane %v4880_v37, 1  ;;  %v4870_v23 = vrot.slane %v4869_v44, 4  ;;  %v12492_v16 = vpop.permute.xlu0 %7399 }
 0x392   : > { %v4854_v24 = vmax.f32 %v4852_v38, %v4853_v29  ;;  %v4840_v39 = vmax.f32 %v4838_v2, %v4839_v9  ;;  %v4904_v49 = vsel %vm3938_vm11, %v4788_v57, -inf  ;;  %v4786_v22 = vmax.f32 %v4696_v31, 0.0  ;;  %13865 = vst [vmem:[#allocation83_spill] sm:$0xff] %v12492_v16 }
 0x393   : > { %v12487_v40 = vmul.f32 %v9765_v8, %v13863_v34  ;;  %v4866_v17 = vmax.f32 %v4864_v3, %v4865_v47  ;;  %v4886_v42 = vrot.slane %v4885_v61, 2  ;;  %v4871_v15 = vmax.f32 %v4869_v44, %v4870_v23  ;;  %v12496_v34 = vpop.f32.mrb[154].mxu1  ;;  %v13867_v44 = vld [vmem:[#allocation27_spill] sm:$0xff] }
 0x394   : > { %v4905_v53 = vrot.slane %v4904_v49, 4  ;;  %v4860_v26 = vrot.slane %v12475_v55, 1  ;;  %v4847_v33 = vmax.f32 %v4845_v52, %v4846_v58  ;;  %v4890_v18 = vsel %vm3938_vm11, %v4786_v22, -inf  ;;  %13866 = vst [vmem:[#allocation84_spill] sm:$0xff] %v12496_v34  ;;  %v13868_v58 = vld [vmem:[#allocation37_spill] sm:$0xff]  ;;  %v12505_v31 = vpop.f32.mrb[155].mxu1 }
 0x395   : > { %13864 = vst [vmem:[#allocation82_spill] sm:$0xff] %v12487_v40  ;;  %v4707_v8 = vadd.f32 %v12088_v41, %v12347_v63  ;;  %v12498_v38 = vmax.f32 %v4880_v37, %v4881_v35  ;;  %v4872_v2 = vrot.slane %v4871_v15, 2  ;;  %v7422_v3 = vrot.slane %v12492_v16, 5  ;;  %13869 = vst [vmem:[#allocation85_spill] sm:$0xff] %v12505_v31 }
 0x396   : > { %v4906_v29 = vmax.f32 %v4904_v49, %v4905_v53  ;;  %v4891_v9 = vrot.slane %v4890_v18, 4  ;;  %v4699_v52 = vadd.f32 %v12347_v63, %v13867_v44  ;;  %v4720_v57 = vadd.f32 %v13868_v58, %v12347_v63 }
 0x397   : > { %v4789_v47 = vmax.f32 %v4707_v8, 0.0  ;;  %v4867_v23 = vrot.slane %v4866_v17, 1  ;;  %v4887_v41 = vmax.f32 %v4885_v61, %v4886_v42  ;;  %v4873_v22 = vmax.f32 %v4871_v15, %v4872_v2 }
 0x398   : > { %v7423_v37 = vrot.slane %v12492_v16, 6  ;;  %v4892_v35 = vmax.f32 %v4890_v18, %v4891_v9  ;;  %v4787_v53 = vmax.f32 %v4699_v52, 0.0  ;;  %v4792_v40 = vmax.f32 %v4720_v57, 0.0 }
 0x399   : > { %v4911_v49 = vsel %vm3938_vm11, %v4789_v47, -inf  ;;  %v4874_v5 = vrot.slane %v4873_v22, 1  ;;  %v4907_v8 = vrot.slane %v4906_v29, 2  ;;  %v7869_v44 = vsel %vm7655_vm10, %v12419_v50, %v12429_v4 }
 0x39a   : > { %v4912_v34 = vrot.slane %v4911_v49, 4  ;;  %v4893_v58 = vrot.slane %v4892_v35, 2  ;;  %v4897_v61 = vsel %vm3938_vm11, %v4787_v53, -inf  ;;  %v7870_v42 = vsel %vm7657_vm12, %v4833_v20, %v7869_v44  ;;  %v9766_v20 = vld [vmem:[%s10661_s29 + $0x60] sm:$0xf]  ;;  %v13873_v44 = vld [vmem:[#allocation107_spill] sm:$0xff] }
 0x39b   : > { %v4868_v15 = vmax.f32 %v4866_v17, %v4867_v23  ;;  %v4875_v18 = vmax.f32 %v4873_v22, %v4874_v5  ;;  %v4898_v2 = vrot.slane %v4897_v61, 4  ;;  %v4932_v9 = vsel %vm3938_vm11, %v4792_v40, -inf  ;;  %v9767_v22 = vld [vmem:[%s10661_s29 + $0x64] sm:$0xf] }
 0x39c   : > { %v4888_v47 = vrot.slane %v4887_v41, 1  ;;  %v4913_v52 = vmax.f32 %v4911_v49, %v4912_v34  ;;  %v7871_v57 = vsel %vm7659_vm13, %v4840_v39, %v7870_v42  ;;  %v4712_v50 = vadd.f32 %v12347_v63, %v13870_v60  ;;  %v13875_v42 = vld [vmem:[#allocation46_spill] sm:$0xff] }
 0x39d   : > { %v12520_v4 = vsel %vm7653_vm9, %v4875_v18, %v4868_v15  ;;  %v12522_v31 = vmax.f32 %v4906_v29, %v4907_v8  ;;  %v4894_v53 = vmax.f32 %v4892_v35, %v4893_v58  ;;  %v12525_v17 = vmul.f32 %v9766_v20, %v7422_v3  ;;  %v13877_v20 = vld [vmem:[#allocation49_spill] sm:$0xff] }
 0x39e   : > { %v4933_v5 = vrot.slane %v4932_v9, 4  ;;  %v4861_v23 = vmax.f32 %v12475_v55, %v4860_v26  ;;  %v7872_v40 = vsel %vm7661_vm14, %v4847_v33, %v7871_v57  ;;  %v4790_v34 = vmax.f32 %v4712_v50, 0.0  ;;  %v12586_v26 = vpop.permute.xlu1 %8140 }
 0x39f   : > { %13871 = vst [vmem:[#allocation87_spill] sm:$0xff] %v12525_v17  ;;  %v12530_v39 = vmul.f32 %v9767_v22, %v7423_v37  ;;  %v4899_v49 = vmax.f32 %v4897_v61, %v4898_v2  ;;  %v7873_v60 = vsel %vm7663_vm15, %v4854_v24, %v7872_v40  ;;  %v4723_v29 = vadd.f32 %v13873_v44, %v12347_v63  ;;  %v13874_v24 = vld [vmem:[#allocation42_spill] sm:$0xff] }
 0x3a0   : > { %v12535_v8 = vmax.f32 %v4887_v41, %v4888_v47  ;;  %v4914_v35 = vrot.slane %v4913_v52, 2  ;;  %v7874_v3 = vsel %vm7665_vm0, %v4861_v23, %v7873_v60  ;;  %v4918_v58 = vsel %vm3938_vm11, %v4790_v34, -inf  ;;  %v13876_v41 = vld [vmem:[#allocation112_spill] sm:$0xff]  ;;  %13883 = vst [vmem:[#allocation94_spill] sm:$0xff] %v12586_v26 }
 0x3a1   : > { %13872 = vst [vmem:[#allocation88_spill] sm:$0xff] %v12530_v39  ;;  %v4895_v55 = vrot.slane %v4894_v53, 1  ;;  %7896 = vrot.lane.b32.xlu1 %v7874_v3, %s9804_s24  ;;  %v4919_v33 = vrot.slane %v4918_v58, 4  ;;  %v4793_v37 = vmax.f32 %v4723_v29, 0.0  ;;  %v4934_v61 = vmax.f32 %v4932_v9, %v4933_v5  ;;  %v13878_v5 = vld [vmem:[#allocation51_spill] sm:$0xff]  ;;  %v13879_v29 = vld [vmem:[#allocation48_spill] sm:$0xff] }
 0x3a2   : > { %v7669_v15 = vsel %vm7657_vm12, %v13875_v42, %v13874_v24  ;;  %v4715_v18 = vadd.f32 %v12347_v63, %v13876_v41  ;;  %v4736_v2 = vadd.f32 %v12147_v12, %v12347_v63  ;;  %v4900_v47 = vrot.slane %v4899_v49, 2 }
 0x3a3   : > { %v4920_v57 = vmax.f32 %v4918_v58, %v4919_v33  ;;  %v4939_v50 = vsel %vm3938_vm11, %v4793_v37, -inf  ;;  %v7670_v23 = vsel %vm7659_vm13, %v13877_v20, %v7669_v15  ;;  %v12551_v40 = vmax.f32 %v4913_v52, %v4914_v35  ;;  %v13880_v37 = vld [vmem:[#allocation50_spill] sm:$0xff] }
 0x3a4   : > { %v4940_v9 = vrot.slane %v4939_v50, 4  ;;  %v7671_v34 = vsel %vm7661_vm14, %v13878_v5, %v7670_v23  ;;  %v4791_v22 = vmax.f32 %v4715_v18, 0.0  ;;  %v12555_v60 = vmax.f32 %v4894_v53, %v4895_v55 }
 0x3a5   : > { %v4921_v44 = vrot.slane %v4920_v57, 2  ;;  %v7672_v12 = vsel %vm7663_vm15, %v13879_v29, %v7671_v34  ;;  %v4796_v3 = vmax.f32 %v4736_v2, 0.0  ;;  %v4935_v58 = vrot.slane %v4934_v61, 2 }
 0x3a6   : > { %v4941_v33 = vmax.f32 %v4939_v50, %v4940_v9  ;;  %v12561_v24 = vsel %vm7665_vm0, %v13880_v37, %v7672_v12  ;;  %v4925_v52 = vsel %vm3938_vm11, %v4791_v22, -inf  ;;  %v4901_v35 = vmax.f32 %v4899_v49, %v4900_v47 }
 0x3a7   : > { %13881 = vst [vmem:[#allocation90_spill] sm:$0xff] %v12561_v24  ;;  %v4922_v42 = vmax.f32 %v4920_v57, %v4921_v44  ;;  %v4926_v15 = vrot.slane %v4925_v52, 4  ;;  %v4960_v41 = vsel %vm3938_vm11, %v4796_v3, -inf  ;;  %v4728_v18 = vadd.f32 %v12347_v63, %v12156_v27 }
 0x3a8   : > { %v4942_v53 = vrot.slane %v4941_v33, 2  ;;  %v4961_v55 = vrot.slane %v4960_v41, 4  ;;  %v4739_v2 = vadd.f32 %v12168_v10, %v12347_v63  ;;  %v4916_v50 = vrot.slane %v12551_v40, 1  ;;  %v12574_v34 = vpop.f32.mrb[156].mxu1 }
 0x3a9   : > { %v4927_v20 = vmax.f32 %v4925_v52, %v4926_v15  ;;  %v4731_v23 = vadd.f32 %v12347_v63, %v12173_v32  ;;  %v4752_v49 = vadd.f32 %v12176_v54, %v12347_v63  ;;  %v4936_v47 = vmax.f32 %v4934_v61, %v4935_v58  ;;  %v12576_v10 = vpop.f32.mrb[157].mxu1 }
 0x3aa   : > { %v4962_v57 = vmax.f32 %v4960_v41, %v4961_v55  ;;  %v4794_v9 = vmax.f32 %v4728_v18, 0.0  ;;  %v4797_v5 = vmax.f32 %v4739_v2, 0.0  ;;  %v4902_v22 = vrot.slane %v4901_v35, 1  ;;  %v12580_v52 = vpop.f32.mrb[158].mxu1 }
 0x3ab   : > { %v4928_v27 = vrot.slane %v4927_v20, 2  ;;  %v4795_v44 = vmax.f32 %v4731_v23, 0.0  ;;  %v4800_v29 = vmax.f32 %v4752_v49, 0.0  ;;  %v4923_v12 = vrot.slane %v4922_v42, 1  ;;  %v12583_v41 = vpop.f32.mrb[159].mxu1 }
 0x3ac   : > { %v4943_v3 = vmax.f32 %v4941_v33, %v4942_v53  ;;  %v4946_v37 = vsel %vm3938_vm11, %v4794_v9, -inf  ;;  %v4967_v32 = vsel %vm3938_vm11, %v4797_v5, -inf  ;;  %13882 = vst [vmem:[#allocation92_spill] sm:$0xff] %v12583_v41  ;;  %v4937_v55 = vrot.slane %v4936_v47, 1 }
 0x3ad   : > { %v4929_v54 = vmax.f32 %v4927_v20, %v4928_v27  ;;  %v4947_v61 = vrot.slane %v4946_v37, 4  ;;  %v4968_v58 = vrot.slane %v4967_v32, 4  ;;  %v4953_v15 = vsel %vm3938_vm11, %v4795_v44, -inf }
 0x3ae   : > { %v4963_v18 = vrot.slane %v4962_v57, 2  ;;  %v4954_v2 = vrot.slane %v4953_v15, 4  ;;  %v4988_v23 = vsel %vm3938_vm11, %v4800_v29, -inf  ;;  %v4903_v5 = vmax.f32 %v4901_v35, %v4902_v22  ;;  %v13885_v35 = vld [vmem:[#allocation114_spill] sm:$0xff] }
 0x3af   : > { %v4930_v49 = vrot.slane %v4929_v54, 1  ;;  %v4948_v33 = vmax.f32 %v4946_v37, %v4947_v61  ;;  %v4969_v53 = vmax.f32 %v4967_v32, %v4968_v58  ;;  %v4989_v9 = vrot.slane %v4988_v23, 4 }
 0x3b0   : > { %v4924_v24 = vmax.f32 %v4922_v42, %v4923_v12  ;;  %v4955_v20 = vmax.f32 %v4953_v15, %v4954_v2  ;;  %v7876_v27 = vsel %vm7655_vm10, %v12498_v38, %v12520_v4  ;;  %v4944_v44 = vrot.slane %v4943_v3, 1  ;;  %v12600_v22 = vpop.f32.mrb[160].mxu1 }
 0x3b1   : > { %v4931_v39 = vmax.f32 %v4929_v54, %v4930_v49  ;;  %v4949_v17 = vrot.slane %v4948_v33, 2  ;;  %v4970_v16 = vrot.slane %v4969_v53, 2  ;;  %v13884_v41 = vrot.slane %v12522_v31, 1  ;;  %v12607_v61 = vpop.f32.mrb[161].mxu1 }
 0x3b2   : > { %v12594_v37 = vmax.f32 %v4962_v57, %v4963_v18  ;;  %v7877_v32 = vsel %vm7657_vm12, %v12535_v8, %v7876_v27  ;;  %v4744_v42 = vadd.f32 %v12347_v63, %v13885_v35  ;;  %v12602_v12 = vmax.f32 %v4936_v47, %v4937_v55  ;;  %v12613_v15 = vpop.f32.mrb[162].mxu1 }
 0x3b3   : > { %v4910_v29 = vmax.f32 %v12522_v31, %v13884_v41  ;;  %v12605_v38 = vsel %vm7653_vm9, %v4931_v39, %v4924_v24  ;;  %v4956_v4 = vrot.slane %v4955_v20, 2  ;;  %v4990_v54 = vmax.f32 %v4988_v23, %v4989_v9  ;;  %v12621_v55 = vpop.f32.mrb[163].mxu1 }
 0x3b4   : > { %v4950_v31 = vmax.f32 %v4948_v33, %v4949_v17  ;;  %v7878_v57 = vsel %vm7659_vm13, %v12555_v60, %v7877_v32  ;;  %v4798_v58 = vmax.f32 %v4744_v42, 0.0  ;;  %v4755_v8 = vadd.f32 %v12199_v62, %v12347_v63  ;;  %v12623_v17 = vpop.permute.xlu1 %7752  ;;  %v13887_v33 = vld [vmem:[#allocation47_spill] sm:$0xff]  ;;  %v13890_v42 = vld [vmem:[#allocation60_spill] sm:$0xff]  ;;  %v12672_v60 = vpop.permute.xlu0 %8142 }
 0x3b5   : > { %v12615_v41 = vmax.f32 %v4943_v3, %v4944_v44  ;;  %v12617_v47 = vmax.f32 %v4969_v53, %v4970_v16  ;;  %v4917_v39 = vmax.f32 %v12551_v40, %v4916_v50  ;;  %v7879_v24 = vsel %vm7661_vm14, %v4903_v5, %v7878_v57  ;;  %13886 = vst [vmem:[#allocation97_spill] sm:$0xff] %v12623_v17  ;;  %v13888_v53 = vld [vmem:[#allocation52_spill] sm:$0xff] }
 0x3b6   : > { %v7880_v18 = vsel %vm7663_vm15, %v4910_v29, %v7879_v24  ;;  %v4974_v62 = vsel %vm3938_vm11, %v4798_v58, -inf  ;;  %v4801_v2 = vmax.f32 %v4755_v8, 0.0  ;;  %v12628_v23 = vmax.f32 %v4955_v20, %v4956_v4  ;;  %v13889_v29 = vld [vmem:[#allocation58_spill] sm:$0xff]  ;;  %v13891_v24 = vld [vmem:[#allocation57_spill] sm:$0xff]  ;;  %13893 = vst [vmem:[#allocation99_spill] sm:$0xff] %v12672_v60 }
 0x3b7   : > { %v4991_v3 = vrot.slane %v4990_v54, 2  ;;  %v7881_v16 = vsel %vm7665_vm0, %v4917_v39, %v7880_v18  ;;  %v4975_v49 = vrot.slane %v4974_v62, 4  ;;  %v4951_v40 = vrot.slane %v4950_v31, 1 }
 0x3b8   : > { %7898 = vrot.lane.b32.xlu0 %v7881_v16, %s9804_s24  ;;  %v4995_v50 = vsel %vm3938_vm11, %v4801_v2, -inf  ;;  %v7676_v9 = vsel %vm7657_vm12, %v13888_v53, %v13887_v33  ;;  %v4747_v5 = vadd.f32 %v12347_v63, %v12206_v0  ;;  %v7757_v35 = vpop.permute.xlu1 %7756  ;;  %v4768_v58 = vadd.f32 %v12226_v43, %v12347_v63  ;;  %v13892_v2 = vld [vmem:[#allocation59_spill] sm:$0xff] }
 0x3b9   : > { %v4976_v20 = vmax.f32 %v4974_v62, %v4975_v49  ;;  %v4996_v44 = vrot.slane %v4995_v50, 4  ;;  %v7677_v32 = vsel %vm7659_vm13, %v13889_v29, %v7676_v9  ;;  %v4760_v8 = vadd.f32 %v12347_v63, %v12234_v11 }
 0x3ba   : > { %v7678_v4 = vsel %vm7661_vm14, %v13890_v42, %v7677_v32  ;;  %v4799_v57 = vmax.f32 %v4747_v5, 0.0  ;;  %v4771_v62 = vadd.f32 %v12244_v51, %v12347_v63  ;;  %v4804_v33 = vmax.f32 %v4768_v58, 0.0 }
 0x3bb   : > { %v4977_v39 = vrot.slane %v4976_v20, 2  ;;  %v4997_v0 = vmax.f32 %v4995_v50, %v4996_v44  ;;  %v7679_v18 = vsel %vm7663_vm15, %v13891_v24, %v7678_v4  ;;  %v4802_v53 = vmax.f32 %v4760_v8, 0.0  ;;  %v12660_v50 = vld [vmem:[%s13505_s16] ss:$0 sm:$0xff] }
 0x3bc   : > { %v7680_v16 = vsel %vm7665_vm0, %v13892_v2, %v7679_v18  ;;  %v4981_v49 = vsel %vm3938_vm11, %v4799_v57, -inf  ;;  %v4992_v9 = vmax.f32 %v4990_v54, %v4991_v3  ;;  %v5016_v51 = vsel %vm3938_vm11, %v4804_v33, -inf }
 0x3bd   : > { %v4998_v43 = vrot.slane %v4997_v0, 2  ;;  %v12655_v5 = vsel %vm1964_vm7, %v7680_v16, %v7757_v35  ;;  %v4982_v11 = vrot.slane %v4981_v49, 4  ;;  %v5002_v44 = vsel %vm3938_vm11, %v4802_v53, -inf }
 0x3be   : > { %v4805_v29 = vmax.f32 %v4771_v62, 0.0  ;;  %v4763_v32 = vadd.f32 %v12347_v63, %v12251_v48  ;;  %v4958_v54 = vrot.slane %v12628_v23, 1  ;;  %v4978_v3 = vmax.f32 %v4976_v20, %v4977_v39 }
 0x3bf   : > { %v4983_v42 = vmax.f32 %v4981_v49, %v4982_v11  ;;  %v5017_v35 = vrot.slane %v5016_v51, 4  ;;  %v5003_v4 = vrot.slane %v5002_v44, 4  ;;  %v5531_v8 = vadd.f32 %v12256_v56, %v12660_v50 }
 0x3c0   : > { %v5023_v57 = vsel %vm3938_vm11, %v4805_v29, -inf  ;;  %v4803_v58 = vmax.f32 %v4763_v32, 0.0  ;;  %v4952_v24 = vmax.f32 %v4950_v31, %v4951_v40  ;;  %v4999_v18 = vmax.f32 %v4997_v0, %v4998_v43 }
 0x3c1   : > { %v4984_v2 = vrot.slane %v4983_v42, 2  ;;  %v5018_v16 = vmax.f32 %v5016_v51, %v5017_v35  ;;  %v5004_v62 = vmax.f32 %v5002_v44, %v5003_v4  ;;  %v5024_v33 = vrot.slane %v5023_v57, 4 }
 0x3c2   : > { %v5009_v48 = vsel %vm3938_vm11, %v4803_v58, -inf  ;;  %v5651_v63 = vmax.f32 %v5531_v8, 0.0  ;;  %v4979_v53 = vrot.slane %v4978_v3, 1  ;;  %v4993_v11 = vrot.slane %v4992_v9, 1 }
 0x3c3   : > { %v4985_v20 = vmax.f32 %v4983_v42, %v4984_v2  ;;  %v5019_v39 = vrot.slane %v5018_v16, 2  ;;  %v5010_v49 = vrot.slane %v5009_v48, 4  ;;  %v5005_v27 = vrot.slane %v5004_v62, 2 }
 0x3c4   : > { %v5025_v29 = vmax.f32 %v5023_v57, %v5024_v33  ;;  %v5695_v32 = vsel %vm3938_vm11, %v5651_v63, -inf  ;;  %v5000_v56 = vrot.slane %v4999_v18, 1  ;;  %v4959_v43 = vmax.f32 %v12628_v23, %v4958_v54 }
 0x3c5   : > { %v4986_v31 = vrot.slane %v4985_v20, 1  ;;  %v5011_v40 = vmax.f32 %v5009_v48, %v5010_v49  ;;  %v5696_v0 = vrot.slane %v5695_v32, 4  ;;  %v12675_v51 = vmax.f32 %v5018_v16, %v5019_v39  ;;  %v12700_v48 = vpop.permute.xlu0 %7754  ;;  %v13897_v49 = vld [vmem:[#allocation56_spill] sm:$0xff] }
 0x3c6   : > { %v7883_v44 = vsel %vm7655_vm10, %v12602_v12, %v12605_v38  ;;  %v5523_v42 = vadd.f32 %v12660_v50, %v12263_v7  ;;  %v4980_v35 = vmax.f32 %v4978_v3, %v4979_v53  ;;  %v5006_v57 = vmax.f32 %v5004_v62, %v5005_v27  ;;  %13896 = vst [vmem:[#allocation98_spill] sm:$0xff] %v12700_v48 }
 0x3c7   : > { %v4987_v4 = vmax.f32 %v4985_v20, %v4986_v31  ;;  %v5026_v58 = vrot.slane %v5025_v29, 2  ;;  %v13894_v8 = vrot.slane %v12594_v37, 1  ;;  %v12685_v33 = vmax.f32 %v4992_v9, %v4993_v11  ;;  %v13898_v11 = vld [vmem:[#allocation61_spill] sm:$0xff] }
 0x3c8   : > { %v7884_v23 = vsel %vm7657_vm12, %v12615_v41, %v7883_v44  ;;  %v5649_v54 = vmax.f32 %v5523_v42, 0.0  ;;  %v12689_v16 = vmax.f32 %v4999_v18, %v5000_v56  ;;  %v5012_v7 = vrot.slane %v5011_v40, 2 }
 0x3c9   : > { %v4966_v2 = vmax.f32 %v12594_v37, %v13894_v8  ;;  %v12692_v12 = vsel %vm7653_vm9, %v4987_v4, %v4980_v35  ;;  %v5697_v38 = vmax.f32 %v5695_v32, %v5696_v0  ;;  %v5021_v27 = vrot.slane %v12675_v51, 1  ;;  %v13901_v8 = vld [vmem:[#allocation65_spill] sm:$0xff] }
 0x3ca   : > { %v13895_v3 = vrot.slane %v12617_v47, 1  ;;  %v7885_v37 = vsel %vm7659_vm13, %v4952_v24, %v7884_v23  ;;  %v5681_v9 = vsel %vm3938_vm11, %v5649_v54, -inf  ;;  %v5007_v41 = vrot.slane %v5006_v57, 1  ;;  %v13902_v54 = vld [vmem:[#allocation75_spill] sm:$0xff] }
 0x3cb   : > { %v12702_v18 = vmax.f32 %v5025_v29, %v5026_v58  ;;  %v7886_v63 = vsel %vm7661_vm14, %v4959_v43, %v7885_v37  ;;  %v5682_v53 = vrot.slane %v5681_v9, 4  ;;  %v5534_v39 = vadd.f32 %v12277_v30, %v12660_v50  ;;  %v13899_v43 = vld [vmem:[#allocation77_spill] sm:$0xff]  ;;  %v7759_v58 = vpop.permute.xlu0 %7758  ;;  %v13903_v37 = vld [vmem:[#allocation78_spill] sm:$0xff] }
 0x3cc   : > { %v4973_v62 = vmax.f32 %v12617_v47, %v13895_v3  ;;  %v7887_v20 = vsel %vm7663_vm15, %v4966_v2, %v7886_v63  ;;  %v7683_v47 = vsel %vm7657_vm12, %v13898_v11, %v13897_v49  ;;  %v5526_v24 = vadd.f32 %v12660_v50, %v12290_v59  ;;  %v13900_v59 = vld [vmem:[#allocation79_spill] sm:$0xff] }
 0x3cd   : > { %v5013_v32 = vmax.f32 %v5011_v40, %v5012_v7  ;;  %v5698_v56 = vrot.slane %v5697_v38, 2  ;;  %v5683_v31 = vmax.f32 %v5681_v9, %v5682_v53  ;;  %v5652_v0 = vmax.f32 %v5534_v39, 0.0  ;;  %v13904_v39 = vld [vmem:[#allocation66_spill] sm:$0xff] }
 0x3ce   : > { %v7888_v29 = vsel %vm7665_vm0, %v4973_v62, %v7887_v20  ;;  %v7684_v44 = vsel %vm7659_vm13, %v13899_v43, %v7683_v47  ;;  %v5650_v42 = vmax.f32 %v5526_v24, 0.0  ;;  %v5547_v30 = vadd.f32 %v12299_v36, %v12660_v50 }
 0x3cf   : > { %7900 = vrot.lane.b32.xlu1 %v7888_v29, %s9804_s24  ;;  %v12719_v35 = vmax.f32 %v5006_v57, %v5007_v41  ;;  %v5684_v4 = vrot.slane %v5683_v31, 2  ;;  %v7685_v40 = vsel %vm7661_vm14, %v13900_v59, %v7684_v44  ;;  %v5539_v2 = vadd.f32 %v12660_v50, %v13901_v8  ;;  %v13905_v44 = vld [vmem:[#allocation67_spill] sm:$0xff] }
 0x3d0   : > { %v5702_v23 = vsel %vm3938_vm11, %v5652_v0, -inf  ;;  %v7686_v7 = vsel %vm7663_vm15, %v13902_v54, %v7685_v40  ;;  %v5688_v3 = vsel %vm3938_vm11, %v5650_v42, -inf  ;;  %v5655_v62 = vmax.f32 %v5547_v30, 0.0  ;;  %v13906_v30 = vld [vmem:[#allocation110_spill] sm:$0xff] }
 0x3d1   : > { %v5028_v36 = vrot.slane %v12702_v18, 1  ;;  %v5703_v57 = vrot.slane %v5702_v23, 4  ;;  %v7687_v9 = vsel %vm7665_vm0, %v13903_v37, %v7686_v7  ;;  %v5689_v41 = vrot.slane %v5688_v3, 4 }
 0x3d2   : > { %v12733_v63 = vsel %vm1964_vm7, %v7687_v9, %v7759_v58  ;;  %v5723_v53 = vsel %vm3938_vm11, %v5655_v62, -inf  ;;  %v5653_v20 = vmax.f32 %v5539_v2, 0.0  ;;  %v5550_v49 = vadd.f32 %v13904_v39, %v12660_v50 }
 0x3d3   : > { %v5685_v11 = vmax.f32 %v5683_v31, %v5684_v4  ;;  %v5704_v47 = vmax.f32 %v5702_v23, %v5703_v57  ;;  %v5690_v24 = vmax.f32 %v5688_v3, %v5689_v41  ;;  %v5724_v29 = vrot.slane %v5723_v53, 4 }
 0x3d4   : > { %v5709_v0 = vsel %vm3938_vm11, %v5653_v20, -inf  ;;  %v5656_v43 = vmax.f32 %v5550_v49, 0.0  ;;  %v5542_v42 = vadd.f32 %v12660_v50, %v13905_v44  ;;  %v5563_v58 = vadd.f32 %v13906_v30, %v12660_v50 }
 0x3d5   : > { %v5014_v59 = vrot.slane %v5013_v32, 1  ;;  %v5705_v40 = vrot.slane %v5704_v47, 2  ;;  %v5691_v8 = vrot.slane %v5690_v24, 2  ;;  %v5725_v2 = vmax.f32 %v5723_v53, %v5724_v29 }
 0x3d6   : > { %v5710_v54 = vrot.slane %v5709_v0, 4  ;;  %v5730_v7 = vsel %vm3938_vm11, %v5656_v43, -inf  ;;  %v5654_v31 = vmax.f32 %v5542_v42, 0.0  ;;  %v5659_v4 = vmax.f32 %v5563_v58, 0.0 }
 0x3d7   : > { %v5699_v23 = vmax.f32 %v5697_v38, %v5698_v56  ;;  %v5686_v3 = vrot.slane %v5685_v11, 1  ;;  %v5692_v62 = vmax.f32 %v5690_v24, %v5691_v8  ;;  %v5731_v57 = vrot.slane %v5730_v7, 4 }
 0x3d8   : > { %v5706_v37 = vmax.f32 %v5704_v47, %v5705_v40  ;;  %v5711_v9 = vmax.f32 %v5709_v0, %v5710_v54  ;;  %v5716_v41 = vsel %vm3938_vm11, %v5654_v31, -inf  ;;  %v5751_v20 = vsel %vm3938_vm11, %v5659_v4, -inf }
 0x3d9   : > { %v5015_v49 = vmax.f32 %v5013_v32, %v5014_v59  ;;  %v5693_v44 = vrot.slane %v5692_v62, 1  ;;  %v5726_v53 = vrot.slane %v5725_v2, 2  ;;  %v5732_v29 = vmax.f32 %v5730_v7, %v5731_v57  ;;  %v13907_v57 = vld [vmem:[#allocation103_spill] sm:$0xff] }
 0x3da   : > { %v12746_v39 = vpop.f32.mrb[164].mxu1  ;;  %v5712_v43 = vrot.slane %v5711_v9, 2  ;;  %v5717_v42 = vrot.slane %v5716_v41, 4  ;;  %v5752_v38 = vrot.slane %v5751_v20, 4  ;;  %v7890_v56 = vsel %vm7655_vm10, %v12685_v33, %v12692_v12 }
 0x3db   : > { %v12748_v30 = vpop.f32.mrb[165].mxu1  ;;  %v5022_v24 = vmax.f32 %v12675_v51, %v5021_v27  ;;  %v5700_v0 = vrot.slane %v5699_v23, 1  ;;  %v5687_v32 = vmax.f32 %v5685_v11, %v5686_v3  ;;  %v5694_v58 = vmax.f32 %v5692_v62, %v5693_v44 }
 0x3dc   : > { %v12753_v47 = vpop.f32.mrb[166].mxu1  ;;  %v5707_v40 = vrot.slane %v5706_v37, 1  ;;  %v5718_v8 = vmax.f32 %v5716_v41, %v5717_v42  ;;  %v5753_v54 = vmax.f32 %v5751_v20, %v5752_v38  ;;  %v7891_v7 = vsel %vm7657_vm12, %v12689_v16, %v7890_v56 }
 0x3dd   : > { %v12758_v59 = vpop.f32.mrb[167].mxu1  ;;  %v12763_v31 = vsel %vm7653_vm9, %v5694_v58, %v5687_v32  ;;  %v12765_v33 = vmax.f32 %v5725_v2, %v5726_v53  ;;  %v5029_v12 = vmax.f32 %v12702_v18, %v5028_v36  ;;  %v7892_v51 = vsel %vm7659_vm13, %v12719_v35, %v7891_v7 }
 0x3de   : > { %v12770_v27 = vmax.f32 %v5711_v9, %v5712_v43  ;;  %v5733_v11 = vrot.slane %v5732_v29, 2  ;;  %v5719_v4 = vrot.slane %v5718_v8, 2  ;;  %v7893_v3 = vsel %vm7661_vm14, %v5015_v49, %v7892_v51 }
 0x3df   : > { %v12773_v62 = vmax.f32 %v5699_v23, %v5700_v0  ;;  %v7894_v16 = vsel %vm7663_vm15, %v5022_v24, %v7893_v3  ;;  %v5555_v41 = vadd.f32 %v12660_v50, %v13907_v57  ;;  %v5566_v2 = vadd.f32 %v12356_v19, %v12660_v50 }
 0x3e0   : > { %v12780_v18 = vmax.f32 %v5706_v37, %v5707_v40  ;;  %v12782_v36 = vmax.f32 %v5718_v8, %v5719_v4  ;;  %v5754_v35 = vrot.slane %v5753_v54, 2  ;;  %v7895_v9 = vsel %vm7665_vm0, %v5029_v12, %v7894_v16  ;;  %v13909_v16 = vld [vmem:[#allocation69_spill] sm:$0xff] }
 0x3e1   : > { %v5728_v23 = vrot.slane %v12765_v33, 1  ;;  %7902 = vrot.lane.b32.xlu0 %v7895_v9, %s9804_s24  ;;  %v5657_v49 = vmax.f32 %v5555_v41, 0.0  ;;  %v5660_v44 = vmax.f32 %v5566_v2, 0.0  ;;  %v5558_v53 = vadd.f32 %v12660_v50, %v12359_v28 }
 0x3e2   : > { %v12785_v20 = vpop.f32.mrb[168].mxu1  ;;  %v5714_v19 = vrot.slane %v12770_v27, 1  ;;  %v12794_v37 = vmax.f32 %v5732_v29, %v5733_v11  ;;  %v5579_v42 = vadd.f32 %v12368_v25, %v12660_v50  ;;  %v5571_v38 = vadd.f32 %v12660_v50, %v12374_v21 }
 0x3e3   : > { %v12791_v43 = vpop.f32.mrb[169].mxu1  ;;  %v5737_v24 = vsel %vm3938_vm11, %v5657_v49, -inf  ;;  %v5758_v0 = vsel %vm3938_vm11, %v5660_v44, -inf  ;;  %v5658_v32 = vmax.f32 %v5558_v53, 0.0  ;;  %v5582_v28 = vadd.f32 %v12383_v13, %v12660_v50 }
 0x3e4   : > { %v12800_v56 = vpop.f32.mrb[170].mxu1  ;;  %v5721_v29 = vrot.slane %v12782_v36, 1  ;;  %v5755_v40 = vmax.f32 %v5753_v54, %v5754_v35  ;;  %v5738_v8 = vrot.slane %v5737_v24, 4  ;;  %v5759_v25 = vrot.slane %v5758_v0, 4  ;;  %v13910_v54 = vld [vmem:[#allocation111_spill] sm:$0xff] }
 0x3e5   : > { %v12806_v58 = vpop.f32.mrb[171].mxu1  ;;  %v5744_v7 = vsel %vm3938_vm11, %v5658_v32, -inf  ;;  %v5663_v21 = vmax.f32 %v5579_v42, 0.0  ;;  %v5661_v12 = vmax.f32 %v5571_v38, 0.0  ;;  %v5664_v51 = vmax.f32 %v5582_v28, 0.0 }
 0x3e6   : > { %13908 = vst [vmem:[#allocation101_spill] sm:$0xff] %v12806_v58  ;;  %v5739_v11 = vmax.f32 %v5737_v24, %v5738_v8  ;;  %v5760_v4 = vmax.f32 %v5758_v0, %v5759_v25  ;;  %v5745_v3 = vrot.slane %v5744_v7, 4  ;;  %v5574_v57 = vadd.f32 %v12660_v50, %v13909_v16 }
 0x3e7   : > { %v5779_v13 = vsel %vm3938_vm11, %v5663_v21, -inf  ;;  %v5765_v41 = vsel %vm3938_vm11, %v5661_v12, -inf  ;;  %v5786_v2 = vsel %vm3938_vm11, %v5664_v51, -inf  ;;  %v5595_v35 = vadd.f32 %v13910_v54, %v12660_v50 }
 0x3e8   : > { %v5740_v9 = vrot.slane %v5739_v11, 2  ;;  %v5761_v49 = vrot.slane %v5760_v4, 2  ;;  %v5746_v44 = vmax.f32 %v5744_v7, %v5745_v3  ;;  %v5780_v53 = vrot.slane %v5779_v13, 4 }
 0x3e9   : > { %v5766_v42 = vrot.slane %v5765_v41, 4  ;;  %v5787_v38 = vrot.slane %v5786_v2, 4  ;;  %v5662_v24 = vmax.f32 %v5574_v57, 0.0  ;;  %v5667_v0 = vmax.f32 %v5595_v35, 0.0 }
 0x3ea   : > { %v5741_v32 = vmax.f32 %v5739_v11, %v5740_v9  ;;  %v5762_v28 = vmax.f32 %v5760_v4, %v5761_v49  ;;  %v5747_v8 = vrot.slane %v5746_v44, 2  ;;  %v5781_v25 = vmax.f32 %v5779_v13, %v5780_v53 }
 0x3eb   : > { %v5767_v21 = vmax.f32 %v5765_v41, %v5766_v42  ;;  %v5788_v16 = vmax.f32 %v5786_v2, %v5787_v38  ;;  %v5772_v12 = vsel %vm3938_vm11, %v5662_v24, -inf  ;;  %v5807_v51 = vsel %vm3938_vm11, %v5667_v0, -inf }
 0x3ec   : > { %v5756_v60 = vrot.slane %v5755_v40, 1  ;;  %v5742_v54 = vrot.slane %v5741_v32, 1  ;;  %v5748_v26 = vmax.f32 %v5746_v44, %v5747_v8  ;;  %v5782_v48 = vrot.slane %v5781_v25, 2 }
 0x3ed   : > { %v5768_v7 = vrot.slane %v5767_v21, 2  ;;  %v5789_v3 = vrot.slane %v5788_v16, 2  ;;  %v5773_v17 = vrot.slane %v5772_v12, 4  ;;  %v5808_v58 = vrot.slane %v5807_v51, 4 }
 0x3ee   : > { %v12819_v57 = vpop.f32.mrb[172].mxu1  ;;  %v5729_v11 = vmax.f32 %v12765_v33, %v5728_v23  ;;  %v5735_v4 = vrot.slane %v12794_v37, 1  ;;  %v5763_v13 = vrot.slane %v5762_v28, 1  ;;  %v5749_v41 = vrot.slane %v5748_v26, 1 }
 0x3ef   : > { %v12823_v2 = vpop.f32.mrb[173].mxu1  ;;  %v5715_v35 = vmax.f32 %v12770_v27, %v5714_v19  ;;  %v12826_v9 = vmax.f32 %v5781_v25, %v5782_v48  ;;  %v5774_v49 = vmax.f32 %v5772_v12, %v5773_v17  ;;  %v5809_v44 = vmax.f32 %v5807_v51, %v5808_v58  ;;  %v13912_v25 = vld [vmem:[#allocation72_spill] sm:$0xff] }
 0x3f0   : > { %v12828_v53 = vpop.f32.mrb[174].mxu1  ;;  %v5722_v42 = vmax.f32 %v12782_v36, %v5721_v29  ;;  %v5743_v38 = vmax.f32 %v5741_v32, %v5742_v54  ;;  %v5750_v24 = vmax.f32 %v5748_v26, %v5749_v41  ;;  %v7941_v33 = vsel %vm7655_vm10, %v12773_v62, %v12763_v31  ;;  %v13911_v36 = vld [vmem:[#allocation70_spill] sm:$0xff] }
 0x3f1   : > { %v12834_v23 = vpop.f32.mrb[175].mxu1  ;;  %v12836_v0 = vmax.f32 %v5755_v40, %v5756_v60  ;;  %v12838_v8 = vmax.f32 %v5767_v21, %v5768_v7  ;;  %v12840_v48 = vmax.f32 %v5788_v16, %v5789_v3  ;;  %v5775_v17 = vrot.slane %v5774_v49, 2 }
 0x3f2   : > { %v12842_v27 = vmax.f32 %v5762_v28, %v5763_v13  ;;  %v12845_v19 = vsel %vm7653_vm9, %v5750_v24, %v5743_v38  ;;  %v7942_v26 = vsel %vm7657_vm12, %v12780_v18, %v7941_v33  ;;  %v5587_v31 = vadd.f32 %v12660_v50, %v13911_v36 }
 0x3f3   : > { %v12852_v60 = vmax.f32 %v5774_v49, %v5775_v17  ;;  %v5810_v58 = vrot.slane %v5809_v44, 2  ;;  %v7943_v29 = vsel %vm7659_vm13, %v5715_v35, %v7942_v26  ;;  %v5736_v40 = vmax.f32 %v12794_v37, %v5735_v4 }
 0x3f4   : > { %v7944_v32 = vsel %vm7661_vm14, %v5722_v42, %v7943_v29  ;;  %v5665_v28 = vmax.f32 %v5587_v31, 0.0  ;;  %v5598_v21 = vadd.f32 %v13912_v25, %v12660_v50  ;;  %v5590_v51 = vadd.f32 %v12660_v50, %v12424_v14 }
 0x3f5   : > { %v7945_v12 = vsel %vm7663_vm15, %v5729_v11, %v7944_v32  ;;  %v5611_v3 = vadd.f32 %v12438_v45, %v12660_v50  ;;  %v5777_v4 = vrot.slane %v12852_v60, 1  ;;  %v5811_v13 = vmax.f32 %v5809_v44, %v5810_v58 }
 0x3f6   : > { %v7946_v54 = vsel %vm7665_vm0, %v5736_v40, %v7945_v12  ;;  %v5793_v7 = vsel %vm3938_vm11, %v5665_v28, -inf  ;;  %v5668_v37 = vmax.f32 %v5598_v21, 0.0  ;;  %v5666_v35 = vmax.f32 %v5590_v51, 0.0 }
 0x3f7   : > { %7968 = vrot.lane.b32.xlu1 %v7946_v54, %s9805_s3  ;;  %v5794_v41 = vrot.slane %v5793_v7, 4  ;;  %v5671_v49 = vmax.f32 %v5611_v3, 0.0  ;;  %v5603_v14 = vadd.f32 %v12660_v50, %v12443_v46  ;;  %v5614_v42 = vadd.f32 %v12446_v1, %v12660_v50 }
 0x3f8   : > { %v5814_v11 = vsel %vm3938_vm11, %v5668_v37, -inf  ;;  %v5800_v45 = vsel %vm3938_vm11, %v5666_v35, -inf  ;;  %v5606_v44 = vadd.f32 %v12660_v50, %v12450_v6  ;;  %v13913_v6 = vld [vmem:[#allocation74_spill] sm:$0xff] }
 0x3f9   : > { %v5795_v38 = vmax.f32 %v5793_v7, %v5794_v41  ;;  %v5815_v24 = vrot.slane %v5814_v11, 4  ;;  %v5801_v33 = vrot.slane %v5800_v45, 4  ;;  %v5835_v17 = vsel %vm3938_vm11, %v5671_v49, -inf }
 0x3fa   : > { %v5669_v26 = vmax.f32 %v5603_v14, 0.0  ;;  %v5672_v36 = vmax.f32 %v5614_v42, 0.0  ;;  %v5836_v46 = vrot.slane %v5835_v17, 4  ;;  %v5670_v40 = vmax.f32 %v5606_v44, 0.0 }
 0x3fb   : > { %v12879_v31 = vpop.f32.mrb[176].mxu1  ;;  %v5796_v58 = vrot.slane %v5795_v38, 2  ;;  %v5816_v29 = vmax.f32 %v5814_v11, %v5815_v24  ;;  %v5802_v1 = vmax.f32 %v5800_v45, %v5801_v33  ;;  %v5627_v21 = vadd.f32 %v13913_v6, %v12660_v50 }
 0x3fc   : > { %v12881_v32 = vpop.f32.mrb[177].mxu1  ;;  %v5821_v28 = vsel %vm3938_vm11, %v5669_v26, -inf  ;;  %v5842_v25 = vsel %vm3938_vm11, %v5672_v36, -inf  ;;  %v5837_v7 = vmax.f32 %v5835_v17, %v5836_v46  ;;  %v5828_v11 = vsel %vm3938_vm11, %v5670_v40, -inf }
 0x3fd   : > { %v12887_v12 = vpop.f32.mrb[178].mxu1  ;;  %v5797_v51 = vmax.f32 %v5795_v38, %v5796_v58  ;;  %v5817_v54 = vrot.slane %v5816_v29, 2  ;;  %v5822_v37 = vrot.slane %v5821_v28, 4  ;;  %v5803_v41 = vrot.slane %v5802_v1, 2  ;;  %v12893_v38 = vpop.permute.xlu1 %7824 }
 0x3fe   : > { %v12889_v3 = vpop.f32.mrb[179].mxu1  ;;  %v5843_v35 = vrot.slane %v5842_v25, 4  ;;  %v5675_v49 = vmax.f32 %v5627_v21, 0.0  ;;  %v5838_v24 = vrot.slane %v5837_v7, 2  ;;  %v5829_v26 = vrot.slane %v5828_v11, 4  ;;  %13914 = vst [vmem:[#allocation105_spill] sm:$0xff] %v12893_v38 }
 0x3ff   : > { %v5798_v14 = vrot.slane %v5797_v51, 1  ;;  %v5818_v42 = vmax.f32 %v5816_v29, %v5817_v54  ;;  %v5823_v45 = vmax.f32 %v5821_v28, %v5822_v37  ;;  %v5804_v44 = vmax.f32 %v5802_v1, %v5803_v41 }
 0x400   : > { %v5844_v33 = vmax.f32 %v5842_v25, %v5843_v35  ;;  %v5863_v36 = vsel %vm3938_vm11, %v5675_v49, -inf  ;;  %v5812_v17 = vrot.slane %v5811_v13, 1  ;;  %v5839_v46 = vmax.f32 %v5837_v7, %v5838_v24  ;;  %v13917_v24 = vld [vmem:[#allocation76_spill] sm:$0xff] }
 0x401   : > { %v5819_v58 = vrot.slane %v5818_v42, 1  ;;  %v5824_v6 = vrot.slane %v5823_v45, 2  ;;  %v5805_v16 = vrot.slane %v5804_v44, 1  ;;  %v5830_v62 = vmax.f32 %v5828_v11, %v5829_v26 }
 0x402   : > { %v5845_v18 = vrot.slane %v5844_v33, 2  ;;  %v5864_v40 = vrot.slane %v5863_v36, 4  ;;  %v13915_v21 = vrot.slane %v12826_v9, 1  ;;  %v13916_v1 = vrot.slane %v12838_v8, 1 }
 0x403   : > { %v5778_v25 = vmax.f32 %v12852_v60, %v5777_v4  ;;  %v5840_v54 = vrot.slane %v5839_v46, 1  ;;  %v5799_v37 = vmax.f32 %v5797_v51, %v5798_v14  ;;  %v5806_v41 = vmax.f32 %v5804_v44, %v5805_v16 }
 0x404   : > { %v5785_v29 = vmax.f32 %v12826_v9, %v13915_v21  ;;  %v5771_v28 = vmax.f32 %v12838_v8, %v13916_v1  ;;  %v5825_v35 = vmax.f32 %v5823_v45, %v5824_v6  ;;  %v12902_v7 = vmax.f32 %v5844_v33, %v5845_v18  ;;  %v7829_v8 = vpop.permute.xlu1 %7828  ;;  %v13921_v6 = vld [vmem:[#allocation85_spill] sm:$0xff] }
 0x405   : > { %v12904_v49 = vmax.f32 %v5811_v13, %v5812_v17  ;;  %v12906_v11 = vmax.f32 %v5818_v42, %v5819_v58  ;;  %v7948_v9 = vsel %vm7655_vm10, %v12836_v0, %v12845_v19  ;;  %v5619_v26 = vadd.f32 %v12660_v50, %v13917_v24  ;;  %v13919_v0 = vld [vmem:[#allocation84_spill] sm:$0xff] }
 0x406   : > { %v12914_v60 = vsel %vm7653_vm9, %v5806_v41, %v5799_v37  ;;  %v5831_v4 = vrot.slane %v5830_v62, 2  ;;  %v5865_v16 = vmax.f32 %v5863_v36, %v5864_v40  ;;  %v13918_v18 = vrot.slane %v12840_v48, 1 }
 0x407   : > { %v12919_v51 = vmax.f32 %v5839_v46, %v5840_v54  ;;  %v7949_v14 = vsel %vm7657_vm12, %v12842_v27, %v7948_v9  ;;  %v5673_v42 = vmax.f32 %v5619_v26, 0.0  ;;  %v5630_v19 = vadd.f32 %v13919_v0, %v12660_v50 }
 0x408   : > { %v5792_v13 = vmax.f32 %v12840_v48, %v13918_v18  ;;  %v12925_v45 = vpop.f32.mrb[180].mxu1  ;;  %v5826_v44 = vrot.slane %v5825_v35, 1  ;;  %v7950_v36 = vsel %vm7659_vm13, %v5771_v28, %v7949_v14  ;;  %v12931_v17 = vsel %vm3938_vm11, %v12655_v5, %v7829_v8 }
 0x409   : > { %13920 = vst [vmem:[#allocation53_spill] sm:$0xff] %v12931_v17  ;;  %v12933_v48 = vpop.f32.mrb[181].mxu1  ;;  %v7951_v58 = vsel %vm7661_vm14, %v5778_v25, %v7950_v36  ;;  %v5849_v27 = vsel %vm3938_vm11, %v5673_v42, -inf  ;;  %v5676_v46 = vmax.f32 %v5630_v19, 0.0  ;;  %v5622_v40 = vadd.f32 %v12660_v50, %v13921_v6 }
 0x40a   : > { %v12939_v21 = vpop.f32.mrb[182].mxu1  ;;  %v12941_v1 = vmax.f32 %v5830_v62, %v5831_v4  ;;  %v5866_v54 = vrot.slane %v5865_v16, 2  ;;  %v7952_v28 = vsel %vm7663_vm15, %v5785_v29, %v7951_v58  ;;  %v5850_v37 = vrot.slane %v5849_v27, 4  ;;  %v12958_v4 = vld [vmem:[%s13505_s16 + $0x1] ss:$0 sm:$0xff] }
 0x40b   : > { %v12944_v5 = vpop.f32.mrb[183].mxu1  ;;  %v7953_v41 = vsel %vm7665_vm0, %v5792_v13, %v7952_v28  ;;  %v5870_v25 = vsel %vm3938_vm11, %v5676_v46, -inf  ;;  %v5674_v9 = vmax.f32 %v5622_v40, 0.0  ;;  %v5643_v24 = vadd.f32 %v12574_v34, %v12660_v50 }
 0x40c   : > { %v12950_v26 = vmax.f32 %v5825_v35, %v5826_v44  ;;  %7970 = vrot.lane.b32.xlu0 %v7953_v41, %s9805_s3  ;;  %v5851_v62 = vmax.f32 %v5849_v27, %v5850_v37  ;;  %v5871_v8 = vrot.slane %v5870_v25, 4  ;;  %v5635_v29 = vadd.f32 %v12660_v50, %v12576_v10  ;;  %v13922_v35 = vld [vmem:[#allocation92_spill] sm:$0xff] }
 0x40d   : > { %v5856_v18 = vsel %vm3938_vm11, %v5674_v9, -inf  ;;  %v5679_v13 = vmax.f32 %v5643_v24, 0.0  ;;  %v5646_v34 = vadd.f32 %v12580_v52, %v12660_v50  ;;  %v5638_v14 = vadd.f32 %v12660_v50, %v13922_v35 }
 0x40e   : > { %v5852_v42 = vrot.slane %v5851_v62, 2  ;;  %v5872_v0 = vmax.f32 %v5870_v25, %v5871_v8  ;;  %v5857_v19 = vrot.slane %v5856_v18, 4  ;;  %v5677_v44 = vmax.f32 %v5635_v29, 0.0 }
 0x40f   : > { %v5891_v10 = vsel %vm3938_vm11, %v5679_v13, -inf  ;;  %v5680_v36 = vmax.f32 %v5646_v34, 0.0  ;;  %v5678_v58 = vmax.f32 %v5638_v14, 0.0  ;;  %v6407_v27 = vadd.f32 %v12600_v22, %v12958_v4 }
 0x410   : > { %v5853_v46 = vmax.f32 %v5851_v62, %v5852_v42  ;;  %v5873_v6 = vrot.slane %v5872_v0, 2  ;;  %v5858_v40 = vmax.f32 %v5856_v18, %v5857_v19  ;;  %v5892_v28 = vrot.slane %v5891_v10, 4 }
 0x411   : > { %v5877_v52 = vsel %vm3938_vm11, %v5677_v44, -inf  ;;  %v5898_v37 = vsel %vm3938_vm11, %v5680_v36, -inf  ;;  %v5884_v50 = vsel %vm3938_vm11, %v5678_v58, -inf  ;;  %v6527_v41 = vmax.f32 %v6407_v27, 0.0 }
 0x412   : > { %v5867_v25 = vmax.f32 %v5865_v16, %v5866_v54  ;;  %v5874_v9 = vmax.f32 %v5872_v0, %v5873_v6  ;;  %v5859_v24 = vrot.slane %v5858_v40, 2  ;;  %v5893_v8 = vmax.f32 %v5891_v10, %v5892_v28  ;;  %v12979_v16 = vpop.permute.xlu0 %7826 }
 0x413   : > { %v12971_v29 = vpop.f32.mrb[184].mxu1  ;;  %v5878_v13 = vrot.slane %v5877_v52, 4  ;;  %v5899_v34 = vrot.slane %v5898_v37, 4  ;;  %v5885_v22 = vrot.slane %v5884_v50, 4  ;;  %v6571_v62 = vsel %vm3938_vm11, %v6527_v41, -inf  ;;  %13924 = vst [vmem:[#allocation55_spill] sm:$0xff] %v12979_v16 }
 0x414   : > { %v12974_v18 = vpop.f32.mrb[185].mxu1  ;;  %v5833_v35 = vrot.slane %v12941_v1, 1  ;;  %v5854_v14 = vrot.slane %v5853_v46, 1  ;;  %v5860_v42 = vmax.f32 %v5858_v40, %v5859_v24  ;;  %v5894_v19 = vrot.slane %v5893_v8, 2 }
 0x415   : > { %13923 = vst [vmem:[#allocation102_spill] sm:$0xff] %v12974_v18  ;;  %v12977_v44 = vpop.f32.mrb[186].mxu1  ;;  %v5879_v54 = vmax.f32 %v5877_v52, %v5878_v13  ;;  %v5900_v0 = vmax.f32 %v5898_v37, %v5899_v34  ;;  %v5886_v10 = vmax.f32 %v5884_v50, %v5885_v22  ;;  %v6572_v36 = vrot.slane %v6571_v62, 4 }
 0x416   : > { %v12981_v58 = vpop.f32.mrb[187].mxu1  ;;  %v5868_v27 = vrot.slane %v5867_v25, 1  ;;  %v5875_v6 = vrot.slane %v5874_v9, 1  ;;  %v5861_v28 = vrot.slane %v5860_v42, 1  ;;  %v5895_v41 = vmax.f32 %v5893_v8, %v5894_v19  ;;  %v7831_v8 = vpop.permute.xlu0 %7830 }
 0x417   : > { %v5880_v33 = vrot.slane %v5879_v54, 2  ;;  %v5901_v38 = vrot.slane %v5900_v0, 2  ;;  %v5887_v17 = vrot.slane %v5886_v10, 2  ;;  %v6573_v18 = vmax.f32 %v6571_v62, %v6572_v36 }
 0x418   : > { %v5855_v40 = vmax.f32 %v5853_v46, %v5854_v14  ;;  %v5862_v24 = vmax.f32 %v5860_v42, %v5861_v28  ;;  %v7955_v16 = vsel %vm7655_vm10, %v12904_v49, %v12914_v60  ;;  %v6399_v52 = vadd.f32 %v12958_v4, %v12607_v61 }
 0x419   : > { %v5834_v37 = vmax.f32 %v12941_v1, %v5833_v35  ;;  %v5896_v50 = vrot.slane %v5895_v41, 1  ;;  %v12989_v13 = vmax.f32 %v5879_v54, %v5880_v33  ;;  %v12991_v34 = vmax.f32 %v5886_v10, %v5887_v17 }
 0x41a   : > { %v12993_v22 = vmax.f32 %v5867_v25, %v5868_v27  ;;  %v12996_v46 = vsel %vm7653_vm9, %v5862_v24, %v5855_v40  ;;  %v7956_v62 = vsel %vm7657_vm12, %v12906_v11, %v7955_v16  ;;  %v6525_v49 = vmax.f32 %v6399_v52, 0.0 }
 0x41b   : > { %v13000_v60 = vmax.f32 %v5874_v9, %v5875_v6  ;;  %v13002_v61 = vmax.f32 %v5900_v0, %v5901_v38  ;;  %v6574_v1 = vrot.slane %v6573_v18, 2  ;;  %v13925_v33 = vrot.slane %v12902_v7, 1 }
 0x41c   : > { %v7957_v25 = vsel %vm7659_vm13, %v12950_v26, %v7956_v62  ;;  %v6557_v35 = vsel %vm3938_vm11, %v6525_v49, -inf  ;;  %v6410_v14 = vadd.f32 %v12613_v15, %v12958_v4  ;;  %v13014_v11 = vsel %vm3938_vm11, %v12733_v63, %v7831_v8 }
 0x41d   : > { %v5848_v17 = vmax.f32 %v12902_v7, %v13925_v33  ;;  %v13016_v9 = vmax.f32 %v5895_v41, %v5896_v50  ;;  %v5882_v38 = vrot.slane %v12989_v13, 1  ;;  %v5889_v42 = vrot.slane %v12991_v34, 1 }
 0x41e   : > { %v7958_v7 = vsel %vm7661_vm14, %v5834_v37, %v7957_v25  ;;  %v6558_v19 = vrot.slane %v6557_v35, 4  ;;  %v6528_v16 = vmax.f32 %v6410_v14, 0.0  ;;  %v6402_v15 = vadd.f32 %v12958_v4, %v12621_v55 }
 0x41f   : > { %v7959_v26 = vsel %vm7663_vm15, %v12919_v51, %v7958_v7  ;;  %v13025_v54 = vmax.f32 %v6573_v18, %v6574_v1  ;;  %v6423_v0 = vadd.f32 %v12746_v39, %v12958_v4  ;;  %v6415_v10 = vadd.f32 %v12958_v4, %v12748_v30 }
 0x420   : > { %v7960_v63 = vsel %vm7665_vm0, %v5848_v17, %v7959_v26  ;;  %v13032_v36 = vpop.f32.mrb[188].mxu1  ;;  %v6559_v51 = vmax.f32 %v6557_v35, %v6558_v19  ;;  %v6578_v27 = vsel %vm3938_vm11, %v6528_v16, -inf  ;;  %v6526_v6 = vmax.f32 %v6402_v15, 0.0 }
 0x421   : > { %7972 = vrot.lane.b32.xlu1 %v7960_v63, %s9805_s3  ;;  %v6426_v55 = vadd.f32 %v12753_v47, %v12958_v4  ;;  %v13038_v18 = vpop.f32.mrb[189].mxu1  ;;  %v6579_v28 = vrot.slane %v6578_v27, 4  ;;  %v6531_v41 = vmax.f32 %v6423_v0, 0.0  ;;  %v6529_v40 = vmax.f32 %v6415_v10, 0.0 }
 0x422   : > { %v6418_v39 = vadd.f32 %v12958_v4, %v12758_v59  ;;  %v13042_v30 = vpop.f32.mrb[190].mxu1  ;;  %v6560_v24 = vrot.slane %v6559_v51, 2  ;;  %v6564_v52 = vsel %vm3938_vm11, %v6526_v6, -inf  ;;  %v6439_v50 = vadd.f32 %v12785_v20, %v12958_v4 }
 0x423   : > { %v6532_v37 = vmax.f32 %v6426_v55, 0.0  ;;  %v13047_v8 = vpop.f32.mrb[191].mxu1  ;;  %v6580_v47 = vmax.f32 %v6578_v27, %v6579_v28  ;;  %v6565_v62 = vrot.slane %v6564_v52, 4  ;;  %v6599_v49 = vsel %vm3938_vm11, %v6531_v41, -inf }
 0x424   : > { %v6585_v1 = vsel %vm3938_vm11, %v6529_v40, -inf  ;;  %v6561_v33 = vmax.f32 %v6559_v51, %v6560_v24  ;;  %v6600_v17 = vrot.slane %v6599_v49, 4  ;;  %v6530_v26 = vmax.f32 %v6418_v39, 0.0  ;;  %v9726_v51 = vld [vmem:[%s13506_s17] sm:$0xff]  }
 0x425   : > { %v6586_v59 = vrot.slane %v6585_v1, 4  ;;  %v6606_v25 = vsel %vm3938_vm11, %v6532_v37, -inf  ;;  %v6581_v35 = vrot.slane %v6580_v47, 2  ;;  %v6566_v14 = vmax.f32 %v6564_v52, %v6565_v62  ;;  %9554 = vmatprep.subr.bf16.mxu0 %v9726_v51 }
 0x426   : > { %v6607_v7 = vrot.slane %v6606_v25, 4  ;;  %v6576_v19 = vrot.slane %v13025_v54, 1  ;;  %v6601_v20 = vmax.f32 %v6599_v49, %v6600_v17  ;;  %v6535_v15 = vmax.f32 %v6439_v50, 0.0  ;;  %9555 = vmatpush3.bf16.msra.mxu0 %v9726_v51 }
 0x427   : > { %v6587_v16 = vmax.f32 %v6585_v1, %v6586_v59  ;;  %v6582_v63 = vmax.f32 %v6580_v47, %v6581_v35  ;;  %v6567_v0 = vrot.slane %v6566_v14, 2  ;;  %v6592_v27 = vsel %vm3938_vm11, %v6530_v26, -inf }
 0x428   : > { %v6608_v10 = vmax.f32 %v6606_v25, %v6607_v7  ;;  %v6562_v6 = vrot.slane %v6561_v33, 1  ;;  %v6602_v55 = vrot.slane %v6601_v20, 2  ;;  %v6593_v41 = vrot.slane %v6592_v27, 4 }
 0x429   : > { %v6588_v28 = vrot.slane %v6587_v16, 2  ;;  %v6583_v40 = vrot.slane %v6582_v63, 1  ;;  %v6568_v39 = vmax.f32 %v6566_v14, %v6567_v0  ;;  %v6627_v52 = vsel %vm3938_vm11, %v6535_v15, -inf }
 0x42a   : > { %v6609_v24 = vrot.slane %v6608_v10, 2  ;;  %v6603_v37 = vmax.f32 %v6601_v20, %v6602_v55  ;;  %v6594_v47 = vmax.f32 %v6592_v27, %v6593_v41  ;;  %v6628_v62 = vrot.slane %v6627_v52, 4 }
 0x42b   : > { %v6589_v50 = vmax.f32 %v6587_v16, %v6588_v28  ;;  %v5883_v49 = vmax.f32 %v12989_v13, %v5882_v38  ;;  %v5903_v1 = vrot.slane %v13002_v61, 1  ;;  %v5890_v17 = vmax.f32 %v12991_v34, %v5889_v42 }
 0x42c   : > { %v6569_v59 = vrot.slane %v6568_v39, 1  ;;  %v6563_v25 = vmax.f32 %v6561_v33, %v6562_v6  ;;  %v13065_v35 = vmax.f32 %v6608_v10, %v6609_v24  ;;  %v6595_v14 = vrot.slane %v6594_v47, 2 }
 0x42d   : > { %v6629_v7 = vmax.f32 %v6627_v52, %v6628_v62  ;;  %v6604_v20 = vrot.slane %v6603_v37, 1  ;;  %v7962_v16 = vsel %vm7655_vm10, %v12993_v22, %v12996_v46  ;;  %v6431_v13 = vadd.f32 %v12958_v4, %v12791_v43 }
 0x42e   : > { %v6570_v26 = vmax.f32 %v6568_v39, %v6569_v59  ;;  %v13073_v38 = vmax.f32 %v13025_v54, %v6576_v19  ;;  %v13075_v15 = vmax.f32 %v6582_v63, %v6583_v40  ;;  %v6590_v34 = vrot.slane %v6589_v50, 1  ;;  %v13926_v40 = vld [vmem:[#allocation101_spill] sm:$0xff] }
 0x42f   : > { %v6596_v42 = vmax.f32 %v6594_v47, %v6595_v14  ;;  %v7963_v0 = vsel %vm7657_vm12, %v13000_v60, %v7962_v16  ;;  %v6533_v10 = vmax.f32 %v6431_v13, 0.0  ;;  %v6442_v22 = vadd.f32 %v12800_v56, %v12958_v4 }
 0x430   : > { %v13078_v33 = vsel %vm7653_vm9, %v6570_v26, %v6563_v25  ;;  %v6611_v46 = vrot.slane %v13065_v35, 1  ;;  %v6630_v43 = vrot.slane %v6629_v7, 2  ;;  %v5904_v54 = vmax.f32 %v13002_v61, %v5903_v1 }
 0x431   : > { %v7964_v19 = vsel %vm7659_vm13, %v5883_v49, %v7963_v0  ;;  %v13087_v63 = vmax.f32 %v6603_v37, %v6604_v20  ;;  %v6613_v51 = vsel %vm3938_vm11, %v6533_v10, -inf  ;;  %v6536_v6 = vmax.f32 %v6442_v22, 0.0 }
 0x432   : > { %v7965_v27 = vsel %vm7661_vm14, %v5890_v17, %v7964_v19  ;;  %v13091_v55 = vmax.f32 %v6589_v50, %v6590_v34  ;;  %v6597_v60 = vrot.slane %v6596_v42, 1  ;;  %v6614_v28 = vrot.slane %v6613_v51, 4 }
 0x433   : > { %v7966_v56 = vsel %vm7663_vm15, %v13016_v9, %v7965_v27  ;;  %v6634_v61 = vsel %vm3938_vm11, %v6536_v6, -inf  ;;  %v6434_v39 = vadd.f32 %v12958_v4, %v13926_v40  ;;  %v6455_v24 = vadd.f32 %v12819_v57, %v12958_v4  ;;  %v9727_v40 = vld [vmem:[%s13506_s17 + $0x8] sm:$0xff]  }
 0x434   : > { %v7967_v41 = vsel %vm7665_vm0, %v5904_v54, %v7966_v56  ;;  %v6631_v52 = vmax.f32 %v6629_v7, %v6630_v43  ;;  %v6615_v37 = vmax.f32 %v6613_v51, %v6614_v28  ;;  %v6635_v50 = vrot.slane %v6634_v61, 4  ;;  %9556 = vmatprep.subr.bf16.mxu0 %v9727_v40 }
 0x435   : > { %7974 = vrot.lane.b32.xlu0 %v7967_v41, %s9805_s3  ;;  %v6447_v47 = vadd.f32 %v12958_v4, %v12823_v2  ;;  %v6534_v9 = vmax.f32 %v6434_v39, 0.0  ;;  %v6539_v62 = vmax.f32 %v6455_v24, 0.0  ;;  %v6458_v49 = vadd.f32 %v12828_v53, %v12958_v4  ;;  %v9728_v39 = vld [vmem:[%s13506_s17 + $0x10] sm:$0xff]   ;;  %9557 = vmatpush3.bf16.msra.mxu0 %v9727_v40  ;;  %s9807_s3 = smov 96  }
 0x436   : > { %v6450_v1 = vadd.f32 %v12958_v4, %v12834_v23  ;;  %v6616_v17 = vrot.slane %v6615_v37, 2  ;;  %v6636_v59 = vmax.f32 %v6634_v61, %v6635_v50  ;;  %v6471_v57 = vadd.f32 %v12879_v31, %v12958_v4  ;;  %9558 = vmatprep.subr.bf16.mxu0 %v9728_v39 }
 0x437   : > { %v6537_v25 = vmax.f32 %v6447_v47, 0.0  ;;  %v6620_v14 = vsel %vm3938_vm11, %v6534_v9, -inf  ;;  %v6655_v7 = vsel %vm3938_vm11, %v6539_v62, -inf  ;;  %v6540_v26 = vmax.f32 %v6458_v49, 0.0 }
 0x438   : > { %v6538_v2 = vmax.f32 %v6450_v1, 0.0  ;;  %v6632_v20 = vrot.slane %v6631_v52, 1  ;;  %v6637_v16 = vrot.slane %v6636_v59, 2  ;;  %v6621_v13 = vrot.slane %v6620_v14, 4 }
 0x439   : > { %v6656_v34 = vrot.slane %v6655_v7, 4  ;;  %v6641_v53 = vsel %vm3938_vm11, %v6537_v25, -inf  ;;  %v6662_v23 = vsel %vm3938_vm11, %v6540_v26, -inf  ;;  %v6543_v10 = vmax.f32 %v6471_v57, 0.0  ;;  %9559 = vmatpush3.bf16.msra.mxu0 %v9728_v39 }
 0x43a   : > { %v6648_v0 = vsel %vm3938_vm11, %v6538_v2, -inf  ;;  %v6617_v22 = vmax.f32 %v6615_v37, %v6616_v17  ;;  %v6638_v43 = vmax.f32 %v6636_v59, %v6637_v16  ;;  %v6622_v31 = vmax.f32 %v6620_v14, %v6621_v13 }
 0x43b   : > { %v6657_v54 = vmax.f32 %v6655_v7, %v6656_v34  ;;  %v6642_v19 = vrot.slane %v6641_v53, 4  ;;  %v6663_v27 = vrot.slane %v6662_v23, 4  ;;  %v6649_v51 = vrot.slane %v6648_v0, 4 }
 0x43c   : > { %v6683_v6 = vsel %vm3938_vm11, %v6543_v10, -inf  ;;  %v6598_v56 = vmax.f32 %v6596_v42, %v6597_v60  ;;  %v13116_v28 = vmax.f32 %v6631_v52, %v6632_v20  ;;  %v6623_v41 = vrot.slane %v6622_v31, 2 }
 0x43d   : > { %v6658_v61 = vrot.slane %v6657_v54, 2  ;;  %v6643_v24 = vmax.f32 %v6641_v53, %v6642_v19  ;;  %v6664_v37 = vmax.f32 %v6662_v23, %v6663_v27  ;;  %v6650_v50 = vmax.f32 %v6648_v0, %v6649_v51 }
 0x43e   : > { %v6684_v47 = vrot.slane %v6683_v6, 4  ;;  %v6618_v9 = vrot.slane %v6617_v22, 1  ;;  %v6639_v62 = vrot.slane %v6638_v43, 1  ;;  %v6624_v49 = vmax.f32 %v6622_v31, %v6623_v41 }
 0x43f   : > { %v6659_v42 = vmax.f32 %v6657_v54, %v6658_v61  ;;  %v6644_v60 = vrot.slane %v6643_v24, 2  ;;  %v6665_v52 = vrot.slane %v6664_v37, 2  ;;  %v6651_v1 = vrot.slane %v6650_v50, 2 }
 0x440   : > { %v6685_v17 = vmax.f32 %v6683_v6, %v6684_v47  ;;  %v6625_v59 = vrot.slane %v6624_v49, 1  ;;  %v8013_v57 = vsel %vm7655_vm10, %v13073_v38, %v13078_v33  ;;  %v6463_v14 = vadd.f32 %v12958_v4, %v12881_v32 }
 0x441   : > { %v6660_v25 = vrot.slane %v6659_v42, 1  ;;  %v6645_v7 = vmax.f32 %v6643_v24, %v6644_v60  ;;  %v13129_v26 = vmax.f32 %v6664_v37, %v6665_v52  ;;  %v6652_v2 = vmax.f32 %v6650_v50, %v6651_v1 }
 0x442   : > { %v6686_v20 = vrot.slane %v6685_v17, 2  ;;  %v6619_v16 = vmax.f32 %v6617_v22, %v6618_v9  ;;  %v6626_v13 = vmax.f32 %v6624_v49, %v6625_v59  ;;  %v8014_v34 = vsel %vm7657_vm12, %v13075_v15, %v8013_v57 }
 0x443   : > { %v6541_v53 = vmax.f32 %v6463_v14, 0.0  ;;  %v13133_v23 = vmax.f32 %v6638_v43, %v6639_v62  ;;  %v6646_v0 = vrot.slane %v6645_v7, 1  ;;  %v6612_v32 = vmax.f32 %v13065_v35, %v6611_v46 }
 0x444   : > { %v13135_v10 = vmax.f32 %v6685_v17, %v6686_v20  ;;  %v13141_v38 = vsel %vm7653_vm9, %v6626_v13, %v6619_v16  ;;  %v8015_v33 = vsel %vm7659_vm13, %v13091_v55, %v8014_v34  ;;  %v6474_v15 = vadd.f32 %v12887_v12, %v12958_v4 }
 0x445   : > { %v6669_v22 = vsel %vm3938_vm11, %v6541_v53, -inf  ;;  %v13148_v43 = vmax.f32 %v6659_v42, %v6660_v25  ;;  %v6667_v31 = vrot.slane %v13129_v26, 1  ;;  %v6653_v54 = vrot.slane %v6652_v2, 1 }
 0x446   : > { %v8016_v19 = vsel %vm7661_vm14, %v6598_v56, %v8015_v33  ;;  %v13152_v35 = vmax.f32 %v6645_v7, %v6646_v0  ;;  %v6670_v27 = vrot.slane %v6669_v22, 4  ;;  %v6544_v51 = vmax.f32 %v6474_v15, 0.0 }
 0x447   : > { %v8017_v46 = vsel %vm7663_vm15, %v13087_v63, %v8016_v19  ;;  %v6688_v55 = vrot.slane %v13135_v10, 1  ;;  %v6466_v12 = vadd.f32 %v12958_v4, %v12889_v3  ;;  %v6487_v41 = vadd.f32 %v12925_v45, %v12958_v4 }
 0x448   : > { %v8018_v6 = vsel %vm7665_vm0, %v6612_v32, %v8017_v46  ;;  %v6671_v56 = vmax.f32 %v6669_v22, %v6670_v27  ;;  %v6690_v61 = vsel %vm3938_vm11, %v6544_v51, -inf  ;;  %v6479_v63 = vadd.f32 %v12958_v4, %v12933_v48  ;;  %v13178_v27 = vpop.permute.xlu1 %7896 }
 0x449   : > { %8040 = vrot.lane.b32.xlu1 %v8018_v6, %s9806_s22  ;;  %v6490_v40 = vadd.f32 %v12939_v21, %v12958_v4  ;;  %v6691_v39 = vrot.slane %v6690_v61, 4  ;;  %v6542_v24 = vmax.f32 %v6466_v12, 0.0  ;;  %v6547_v37 = vmax.f32 %v6487_v41, 0.0 }
 0x44a   : > { %v6482_v3 = vadd.f32 %v12958_v4, %v12944_v5  ;;  %v6672_v50 = vrot.slane %v6671_v56, 2  ;;  %v6545_v45 = vmax.f32 %v6479_v63, 0.0  ;;  %v6503_v9 = vadd.f32 %v12971_v29, %v12958_v4 }
 0x44b   : > { %v6548_v47 = vmax.f32 %v6490_v40, 0.0  ;;  %v6692_v62 = vmax.f32 %v6690_v61, %v6691_v39  ;;  %v6676_v49 = vsel %vm3938_vm11, %v6542_v24, -inf  ;;  %v6711_v48 = vsel %vm3938_vm11, %v6547_v37, -inf }
 0x44c   : > { %v6546_v42 = vmax.f32 %v6482_v3, 0.0  ;;  %v6673_v60 = vmax.f32 %v6671_v56, %v6672_v50  ;;  %v6677_v21 = vrot.slane %v6676_v49, 4  ;;  %v6712_v52 = vrot.slane %v6711_v48, 4 }
 0x44d   : > { %v6697_v1 = vsel %vm3938_vm11, %v6545_v45, -inf  ;;  %v6693_v17 = vrot.slane %v6692_v62, 2  ;;  %v6718_v5 = vsel %vm3938_vm11, %v6548_v47, -inf  ;;  %v6551_v34 = vmax.f32 %v6503_v9, 0.0 }
 0x44e   : > { %v6698_v59 = vrot.slane %v6697_v1, 4  ;;  %v6704_v25 = vsel %vm3938_vm11, %v6546_v42, -inf  ;;  %v6674_v57 = vrot.slane %v6673_v60, 1  ;;  %v6678_v14 = vmax.f32 %v6676_v49, %v6677_v21 }
 0x44f   : > { %v6713_v29 = vmax.f32 %v6711_v48, %v6712_v52  ;;  %v6719_v7 = vrot.slane %v6718_v5, 4  ;;  %v6694_v20 = vmax.f32 %v6692_v62, %v6693_v17  ;;  %v6705_v13 = vrot.slane %v6704_v25, 4  ;;  %v7901_v48 = vpop.permute.xlu1 %7900 }
 0x450   : > { %v6699_v16 = vmax.f32 %v6697_v1, %v6698_v59  ;;  %v6654_v53 = vmax.f32 %v6652_v2, %v6653_v54  ;;  %v6679_v0 = vrot.slane %v6678_v14, 2  ;;  %v6739_v46 = vsel %vm3938_vm11, %v6551_v34, -inf  ;;  %v9729_v54 = vld [vmem:[%s13506_s17 + $0x18] sm:$0xff]  }
 0x451   : > { %v6714_v32 = vrot.slane %v6713_v29, 2  ;;  %v6720_v33 = vmax.f32 %v6718_v5, %v6719_v7  ;;  %v6695_v22 = vrot.slane %v6694_v20, 1  ;;  %v6706_v19 = vmax.f32 %v6704_v25, %v6705_v13  ;;  %9560 = vmatprep.subr.bf16.mxu0 %v9729_v54  ;;  %v13928_v5 = vld [vmem:[#allocation53_spill] sm:$0xff] }
 0x452   : > { %v6700_v15 = vrot.slane %v6699_v16, 2  ;;  %v6680_v51 = vmax.f32 %v6678_v14, %v6679_v0  ;;  %v6740_v41 = vrot.slane %v6739_v46, 4  ;;  %v13181_v56 = vmax.f32 %v13135_v10, %v6688_v55  ;;  %v13927_v10 = vld [vmem:[#allocation102_spill] sm:$0xff]  ;;  %9561 = vmatpush3.bf16.msra.mxu0 %v9729_v54 }
 0x453   : > { %v6715_v6 = vmax.f32 %v6713_v29, %v6714_v32  ;;  %v6721_v12 = vrot.slane %v6720_v33, 2  ;;  %v6675_v61 = vmax.f32 %v6673_v60, %v6674_v57  ;;  %v6707_v2 = vrot.slane %v6706_v19, 2 }
 0x454   : > { %v6701_v63 = vmax.f32 %v6699_v16, %v6700_v15  ;;  %v6681_v40 = vrot.slane %v6680_v51, 1  ;;  %v6741_v37 = vmax.f32 %v6739_v46, %v6740_v41  ;;  %v8020_v45 = vsel %vm7655_vm10, %v13116_v28, %v13141_v38 }
 0x455   : > { %v6716_v39 = vrot.slane %v6715_v6, 1  ;;  %v13186_v24 = vmax.f32 %v6720_v33, %v6721_v12  ;;  %v6708_v50 = vmax.f32 %v6706_v19, %v6707_v2  ;;  %v6495_v55 = vadd.f32 %v12958_v4, %v13927_v10 }
 0x456   : > { %v6702_v3 = vrot.slane %v6701_v63, 1  ;;  %v13193_v47 = vmax.f32 %v6694_v20, %v6695_v22  ;;  %v6682_v9 = vmax.f32 %v6680_v51, %v6681_v40  ;;  %v6742_v62 = vrot.slane %v6741_v37, 2 }
 0x457   : > { %v6668_v49 = vmax.f32 %v13129_v26, %v6667_v31  ;;  %v13198_v42 = vmax.f32 %v6715_v6, %v6716_v39  ;;  %v6723_v60 = vrot.slane %v13186_v24, 1  ;;  %v8021_v28 = vsel %vm7657_vm12, %v13133_v23, %v8020_v45 }
 0x458   : > { %v6549_v38 = vmax.f32 %v6495_v55, 0.0  ;;  %v8026_v21 = vsel %vm7653_vm9, %v6682_v9, %v6675_v61  ;;  %v6709_v52 = vrot.slane %v6708_v50, 1  ;;  %v8022_v1 = vsel %vm7659_vm13, %v13152_v35, %v8021_v28 }
 0x459   : > { %v6506_v17 = vadd.f32 %v12977_v44, %v12958_v4  ;;  %v6703_v26 = vmax.f32 %v6701_v63, %v6702_v3  ;;  %v8023_v31 = vsel %vm7661_vm14, %v6654_v53, %v8022_v1  ;;  %v13212_v25 = vsel %vm8160_vm1, %v13928_v5, %v7901_v48  ;;  %v9730_v53 = vld [vmem:[%s13506_s17 + $0x20] sm:$0xff]  }
 0x45a   : > { %v6725_v59 = vsel %vm3938_vm11, %v6549_v38, -inf  ;;  %v6743_v23 = vmax.f32 %v6741_v37, %v6742_v62  ;;  %v8024_v57 = vsel %vm7663_vm15, %v13148_v43, %v8023_v31  ;;  %v6498_v44 = vadd.f32 %v12958_v4, %v12981_v58  ;;  %9562 = vmatprep.subr.bf16.mxu0 %v9730_v53 }
 0x45b   : > { %v6726_v14 = vrot.slane %v6725_v59, 4  ;;  %v6552_v29 = vmax.f32 %v6506_v17, 0.0  ;;  %v8025_v35 = vsel %vm7665_vm0, %v6668_v49, %v8024_v57  ;;  %v6519_v7 = vadd.f32 %v13032_v36, %v12958_v4  ;;  %9563 = vmatpush3.bf16.msra.mxu0 %v9730_v53 }
 0x45c   : > { %v6511_v20 = vadd.f32 %v12958_v4, %v13038_v18  ;;  %v6710_v16 = vmax.f32 %v6708_v50, %v6709_v52  ;;  %8042 = vrot.lane.b32.xlu0 %v8025_v35, %s9806_s22  ;;  %v6522_v43 = vadd.f32 %v13042_v30, %v12958_v4  ;;  %v6550_v0 = vmax.f32 %v6498_v44, 0.0 }
 0x45d   : > { %v6727_v13 = vmax.f32 %v6725_v59, %v6726_v14  ;;  %v6746_v34 = vsel %vm3938_vm11, %v6552_v29, -inf  ;;  %v6555_v32 = vmax.f32 %v6519_v7, 0.0  ;;  %v6744_v33 = vrot.slane %v6743_v23, 1  ;;  %v13929_v7 = vld [vmem:[#allocation68_spill] sm:$0xff] }
 0x45e   : > { %v6747_v58 = vrot.slane %v6746_v34, 4  ;;  %v6553_v36 = vmax.f32 %v6511_v20, 0.0  ;;  %v6556_v18 = vmax.f32 %v6522_v43, 0.0  ;;  %v6514_v15 = vadd.f32 %v12958_v4, %v13047_v8  ;;  %v13238_v8 = vpop.permute.xlu0 %7898 }
 0x45f   : > { %v6728_v22 = vrot.slane %v6727_v13, 2  ;;  %v6732_v46 = vsel %vm3938_vm11, %v6550_v0, -inf  ;;  %v6767_v30 = vsel %vm3938_vm11, %v6555_v32, -inf  ;;  %v8027_v4 = vsel %vm7655_vm10, %v13181_v56, %v8026_v21  ;;  %v6801_v0 = vld [vmem:[%s10661_s29 + $0x50] sm:$0xf] }
 0x460   : > { %v6748_v19 = vmax.f32 %v6746_v34, %v6747_v58  ;;  %v6753_v51 = vsel %vm3938_vm11, %v6553_v36, -inf  ;;  %v6733_v12 = vrot.slane %v6732_v46, 4  ;;  %v6768_v41 = vrot.slane %v6767_v30, 4  ;;  %v6802_v32 = vld [vmem:[%s10661_s29 + $0x54] sm:$0xf] }
 0x461   : > { %v6729_v6 = vmax.f32 %v6727_v13, %v6728_v22  ;;  %v6754_v61 = vrot.slane %v6753_v51, 4  ;;  %v6774_v2 = vsel %vm3938_vm11, %v6556_v18, -inf  ;;  %v6554_v54 = vmax.f32 %v6514_v15, 0.0  ;;  %v9768_v22 = vld [vmem:[%s10661_s29 + $0x4c] sm:$0xf] }
 0x462   : > { %v6749_v63 = vrot.slane %v6748_v19, 2  ;;  %v6734_v40 = vmax.f32 %v6732_v46, %v6733_v12  ;;  %v6769_v39 = vmax.f32 %v6767_v30, %v6768_v41  ;;  %v6724_v3 = vmax.f32 %v13186_v24, %v6723_v60  ;;  %v7903_v17 = vpop.permute.xlu0 %7902  ;;  %v13932_v41 = vld [vmem:[#allocation11_spill] sm:$0xff] }
 0x463   : > { %v6755_v37 = vmax.f32 %v6753_v51, %v6754_v61  ;;  %v6775_v45 = vrot.slane %v6774_v2, 4  ;;  %v6760_v10 = vsel %vm3938_vm11, %v6554_v54, -inf  ;;  %v8028_v55 = vsel %vm7657_vm12, %v13193_v47, %v8027_v4 }
 0x464   : > { %v6750_v50 = vmax.f32 %v6748_v19, %v6749_v63  ;;  %v6730_v9 = vrot.slane %v6729_v6, 1  ;;  %v6735_v62 = vrot.slane %v6734_v40, 2  ;;  %v6770_v49 = vrot.slane %v6769_v39, 2 }
 0x465   : > { %v6756_v48 = vrot.slane %v6755_v37, 2  ;;  %v6776_v56 = vmax.f32 %v6774_v2, %v6775_v45  ;;  %v6761_v38 = vrot.slane %v6760_v10, 4  ;;  %v8029_v21 = vsel %vm7659_vm13, %v6703_v26, %v8028_v55  ;;  %v13935_v45 = vld [vmem:[#allocation86_spill] sm:$0xff] }
 0x466   : > { %v6751_v28 = vrot.slane %v6750_v50, 1  ;;  %v6736_v52 = vmax.f32 %v6734_v40, %v6735_v62  ;;  %v13245_v1 = vmax.f32 %v6769_v39, %v6770_v49  ;;  %v8030_v60 = vsel %vm7661_vm14, %v6710_v16, %v8029_v21  ;;  %v13934_v39 = vld [vmem:[#allocation20_spill] sm:$0xff]  ;;  %v13938_v62 = vld [vmem:[#allocation81_spill] sm:$0xff] }
 0x467   : > { %v6757_v24 = vmax.f32 %v6755_v37, %v6756_v48  ;;  %v13248_v31 = vmax.f32 %v6743_v23, %v6744_v33  ;;  %v6777_v59 = vrot.slane %v6776_v56, 2  ;;  %v6762_v47 = vmax.f32 %v6760_v10, %v6761_v38  ;;  %v6803_v33 = vld [vmem:[%s10661_s29 + $0x58] sm:$0xf] }
 0x468   : > { %v8031_v5 = vsel %vm7663_vm15, %v13198_v42, %v8030_v60  ;;  %v6731_v57 = vmax.f32 %v6729_v6, %v6730_v9  ;;  %v6737_v14 = vrot.slane %v6736_v52, 1  ;;  %v13258_v23 = vsel %vm8160_vm1, %v13014_v11, %v7903_v17  ;;  %v6804_v6 = vld [vmem:[%s10661_s29 + $0x5c] sm:$0xf] }
 0x469   : > { %v6758_v29 = vrot.slane %v6757_v24, 1  ;;  %v8032_v26 = vsel %vm7665_vm0, %v6724_v3, %v8031_v5  ;;  %v13253_v35 = vmax.f32 %v6776_v56, %v6777_v59  ;;  %v6763_v44 = vrot.slane %v6762_v47, 2  ;;  %v13936_v10 = vld [vmem:[#allocation16_spill] sm:$0xff] }
 0x46a   : > { %8044 = vrot.lane.b32.xlu1 %v8032_v26, %s9806_s22  ;;  %v6851_v42 = vrot.slane %v13929_v7, 5  ;;  %v13261_v20 = vmax.f32 %v6750_v50, %v6751_v28  ;;  %v6738_v16 = vmax.f32 %v6736_v52, %v6737_v14  ;;  %v6772_v13 = vrot.slane %v13245_v1, 1 }
 0x46b   : > { %v6852_v34 = vrot.slane %v13929_v7, 6  ;;  %v13265_v43 = vmax.f32 %v6757_v24, %v6758_v29  ;;  %v6779_v53 = vrot.slane %v13253_v35, 1  ;;  %v13268_v58 = vmax.f32 %v6762_v47, %v6763_v44 }
 0x46c   : > { %v6853_v11 = vrot.slane %v13929_v7, 7  ;;  %v13274_v36 = vsel %vm7653_vm9, %v6738_v16, %v6731_v57  ;;  %v13930_v18 = vrot.slane %v13929_v7, 3  ;;  %v13931_v19 = vrot.slane %v13929_v7, 4 }
 0x46d   : > { %v6914_v30 = vmul.f32 %v6851_v42, %v6802_v32  ;;  %v6765_v51 = vrot.slane %v13268_v58, 1  ;;  %v6915_v12 = vmul.f32 %v6852_v34, %v6803_v33  ;;  %v6955_v61 = vrot.slane %v13932_v41, 4 }
 0x46e   : > { %v6912_v15 = vmul.f32 %v9768_v22, %v13930_v18  ;;  %v6913_v46 = vmul.f32 %v13931_v19, %v6801_v0  ;;  %v6956_v63 = vrot.slane %v13932_v41, 5  ;;  %v6916_v2 = vmul.f32 %v6853_v11, %v6804_v6  ;;  %v13941_v19 = vld [vmem:[#allocation89_spill] sm:$0xff] }
 0x46f   : > { %v6957_v54 = vrot.slane %v13932_v41, 6  ;;  %v13933_v4 = vrot.slane %v13932_v41, 3  ;;  %v7080_v37 = vrot.slane %v13934_v39, 1  ;;  %v7018_v3 = vmul.f32 %v6955_v61, %v6802_v32  ;;  %v13942_v41 = vld [vmem:[#allocation91_spill] sm:$0xff] }
 0x470   : > { %v7019_v50 = vmul.f32 %v6956_v63, %v6803_v33  ;;  %v13937_v55 = vrot.slane %v13936_v10, 1  ;;  %v7187_v49 = vrot.slane %v13938_v62, 3  ;;  %v7188_v38 = vrot.slane %v13938_v62, 4  ;;  %v13947_v39 = vld [vmem:[#allocation95_spill] sm:$0xff] }
 0x471   : > { %v7017_v40 = vmul.f32 %v13933_v4, %v6801_v0  ;;  %v7020_v48 = vmul.f32 %v6957_v54, %v6804_v6  ;;  %v7144_v56 = vadd.f32 %v7080_v37, %v6912_v15  ;;  %v7082_v21 = vrot.slane %v7018_v3, 1  ;;  %v13945_v54 = vld [vmem:[#allocation93_spill] sm:$0xff]  ;;  %v13949_v10 = vld [vmem:[#allocation71_spill] sm:$0xff] }
 0x472   : > { %v7143_v9 = vadd.f32 %v13937_v55, %v13935_v45  ;;  %v7083_v52 = vrot.slane %v7019_v50, 1  ;;  %v7189_v24 = vrot.slane %v13938_v62, 5  ;;  %v13939_v60 = vrot.slane %v13938_v62, 1 }
 0x473   : > { %v7081_v28 = vrot.slane %v7017_v40, 1  ;;  %v7084_v59 = vrot.slane %v7020_v48, 1  ;;  %v13940_v5 = vrot.slane %v13938_v62, 2  ;;  %v7250_v14 = vmul.f32 %v7187_v49, %v6802_v32 }
 0x474   : > { %v7248_v17 = vmul.f32 %v9768_v22, %v13939_v60  ;;  %v7146_v29 = vadd.f32 %v7082_v21, %v6914_v30  ;;  %v7147_v26 = vadd.f32 %v7083_v52, %v6915_v12  ;;  %v7251_v44 = vmul.f32 %v7188_v38, %v6803_v33 }
 0x475   : > { %v7145_v47 = vadd.f32 %v7081_v28, %v6913_v46  ;;  %v7249_v57 = vmul.f32 %v13940_v5, %v6801_v0  ;;  %v7252_v7 = vmul.f32 %v7189_v24, %v6804_v6  ;;  %v7148_v42 = vadd.f32 %v7084_v59, %v6916_v2  ;;  %v13944_v46 = vld [vmem:[#allocation15_spill] sm:$0xff]  ;;  %v9769_v28 = vld [vmem:[%s10661_s29 + $0x48] sm:$0xf]  ;;  %v13951_v24 = vld [vmem:[#allocation73_spill] sm:$0xff] }
 0x476   : > { %v7312_v16 = vrot.slane %v7248_v17, 2  ;;  %v7314_v11 = vrot.slane %v7250_v14, 2  ;;  %v7315_v18 = vrot.slane %v7251_v44, 2  ;;  %v13943_v61 = vrot.slane %v13942_v41, 2  ;;  %v13952_v17 = vld [vmem:[#allocation82_spill] sm:$0xff] }
 0x477   : > { %v7313_v34 = vrot.slane %v7249_v57, 2  ;;  %v7316_v15 = vrot.slane %v7252_v7, 2  ;;  %v13946_v4 = vrot.slane %v13945_v54, 2  ;;  %v13948_v30 = vrot.slane %v13947_v39, 2 }
 0x478   : > { %v7373_v63 = vadd.f32 %v13943_v61, %v13941_v19  ;;  %v7376_v37 = vadd.f32 %v7312_v16, %v7144_v56  ;;  %v7378_v2 = vadd.f32 %v7314_v11, %v7146_v29  ;;  %v7379_v50 = vadd.f32 %v7315_v18, %v7147_v26 }
 0x479   : > { %v7374_v40 = vadd.f32 %v13946_v4, %v13944_v46  ;;  %v7375_v12 = vadd.f32 %v13948_v30, %v7143_v9  ;;  %v7377_v3 = vadd.f32 %v7313_v34, %v7145_v47  ;;  %v7380_v45 = vadd.f32 %v7316_v15, %v7148_v42  ;;  %v9731_v47 = vld [vmem:[%s13506_s17 + $0x28] sm:$0xff]  }
 0x47a   : > { %v7418_v55 = vrot.slane %v13949_v10, 1  ;;  %v7419_v62 = vrot.slane %v13949_v10, 2  ;;  %v7420_v49 = vrot.slane %v13949_v10, 3  ;;  %v7421_v48 = vrot.slane %v13949_v10, 4  ;;  %9564 = vmatprep.subr.bf16.mxu0 %v9731_v47 }
 0x47b   : > { %v13950_v38 = vrot.slane %v13949_v10, 7  ;;  %v7480_v52 = vmul.f32 %v9768_v22, %v13949_v10  ;;  %v7541_v60 = vrot.slane %v13951_v24, 3  ;;  %v7542_v59 = vrot.slane %v13952_v17, 3  ;;  %9565 = vmatpush3.bf16.msra.mxu0 %v9731_v47  ;;  %v9770_v10 = vld [vmem:[%s10661_s29 + $0x6c] sm:$0xf]  ;;  %v13956_v24 = vld [vmem:[#allocation21_spill] sm:$0xff] }
 0x47c   : > { %v7481_v9 = vmul.f32 %v7418_v55, %v6801_v0  ;;  %v7482_v56 = vmul.f32 %v7419_v62, %v6802_v32  ;;  %v7483_v5 = vmul.f32 %v7420_v49, %v6803_v33  ;;  %v7484_v57 = vmul.f32 %v7421_v48, %v6804_v6  ;;  %v6811_v49 = vld [vmem:[%s10661_s29 + $0x78] sm:$0xf]  ;;  %v6812_v48 = vld [vmem:[%s10661_s29 + $0x7c] sm:$0xf] }
 0x47d   : > { %v7479_v21 = vmul.f32 %v9769_v28, %v13950_v38  ;;  %v7544_v29 = vrot.slane %v7480_v52, 3  ;;  %v7605_v7 = vadd.f32 %v7541_v60, %v7373_v63  ;;  %v7606_v42 = vadd.f32 %v7542_v59, %v7374_v40 }
 0x47e   : > { %v7545_v26 = vrot.slane %v7481_v9, 3  ;;  %v7546_v44 = vrot.slane %v7482_v56, 3  ;;  %v7547_v22 = vrot.slane %v7483_v5, 3  ;;  %v7548_v0 = vrot.slane %v7484_v57, 3  ;;  %v13958_v57 = vld [vmem:[#allocation30_spill] sm:$0xff] }
 0x47f   : > { %v7543_v14 = vrot.slane %v7479_v21, 3  ;;  %v7608_v16 = vadd.f32 %v7544_v29, %v7376_v37  ;;  %v6766_v34 = vmax.f32 %v13268_v58, %v6765_v51  ;;  %v8112_v33 = vrot.slane %v7606_v42, 7 }
 0x480   : > { %v7609_v11 = vadd.f32 %v7545_v26, %v7377_v3  ;;  %v7610_v18 = vadd.f32 %v7546_v44, %v7378_v2  ;;  %v7611_v6 = vadd.f32 %v7547_v22, %v7379_v50  ;;  %v7612_v15 = vadd.f32 %v7548_v0, %v7380_v45  ;;  %v13347_v50 = vld [vmem:[%s10661_s29 + $0x70] sm:$0xf]  ;;  %v13960_v44 = vld [vmem:[#allocation29_spill] sm:$0xff]  ;;  %v13962_v22 = vld [vmem:[#allocation96_spill] sm:$0xff] }
 0x481   : > { %v7607_v32 = vadd.f32 %v7543_v14, %v7375_v12  ;;  %v8116_v41 = vrot.slane %v7608_v16, 5  ;;  %v8113_v61 = vsel %vm7653_vm9, %v8112_v33, %v7605_v7  ;;  %v8034_v54 = vsel %vm7655_vm10, %v13248_v31, %v13274_v36  ;;  %v13953_v31 = vld [vmem:[#allocation28_spill] sm:$0xff]  ;;  %v13959_v26 = vld [vmem:[#allocation31_spill] sm:$0xff] }
 0x482   : > { %v8118_v63 = vrot.slane %v7609_v11, 4  ;;  %v8120_v46 = vrot.slane %v7610_v18, 3  ;;  %v6773_v58 = vmax.f32 %v13245_v1, %v6772_v13  ;;  %v8122_v4 = vrot.slane %v7611_v6, 2 }
 0x483   : > { %v8114_v19 = vrot.slane %v7607_v32, 6  ;;  %v8035_v40 = vsel %vm7657_vm12, %v13261_v20, %v8034_v54  ;;  %v8124_v30 = vrot.slane %v7612_v15, 1  ;;  %v6858_v36 = vrot.slane %v13953_v31, 5 }
 0x484   : > { %v8036_v12 = vsel %vm7659_vm13, %v13265_v43, %v8035_v40  ;;  %v6780_v1 = vmax.f32 %v13253_v35, %v6779_v53  ;;  %v6859_v20 = vrot.slane %v13953_v31, 6  ;;  %v13350_v43 = vld [vmem:[%s10661_s29 + $0x74] sm:$0xf]  ;;  %v6860_v45 = vrot.slane %v13953_v31, 7 }
 0x485   : > { %v8115_v51 = vsel %vm7655_vm10, %v8114_v19, %v8113_v61  ;;  %v8037_v13 = vsel %vm7661_vm14, %v6766_v34, %v8036_v12  ;;  %v13954_v55 = vrot.slane %v13953_v31, 3  ;;  %v13955_v28 = vrot.slane %v13953_v31, 4 }
 0x486   : > { %v8117_v39 = vsel %vm7657_vm12, %v8116_v41, %v8115_v51  ;;  %v8038_v2 = vsel %vm7663_vm15, %v6773_v58, %v8037_v13  ;;  %v6922_v21 = vmul.f32 %v6858_v36, %v13350_v43  ;;  %v6923_v9 = vmul.f32 %v6859_v20, %v6811_v49  ;;  %v13965_v13 = vld [vmem:[#allocation33_spill] sm:$0xff]  ;;  %v13966_v20 = vld [vmem:[#allocation100_spill] sm:$0xff] }
 0x487   : > { %v8119_v37 = vsel %vm7659_vm13, %v8118_v63, %v8117_v39  ;;  %v6920_v62 = vmul.f32 %v9770_v10, %v13954_v55  ;;  %v8039_v53 = vsel %vm7665_vm0, %v6780_v1, %v8038_v2  ;;  %v6921_v38 = vmul.f32 %v13955_v28, %v13347_v50  ;;  %v13969_v55 = vld [vmem:[#allocation104_spill] sm:$0xff] }
 0x488   : > { %v8121_v3 = vsel %vm7661_vm14, %v8120_v46, %v8119_v37  ;;  %8046 = vrot.lane.b32.xlu0 %v8039_v53, %s9806_s22  ;;  %v6924_v56 = vmul.f32 %v6860_v45, %v6812_v48  ;;  %v6962_v60 = vrot.slane %v13956_v24, 4  ;;  %v6963_v17 = vrot.slane %v13956_v24, 5  ;;  %v13968_v45 = vld [vmem:[#allocation34_spill] sm:$0xff] }
 0x489   : > { %v8123_v35 = vsel %vm7663_vm15, %v8122_v4, %v8121_v3  ;;  %v6964_v59 = vrot.slane %v13956_v24, 6  ;;  %v13957_v47 = vrot.slane %v13956_v24, 3  ;;  %v7088_v14 = vrot.slane %v13958_v57, 1  ;;  %v13971_v53 = vld [vmem:[#allocation106_spill] sm:$0xff] }
 0x48a   : > { %v8125_v52 = vsel %vm7665_vm0, %v8124_v30, %v8123_v35  ;;  %v7026_v29 = vmul.f32 %v6962_v60, %v13350_v43  ;;  %v13961_v7 = vrot.slane %v13960_v44, 1  ;;  %v7194_v0 = vrot.slane %v13962_v22, 3  ;;  %v13973_v60 = vld [vmem:[#allocation83_spill] sm:$0xff] }
 0x48b   : > { %8144 = vrot.lane.b32.xlu1 %v8125_v52, %s9801_s20  ;;  %v7025_v5 = vmul.f32 %v13957_v47, %v13347_v50  ;;  %v7195_v32 = vrot.slane %v13962_v22, 4  ;;  %v7027_v16 = vmul.f32 %v6963_v17, %v6811_v49  ;;  %v7028_v34 = vmul.f32 %v6964_v59, %v6812_v48  ;;  %v7969_v47 = vpop.permute.xlu1 %7968 }
 0x48c   : > { %v7151_v42 = vadd.f32 %v13961_v7, %v13959_v26  ;;  %v7152_v18 = vadd.f32 %v7088_v14, %v6920_v62  ;;  %v7090_v33 = vrot.slane %v7026_v29, 1  ;;  %v7196_v6 = vrot.slane %v13962_v22, 5  ;;  %v9771_v14 = vld [vmem:[%s10661_s29 + $0x68] sm:$0xf] }
 0x48d   : > { %v7089_v11 = vrot.slane %v7025_v5, 1  ;;  %v13963_v15 = vrot.slane %v13962_v22, 1  ;;  %v13964_v41 = vrot.slane %v13962_v22, 2  ;;  %v7091_v63 = vrot.slane %v7027_v16, 1  ;;  %v13975_v22 = vld [vmem:[#allocation87_spill] sm:$0xff] }
 0x48e   : > { %v7092_v46 = vrot.slane %v7028_v34, 1  ;;  %v7258_v58 = vmul.f32 %v7194_v0, %v13350_v43  ;;  %v7154_v51 = vadd.f32 %v7090_v33, %v6922_v21  ;;  %v7259_v4 = vmul.f32 %v7195_v32, %v6811_v49  ;;  %v13976_v32 = vld [vmem:[#allocation88_spill] sm:$0xff] }
 0x48f   : > { %v7256_v19 = vmul.f32 %v9770_v10, %v13963_v15  ;;  %v7257_v61 = vmul.f32 %v13964_v41, %v13347_v50  ;;  %v7153_v54 = vadd.f32 %v7089_v11, %v6921_v38  ;;  %v7260_v40 = vmul.f32 %v7196_v6, %v6812_v48 }
 0x490   : > { %v7155_v30 = vadd.f32 %v7091_v63, %v6923_v9  ;;  %v7156_v12 = vadd.f32 %v7092_v46, %v6924_v56  ;;  %v7322_v36 = vrot.slane %v7258_v58, 2  ;;  %v7323_v37 = vrot.slane %v7259_v4, 2 }
 0x491   : > { %v7320_v39 = vrot.slane %v7256_v19, 2  ;;  %v7321_v31 = vrot.slane %v7257_v61, 2  ;;  %v7324_v1 = vrot.slane %v7260_v40, 2  ;;  %v13967_v3 = vrot.slane %v13966_v20, 2 }
 0x492   : > { %v13970_v62 = vrot.slane %v13969_v55, 2  ;;  %v13972_v28 = vrot.slane %v13971_v53, 2  ;;  %v7386_v9 = vadd.f32 %v7322_v36, %v7154_v51  ;;  %v7387_v56 = vadd.f32 %v7323_v37, %v7155_v30 }
 0x493   : > { %v7381_v2 = vadd.f32 %v13967_v3, %v13965_v13  ;;  %v7384_v21 = vadd.f32 %v7320_v39, %v7152_v18  ;;  %v7385_v52 = vadd.f32 %v7321_v31, %v7153_v54  ;;  %v7388_v24 = vadd.f32 %v7324_v1, %v7156_v12  ;;  %v7973_v54 = vpop.permute.xlu1 %7972 }
 0x494   : > { %v7382_v35 = vadd.f32 %v13970_v62, %v13968_v45  ;;  %v7383_v38 = vadd.f32 %v13972_v28, %v7151_v42  ;;  %v7425_v17 = vrot.slane %v13973_v60, 1  ;;  %v7426_v59 = vrot.slane %v13973_v60, 2  ;;  %v7971_v45 = vpop.permute.xlu0 %7970  ;;  %v13977_v62 = vld [vmem:[#allocation97_spill] sm:$0xff] }
 0x495   : > { %v7427_v5 = vrot.slane %v13973_v60, 3  ;;  %v7428_v57 = vrot.slane %v13973_v60, 4  ;;  %v13974_v29 = vrot.slane %v13973_v60, 7  ;;  %v7488_v44 = vmul.f32 %v9770_v10, %v13973_v60  ;;  %v13979_v28 = vld [vmem:[#allocation105_spill] sm:$0xff]  ;;  %v13982_v60 = vld [vmem:[#allocation55_spill] sm:$0xff] }
 0x496   : > { %v7489_v7 = vmul.f32 %v7425_v17, %v13347_v50  ;;  %v7490_v42 = vmul.f32 %v7426_v59, %v13350_v43  ;;  %v7549_v0 = vrot.slane %v13975_v22, 3  ;;  %v7550_v16 = vrot.slane %v13976_v32, 3 }
 0x497   : > { %v7487_v26 = vmul.f32 %v9771_v14, %v13974_v29  ;;  %v7491_v34 = vmul.f32 %v7427_v5, %v6811_v49  ;;  %v7492_v11 = vmul.f32 %v7428_v57, %v6812_v48  ;;  %v7552_v33 = vrot.slane %v7488_v44, 3 }
 0x498   : > { %v7553_v6 = vrot.slane %v7489_v7, 3  ;;  %v7554_v15 = vrot.slane %v7490_v42, 3  ;;  %v7613_v19 = vadd.f32 %v7549_v0, %v7381_v2  ;;  %v7614_v41 = vadd.f32 %v7550_v16, %v7382_v35  ;;  %v13978_v35 = vld [vmem:[#allocation80_spill] sm:$0xff] }
 0x499   : > { %v7551_v18 = vrot.slane %v7487_v26, 3  ;;  %v7555_v61 = vrot.slane %v7491_v34, 3  ;;  %v7556_v63 = vrot.slane %v7492_v11, 3  ;;  %v7616_v10 = vadd.f32 %v7552_v33, %v7384_v21  ;;  %v13983_v26 = vld [vmem:[#allocation94_spill] sm:$0xff]  ;;  %v8914_v33 = vld [vmem:[%s13507_s18] ss:$0 sm:$0xff] }
 0x49a   : > { %v7617_v50 = vadd.f32 %v7553_v6, %v7385_v52  ;;  %v7618_v43 = vadd.f32 %v7554_v15, %v7386_v9  ;;  %v8126_v58 = vrot.slane %v7614_v41, 7  ;;  %v8168_v12 = vsel %vm8165_vm2, %v13212_v25, %v7973_v54  ;;  %v13980_v52 = vld [vmem:[#allocation98_spill] sm:$0xff] }
 0x49b   : > { %v7615_v46 = vadd.f32 %v7551_v18, %v7383_v38  ;;  %v7619_v51 = vadd.f32 %v7555_v61, %v7387_v56  ;;  %v7620_v4 = vadd.f32 %v7556_v63, %v7388_v24  ;;  %v8130_v49 = vrot.slane %v7616_v10, 5  ;;  %v13981_v9 = vld [vmem:[#allocation90_spill] sm:$0xff] }
 0x49c   : > { %v8127_v48 = vsel %vm7653_vm9, %v8126_v58, %v7613_v19  ;;  %v8132_v39 = vrot.slane %v7617_v50, 4  ;;  %v8134_v30 = vrot.slane %v7618_v43, 3  ;;  %v8152_v53 = vsel %vm1964_vm7, %v13978_v35, %v13977_v62 }
 0x49d   : > { %v8128_v40 = vrot.slane %v7615_v46, 6  ;;  %v8136_v36 = vrot.slane %v7619_v51, 2  ;;  %v8138_v1 = vrot.slane %v7620_v4, 1  ;;  %v8156_v38 = vsel %vm3938_vm11, %v8152_v53, %v13979_v28 }
 0x49e   : > { %v8153_v56 = vsel %vm1964_vm7, %v13981_v9, %v13980_v52  ;;  %v8161_v24 = vsel %vm8160_vm1, %v8156_v38, %v13178_v27  ;;  %v13984_v27 = vld [vmem:[#allocation99_spill] sm:$0xff]  ;;  %vm8340_vm7 = vcmask 916480  }
 0x49f   : > { %v8129_v31 = vsel %vm7655_vm10, %v8128_v40, %v8127_v48  ;;  %v8157_v17 = vsel %vm3938_vm11, %v8153_v56, %v13982_v60 }
 0x4a0   : > { %v8131_v37 = vsel %vm7657_vm12, %v8130_v49, %v8129_v31  ;;  %v8162_v59 = vsel %vm8160_vm1, %v8157_v17, %v13238_v8 }
 0x4a1   : > { %v8133_v13 = vsel %vm7659_vm13, %v8132_v39, %v8131_v37  ;;  %v8167_v57 = vsel %vm8165_vm2, %v8162_v59, %v7971_v45 }
 0x4a2   : > { %v8135_v20 = vsel %vm7661_vm14, %v8134_v30, %v8133_v13  ;;  %v8313_v13 = vlaneseq }
 0x4a3   : > { %v8137_v3 = vsel %vm7663_vm15, %v8136_v36, %v8135_v20 }
 0x4a4   : > { %v8139_v2 = vsel %vm7665_vm0, %v8138_v1, %v8137_v3  ;;  %v8314_v20 = vand.u32 127, %v8313_v13 }
 0x4a5   : > { %8146 = vrot.lane.b32.xlu0 %v8139_v2, %s9801_s20 }
 0x4a6   : > { %vm8315_vm6 = vcmp.lt.s32.totalorder %v8314_v20, 2 }
 0x4a7   : > { %v7975_v55 = vpop.permute.xlu0 %7974 }
 0x4a8   : > { %v8169_v25 = vsel %vm8165_vm2, %v13258_v23, %v7975_v55  ;;  %v8166_v23 = vsel %vm8165_vm2, %v8161_v24, %v7969_v47 }
 0x4bb   : > { %v8041_v21 = vpop.permute.xlu1 %8040 }
 0x4bc   : > { %v8171_v5 = vsel %vm8170_vm3, %v8166_v23, %v8041_v21 }
 0x4bd   : > { %v13439_v44 = vsel %vm8175_vm4, %v8171_v5, %v13983_v26 }
 0x4ce   : > { %v8043_v14 = vpop.permute.xlu0 %8042 }
 0x4cf   : > { %v8172_v29 = vsel %vm8170_vm3, %v8167_v57, %v8043_v14 }
 0x4d0   : > { %v13443_v7 = vsel %vm8175_vm4, %v8172_v29, %v13984_v27 }
 0x4d1   : > { %v8180_v8 = vpack.c.bf16 %v13443_v7, %v13439_v44 }
 0x4d3   : > { %9566 = vmatprep.mubr.msk.bf16.mxu0 %vm8237_vm5, %v8180_v8 }
 0x4dc   : > { %v8045_v47 = vpop.permute.xlu1 %8044 }
 0x4dd   : > { %v8173_v42 = vsel %vm8170_vm3, %v8168_v12, %v8045_v47 }
 0x4fa   : > { %v8047_v22 = vpop.permute.xlu0 %8046 }
 0x4fb   : > { %v8174_v0 = vsel %vm8170_vm3, %v8169_v25, %v8047_v22 }
 0x4fd   : > { %v8145_v32 = vpop.permute.xlu1 %8144 }
 0x4fe   : > { %v13451_v34 = vsel %vm8175_vm4, %v8173_v42, %v8145_v32 }
 0x517   : > { %v8147_v16 = vpop.permute.xlu0 %8146 }
 0x518   : > { %v13454_v11 = vsel %vm8175_vm4, %v8174_v0, %v8147_v16 }
 0x519   : > { %v8181_v18 = vpack.c.bf16 %v13454_v11, %v13451_v34 }
 0x51b   : > { %9567 = vmatmul.mubr.msk.bf16.vlgmr.msra.gmra.mrb[192].mxu0 %vm8237_vm5, %v8181_v18 }
 0x5ee   : > { %v9568_v6 = vpop.f32.mrb[192].mxu0 }
 0x5ef   : > { %v8287_v15 = vadd.f32 %v9568_v6, %v8914_v33  ;;  %v8278_v19 = vpop.f32.mrb[193].mxu0 }
 0x5f0   : > { %v8279_v41 = vadd.f32 %v8914_v33, %v8278_v19  ;;  %v9569_v61 = vpop.f32.mrb[194].mxu0 }
 0x5f1   : > { %v8295_v63 = vsub.f32 0.0, %v8287_v15  ;;  %v8290_v46 = vadd.f32 %v9569_v61, %v8914_v33  ;;  %v8281_v10 = vpop.f32.mrb[195].mxu0 }
 0x5f2   : > { %v8293_v54 = vsub.f32 0.0, %v8279_v41  ;;  %v8282_v50 = vadd.f32 %v8914_v33, %v8281_v10 }
 0x5f3   : > { %v8301_v43 = vmul.f32 1.442695, %v8295_v63  ;;  %v8296_v58 = vsub.f32 0.0, %v8290_v46 }
 0x5f4   : > { %v8297_v51 = vmul.f32 1.442695, %v8293_v54  ;;  %v8294_v4 = vsub.f32 0.0, %v8282_v50 }
 0x5f5   : > { %9732 = vpow2.f32 %v8301_v43  ;;  %v8303_v40 = vmul.f32 1.442695, %v8296_v58 }
 0x5f6   : > { %9734 = vpow2.f32 %v8297_v51  ;;  %v8299_v49 = vmul.f32 1.442695, %v8294_v4 }
 0x5f7   : > { %9736 = vpow2.f32 %v8303_v40 }
 0x5f8   : > { %9738 = vpow2.f32 %v8299_v49 }
 0x5ff   : > { %v9733_v48 = vpop.eup %9732 }
 0x600   : > { %v9735_v39 = vpop.eup %9734  ;;  %v8307_v30 = vadd.f32 1.0, %v9733_v48 }
 0x601   : > { %v9737_v12 = vpop.eup %9736  ;;  %v8305_v31 = vadd.f32 1.0, %v9735_v39 }
 0x602   : > { %v9739_v36 = vpop.eup %9738  ;;  %v8308_v37 = vadd.f32 1.0, %v9737_v12 }
 0x603   : > { %9740 = vrcp.f32 %v8305_v31  ;;  %v8306_v1 = vadd.f32 1.0, %v9739_v36 }
 0x604   : > { %9742 = vrcp.f32 %v8307_v30 }
 0x605   : > { %9744 = vrcp.f32 %v8306_v1 }
 0x606   : > { %9746 = vrcp.f32 %v8308_v37 }
 0x60d   : > { %v9741_v3 = vpop.eup %9740 }
 0x60e   : > { %v9743_v2 = vpop.eup %9742  ;;  %v8316_v45 = vsel %vm8315_vm6, %v9741_v3, %v8279_v41 }
 0x60f   : > { %v9745_v55 = vpop.eup %9744  ;;  %8324 = vrot.lane.b32.xlu1 %v8316_v45, %s9807_s3  ;;  %v8318_v35 = vsel %vm8315_vm6, %v9743_v2, %v8287_v15 }
 0x610   : > { %v8317_v25 = vsel %vm8315_vm6, %v9745_v55, %v8282_v50  ;;  %v9747_v62 = vpop.eup %9746 }
 0x611   : > { %8326 = vrot.lane.b32.xlu0 %v8317_v25, %s9807_s3  ;;  %v8319_v53 = vsel %vm8315_vm6, %v9747_v62, %v8290_v46 }
 0x613   : > { %8328 = vrot.lane.b32.xlu1 %v8318_v35, %s9807_s3 }
 0x615   : > { %8330 = vrot.lane.b32.xlu0 %v8319_v53, %s9807_s3 }
 0x681   : > { %v8325_v28 = vpop.permute.xlu1 %8324 }
 0x682   : > { %v8336_v38 = vsel %vm8237_vm5, %v13439_v44, %v8325_v28 }
 0x683   : > { %v8341_v21 = vsel %vm8340_vm7, %v8336_v38, 0.0  ;;  %v8327_v52 = vpop.permute.xlu0 %8326 }
 0x684   : > { %8345 = vst [vmem:[%s1571_s0] sm:$0xff] %v8341_v21  ;;  %v8337_v9 = vsel %vm8237_vm5, %v13443_v7, %v8327_v52 }
 0x685   : > { %v8342_v56 = vsel %vm8340_vm7, %v8337_v9, 0.0  ;;  %v8329_v24 = vpop.permute.xlu1 %8328 }
 0x686   : > { %8346 = vst [vmem:[%s1571_s0 + $0x8] sm:$0xff] %v8342_v56  ;;  %v8338_v60 = vsel %vm8237_vm5, %v13451_v34, %v8329_v24 }
 0x687   : > { %v8343_v17 = vsel %vm8340_vm7, %v8338_v60, 0.0  ;;  %v8331_v23 = vpop.permute.xlu0 %8330 }
 0x688   : > { %8347 = vst [vmem:[%s1571_s0 + $0x10] sm:$0xff] %v8343_v17  ;;  %v8339_v59 = vsel %vm8237_vm5, %v13454_v11, %v8331_v23 }
 0x689   : > { %v8344_v5 = vsel %vm8340_vm7, %v8339_v59, 0.0 }
 0x68a   : > { %8348 = vst [vmem:[%s1571_s0 + $0x18] sm:$0xff] %v8344_v5 }
 0x68b PF: > { %p26_p10 = scmp.ge.s32.totalorder %s9925_s1, 4   ;;  %s13985_s0 = smov %s9790_s30 }
 0x68c   : > { %s13986_s30 = smov %s9934_s23  ;;  %s13987_s20 = smov %s9925_s1 }
 0x68d   :  { %28 = sbr.rel (!%p26_p10) target bundleno = 7 (0x7), region = 291 }

</bundles_post_ra>
